<compile_context>
chip_gen: v7x
topology: tpu7x:2x2x1
jax: 0.10.0
libtpu: 0.0.40
codegen_flags: <defaults>
</compile_context>

<pallas_src>
import math

import jax
import jax.numpy as jnp
from jax.experimental import pallas as pl
from jax.experimental.pallas import tpu as pltpu

BN_EPS = 1e-3
VMEM_LIMIT = 32 * 1024 * 1024


def _round_up(x, m):
    return (x + m - 1) // m * m


# ----------------------------------------------------------------------------
# Kernel 1: weight-resident matmul + bias + ReLU
#   (1x1 convs and the im2col'd stride-2 3x3 convs)
# ----------------------------------------------------------------------------
def _matmul_bias_relu_kernel(x_ref, w_ref, b_ref, o_ref):
    acc = jnp.dot(x_ref[...], w_ref[...], preferred_element_type=jnp.float32)
    o_ref[...] = jnp.maximum(acc + b_ref[...], 0.0).astype(o_ref.dtype)


def matmul_bias_relu(x2d, w2d, bias, out_dtype=jnp.float32, tm_max=512):
    """relu(x2d @ w2d + bias).  x2d:(M,K) bf16, w2d:(K,N) bf16 (BN folded),
    bias:(1,N) f32.  Full-K / full-N blocks (weight stays resident in VMEM)."""
    m, k = x2d.shape
    _, n = w2d.shape
    tm = m if m <= tm_max else tm_max          # tm_max is a multiple of 8
    return pl.pallas_call(
        _matmul_bias_relu_kernel,
        out_shape=jax.ShapeDtypeStruct((m, n), out_dtype),
        grid=(pl.cdiv(m, tm),),
        in_specs=[
            pl.BlockSpec((tm, k), lambda i: (i, 0)),
            pl.BlockSpec((k, n), lambda i: (0, 0)),     # resident weight
            pl.BlockSpec((1, n), lambda i: (0, 0)),     # resident bias
        ],
        out_specs=pl.BlockSpec((tm, n), lambda i: (i, 0)),
        compiler_params=pltpu.CompilerParams(
            dimension_semantics=("parallel",),
            vmem_limit_bytes=VMEM_LIMIT,
        ),
    )(x2d.astype(jnp.bfloat16), w2d.astype(jnp.bfloat16), bias.astype(jnp.float32))


# ----------------------------------------------------------------------------
# Kernel 2: 1-D (1x7 / 7x1) conv + bias + ReLU, activation block resident,
#           one big MXU dot per tap (static 7-tap unroll, no im2col).
# ----------------------------------------------------------------------------
def _axis_conv_kernel(a_ref, w_ref, b_ref, o_ref, acc_ref):
    # a_ref:(Sp,tm,C) resident; w_ref:(T,C,Co); b_ref:(1,1,Co);
    # o_ref/acc_ref:(S_out,tm,Co).
    s_out, tm, cop = o_ref.shape
    cp = a_ref.shape[-1]
    t_taps = w_ref.shape[0]
    for t in range(t_taps):                              # static unroll over taps
        slab = a_ref[t:t + s_out, :, :]                  # (s_out, tm, cp)
        contrib = jnp.dot(slab.reshape(s_out * tm, cp), w_ref[t],
                          preferred_element_type=jnp.float32)
        contrib = contrib.reshape(s_out, tm, cop)
        if t == 0:
            acc_ref[...] = contrib
        else:
            acc_ref[...] += contrib
    o_ref[...] = jnp.maximum(acc_ref[...] + b_ref[...], 0.0).astype(o_ref.dtype)


def axis_conv_bias_relu(a, w_taps, bias, *, pad, out_dtype=jnp.bfloat16, tm_max=256):
    """Stride-1 conv over the leading axis of a:(S, M, C).  w_taps:(T,C,Co) bf16
    (BN folded), bias:(1,1,Co) f32.  Output: (S_out, M, Co)."""
    s_dim, m, c = a.shape
    t_taps, _, cop = w_taps.shape
    s_out = s_dim + 2 * pad - (t_taps - 1)
    mp = _round_up(m, 8)                                  # keep sublane dim 8-aligned
    a = jnp.pad(a.astype(jnp.bfloat16), ((pad, pad), (0, mp - m), (0, 0)))
    sp = s_dim + 2 * pad
    tm = mp if mp <= tm_max else tm_max
    out = pl.pallas_call(
        _axis_conv_kernel,
        out_shape=jax.ShapeDtypeStruct((s_out, mp, cop), out_dtype),
        grid=(pl.cdiv(mp, tm),),
        in_specs=[
            pl.BlockSpec((sp, tm, c), lambda i: (0, i, 0)),
            pl.BlockSpec((t_taps, c, cop), lambda i: (0, 0, 0)),   # resident weights
            pl.BlockSpec((1, 1, cop), lambda i: (0, 0, 0)),        # resident bias
        ],
        out_specs=pl.BlockSpec((s_out, tm, cop), lambda i: (0, i, 0)),
        scratch_shapes=[pltpu.VMEM((s_out, tm, cop), jnp.float32)],
        compiler_params=pltpu.CompilerParams(
            dimension_semantics=("parallel",),
            vmem_limit_bytes=VMEM_LIMIT,
        ),
    )(a, w_taps.astype(jnp.bfloat16), bias.astype(jnp.float32))
    return out[:, :m, :]


# ----------------------------------------------------------------------------
# Kernel 3: maxpool 3x3 stride 2 -- separable max, no strided ref indexing.
# ----------------------------------------------------------------------------
def _maxpool3x3s2_kernel(x_ref, o_ref):
    ho, wo = o_ref.shape[1], o_ref.shape[2]
    x = x_ref[0]                                          # (h, w, c)
    # 3-tap max along H (leading dim, stride-1 slices only).
    mh = jnp.maximum(jnp.maximum(x[:-2], x[1:-1]), x[2:])   # (h-2, w, c)
    rows = mh.shape[0]
    need = 2 * ho
    if rows < need:                                       # pad rows never selected
        mh = jnp.concatenate([mh] + [mh[-1:]] * (need - rows), axis=0)
    elif rows > need:
        mh = mh[:need]
    # Even-row subsample via leading-dim reshape (layout-free).
    mh = mh.reshape(ho, 2, mh.shape[1], mh.shape[2])[:, 0]  # (ho, w, c)
    # 3-tap max + stride-2 subsample along W via a small static column loop.
    cols = []
    for j in range(wo):
        cols.append(jnp.maximum(jnp.maximum(mh[:, 2 * j, :], mh[:, 2 * j + 1, :]),
                                mh[:, 2 * j + 2, :]))
    o_ref[0] = jnp.stack(cols, axis=1).astype(o_ref.dtype)


def maxpool3x3s2(x_nhwc):
    n, h, w, c = x_nhwc.shape
    ho = (h - 3) // 2 + 1
    wo = (w - 3) // 2 + 1
    return pl.pallas_call(
        _maxpool3x3s2_kernel,
        out_shape=jax.ShapeDtypeStruct((n, ho, wo, c), x_nhwc.dtype),
        grid=(n,),
        in_specs=[pl.BlockSpec((1, h, w, c), lambda i: (i, 0, 0, 0))],
        out_specs=pl.BlockSpec((1, ho, wo, c), lambda i: (i, 0, 0, 0)),
        compiler_params=pltpu.CompilerParams(
            dimension_semantics=("parallel",),
            vmem_limit_bytes=VMEM_LIMIT,
        ),
    )(x_nhwc)


# ----------------------------------------------------------------------------
# Glue: BN folding, weight packing, im2col for the stride-2 3x3 convs
# ----------------------------------------------------------------------------
def _fold_bn(p):
    scale = p["gamma"] / jnp.sqrt(p["var"] + BN_EPS)
    bias = p["beta"] - p["mean"] * scale
    return scale, bias


def _matmul_weights(p):
    """torch (Cout,Cin,kh,kw) -> (kh*kw*Cin, Cout) bf16 with BN scale folded in,
    plus (1, Cout) f32 bias.  No channel padding."""
    cout, cin, kh, kw = p["w"].shape
    scale, bias = _fold_bn(p)
    wf = p["w"] * scale[:, None, None, None]
    w2d = jnp.transpose(wf, (2, 3, 1, 0)).reshape(kh * kw * cin, cout)
    return w2d.astype(jnp.bfloat16), bias.reshape(1, cout).astype(jnp.float32)


def _axis_conv_weights(p):
    """torch (Cout,Cin,kh,kw) with kh==1 or kw==1 -> (T, Cin, Cout) bf16 per-tap
    weights (BN folded) + (1,1,Cout) f32 bias."""
    cout, cin, kh, kw = p["w"].shape
    scale, bias = _fold_bn(p)
    wf = p["w"] * scale[:, None, None, None]
    wt = jnp.transpose(wf, (2, 3, 1, 0)).reshape(kh * kw, cin, cout)
    return wt.astype(jnp.bfloat16), bias.reshape(1, 1, cout).astype(jnp.float32)


def _im2col_s2(x_nhwc, kh, kw, stride):
    n, h, w, c = x_nhwc.shape
    ho = (h - kh) // stride + 1
    wo = (w - kw) // stride + 1
    taps = [x_nhwc[:, i:i + stride * (ho - 1) + 1:stride,
                   j:j + stride * (wo - 1) + 1:stride, :]
            for i in range(kh) for j in range(kw)]
    patches = jnp.stack(taps, axis=3).reshape(n * ho * wo, kh * kw * c)
    return patches, (ho, wo)


# ----------------------------------------------------------------------------
# InceptionD forward (public interface: NCHW in, NCHW out, like torch.cat dim=1)
# ----------------------------------------------------------------------------
def inception_d_forward(x_nchw, params):
    n, cin, h, w = x_nchw.shape
    x_nhwc = jnp.transpose(x_nchw, (0, 2, 3, 1)).astype(jnp.float32)
    x2d = x_nhwc.astype(jnp.bfloat16).reshape(n * h * w, cin)   # single bf16 copy of x

    # ---- fused 1x1 reduces for both branches: one pass over x ----
    w3a, b3a = _matmul_weights(params["branch3x3_1"])           # (cin, 192)
    w7a, b7a = _matmul_weights(params["branch7x7x3_1"])         # (cin, 192)
    w1 = jnp.concatenate([w3a, w7a], axis=1)                    # (cin, 384)
    b1 = jnp.concatenate([b3a, b7a], axis=1)                    # (1, 384)
    y = matmul_bias_relu(x2d, w1, b1, out_dtype=jnp.bfloat16)   # (n*h*w, 384)
    c3 = w3a.shape[1]
    c7 = w7a.shape[1]
    y3 = y[:, :c3].reshape(n, h, w, c3)                         # (n,h,w,192) bf16
    y7 = y[:, c3:]                                              # (n*h*w, 192) bf16

    # ---- branch3x3: 3x3 s2 conv as one weight-resident matmul ----
    w2, b2 = _matmul_weights(params["branch3x3_2"])             # (9*192, 320)
    patches, (ho, wo) = _im2col_s2(y3, 3, 3, 2)
    b3 = matmul_bias_relu(patches, w2, b2, out_dtype=jnp.float32)
    b3 = b3.reshape(n, ho, wo, w2.shape[1])

    # ---- branch7x7x3: 1x7 -> 7x1 (axis convs) -> 3x3 s2 ----
    y = jnp.transpose(y7.reshape(n, h, w, c7), (2, 0, 1, 3)).reshape(w, n * h, c7)
    wt, bt = _axis_conv_weights(params["branch7x7x3_2"])
    y = axis_conv_bias_relu(y, wt, bt, pad=3)                   # (w, n*h, 192)
    y = jnp.transpose(y.reshape(w, n, h, -1), (2, 1, 0, 3)).reshape(h, n * w, -1)
    wt, bt = _axis_conv_weights(params["branch7x7x3_3"])
    y = axis_conv_bias_relu(y, wt, bt, pad=3)                   # (h, n*w, 192)
    y = jnp.transpose(y.reshape(h, n, w, -1), (1, 0, 2, 3))     # NHWC bf16
    w4, b4 = _matmul_weights(params["branch7x7x3_4"])           # (9*192, 192)
    patches, (ho, wo) = _im2col_s2(y, 3, 3, 2)
    b7 = matmul_bias_relu(patches, w4, b4, out_dtype=jnp.float32)
    b7 = b7.reshape(n, ho, wo, w4.shape[1])

    # ---- branch_pool: maxpool 3x3 s2 (exact f32) ----
    bp = maxpool3x3s2(x_nhwc)

    out = jnp.concatenate([b3, b7, bp], axis=-1)                # NHWC concat
    return jnp.transpose(out, (0, 3, 1, 2))                     # -> NCHW


# ----------------------------------------------------------------------------
# Deterministic parameter init (shapes from InceptionD.__init__)
# ----------------------------------------------------------------------------
def init_conv_bn(key, cin, cout, kh, kw):
    kw_, kg, kb, km, kv = jax.random.split(key, 5)
    fan_in = cin * kh * kw
    return dict(
        w=jax.random.normal(kw_, (cout, cin, kh, kw), jnp.float32)
        * (1.0 / math.sqrt(fan_in)),
        gamma=1.0 + 0.1 * jax.random.normal(kg, (cout,), jnp.float32),
        beta=0.1 * jax.random.normal(kb, (cout,), jnp.float32),
        mean=0.1 * jax.random.normal(km, (cout,), jnp.float32),
        var=jnp.abs(jax.random.normal(kv, (cout,), jnp.float32)) + 0.5,
    )


def init_inception_d(key, in_channels):
    ks = jax.random.split(key, 6)
    return {
        "branch3x3_1": init_conv_bn(ks[0], in_channels, 192, 1, 1),
        "branch3x3_2": init_conv_bn(ks[1], 192, 320, 3, 3),
        "branch7x7x3_1": init_conv_bn(ks[2], in_channels, 192, 1, 1),
        "branch7x7x3_2": init_conv_bn(ks[3], 192, 192, 1, 7),
        "branch7x7x3_3": init_conv_bn(ks[4], 192, 192, 7, 1),
        "branch7x7x3_4": init_conv_bn(ks[5], 192, 192, 3, 3),
    }


# ----------------------------------------------------------------------------
# Pure-JAX f32 reference (lax conv / reduce_window) for a sanity check
# ----------------------------------------------------------------------------
def _ref_conv_bn_relu(x, p, *, stride=1, pad=(0, 0)):
    w = jnp.transpose(p["w"], (2, 3, 1, 0))  # HWIO
    y = jax.lax.conv_general_dilated(
        x, w, (stride, stride), ((pad[0], pad[0]), (pad[1], pad[1])),
        dimension_numbers=("NHWC", "HWIO", "NHWC"),
        precision=jax.lax.Precision.HIGHEST)
    scale = p["gamma"] / jnp.sqrt(p["var"] + BN_EPS)
    bias = p["beta"] - p["mean"] * scale
    return jnp.maximum(y * scale + bias, 0.0)


def _ref_forward(x_nchw, params):
    x = jnp.transpose(x_nchw, (0, 2, 3, 1)).astype(jnp.float32)
    b3 = _ref_conv_bn_relu(x, params["branch3x3_1"])
    b3 = _ref_conv_bn_relu(b3, params["branch3x3_2"], stride=2)
    b7 = _ref_conv_bn_relu(x, params["branch7x7x3_1"])
    b7 = _ref_conv_bn_relu(b7, params["branch7x7x3_2"], pad=(0, 3))
    b7 = _ref_conv_bn_relu(b7, params["branch7x7x3_3"], pad=(3, 0))
    b7 = _ref_conv_bn_relu(b7, params["branch7x7x3_4"], stride=2)
    bp = jax.lax.reduce_window(x, -jnp.inf, jax.lax.max,
                               (1, 3, 3, 1), (1, 2, 2, 1), "VALID")
    out = jnp.concatenate([b3, b7, bp], axis=-1)
    return jnp.transpose(out, (0, 3, 1, 2))


if __name__ == "__main__":
    key = jax.random.PRNGKey(0)
    k_param, k_x = jax.random.split(key)

    B, Cin, H, W = 2, 16, 9, 9
    x = jax.random.normal(k_x, (B, Cin, H, W), jnp.float32)
    params = init_inception_d(k_param, Cin)

    fwd = jax.jit(inception_d_forward)
    out = jax.block_until_ready(fwd(x, params))

    expected = (B, 320 + 192 + Cin, (H - 3) // 2 + 1, (W - 3) // 2 + 1)
    assert out.shape == expected, (out.shape, expected)

    ref = jax.block_until_ready(jax.jit(_ref_forward)(x, params))
    # bf16 MXU operands (f32 accumulation) vs a pure-f32 reference.
    max_err = float(jnp.max(jnp.abs(out - ref)))
    rel_err = float(jnp.linalg.norm(out - ref) / jnp.linalg.norm(ref))
    assert rel_err < 5e-2, (max_err, rel_err)

    print("KERNEL_OK")
</pallas_src>

<mosaic_0001>
module attributes {stable_mosaic.version = 11 : i64} {
  func.func @_matmul_bias_relu_kernel(%arg0: i32, %arg1: memref<162x16xbf16, #tpu.memory_space<vmem>>, %arg2: memref<16x384xbf16, #tpu.memory_space<vmem>>, %arg3: memref<1x384xf32, #tpu.memory_space<vmem>>, %arg4: memref<162x384xbf16, #tpu.memory_space<vmem>>) attributes {dimension_semantics = [#tpu.dimension_semantics<parallel>], iteration_bounds = array<i64: 1>, scalar_prefetch = 0 : i64, scratch_operands = 0 : i64, tpu.core_type = #tpu.core_type<tc>, window_params = [{transform_indices = @transform_0, window_bounds = array<i64: 162, 16>}, {pipeline_mode = #tpu.pipeline_mode<synchronous>, transform_indices = @transform_1, window_bounds = array<i64: 16, 384>}, {pipeline_mode = #tpu.pipeline_mode<synchronous>, transform_indices = @transform_2, window_bounds = array<i64: 1, 384>}, {transform_indices = @transform_3, window_bounds = array<i64: 162, 384>}]} {
    %c0 = arith.constant 0 : index
    %c0_0 = arith.constant 0 : index
    %0 = vector.load %arg1[%c0, %c0_0] : memref<162x16xbf16, #tpu.memory_space<vmem>>, vector<162x16xbf16>
    %c0_1 = arith.constant 0 : index
    %c0_2 = arith.constant 0 : index
    %1 = vector.load %arg2[%c0_1, %c0_2] : memref<16x384xbf16, #tpu.memory_space<vmem>>, vector<16x384xbf16>
    %cst = arith.constant dense<0.000000e+00> : vector<162x384xf32>
    %2 = tpu.matmul %0, %1, %cst {dimension_numbers = #tpu.dot_dimension_numbers<[1], [0], [0], [1], [0, 0, 1, 1], [], []>} : vector<162x16xbf16>, vector<16x384xbf16>, vector<162x384xf32> -> vector<162x384xf32>
    %c0_3 = arith.constant 0 : index
    %c0_4 = arith.constant 0 : index
    %3 = vector.load %arg3[%c0_3, %c0_4] : memref<1x384xf32, #tpu.memory_space<vmem>>, vector<1x384xf32>
    %4 = vector.broadcast %3 : vector<1x384xf32> to vector<162x384xf32>
    %5 = arith.addf %2, %4 : vector<162x384xf32>
    %cst_5 = arith.constant 0.000000e+00 : f32
    %6 = vector.broadcast %cst_5 : f32 to vector<162x384xf32>
    %7 = arith.maximumf %5, %6 : vector<162x384xf32>
    %8 = arith.truncf %7 : vector<162x384xf32> to vector<162x384xbf16>
    %c0_6 = arith.constant 0 : index
    %c0_7 = arith.constant 0 : index
    %9 = vector.load %arg4[%c0_6, %c0_7] : memref<162x384xbf16, #tpu.memory_space<vmem>>, vector<162x384xbf16>
    tpu.vector_store %arg4[%c0_6, %c0_7], %8 {strides = array<i32>} : memref<162x384xbf16, #tpu.memory_space<vmem>>, vector<162x384xbf16>,
    return
  }
  func.func @transform_0(%arg0: i32) -> (i32, i32) {
    %c0_i32 = arith.constant 0 : i32
    %c0_i32_0 = arith.constant 0 : i32
    return %arg0, %c0_i32 : i32, i32
  }
  func.func @transform_1(%arg0: i32) -> (i32, i32) {
    %c0_i32 = arith.constant 0 : i32
    %c0_i32_0 = arith.constant 0 : i32
    %c0_i32_1 = arith.constant 0 : i32
    return %c0_i32, %c0_i32_0 : i32, i32
  }
  func.func @transform_2(%arg0: i32) -> (i32, i32) {
    %c0_i32 = arith.constant 0 : i32
    %c0_i32_0 = arith.constant 0 : i32
    %c0_i32_1 = arith.constant 0 : i32
    return %c0_i32, %c0_i32_0 : i32, i32
  }
  func.func @transform_3(%arg0: i32) -> (i32, i32) {
    %c0_i32 = arith.constant 0 : i32
    %c0_i32_0 = arith.constant 0 : i32
    return %arg0, %c0_i32 : i32, i32
  }
}

module attributes {stable_mosaic.version = 11 : i64} {
  func.func @_axis_conv_kernel(%arg0: i32, %arg1: memref<15x24x192xbf16, #tpu.memory_space<vmem>>, %arg2: memref<7x192x192xbf16, #tpu.memory_space<vmem>>, %arg3: memref<1x1x192xf32, #tpu.memory_space<vmem>>, %arg4: memref<9x24x192xbf16, #tpu.memory_space<vmem>>, %arg5: memref<9x24x192xf32, #tpu.memory_space<vmem>>) attributes {dimension_semantics = [#tpu.dimension_semantics<parallel>], iteration_bounds = array<i64: 1>, scalar_prefetch = 0 : i64, scratch_operands = 1 : i64, tpu.core_type = #tpu.core_type<tc>, window_params = [{transform_indices = @transform_0, window_bounds = array<i64: 15, 24, 192>}, {pipeline_mode = #tpu.pipeline_mode<synchronous>, transform_indices = @transform_1, window_bounds = array<i64: 7, 192, 192>}, {pipeline_mode = #tpu.pipeline_mode<synchronous>, transform_indices = @transform_2, window_bounds = array<i64: 1, 1, 192>}, {transform_indices = @transform_3, window_bounds = array<i64: 9, 24, 192>}]} {
    %c0 = arith.constant 0 : index
    %c0_0 = arith.constant 0 : index
    %c0_1 = arith.constant 0 : index
    %0 = vector.load %arg1[%c0, %c0_0, %c0_1] : memref<15x24x192xbf16, #tpu.memory_space<vmem>>, vector<9x24x192xbf16>
    %1 = vector.shape_cast %0 : vector<9x24x192xbf16> to vector<216x192xbf16>
    %c0_2 = arith.constant 0 : index
    %c0_3 = arith.constant 0 : index
    %c0_4 = arith.constant 0 : index
    %2 = vector.load %arg2[%c0_2, %c0_3, %c0_4] : memref<7x192x192xbf16, #tpu.memory_space<vmem>>, vector<1x192x192xbf16>
    %3 = vector.shape_cast %2 : vector<1x192x192xbf16> to vector<192x192xbf16>
    %cst = arith.constant dense<0.000000e+00> : vector<216x192xf32>
    %4 = tpu.matmul %1, %3, %cst {dimension_numbers = #tpu.dot_dimension_numbers<[1], [0], [0], [1], [0, 0, 1, 1], [], []>} : vector<216x192xbf16>, vector<192x192xbf16>, vector<216x192xf32> -> vector<216x192xf32>
    %5 = vector.shape_cast %4 : vector<216x192xf32> to vector<9x24x192xf32>
    %c0_5 = arith.constant 0 : index
    %c0_6 = arith.constant 0 : index
    %c0_7 = arith.constant 0 : index
    %6 = vector.load %arg5[%c0_5, %c0_6, %c0_7] : memref<9x24x192xf32, #tpu.memory_space<vmem>>, vector<9x24x192xf32>
    tpu.vector_store %arg5[%c0_5, %c0_6, %c0_7], %5 {strides = array<i32>} : memref<9x24x192xf32, #tpu.memory_space<vmem>>, vector<9x24x192xf32>,
    %c1 = arith.constant 1 : index
    %c0_8 = arith.constant 0 : index
    %c0_9 = arith.constant 0 : index
    %7 = vector.load %arg1[%c1, %c0_8, %c0_9] : memref<15x24x192xbf16, #tpu.memory_space<vmem>>, vector<9x24x192xbf16>
    %8 = vector.shape_cast %7 : vector<9x24x192xbf16> to vector<216x192xbf16>
    %c1_10 = arith.constant 1 : index
    %c0_11 = arith.constant 0 : index
    %c0_12 = arith.constant 0 : index
    %9 = vector.load %arg2[%c1_10, %c0_11, %c0_12] : memref<7x192x192xbf16, #tpu.memory_space<vmem>>, vector<1x192x192xbf16>
    %10 = vector.shape_cast %9 : vector<1x192x192xbf16> to vector<192x192xbf16>
    %cst_13 = arith.constant dense<0.000000e+00> : vector<216x192xf32>
    %11 = tpu.matmul %8, %10, %cst_13 {dimension_numbers = #tpu.dot_dimension_numbers<[1], [0], [0], [1], [0, 0, 1, 1], [], []>} : vector<216x192xbf16>, vector<192x192xbf16>, vector<216x192xf32> -> vector<216x192xf32>
    %12 = vector.shape_cast %11 : vector<216x192xf32> to vector<9x24x192xf32>
    %c0_14 = arith.constant 0 : index
    %c0_15 = arith.constant 0 : index
    %c0_16 = arith.constant 0 : index
    %13 = vector.load %arg5[%c0_14, %c0_15, %c0_16] : memref<9x24x192xf32, #tpu.memory_space<vmem>>, vector<9x24x192xf32>
    %14 = arith.addf %13, %12 : vector<9x24x192xf32>
    %c0_17 = arith.constant 0 : index
    %c0_18 = arith.constant 0 : index
    %c0_19 = arith.constant 0 : index
    %15 = vector.load %arg5[%c0_17, %c0_18, %c0_19] : memref<9x24x192xf32, #tpu.memory_space<vmem>>, vector<9x24x192xf32>
    tpu.vector_store %arg5[%c0_17, %c0_18, %c0_19], %14 {strides = array<i32>} : memref<9x24x192xf32, #tpu.memory_space<vmem>>, vector<9x24x192xf32>,
    %c2 = arith.constant 2 : index
    %c0_20 = arith.constant 0 : index
    %c0_21 = arith.constant 0 : index
    %16 = vector.load %arg1[%c2, %c0_20, %c0_21] : memref<15x24x192xbf16, #tpu.memory_space<vmem>>, vector<9x24x192xbf16>
    %17 = vector.shape_cast %16 : vector<9x24x192xbf16> to vector<216x192xbf16>
    %c2_22 = arith.constant 2 : index
    %c0_23 = arith.constant 0 : index
    %c0_24 = arith.constant 0 : index
    %18 = vector.load %arg2[%c2_22, %c0_23, %c0_24] : memref<7x192x192xbf16, #tpu.memory_space<vmem>>, vector<1x192x192xbf16>
    %19 = vector.shape_cast %18 : vector<1x192x192xbf16> to vector<192x192xbf16>
    %cst_25 = arith.constant dense<0.000000e+00> : vector<216x192xf32>
    %20 = tpu.matmul %17, %19, %cst_25 {dimension_numbers = #tpu.dot_dimension_numbers<[1], [0], [0], [1], [0, 0, 1, 1], [], []>} : vector<216x192xbf16>, vector<192x192xbf16>, vector<216x192xf32> -> vector<216x192xf32>
    %21 = vector.shape_cast %20 : vector<216x192xf32> to vector<9x24x192xf32>
    %c0_26 = arith.constant 0 : index
    %c0_27 = arith.constant 0 : index
    %c0_28 = arith.constant 0 : index
    %22 = vector.load %arg5[%c0_26, %c0_27, %c0_28] : memref<9x24x192xf32, #tpu.memory_space<vmem>>, vector<9x24x192xf32>
    %23 = arith.addf %22, %21 : vector<9x24x192xf32>
    %c0_29 = arith.constant 0 : index
    %c0_30 = arith.constant 0 : index
    %c0_31 = arith.constant 0 : index
    %24 = vector.load %arg5[%c0_29, %c0_30, %c0_31] : memref<9x24x192xf32, #tpu.memory_space<vmem>>, vector<9x24x192xf32>
    tpu.vector_store %arg5[%c0_29, %c0_30, %c0_31], %23 {strides = array<i32>} : memref<9x24x192xf32, #tpu.memory_space<vmem>>, vector<9x24x192xf32>,
    %c3 = arith.constant 3 : index
    %c0_32 = arith.constant 0 : index
    %c0_33 = arith.constant 0 : index
    %25 = vector.load %arg1[%c3, %c0_32, %c0_33] : memref<15x24x192xbf16, #tpu.memory_space<vmem>>, vector<9x24x192xbf16>
    %26 = vector.shape_cast %25 : vector<9x24x192xbf16> to vector<216x192xbf16>
    %c3_34 = arith.constant 3 : index
    %c0_35 = arith.constant 0 : index
    %c0_36 = arith.constant 0 : index
    %27 = vector.load %arg2[%c3_34, %c0_35, %c0_36] : memref<7x192x192xbf16, #tpu.memory_space<vmem>>, vector<1x192x192xbf16>
    %28 = vector.shape_cast %27 : vector<1x192x192xbf16> to vector<192x192xbf16>
    %cst_37 = arith.constant dense<0.000000e+00> : vector<216x192xf32>
    %29 = tpu.matmul %26, %28, %cst_37 {dimension_numbers = #tpu.dot_dimension_numbers<[1], [0], [0], [1], [0, 0, 1, 1], [], []>} : vector<216x192xbf16>, vector<192x192xbf16>, vector<216x192xf32> -> vector<216x192xf32>
    %30 = vector.shape_cast %29 : vector<216x192xf32> to vector<9x24x192xf32>
    %c0_38 = arith.constant 0 : index
    %c0_39 = arith.constant 0 : index
    %c0_40 = arith.constant 0 : index
    %31 = vector.load %arg5[%c0_38, %c0_39, %c0_40] : memref<9x24x192xf32, #tpu.memory_space<vmem>>, vector<9x24x192xf32>
    %32 = arith.addf %31, %30 : vector<9x24x192xf32>
    %c0_41 = arith.constant 0 : index
    %c0_42 = arith.constant 0 : index
    %c0_43 = arith.constant 0 : index
    %33 = vector.load %arg5[%c0_41, %c0_42, %c0_43] : memref<9x24x192xf32, #tpu.memory_space<vmem>>, vector<9x24x192xf32>
    tpu.vector_store %arg5[%c0_41, %c0_42, %c0_43], %32 {strides = array<i32>} : memref<9x24x192xf32, #tpu.memory_space<vmem>>, vector<9x24x192xf32>,
    %c4 = arith.constant 4 : index
    %c0_44 = arith.constant 0 : index
    %c0_45 = arith.constant 0 : index
    %34 = vector.load %arg1[%c4, %c0_44, %c0_45] : memref<15x24x192xbf16, #tpu.memory_space<vmem>>, vector<9x24x192xbf16>
    %35 = vector.shape_cast %34 : vector<9x24x192xbf16> to vector<216x192xbf16>
    %c4_46 = arith.constant 4 : index
    %c0_47 = arith.constant 0 : index
    %c0_48 = arith.constant 0 : index
    %36 = vector.load %arg2[%c4_46, %c0_47, %c0_48] : memref<7x192x192xbf16, #tpu.memory_space<vmem>>, vector<1x192x192xbf16>
    %37 = vector.shape_cast %36 : vector<1x192x192xbf16> to vector<192x192xbf16>
    %cst_49 = arith.constant dense<0.000000e+00> : vector<216x192xf32>
    %38 = tpu.matmul %35, %37, %cst_49 {dimension_numbers = #tpu.dot_dimension_numbers<[1], [0], [0], [1], [0, 0, 1, 1], [], []>} : vector<216x192xbf16>, vector<192x192xbf16>, vector<216x192xf32> -> vector<216x192xf32>
    %39 = vector.shape_cast %38 : vector<216x192xf32> to vector<9x24x192xf32>
    %c0_50 = arith.constant 0 : index
    %c0_51 = arith.constant 0 : index
    %c0_52 = arith.constant 0 : index
    %40 = vector.load %arg5[%c0_50, %c0_51, %c0_52] : memref<9x24x192xf32, #tpu.memory_space<vmem>>, vector<9x24x192xf32>
    %41 = arith.addf %40, %39 : vector<9x24x192xf32>
    %c0_53 = arith.constant 0 : index
    %c0_54 = arith.constant 0 : index
    %c0_55 = arith.constant 0 : index
    %42 = vector.load %arg5[%c0_53, %c0_54, %c0_55] : memref<9x24x192xf32, #tpu.memory_space<vmem>>, vector<9x24x192xf32>
    tpu.vector_store %arg5[%c0_53, %c0_54, %c0_55], %41 {strides = array<i32>} : memref<9x24x192xf32, #tpu.memory_space<vmem>>, vector<9x24x192xf32>,
    %c5 = arith.constant 5 : index
    %c0_56 = arith.constant 0 : index
    %c0_57 = arith.constant 0 : index
    %43 = vector.load %arg1[%c5, %c0_56, %c0_57] : memref<15x24x192xbf16, #tpu.memory_space<vmem>>, vector<9x24x192xbf16>
    %44 = vector.shape_cast %43 : vector<9x24x192xbf16> to vector<216x192xbf16>
    %c5_58 = arith.constant 5 : index
    %c0_59 = arith.constant 0 : index
    %c0_60 = arith.constant 0 : index
    %45 = vector.load %arg2[%c5_58, %c0_59, %c0_60] : memref<7x192x192xbf16, #tpu.memory_space<vmem>>, vector<1x192x192xbf16>
    %46 = vector.shape_cast %45 : vector<1x192x192xbf16> to vector<192x192xbf16>
    %cst_61 = arith.constant dense<0.000000e+00> : vector<216x192xf32>
    %47 = tpu.matmul %44, %46, %cst_61 {dimension_numbers = #tpu.dot_dimension_numbers<[1], [0], [0], [1], [0, 0, 1, 1], [], []>} : vector<216x192xbf16>, vector<192x192xbf16>, vector<216x192xf32> -> vector<216x192xf32>
    %48 = vector.shape_cast %47 : vector<216x192xf32> to vector<9x24x192xf32>
    %c0_62 = arith.constant 0 : index
    %c0_63 = arith.constant 0 : index
    %c0_64 = arith.constant 0 : index
    %49 = vector.load %arg5[%c0_62, %c0_63, %c0_64] : memref<9x24x192xf32, #tpu.memory_space<vmem>>, vector<9x24x192xf32>
    %50 = arith.addf %49, %48 : vector<9x24x192xf32>
    %c0_65 = arith.constant 0 : index
    %c0_66 = arith.constant 0 : index
    %c0_67 = arith.constant 0 : index
    %51 = vector.load %arg5[%c0_65, %c0_66, %c0_67] : memref<9x24x192xf32, #tpu.memory_space<vmem>>, vector<9x24x192xf32>
    tpu.vector_store %arg5[%c0_65, %c0_66, %c0_67], %50 {strides = array<i32>} : memref<9x24x192xf32, #tpu.memory_space<vmem>>, vector<9x24x192xf32>,
    %c6 = arith.constant 6 : index
    %c0_68 = arith.constant 0 : index
    %c0_69 = arith.constant 0 : index
    %52 = vector.load %arg1[%c6, %c0_68, %c0_69] : memref<15x24x192xbf16, #tpu.memory_space<vmem>>, vector<9x24x192xbf16>
    %53 = vector.shape_cast %52 : vector<9x24x192xbf16> to vector<216x192xbf16>
    %c6_70 = arith.constant 6 : index
    %c0_71 = arith.constant 0 : index
    %c0_72 = arith.constant 0 : index
    %54 = vector.load %arg2[%c6_70, %c0_71, %c0_72] : memref<7x192x192xbf16, #tpu.memory_space<vmem>>, vector<1x192x192xbf16>
    %55 = vector.shape_cast %54 : vector<1x192x192xbf16> to vector<192x192xbf16>
    %cst_73 = arith.constant dense<0.000000e+00> : vector<216x192xf32>
    %56 = tpu.matmul %53, %55, %cst_73 {dimension_numbers = #tpu.dot_dimension_numbers<[1], [0], [0], [1], [0, 0, 1, 1], [], []>} : vector<216x192xbf16>, vector<192x192xbf16>, vector<216x192xf32> -> vector<216x192xf32>
    %57 = vector.shape_cast %56 : vector<216x192xf32> to vector<9x24x192xf32>
    %c0_74 = arith.constant 0 : index
    %c0_75 = arith.constant 0 : index
    %c0_76 = arith.constant 0 : index
    %58 = vector.load %arg5[%c0_74, %c0_75, %c0_76] : memref<9x24x192xf32, #tpu.memory_space<vmem>>, vector<9x24x192xf32>
    %59 = arith.addf %58, %57 : vector<9x24x192xf32>
    %c0_77 = arith.constant 0 : index
    %c0_78 = arith.constant 0 : index
    %c0_79 = arith.constant 0 : index
    %60 = vector.load %arg5[%c0_77, %c0_78, %c0_79] : memref<9x24x192xf32, #tpu.memory_space<vmem>>, vector<9x24x192xf32>
    tpu.vector_store %arg5[%c0_77, %c0_78, %c0_79], %59 {strides = array<i32>} : memref<9x24x192xf32, #tpu.memory_space<vmem>>, vector<9x24x192xf32>,
    %c0_80 = arith.constant 0 : index
    %c0_81 = arith.constant 0 : index
    %c0_82 = arith.constant 0 : index
    %61 = vector.load %arg5[%c0_80, %c0_81, %c0_82] : memref<9x24x192xf32, #tpu.memory_space<vmem>>, vector<9x24x192xf32>
    %c0_83 = arith.constant 0 : index
    %c0_84 = arith.constant 0 : index
    %c0_85 = arith.constant 0 : index
    %62 = vector.load %arg3[%c0_83, %c0_84, %c0_85] : memref<1x1x192xf32, #tpu.memory_space<vmem>>, vector<1x1x192xf32>
    %63 = vector.broadcast %62 : vector<1x1x192xf32> to vector<9x24x192xf32>
    %64 = arith.addf %61, %63 : vector<9x24x192xf32>
    %cst_86 = arith.constant 0.000000e+00 : f32
    %65 = vector.broadcast %cst_86 : f32 to vector<9x24x192xf32>
    %66 = arith.maximumf %64, %65 : vector<9x24x192xf32>
    %67 = arith.truncf %66 : vector<9x24x192xf32> to vector<9x24x192xbf16>
    %c0_87 = arith.constant 0 : index
    %c0_88 = arith.constant 0 : index
    %c0_89 = arith.constant 0 : index
    %68 = vector.load %arg4[%c0_87, %c0_88, %c0_89] : memref<9x24x192xbf16, #tpu.memory_space<vmem>>, vector<9x24x192xbf16>
    tpu.vector_store %arg4[%c0_87, %c0_88, %c0_89], %67 {strides = array<i32>} : memref<9x24x192xbf16, #tpu.memory_space<vmem>>, vector<9x24x192xbf16>,
    return
  }
  func.func @transform_0(%arg0: i32) -> (i32, i32, i32) {
    %c0_i32 = arith.constant 0 : i32
    %c0_i32_0 = arith.constant 0 : i32
    %c0_i32_1 = arith.constant 0 : i32
    return %c0_i32, %arg0, %c0_i32_0 : i32, i32, i32
  }
  func.func @transform_1(%arg0: i32) -> (i32, i32, i32) {
    %c0_i32 = arith.constant 0 : i32
    %c0_i32_0 = arith.constant 0 : i32
    %c0_i32_1 = arith.constant 0 : i32
    %c0_i32_2 = arith.constant 0 : i32
    return %c0_i32, %c0_i32_0, %c0_i32_1 : i32, i32, i32
  }
  func.func @transform_2(%arg0: i32) -> (i32, i32, i32) {
    %c0_i32 = arith.constant 0 : i32
    %c0_i32_0 = arith.constant 0 : i32
    %c0_i32_1 = arith.constant 0 : i32
    %c0_i32_2 = arith.constant 0 : i32
    return %c0_i32, %c0_i32_0, %c0_i32_1 : i32, i32, i32
  }
  func.func @transform_3(%arg0: i32) -> (i32, i32, i32) {
    %c0_i32 = arith.constant 0 : i32
    %c0_i32_0 = arith.constant 0 : i32
    %c0_i32_1 = arith.constant 0 : i32
    return %c0_i32, %arg0, %c0_i32_0 : i32, i32, i32
  }
}

module attributes {stable_mosaic.version = 11 : i64} {
  func.func @_matmul_bias_relu_kernel(%arg0: i32, %arg1: memref<32x1728xbf16, #tpu.memory_space<vmem>>, %arg2: memref<1728x192xbf16, #tpu.memory_space<vmem>>, %arg3: memref<1x192xf32, #tpu.memory_space<vmem>>, %arg4: memref<32x192xf32, #tpu.memory_space<vmem>>) attributes {dimension_semantics = [#tpu.dimension_semantics<parallel>], iteration_bounds = array<i64: 1>, scalar_prefetch = 0 : i64, scratch_operands = 0 : i64, tpu.core_type = #tpu.core_type<tc>, window_params = [{transform_indices = @transform_0, window_bounds = array<i64: 32, 1728>}, {pipeline_mode = #tpu.pipeline_mode<synchronous>, transform_indices = @transform_1, window_bounds = array<i64: 1728, 192>}, {pipeline_mode = #tpu.pipeline_mode<synchronous>, transform_indices = @transform_2, window_bounds = array<i64: 1, 192>}, {transform_indices = @transform_3, window_bounds = array<i64: 32, 192>}]} {
    %c0 = arith.constant 0 : index
    %c0_0 = arith.constant 0 : index
    %0 = vector.load %arg1[%c0, %c0_0] : memref<32x1728xbf16, #tpu.memory_space<vmem>>, vector<32x1728xbf16>
    %c0_1 = arith.constant 0 : index
    %c0_2 = arith.constant 0 : index
    %1 = vector.load %arg2[%c0_1, %c0_2] : memref<1728x192xbf16, #tpu.memory_space<vmem>>, vector<1728x192xbf16>
    %cst = arith.constant dense<0.000000e+00> : vector<32x192xf32>
    %2 = tpu.matmul %0, %1, %cst {dimension_numbers = #tpu.dot_dimension_numbers<[1], [0], [0], [1], [0, 0, 1, 1], [], []>} : vector<32x1728xbf16>, vector<1728x192xbf16>, vector<32x192xf32> -> vector<32x192xf32>
    %c0_3 = arith.constant 0 : index
    %c0_4 = arith.constant 0 : index
    %3 = vector.load %arg3[%c0_3, %c0_4] : memref<1x192xf32, #tpu.memory_space<vmem>>, vector<1x192xf32>
    %4 = vector.broadcast %3 : vector<1x192xf32> to vector<32x192xf32>
    %5 = arith.addf %2, %4 : vector<32x192xf32>
    %cst_5 = arith.constant 0.000000e+00 : f32
    %6 = vector.broadcast %cst_5 : f32 to vector<32x192xf32>
    %7 = arith.maximumf %5, %6 : vector<32x192xf32>
    %c0_6 = arith.constant 0 : index
    %c0_7 = arith.constant 0 : index
    %8 = vector.load %arg4[%c0_6, %c0_7] : memref<32x192xf32, #tpu.memory_space<vmem>>, vector<32x192xf32>
    tpu.vector_store %arg4[%c0_6, %c0_7], %7 {strides = array<i32>} : memref<32x192xf32, #tpu.memory_space<vmem>>, vector<32x192xf32>,
    return
  }
  func.func @transform_0(%arg0: i32) -> (i32, i32) {
    %c0_i32 = arith.constant 0 : i32
    %c0_i32_0 = arith.constant 0 : i32
    return %arg0, %c0_i32 : i32, i32
  }
  func.func @transform_1(%arg0: i32) -> (i32, i32) {
    %c0_i32 = arith.constant 0 : i32
    %c0_i32_0 = arith.constant 0 : i32
    %c0_i32_1 = arith.constant 0 : i32
    return %c0_i32, %c0_i32_0 : i32, i32
  }
  func.func @transform_2(%arg0: i32) -> (i32, i32) {
    %c0_i32 = arith.constant 0 : i32
    %c0_i32_0 = arith.constant 0 : i32
    %c0_i32_1 = arith.constant 0 : i32
    return %c0_i32, %c0_i32_0 : i32, i32
  }
  func.func @transform_3(%arg0: i32) -> (i32, i32) {
    %c0_i32 = arith.constant 0 : i32
    %c0_i32_0 = arith.constant 0 : i32
    return %arg0, %c0_i32 : i32, i32
  }
}

module attributes {stable_mosaic.version = 11 : i64} {
  func.func @_matmul_bias_relu_kernel(%arg0: i32, %arg1: memref<32x1728xbf16, #tpu.memory_space<vmem>>, %arg2: memref<1728x320xbf16, #tpu.memory_space<vmem>>, %arg3: memref<1x320xf32, #tpu.memory_space<vmem>>, %arg4: memref<32x320xf32, #tpu.memory_space<vmem>>) attributes {dimension_semantics = [#tpu.dimension_semantics<parallel>], iteration_bounds = array<i64: 1>, scalar_prefetch = 0 : i64, scratch_operands = 0 : i64, tpu.core_type = #tpu.core_type<tc>, window_params = [{transform_indices = @transform_0, window_bounds = array<i64: 32, 1728>}, {pipeline_mode = #tpu.pipeline_mode<synchronous>, transform_indices = @transform_1, window_bounds = array<i64: 1728, 320>}, {pipeline_mode = #tpu.pipeline_mode<synchronous>, transform_indices = @transform_2, window_bounds = array<i64: 1, 320>}, {transform_indices = @transform_3, window_bounds = array<i64: 32, 320>}]} {
    %c0 = arith.constant 0 : index
    %c0_0 = arith.constant 0 : index
    %0 = vector.load %arg1[%c0, %c0_0] : memref<32x1728xbf16, #tpu.memory_space<vmem>>, vector<32x1728xbf16>
    %c0_1 = arith.constant 0 : index
    %c0_2 = arith.constant 0 : index
    %1 = vector.load %arg2[%c0_1, %c0_2] : memref<1728x320xbf16, #tpu.memory_space<vmem>>, vector<1728x320xbf16>
    %cst = arith.constant dense<0.000000e+00> : vector<32x320xf32>
    %2 = tpu.matmul %0, %1, %cst {dimension_numbers = #tpu.dot_dimension_numbers<[1], [0], [0], [1], [0, 0, 1, 1], [], []>} : vector<32x1728xbf16>, vector<1728x320xbf16>, vector<32x320xf32> -> vector<32x320xf32>
    %c0_3 = arith.constant 0 : index
    %c0_4 = arith.constant 0 : index
    %3 = vector.load %arg3[%c0_3, %c0_4] : memref<1x320xf32, #tpu.memory_space<vmem>>, vector<1x320xf32>
    %4 = vector.broadcast %3 : vector<1x320xf32> to vector<32x320xf32>
    %5 = arith.addf %2, %4 : vector<32x320xf32>
    %cst_5 = arith.constant 0.000000e+00 : f32
    %6 = vector.broadcast %cst_5 : f32 to vector<32x320xf32>
    %7 = arith.maximumf %5, %6 : vector<32x320xf32>
    %c0_6 = arith.constant 0 : index
    %c0_7 = arith.constant 0 : index
    %8 = vector.load %arg4[%c0_6, %c0_7] : memref<32x320xf32, #tpu.memory_space<vmem>>, vector<32x320xf32>
    tpu.vector_store %arg4[%c0_6, %c0_7], %7 {strides = array<i32>} : memref<32x320xf32, #tpu.memory_space<vmem>>, vector<32x320xf32>,
    return
  }
  func.func @transform_0(%arg0: i32) -> (i32, i32) {
    %c0_i32 = arith.constant 0 : i32
    %c0_i32_0 = arith.constant 0 : i32
    return %arg0, %c0_i32 : i32, i32
  }
  func.func @transform_1(%arg0: i32) -> (i32, i32) {
    %c0_i32 = arith.constant 0 : i32
    %c0_i32_0 = arith.constant 0 : i32
    %c0_i32_1 = arith.constant 0 : i32
    return %c0_i32, %c0_i32_0 : i32, i32
  }
  func.func @transform_2(%arg0: i32) -> (i32, i32) {
    %c0_i32 = arith.constant 0 : i32
    %c0_i32_0 = arith.constant 0 : i32
    %c0_i32_1 = arith.constant 0 : i32
    return %c0_i32, %c0_i32_0 : i32, i32
  }
  func.func @transform_3(%arg0: i32) -> (i32, i32) {
    %c0_i32 = arith.constant 0 : i32
    %c0_i32_0 = arith.constant 0 : i32
    return %arg0, %c0_i32 : i32, i32
  }
}

module attributes {stable_mosaic.version = 11 : i64} {
  func.func @_maxpool3x3s2_kernel(%arg0: i32, %arg1: memref<1x9x9x16xf32, #tpu.memory_space<vmem>>, %arg2: memref<1x4x4x16xf32, #tpu.memory_space<vmem>>) attributes {dimension_semantics = [#tpu.dimension_semantics<parallel>], iteration_bounds = array<i64: 2>, scalar_prefetch = 0 : i64, scratch_operands = 0 : i64, tpu.core_type = #tpu.core_type<tc>, window_params = [{transform_indices = @transform_0, window_bounds = array<i64: 1, 9, 9, 16>}, {transform_indices = @transform_1, window_bounds = array<i64: 1, 4, 4, 16>}]} {
    %c0 = arith.constant 0 : index
    %c0_0 = arith.constant 0 : index
    %c0_1 = arith.constant 0 : index
    %c0_2 = arith.constant 0 : index
    %0 = vector.load %arg1[%c0, %c0_0, %c0_1, %c0_2] : memref<1x9x9x16xf32, #tpu.memory_space<vmem>>, vector<1x9x9x16xf32>
    %1 = vector.shape_cast %0 : vector<1x9x9x16xf32> to vector<9x9x16xf32>
    %2 = vector.extract_strided_slice %1 {offsets = [0, 0, 0], sizes = [7, 9, 16], strides = [1, 1, 1]} : vector<9x9x16xf32> to vector<7x9x16xf32>
    %3 = vector.extract_strided_slice %1 {offsets = [1, 0, 0], sizes = [7, 9, 16], strides = [1, 1, 1]} : vector<9x9x16xf32> to vector<7x9x16xf32>
    %4 = arith.maximumf %2, %3 : vector<7x9x16xf32>
    %5 = vector.extract_strided_slice %1 {offsets = [2, 0, 0], sizes = [7, 9, 16], strides = [1, 1, 1]} : vector<9x9x16xf32> to vector<7x9x16xf32>
    %6 = arith.maximumf %4, %5 : vector<7x9x16xf32>
    %7 = vector.extract_strided_slice %6 {offsets = [6, 0, 0], sizes = [1, 9, 16], strides = [1, 1, 1]} : vector<7x9x16xf32> to vector<1x9x16xf32>
    %8 = tpu.concatenate %6, %7 in 0 : vector<7x9x16xf32>, vector<1x9x16xf32> -> vector<8x9x16xf32>
    %9 = vector.shape_cast %8 : vector<8x9x16xf32> to vector<4x2x9x16xf32>
    %10 = vector.extract_strided_slice %9 {offsets = [0, 0, 0, 0], sizes = [4, 1, 9, 16], strides = [1, 1, 1, 1]} : vector<4x2x9x16xf32> to vector<4x1x9x16xf32>
    %11 = vector.shape_cast %10 : vector<4x1x9x16xf32> to vector<4x9x16xf32>
    %12 = vector.extract_strided_slice %11 {offsets = [0, 0, 0], sizes = [4, 1, 16], strides = [1, 1, 1]} : vector<4x9x16xf32> to vector<4x1x16xf32>
    %13 = vector.shape_cast %12 : vector<4x1x16xf32> to vector<4x16xf32>
    %14 = vector.extract_strided_slice %11 {offsets = [0, 1, 0], sizes = [4, 1, 16], strides = [1, 1, 1]} : vector<4x9x16xf32> to vector<4x1x16xf32>
    %15 = vector.shape_cast %14 : vector<4x1x16xf32> to vector<4x16xf32>
    %16 = arith.maximumf %13, %15 : vector<4x16xf32>
    %17 = vector.extract_strided_slice %11 {offsets = [0, 2, 0], sizes = [4, 1, 16], strides = [1, 1, 1]} : vector<4x9x16xf32> to vector<4x1x16xf32>
    %18 = vector.shape_cast %17 : vector<4x1x16xf32> to vector<4x16xf32>
    %19 = arith.maximumf %16, %18 : vector<4x16xf32>
    %20 = vector.extract_strided_slice %11 {offsets = [0, 2, 0], sizes = [4, 1, 16], strides = [1, 1, 1]} : vector<4x9x16xf32> to vector<4x1x16xf32>
    %21 = vector.shape_cast %20 : vector<4x1x16xf32> to vector<4x16xf32>
    %22 = vector.extract_strided_slice %11 {offsets = [0, 3, 0], sizes = [4, 1, 16], strides = [1, 1, 1]} : vector<4x9x16xf32> to vector<4x1x16xf32>
    %23 = vector.shape_cast %22 : vector<4x1x16xf32> to vector<4x16xf32>
    %24 = arith.maximumf %21, %23 : vector<4x16xf32>
    %25 = vector.extract_strided_slice %11 {offsets = [0, 4, 0], sizes = [4, 1, 16], strides = [1, 1, 1]} : vector<4x9x16xf32> to vector<4x1x16xf32>
    %26 = vector.shape_cast %25 : vector<4x1x16xf32> to vector<4x16xf32>
    %27 = arith.maximumf %24, %26 : vector<4x16xf32>
    %28 = vector.extract_strided_slice %11 {offsets = [0, 4, 0], sizes = [4, 1, 16], strides = [1, 1, 1]} : vector<4x9x16xf32> to vector<4x1x16xf32>
    %29 = vector.shape_cast %28 : vector<4x1x16xf32> to vector<4x16xf32>
    %30 = vector.extract_strided_slice %11 {offsets = [0, 5, 0], sizes = [4, 1, 16], strides = [1, 1, 1]} : vector<4x9x16xf32> to vector<4x1x16xf32>
    %31 = vector.shape_cast %30 : vector<4x1x16xf32> to vector<4x16xf32>
    %32 = arith.maximumf %29, %31 : vector<4x16xf32>
    %33 = vector.extract_strided_slice %11 {offsets = [0, 6, 0], sizes = [4, 1, 16], strides = [1, 1, 1]} : vector<4x9x16xf32> to vector<4x1x16xf32>
    %34 = vector.shape_cast %33 : vector<4x1x16xf32> to vector<4x16xf32>
    %35 = arith.maximumf %32, %34 : vector<4x16xf32>
    %36 = vector.extract_strided_slice %11 {offsets = [0, 6, 0], sizes = [4, 1, 16], strides = [1, 1, 1]} : vector<4x9x16xf32> to vector<4x1x16xf32>
    %37 = vector.shape_cast %36 : vector<4x1x16xf32> to vector<4x16xf32>
    %38 = vector.extract_strided_slice %11 {offsets = [0, 7, 0], sizes = [4, 1, 16], strides = [1, 1, 1]} : vector<4x9x16xf32> to vector<4x1x16xf32>
    %39 = vector.shape_cast %38 : vector<4x1x16xf32> to vector<4x16xf32>
    %40 = arith.maximumf %37, %39 : vector<4x16xf32>
    %41 = vector.extract_strided_slice %11 {offsets = [0, 8, 0], sizes = [4, 1, 16], strides = [1, 1, 1]} : vector<4x9x16xf32> to vector<4x1x16xf32>
    %42 = vector.shape_cast %41 : vector<4x1x16xf32> to vector<4x16xf32>
    %43 = arith.maximumf %40, %42 : vector<4x16xf32>
    %44 = vector.shape_cast %19 : vector<4x16xf32> to vector<4x1x16xf32>
    %45 = vector.shape_cast %27 : vector<4x16xf32> to vector<4x1x16xf32>
    %46 = vector.shape_cast %35 : vector<4x16xf32> to vector<4x1x16xf32>
    %47 = vector.shape_cast %43 : vector<4x16xf32> to vector<4x1x16xf32>
    %48 = tpu.concatenate %44, %45, %46, %47 in 1 : vector<4x1x16xf32>, vector<4x1x16xf32>, vector<4x1x16xf32>, vector<4x1x16xf32> -> vector<4x4x16xf32>
    %c0_3 = arith.constant 0 : index
    %c0_4 = arith.constant 0 : index
    %c0_5 = arith.constant 0 : index
    %c0_6 = arith.constant 0 : index
    %49 = vector.load %arg2[%c0_3, %c0_4, %c0_5, %c0_6] : memref<1x4x4x16xf32, #tpu.memory_space<vmem>>, vector<1x4x4x16xf32>
    %50 = vector.shape_cast %49 : vector<1x4x4x16xf32> to vector<4x4x16xf32>
    %51 = vector.shape_cast %48 : vector<4x4x16xf32> to vector<1x4x4x16xf32>
    tpu.vector_store %arg2[%c0_3, %c0_4, %c0_5, %c0_6], %51 {strides = array<i32>} : memref<1x4x4x16xf32, #tpu.memory_space<vmem>>, vector<1x4x4x16xf32>,
    return
  }
  func.func @transform_0(%arg0: i32) -> (i32, i32, i32, i32) {
    %c0_i32 = arith.constant 0 : i32
    %c0_i32_0 = arith.constant 0 : i32
    %c0_i32_1 = arith.constant 0 : i32
    %c0_i32_2 = arith.constant 0 : i32
    return %arg0, %c0_i32, %c0_i32_0, %c0_i32_1 : i32, i32, i32, i32
  }
  func.func @transform_1(%arg0: i32) -> (i32, i32, i32, i32) {
    %c0_i32 = arith.constant 0 : i32
    %c0_i32_0 = arith.constant 0 : i32
    %c0_i32_1 = arith.constant 0 : i32
    %c0_i32_2 = arith.constant 0 : i32
    return %arg0, %c0_i32, %c0_i32_0, %c0_i32_1 : i32, i32, i32, i32
  }
}

</mosaic_0001>

<bundles_post_ra>
// kernel: inception_d_forward.6
= control target key start
LH: loop header
LB: loop body
LE: loop exit
PB: predicated region body
PF: predicated region fallthrough
CT: control target
= control target key end

     0   :  { %v939_v0 = vmov 0.0   ;;  %vm940_vm0 = vmmov 0   ;;  %v941_v3 = vmov 0   ;;  %vm126_vm1 = vcmask 130048   ;;  %s1235_s1 = inlined_call_operand.vmem [shape: bf16[16,384], index: 1, kind: input, shape index: {}]   ;;  %s1236_s0 = inlined_call_operand.vmem [shape: bf16[162,16], index: 0, kind: input, shape index: {}]   ;;  %s1237_s2 = inlined_call_operand.vmem [shape: f32[1,384], index: 2, kind: input, shape index: {}]   ;;  %s1238_s3 = inlined_call_operand.vmem [shape: bf16[162,384], index: 3, kind: output, shape index: {}]  }
   0x1   :  { %875 = vmatprep.subr.bf16.mxu1 %v939_v0  ;;  %v924_v1 = vld [vmem:[%s1235_s1 + $0x4] ss:$12 sps:$4 sm:$0xff]   ;;  %877 = vmatprep.mubr.msk.bf16.mxu1 %vm940_vm0, %v939_v0  ;;  %v926_v2 = vld [vmem:[%s1235_s1 + $0x8] ss:$12 sps:$4 sm:$0xff]   ;;  %v927_v4 = vld [vmem:[%s1235_s1] ss:$12 sps:$4 sm:$0xff]   ;;  %v42_v16 = vlaneseq }
   0x2   :  { %192 = vmatprep.mubr.bf16.mxu0 %v941_v3  ;;  %160 = vmatprep.subr.bf16.mxu0 %v924_v1  ;;  %v928_v5 = vld [vmem:[%s1236_s0] sm:$0xff]   ;;  %v929_v6 = vld [vmem:[%s1236_s0 + $0x8] sm:$0xff]   ;;  %v930_v7 = vld [vmem:[%s1236_s0 + $0x10] sm:$0xff]  }
   0x3   :  { %876 = vmatpush3.bf16.msra.mxu1 %v926_v2  ;;  %161 = vmatpush1.bf16.msra.mxu0 %v927_v4  ;;  %v931_v8 = vld [vmem:[%s1236_s0 + $0x18] sm:$0xff]   ;;  %v932_v9 = vld [vmem:[%s1236_s0 + $0x20] sm:$0xff]   ;;  %v933_v10 = vld [vmem:[%s1236_s0 + $0x28] sm:$0xff]   ;;  %v43_v17 = vshrl.u32 %v42_v16, 7 }
   0x4   :  { %v934_v11 = vld [vmem:[%s1236_s0 + $0x30] sm:$0xff]   ;;  %v935_v12 = vld [vmem:[%s1236_s0 + $0x38] sm:$0xff]   ;;  %v936_v13 = vld [vmem:[%s1236_s0 + $0x40] sm:$0xff]  }
   0x5   :  { %v937_v14 = vld [vmem:[%s1236_s0 + $0x48] sm:$0xff]   ;;  %v938_v15 = vld [vmem:[%s1236_s0 + $0x50] ss:$0 sps:$4 sm:$0x11]   ;;  %v52_v18 = vsub.s32 2, %v43_v17  ;;  %v44_v20 = vsub.s32 0, %v43_v17 }
   0x6   :  { %878 = vmatmul.mubr.msk.bf16.vlgmr.msra.gmra.mrb[0].mxu1 %vm126_vm1, %v928_v5  ;;  %757 = vmatmul.mubr.msk.bf16.vlgmr.msra.gmra.mrb[0].mxu0 %vm126_vm1, %v928_v5  ;;  %v40_v19 = vld [vmem:[%s1237_s2] sm:$0x7]  ;;  %v48_v21 = vsub.s32 1, %v43_v17 }
   0x7   :  { %881 = vmatprep.mubr.msk.bf16.mxu1 %vm940_vm0, %v939_v0  ;;  %202 = vmatprep.mubr.bf16.mxu0 %v941_v3  ;;  %v1040_v22 = vrot.slane %v40_v19, %v52_v18  ;;  %v1042_v23 = vrot.slane %v40_v19, %v44_v20 }
   0x8   :  { %v1044_v24 = vrot.slane %v40_v19, %v48_v21 }
   0xe   :  { %882 = vmatmul.mubr.msk.bf16.gmra.mrb[4].mxu1 %vm126_vm1, %v929_v6  ;;  %758 = vmatmul.mubr.msk.bf16.gmra.mrb[4].mxu0 %vm126_vm1, %v929_v6 }
   0xf   :  { %885 = vmatprep.mubr.msk.bf16.mxu1 %vm940_vm0, %v939_v0  ;;  %212 = vmatprep.mubr.bf16.mxu0 %v941_v3 }
  0x16   :  { %886 = vmatmul.mubr.msk.bf16.gmra.mrb[8].mxu1 %vm126_vm1, %v930_v7  ;;  %759 = vmatmul.mubr.msk.bf16.gmra.mrb[8].mxu0 %vm126_vm1, %v930_v7 }
  0x17   :  { %889 = vmatprep.mubr.msk.bf16.mxu1 %vm940_vm0, %v939_v0  ;;  %222 = vmatprep.mubr.bf16.mxu0 %v941_v3 }
  0x1e   :  { %890 = vmatmul.mubr.msk.bf16.gmra.mrb[12].mxu1 %vm126_vm1, %v931_v8  ;;  %760 = vmatmul.mubr.msk.bf16.gmra.mrb[12].mxu0 %vm126_vm1, %v931_v8 }
  0x1f   :  { %893 = vmatprep.mubr.msk.bf16.mxu1 %vm940_vm0, %v939_v0  ;;  %232 = vmatprep.mubr.bf16.mxu0 %v941_v3 }
  0x26   :  { %894 = vmatmul.mubr.msk.bf16.gmra.mrb[16].mxu1 %vm126_vm1, %v932_v9  ;;  %761 = vmatmul.mubr.msk.bf16.gmra.mrb[16].mxu0 %vm126_vm1, %v932_v9 }
  0x27   :  { %897 = vmatprep.mubr.msk.bf16.mxu1 %vm940_vm0, %v939_v0  ;;  %242 = vmatprep.mubr.bf16.mxu0 %v941_v3 }
  0x2e   :  { %898 = vmatmul.mubr.msk.bf16.gmra.mrb[20].mxu1 %vm126_vm1, %v933_v10  ;;  %762 = vmatmul.mubr.msk.bf16.gmra.mrb[20].mxu0 %vm126_vm1, %v933_v10 }
  0x2f   :  { %901 = vmatprep.mubr.msk.bf16.mxu1 %vm940_vm0, %v939_v0  ;;  %252 = vmatprep.mubr.bf16.mxu0 %v941_v3 }
  0x36   :  { %902 = vmatmul.mubr.msk.bf16.gmra.mrb[24].mxu1 %vm126_vm1, %v934_v11  ;;  %763 = vmatmul.mubr.msk.bf16.gmra.mrb[24].mxu0 %vm126_vm1, %v934_v11 }
  0x37   :  { %905 = vmatprep.mubr.msk.bf16.mxu1 %vm940_vm0, %v939_v0  ;;  %262 = vmatprep.mubr.bf16.mxu0 %v941_v3 }
  0x3e   :  { %906 = vmatmul.mubr.msk.bf16.gmra.mrb[28].mxu1 %vm126_vm1, %v935_v12  ;;  %764 = vmatmul.mubr.msk.bf16.gmra.mrb[28].mxu0 %vm126_vm1, %v935_v12 }
  0x3f   :  { %909 = vmatprep.mubr.msk.bf16.mxu1 %vm940_vm0, %v939_v0  ;;  %272 = vmatprep.mubr.bf16.mxu0 %v941_v3 }
  0x46   :  { %910 = vmatmul.mubr.msk.bf16.gmra.mrb[32].mxu1 %vm126_vm1, %v936_v13  ;;  %765 = vmatmul.mubr.msk.bf16.gmra.mrb[32].mxu0 %vm126_vm1, %v936_v13 }
  0x47   :  { %913 = vmatprep.mubr.msk.bf16.mxu1 %vm940_vm0, %v939_v0  ;;  %282 = vmatprep.mubr.bf16.mxu0 %v941_v3 }
  0x4e   :  { %914 = vmatmul.mubr.msk.bf16.gmra.mrb[36].mxu1 %vm126_vm1, %v937_v14  ;;  %766 = vmatmul.mubr.msk.bf16.gmra.mrb[36].mxu0 %vm126_vm1, %v937_v14 }
  0x4f   :  { %917 = vmatprep.mubr.msk.bf16.mxu1 %vm940_vm0, %v939_v0  ;;  %292 = vmatprep.mubr.bf16.mxu0 %v941_v3 }
  0x56   :  { %918 = vmatmul.mubr.msk.bf16.gmra.mrb[40].mxu1 %vm126_vm1, %v938_v15  ;;  %767 = vmatmul.mubr.msk.bf16.gmra.mrb[40].mxu0 %vm126_vm1, %v938_v15 }
  0xd9   :  { %v335_v25 = vpop.f32.mrb[0].mxu1  ;;  %v194_v27 = vpop.f32.mrb[0].mxu0 }
  0xda   :  { %v336_v26 = vadd.f32 %v335_v25, %v1040_v22  ;;  %v879_v28 = vpop.f32.mrb[1].mxu1  ;;  %v195_v29 = vadd.f32 %v194_v27, %v1042_v23  ;;  %v196_v30 = vpop.f32.mrb[1].mxu0 }
  0xdb   :  { %v338_v31 = vpop.f32.mrb[2].mxu1  ;;  %v197_v33 = vadd.f32 %v196_v30, %v1044_v24  ;;  %v198_v35 = vpop.f32.mrb[2].mxu0 }
  0xdc   :  { %v423_v32 = vmax.f32 %v336_v26, 0.0  ;;  %v339_v34 = vadd.f32 %v338_v31, %v1040_v22  ;;  %v880_v36 = vpop.f32.mrb[3].mxu1  ;;  %v421_v37 = vmax.f32 %v195_v29, 0.0  ;;  %v199_v38 = vadd.f32 %v198_v35, %v1042_v23  ;;  %v200_v39 = vpop.f32.mrb[3].mxu0 }
  0xdd   :  { %v422_v41 = vmax.f32 %v197_v33, 0.0  ;;  %v201_v43 = vadd.f32 %v200_v39, %v1044_v24 }
  0xde   :  { %v822_v40 = vpack.c.bf16 %v423_v32, %v423_v32  ;;  %v426_v42 = vmax.f32 %v339_v34, 0.0  ;;  %v424_v44 = vmax.f32 %v199_v38, 0.0 }
  0xdf   :  { %v821_v45 = vpack.c.bf16 %v422_v41, %v421_v37  ;;  %v425_v47 = vmax.f32 %v201_v43, 0.0 }
  0xe0   :  { %698 = vst [vmem:[%s1238_s3 + $0x8] sm:$0xf] %v822_v40  ;;  %v824_v46 = vpack.c.bf16 %v426_v42, %v426_v42 }
  0xe1   :  { %v343_v48 = vpop.f32.mrb[4].mxu1  ;;  %697 = vst [vmem:[%s1238_s3] sm:$0xff] %v821_v45  ;;  %v823_v49 = vpack.c.bf16 %v425_v47, %v424_v44  ;;  %v204_v51 = vpop.f32.mrb[4].mxu0 }
  0xe2   :  { %700 = vst [vmem:[%s1238_s3 + $0x14] sm:$0xf] %v824_v46  ;;  %v344_v50 = vadd.f32 %v343_v48, %v1040_v22  ;;  %v883_v52 = vpop.f32.mrb[5].mxu1  ;;  %v205_v53 = vadd.f32 %v204_v51, %v1042_v23  ;;  %v206_v54 = vpop.f32.mrb[5].mxu0 }
  0xe3   :  { %v346_v55 = vpop.f32.mrb[6].mxu1  ;;  %699 = vst [vmem:[%s1238_s3 + $0xc] sm:$0xff] %v823_v49  ;;  %v207_v57 = vadd.f32 %v206_v54, %v1044_v24  ;;  %v208_v59 = vpop.f32.mrb[6].mxu0 }
  0xe4   :  { %v429_v56 = vmax.f32 %v344_v50, 0.0  ;;  %v347_v58 = vadd.f32 %v346_v55, %v1040_v22  ;;  %v884_v60 = vpop.f32.mrb[7].mxu1  ;;  %v427_v61 = vmax.f32 %v205_v53, 0.0  ;;  %v209_v62 = vadd.f32 %v208_v59, %v1042_v23  ;;  %v210_v63 = vpop.f32.mrb[7].mxu0 }
  0xe5   :  { %v428_v1 = vmax.f32 %v207_v57, 0.0  ;;  %v211_v3 = vadd.f32 %v210_v63, %v1044_v24 }
  0xe6   :  { %v826_v0 = vpack.c.bf16 %v429_v56, %v429_v56  ;;  %v432_v2 = vmax.f32 %v347_v58, 0.0  ;;  %v430_v4 = vmax.f32 %v209_v62, 0.0 }
  0xe7   :  { %v825_v5 = vpack.c.bf16 %v428_v1, %v427_v61  ;;  %v431_v7 = vmax.f32 %v211_v3, 0.0 }
  0xe8   :  { %702 = vst [vmem:[%s1238_s3 + $0x20] sm:$0xf] %v826_v0  ;;  %v828_v6 = vpack.c.bf16 %v432_v2, %v432_v2 }
  0xe9   :  { %v351_v8 = vpop.f32.mrb[8].mxu1  ;;  %701 = vst [vmem:[%s1238_s3 + $0x18] sm:$0xff] %v825_v5  ;;  %v827_v9 = vpack.c.bf16 %v431_v7, %v430_v4  ;;  %v214_v11 = vpop.f32.mrb[8].mxu0 }
  0xea   :  { %704 = vst [vmem:[%s1238_s3 + $0x2c] sm:$0xf] %v828_v6  ;;  %v352_v10 = vadd.f32 %v351_v8, %v1040_v22  ;;  %v887_v12 = vpop.f32.mrb[9].mxu1  ;;  %v215_v13 = vadd.f32 %v214_v11, %v1042_v23  ;;  %v216_v14 = vpop.f32.mrb[9].mxu0 }
  0xeb   :  { %v354_v15 = vpop.f32.mrb[10].mxu1  ;;  %703 = vst [vmem:[%s1238_s3 + $0x24] sm:$0xff] %v827_v9  ;;  %v217_v17 = vadd.f32 %v216_v14, %v1044_v24  ;;  %v218_v19 = vpop.f32.mrb[10].mxu0 }
  0xec   :  { %v435_v16 = vmax.f32 %v352_v10, 0.0  ;;  %v355_v18 = vadd.f32 %v354_v15, %v1040_v22  ;;  %v888_v20 = vpop.f32.mrb[11].mxu1  ;;  %v433_v21 = vmax.f32 %v215_v13, 0.0  ;;  %v219_v25 = vadd.f32 %v218_v19, %v1042_v23  ;;  %v220_v26 = vpop.f32.mrb[11].mxu0 }
  0xed   :  { %v434_v28 = vmax.f32 %v217_v17, 0.0  ;;  %v221_v30 = vadd.f32 %v220_v26, %v1044_v24 }
  0xee   :  { %v830_v27 = vpack.c.bf16 %v435_v16, %v435_v16  ;;  %v438_v29 = vmax.f32 %v355_v18, 0.0  ;;  %v436_v31 = vmax.f32 %v219_v25, 0.0 }
  0xef   :  { %v829_v32 = vpack.c.bf16 %v434_v28, %v433_v21  ;;  %v437_v34 = vmax.f32 %v221_v30, 0.0 }
  0xf0   :  { %706 = vst [vmem:[%s1238_s3 + $0x38] sm:$0xf] %v830_v27  ;;  %v832_v33 = vpack.c.bf16 %v438_v29, %v438_v29 }
  0xf1   :  { %v359_v35 = vpop.f32.mrb[12].mxu1  ;;  %705 = vst [vmem:[%s1238_s3 + $0x30] sm:$0xff] %v829_v32  ;;  %v831_v36 = vpack.c.bf16 %v437_v34, %v436_v31  ;;  %v224_v38 = vpop.f32.mrb[12].mxu0 }
  0xf2   :  { %708 = vst [vmem:[%s1238_s3 + $0x44] sm:$0xf] %v832_v33  ;;  %v360_v37 = vadd.f32 %v359_v35, %v1040_v22  ;;  %v891_v39 = vpop.f32.mrb[13].mxu1  ;;  %v225_v40 = vadd.f32 %v224_v38, %v1042_v23  ;;  %v226_v41 = vpop.f32.mrb[13].mxu0 }
  0xf3   :  { %v362_v42 = vpop.f32.mrb[14].mxu1  ;;  %707 = vst [vmem:[%s1238_s3 + $0x3c] sm:$0xff] %v831_v36  ;;  %v227_v44 = vadd.f32 %v226_v41, %v1044_v24  ;;  %v228_v46 = vpop.f32.mrb[14].mxu0 }
  0xf4   :  { %v441_v43 = vmax.f32 %v360_v37, 0.0  ;;  %v363_v45 = vadd.f32 %v362_v42, %v1040_v22  ;;  %v892_v47 = vpop.f32.mrb[15].mxu1  ;;  %v439_v48 = vmax.f32 %v225_v40, 0.0  ;;  %v229_v49 = vadd.f32 %v228_v46, %v1042_v23  ;;  %v230_v50 = vpop.f32.mrb[15].mxu0 }
  0xf5   :  { %v440_v52 = vmax.f32 %v227_v44, 0.0  ;;  %v231_v54 = vadd.f32 %v230_v50, %v1044_v24 }
  0xf6   :  { %v834_v51 = vpack.c.bf16 %v441_v43, %v441_v43  ;;  %v444_v53 = vmax.f32 %v363_v45, 0.0  ;;  %v442_v55 = vmax.f32 %v229_v49, 0.0 }
  0xf7   :  { %v833_v56 = vpack.c.bf16 %v440_v52, %v439_v48  ;;  %v443_v58 = vmax.f32 %v231_v54, 0.0 }
  0xf8   :  { %710 = vst [vmem:[%s1238_s3 + $0x50] sm:$0xf] %v834_v51  ;;  %v836_v57 = vpack.c.bf16 %v444_v53, %v444_v53 }
  0xf9   :  { %v367_v59 = vpop.f32.mrb[16].mxu1  ;;  %709 = vst [vmem:[%s1238_s3 + $0x48] sm:$0xff] %v833_v56  ;;  %v835_v60 = vpack.c.bf16 %v443_v58, %v442_v55  ;;  %v234_v62 = vpop.f32.mrb[16].mxu0 }
  0xfa   :  { %712 = vst [vmem:[%s1238_s3 + $0x5c] sm:$0xf] %v836_v57  ;;  %v368_v61 = vadd.f32 %v367_v59, %v1040_v22  ;;  %v895_v63 = vpop.f32.mrb[17].mxu1  ;;  %v235_v0 = vadd.f32 %v234_v62, %v1042_v23  ;;  %v236_v1 = vpop.f32.mrb[17].mxu0 }
  0xfb   :  { %v370_v2 = vpop.f32.mrb[18].mxu1  ;;  %711 = vst [vmem:[%s1238_s3 + $0x54] sm:$0xff] %v835_v60  ;;  %v237_v4 = vadd.f32 %v236_v1, %v1044_v24  ;;  %v238_v6 = vpop.f32.mrb[18].mxu0 }
  0xfc   :  { %v447_v3 = vmax.f32 %v368_v61, 0.0  ;;  %v371_v5 = vadd.f32 %v370_v2, %v1040_v22  ;;  %v896_v7 = vpop.f32.mrb[19].mxu1  ;;  %v445_v8 = vmax.f32 %v235_v0, 0.0  ;;  %v239_v9 = vadd.f32 %v238_v6, %v1042_v23  ;;  %v240_v10 = vpop.f32.mrb[19].mxu0 }
  0xfd   :  { %v446_v12 = vmax.f32 %v237_v4, 0.0  ;;  %v241_v14 = vadd.f32 %v240_v10, %v1044_v24 }
  0xfe   :  { %v838_v11 = vpack.c.bf16 %v447_v3, %v447_v3  ;;  %v450_v13 = vmax.f32 %v371_v5, 0.0  ;;  %v448_v15 = vmax.f32 %v239_v9, 0.0 }
  0xff   :  { %v837_v16 = vpack.c.bf16 %v446_v12, %v445_v8  ;;  %v449_v18 = vmax.f32 %v241_v14, 0.0 }
 0x100   :  { %714 = vst [vmem:[%s1238_s3 + $0x68] sm:$0xf] %v838_v11  ;;  %v840_v17 = vpack.c.bf16 %v450_v13, %v450_v13 }
 0x101   :  { %v375_v19 = vpop.f32.mrb[20].mxu1  ;;  %713 = vst [vmem:[%s1238_s3 + $0x60] sm:$0xff] %v837_v16  ;;  %v839_v20 = vpack.c.bf16 %v449_v18, %v448_v15  ;;  %v244_v25 = vpop.f32.mrb[20].mxu0 }
 0x102   :  { %716 = vst [vmem:[%s1238_s3 + $0x74] sm:$0xf] %v840_v17  ;;  %v376_v21 = vadd.f32 %v375_v19, %v1040_v22  ;;  %v899_v26 = vpop.f32.mrb[21].mxu1  ;;  %v245_v27 = vadd.f32 %v244_v25, %v1042_v23  ;;  %v246_v28 = vpop.f32.mrb[21].mxu0 }
 0x103   :  { %v378_v29 = vpop.f32.mrb[22].mxu1  ;;  %715 = vst [vmem:[%s1238_s3 + $0x6c] sm:$0xff] %v839_v20  ;;  %v247_v31 = vadd.f32 %v246_v28, %v1044_v24  ;;  %v248_v33 = vpop.f32.mrb[22].mxu0 }
 0x104   :  { %v453_v30 = vmax.f32 %v376_v21, 0.0  ;;  %v379_v32 = vadd.f32 %v378_v29, %v1040_v22  ;;  %v900_v34 = vpop.f32.mrb[23].mxu1  ;;  %v451_v35 = vmax.f32 %v245_v27, 0.0  ;;  %v249_v36 = vadd.f32 %v248_v33, %v1042_v23  ;;  %v250_v37 = vpop.f32.mrb[23].mxu0 }
 0x105   :  { %v452_v39 = vmax.f32 %v247_v31, 0.0  ;;  %v251_v41 = vadd.f32 %v250_v37, %v1044_v24 }
 0x106   :  { %v842_v38 = vpack.c.bf16 %v453_v30, %v453_v30  ;;  %v456_v40 = vmax.f32 %v379_v32, 0.0  ;;  %v454_v42 = vmax.f32 %v249_v36, 0.0 }
 0x107   :  { %v841_v43 = vpack.c.bf16 %v452_v39, %v451_v35  ;;  %v455_v45 = vmax.f32 %v251_v41, 0.0 }
 0x108   :  { %718 = vst [vmem:[%s1238_s3 + $0x80] sm:$0xf] %v842_v38  ;;  %v844_v44 = vpack.c.bf16 %v456_v40, %v456_v40 }
 0x109   :  { %v383_v46 = vpop.f32.mrb[24].mxu1  ;;  %717 = vst [vmem:[%s1238_s3 + $0x78] sm:$0xff] %v841_v43  ;;  %v843_v47 = vpack.c.bf16 %v455_v45, %v454_v42  ;;  %v254_v49 = vpop.f32.mrb[24].mxu0 }
 0x10a   :  { %720 = vst [vmem:[%s1238_s3 + $0x8c] sm:$0xf] %v844_v44  ;;  %v384_v48 = vadd.f32 %v383_v46, %v1040_v22  ;;  %v903_v50 = vpop.f32.mrb[25].mxu1  ;;  %v255_v51 = vadd.f32 %v254_v49, %v1042_v23  ;;  %v256_v52 = vpop.f32.mrb[25].mxu0 }
 0x10b   :  { %v386_v53 = vpop.f32.mrb[26].mxu1  ;;  %719 = vst [vmem:[%s1238_s3 + $0x84] sm:$0xff] %v843_v47  ;;  %v257_v55 = vadd.f32 %v256_v52, %v1044_v24  ;;  %v258_v57 = vpop.f32.mrb[26].mxu0 }
 0x10c   :  { %v459_v54 = vmax.f32 %v384_v48, 0.0  ;;  %v387_v56 = vadd.f32 %v386_v53, %v1040_v22  ;;  %v904_v58 = vpop.f32.mrb[27].mxu1  ;;  %v457_v59 = vmax.f32 %v255_v51, 0.0  ;;  %v259_v60 = vadd.f32 %v258_v57, %v1042_v23  ;;  %v260_v61 = vpop.f32.mrb[27].mxu0 }
 0x10d   :  { %v458_v63 = vmax.f32 %v257_v55, 0.0  ;;  %v261_v1 = vadd.f32 %v260_v61, %v1044_v24 }
 0x10e   :  { %v846_v62 = vpack.c.bf16 %v459_v54, %v459_v54  ;;  %v462_v0 = vmax.f32 %v387_v56, 0.0  ;;  %v460_v2 = vmax.f32 %v259_v60, 0.0 }
 0x10f   :  { %v845_v3 = vpack.c.bf16 %v458_v63, %v457_v59  ;;  %v461_v5 = vmax.f32 %v261_v1, 0.0 }
 0x110   :  { %722 = vst [vmem:[%s1238_s3 + $0x98] sm:$0xf] %v846_v62  ;;  %v848_v4 = vpack.c.bf16 %v462_v0, %v462_v0 }
 0x111   :  { %v391_v6 = vpop.f32.mrb[28].mxu1  ;;  %721 = vst [vmem:[%s1238_s3 + $0x90] sm:$0xff] %v845_v3  ;;  %v847_v7 = vpack.c.bf16 %v461_v5, %v460_v2  ;;  %v264_v9 = vpop.f32.mrb[28].mxu0 }
 0x112   :  { %724 = vst [vmem:[%s1238_s3 + $0xa4] sm:$0xf] %v848_v4  ;;  %v392_v8 = vadd.f32 %v391_v6, %v1040_v22  ;;  %v907_v10 = vpop.f32.mrb[29].mxu1  ;;  %v265_v11 = vadd.f32 %v264_v9, %v1042_v23  ;;  %v266_v12 = vpop.f32.mrb[29].mxu0 }
 0x113   :  { %v394_v13 = vpop.f32.mrb[30].mxu1  ;;  %723 = vst [vmem:[%s1238_s3 + $0x9c] sm:$0xff] %v847_v7  ;;  %v267_v15 = vadd.f32 %v266_v12, %v1044_v24  ;;  %v268_v17 = vpop.f32.mrb[30].mxu0 }
 0x114   :  { %v465_v14 = vmax.f32 %v392_v8, 0.0  ;;  %v395_v16 = vadd.f32 %v394_v13, %v1040_v22  ;;  %v908_v18 = vpop.f32.mrb[31].mxu1  ;;  %v463_v19 = vmax.f32 %v265_v11, 0.0  ;;  %v269_v20 = vadd.f32 %v268_v17, %v1042_v23  ;;  %v270_v21 = vpop.f32.mrb[31].mxu0 }
 0x115   :  { %v464_v26 = vmax.f32 %v267_v15, 0.0  ;;  %v271_v28 = vadd.f32 %v270_v21, %v1044_v24 }
 0x116   :  { %v850_v25 = vpack.c.bf16 %v465_v14, %v465_v14  ;;  %v468_v27 = vmax.f32 %v395_v16, 0.0  ;;  %v466_v29 = vmax.f32 %v269_v20, 0.0 }
 0x117   :  { %v849_v30 = vpack.c.bf16 %v464_v26, %v463_v19  ;;  %v467_v32 = vmax.f32 %v271_v28, 0.0 }
 0x118   :  { %726 = vst [vmem:[%s1238_s3 + $0xb0] sm:$0xf] %v850_v25  ;;  %v852_v31 = vpack.c.bf16 %v468_v27, %v468_v27 }
 0x119   :  { %v399_v33 = vpop.f32.mrb[32].mxu1  ;;  %725 = vst [vmem:[%s1238_s3 + $0xa8] sm:$0xff] %v849_v30  ;;  %v851_v34 = vpack.c.bf16 %v467_v32, %v466_v29  ;;  %v274_v36 = vpop.f32.mrb[32].mxu0 }
 0x11a   :  { %728 = vst [vmem:[%s1238_s3 + $0xbc] sm:$0xf] %v852_v31  ;;  %v400_v35 = vadd.f32 %v399_v33, %v1040_v22  ;;  %v911_v37 = vpop.f32.mrb[33].mxu1  ;;  %v275_v38 = vadd.f32 %v274_v36, %v1042_v23  ;;  %v276_v39 = vpop.f32.mrb[33].mxu0 }
 0x11b   :  { %v402_v40 = vpop.f32.mrb[34].mxu1  ;;  %727 = vst [vmem:[%s1238_s3 + $0xb4] sm:$0xff] %v851_v34  ;;  %v277_v42 = vadd.f32 %v276_v39, %v1044_v24  ;;  %v278_v44 = vpop.f32.mrb[34].mxu0 }
 0x11c   :  { %v471_v41 = vmax.f32 %v400_v35, 0.0  ;;  %v403_v43 = vadd.f32 %v402_v40, %v1040_v22  ;;  %v912_v45 = vpop.f32.mrb[35].mxu1  ;;  %v469_v46 = vmax.f32 %v275_v38, 0.0  ;;  %v279_v47 = vadd.f32 %v278_v44, %v1042_v23  ;;  %v280_v48 = vpop.f32.mrb[35].mxu0 }
 0x11d   :  { %v470_v50 = vmax.f32 %v277_v42, 0.0  ;;  %v281_v52 = vadd.f32 %v280_v48, %v1044_v24 }
 0x11e   :  { %v854_v49 = vpack.c.bf16 %v471_v41, %v471_v41  ;;  %v474_v51 = vmax.f32 %v403_v43, 0.0  ;;  %v472_v53 = vmax.f32 %v279_v47, 0.0 }
 0x11f   :  { %v853_v54 = vpack.c.bf16 %v470_v50, %v469_v46  ;;  %v473_v56 = vmax.f32 %v281_v52, 0.0 }
 0x120   :  { %730 = vst [vmem:[%s1238_s3 + $0xc8] sm:$0xf] %v854_v49  ;;  %v856_v55 = vpack.c.bf16 %v474_v51, %v474_v51 }
 0x121   :  { %v407_v57 = vpop.f32.mrb[36].mxu1  ;;  %729 = vst [vmem:[%s1238_s3 + $0xc0] sm:$0xff] %v853_v54  ;;  %v855_v58 = vpack.c.bf16 %v473_v56, %v472_v53  ;;  %v284_v60 = vpop.f32.mrb[36].mxu0 }
 0x122   :  { %732 = vst [vmem:[%s1238_s3 + $0xd4] sm:$0xf] %v856_v55  ;;  %v408_v59 = vadd.f32 %v407_v57, %v1040_v22  ;;  %v915_v61 = vpop.f32.mrb[37].mxu1  ;;  %v285_v62 = vadd.f32 %v284_v60, %v1042_v23  ;;  %v286_v63 = vpop.f32.mrb[37].mxu0 }
 0x123   :  { %v410_v0 = vpop.f32.mrb[38].mxu1  ;;  %731 = vst [vmem:[%s1238_s3 + $0xcc] sm:$0xff] %v855_v58  ;;  %v287_v2 = vadd.f32 %v286_v63, %v1044_v24  ;;  %v288_v4 = vpop.f32.mrb[38].mxu0 }
 0x124   :  { %v477_v1 = vmax.f32 %v408_v59, 0.0  ;;  %v411_v3 = vadd.f32 %v410_v0, %v1040_v22  ;;  %v916_v5 = vpop.f32.mrb[39].mxu1  ;;  %v475_v6 = vmax.f32 %v285_v62, 0.0  ;;  %v289_v7 = vadd.f32 %v288_v4, %v1042_v23  ;;  %v290_v8 = vpop.f32.mrb[39].mxu0 }
 0x125   :  { %v476_v10 = vmax.f32 %v287_v2, 0.0  ;;  %v291_v12 = vadd.f32 %v290_v8, %v1044_v24 }
 0x126   :  { %v858_v9 = vpack.c.bf16 %v477_v1, %v477_v1  ;;  %v480_v11 = vmax.f32 %v411_v3, 0.0  ;;  %v478_v13 = vmax.f32 %v289_v7, 0.0 }
 0x127   :  { %v857_v14 = vpack.c.bf16 %v476_v10, %v475_v6  ;;  %v479_v16 = vmax.f32 %v291_v12, 0.0 }
 0x128   :  { %734 = vst [vmem:[%s1238_s3 + $0xe0] sm:$0xf] %v858_v9  ;;  %v860_v15 = vpack.c.bf16 %v480_v11, %v480_v11 }
 0x129   :  { %v415_v17 = vpop.f32.mrb[40].mxu1  ;;  %733 = vst [vmem:[%s1238_s3 + $0xd8] sm:$0xff] %v857_v14  ;;  %v859_v18 = vpack.c.bf16 %v479_v16, %v478_v13  ;;  %v294_v20 = vpop.f32.mrb[40].mxu0 }
 0x12a   :  { %736 = vst [vmem:[%s1238_s3 + $0xec] sm:$0xf] %v860_v15  ;;  %v416_v19 = vadd.f32 %v415_v17, %v1040_v22  ;;  %v919_v21 = vpop.f32.mrb[41].mxu1  ;;  %v295_v25 = vadd.f32 %v294_v20, %v1042_v23  ;;  %v296_v26 = vpop.f32.mrb[41].mxu0 }
 0x12b   :  { %v418_v27 = vpop.f32.mrb[42].mxu1  ;;  %735 = vst [vmem:[%s1238_s3 + $0xe4] sm:$0xff] %v859_v18  ;;  %v297_v29 = vadd.f32 %v296_v26, %v1044_v24  ;;  %v298_v30 = vpop.f32.mrb[42].mxu0 }
 0x12c   :  { %v483_v28 = vmax.f32 %v416_v19, 0.0  ;;  %v920_v31 = vpop.f32.mrb[43].mxu1  ;;  %v481_v32 = vmax.f32 %v295_v25, 0.0  ;;  %v299_v33 = vpop.f32.mrb[43].mxu0 }
 0x12d   :  { %v482_v35 = vmax.f32 %v297_v29, 0.0 }
 0x12e   :  { %v862_v34 = vpack.c.bf16 %v483_v28, %v483_v28 }
 0x12f   :  { %v861_v22 = vpack.c.bf16 %v482_v35, %v481_v32 }
 0x130   :  { %738 = vst [vmem:[%s1238_s3 + $0xf8] sm:$0x1] %v862_v34 }
 0x131   :  { %737 = vst [vmem:[%s1238_s3 + $0xf0] sm:$0x11] %v861_v22 }

// kernel: inception_d_forward.8
= control target key start
LH: loop header
LB: loop body
LE: loop exit
PB: predicated region body
PF: predicated region fallthrough
CT: control target
= control target key end

     0   :  { %vm309_vm0 = vcmask 523264   ;;  %vm4957_vm1 = vcmask 1043456   ;;  %vm4958_vm2 = vcmask 523268   ;;  %s8232_s1 = inlined_call_operand.vmem [shape: bf16[7,192,192], index: 1, kind: input, shape index: {}]   ;;  %s8233_s0 = inlined_call_operand.vmem [shape: bf16[15,24,192], index: 0, kind: input, shape index: {}]   ;;  %s8234_s2 = inlined_call_operand.vmem [shape: f32[1,1,192], index: 2, kind: input, shape index: {}]   ;;  %s8235_s3 = inlined_call_operand.vmem [shape: bf16[9,24,192], index: 3, kind: output, shape index: {}]  }
   0x1   :  { %v5837_v0 = vld [vmem:[%s8232_s1 + $0x4] ss:$8 sps:$4 sm:$0xff]   ;;  %v5839_v1 = vld [vmem:[%s8232_s1] ss:$8 sps:$4 sm:$0xff]   ;;  %v5840_v2 = vld [vmem:[%s8232_s1 + $0x14] ss:$8 sps:$4 sm:$0xff]  }
   0x2   :  { %5813 = vmatprep.subr.bf16.mxu1 %v5837_v0  ;;  %352 = vmatprep.subr.bf16.mxu0 %v5837_v0  ;;  %v5842_v3 = vld [vmem:[%s8232_s1 + $0x10] ss:$8 sps:$4 sm:$0xff]   ;;  %v5843_v4 = vld [vmem:[%s8232_s1 + $0x24] ss:$8 sps:$4 sm:$0xff]   ;;  %v5845_v5 = vld [vmem:[%s8232_s1 + $0x20] ss:$8 sps:$4 sm:$0xff]  }
   0x3   :  { %5825 = vmatpush1.bf16.msra.mxu1 %v5839_v1  ;;  %353 = vmatpush1.bf16.msra.mxu0 %v5839_v1  ;;  %v5846_v6 = vld [vmem:[%s8232_s1 + $0x34] ss:$8 sps:$4 sm:$0xff]   ;;  %v5848_v7 = vld [vmem:[%s8232_s1 + $0x30] ss:$8 sps:$4 sm:$0xff]   ;;  %v5849_v8 = vld [vmem:[%s8232_s1 + $0x44] ss:$8 sps:$4 sm:$0xff]  }
   0x4   :  { %5814 = vmatprep.subr.bf16.mxu1 %v5840_v2  ;;  %354 = vmatprep.subr.bf16.mxu0 %v5840_v2  ;;  %v5851_v9 = vld [vmem:[%s8232_s1 + $0x40] ss:$8 sps:$4 sm:$0xff]   ;;  %v5852_v10 = vld [vmem:[%s8232_s1 + $0x54] ss:$8 sps:$4 sm:$0xff]   ;;  %v5854_v14 = vld [vmem:[%s8232_s1 + $0x50] ss:$8 sps:$4 sm:$0xff]  }
   0x5   :  { %v6247_v11 = vld [vmem:[%s8233_s0 + $0x70] sm:$0xff]  ;;  %v6252_v12 = vld [vmem:[%s8233_s0 + $0x78] sm:$0xff]  ;;  %v5855_v15 = vld [vmem:[%s8232_s1 + $0x64] ss:$8 sps:$4 sm:$0xff]  }
   0x6   :  { %v6256_v13 = vcombine.high %v6247_v11, %v6252_v12  ;;  %v5883_v16 = vld [vmem:[%s8233_s0 + $0x4] ss:$8 sps:$4 sm:$0xff]   ;;  %v5857_v20 = vld [vmem:[%s8232_s1 + $0x60] ss:$8 sps:$4 sm:$0xff]   ;;  %v5858_v21 = vld [vmem:[%s8232_s1 + $0x74] ss:$8 sps:$4 sm:$0xff]   ;;  %v6365_v46 = vcombine.low %v6247_v11, %v6252_v12 }
   0x7   :  { %5826 = vmatpush1.bf16.msra.mxu1 %v5842_v3  ;;  %355 = vmatpush1.bf16.msra.mxu0 %v5842_v3  ;;  %v6270_v17 = vld [vmem:[%s8233_s0 + $0x80] sm:$0xff]  ;;  %v6288_v22 = vld [vmem:[%s8233_s0 + $0x88] sm:$0xff]  ;;  %v6293_v23 = vld [vmem:[%s8233_s0 + $0x90] sm:$0xff] }
   0x8   :  { %5815 = vmatprep.subr.bf16.mxu1 %v5843_v4  ;;  %356 = vmatprep.subr.bf16.mxu0 %v5843_v4  ;;  %v5121_v18 = vcombine.high %v6252_v12, %v6270_v17  ;;  %v5120_v19 = vcombine.low %v6252_v12, %v6270_v17  ;;  %v5860_v24 = vld [vmem:[%s8232_s1 + $0x70] ss:$8 sps:$4 sm:$0xff]   ;;  %v5123_v25 = vcombine.high %v6288_v22, %v6293_v23  ;;  %v5861_v26 = vld [vmem:[%s8232_s1 + $0x84] ss:$8 sps:$4 sm:$0xff]   ;;  %v5863_v28 = vld [vmem:[%s8232_s1 + $0x80] ss:$8 sps:$4 sm:$0xff]  }
   0x9   :  { %5050 = vmatprep.mubr.msk.bf16.mxu1 %vm309_vm0, %v6256_v13  ;;  %5043 = vmatprep.mubr.msk.bf16.mxu0 %vm309_vm0, %v5883_v16  ;;  %v5122_v27 = vcombine.low %v6288_v22, %v6293_v23  ;;  %v5864_v29 = vld [vmem:[%s8232_s1 + $0x94] ss:$8 sps:$4 sm:$0xff]   ;;  %v6319_v31 = vld [vmem:[%s8233_s0 + $0xa0] sm:$0xff]  ;;  %v5866_v33 = vld [vmem:[%s8232_s1 + $0x90] ss:$8 sps:$4 sm:$0xff]   ;;  %v6383_v51 = vcombine.high %v6270_v17, %v6288_v22  ;;  %v6427_v0 = vcombine.low %v6270_v17, %v6288_v22 }
   0xa   :  { %v6314_v30 = vld [vmem:[%s8233_s0 + $0x98] sm:$0xff]  ;;  %v5867_v35 = vld [vmem:[%s8232_s1 + $0xa4] ss:$8 sps:$4 sm:$0xff]   ;;  %v5869_v36 = vld [vmem:[%s8232_s1 + $0xa0] ss:$8 sps:$4 sm:$0xff]  }
   0xb   :  { %5827 = vmatpush1.bf16.msra.mxu1 %v5845_v5  ;;  %357 = vmatpush1.bf16.msra.mxu0 %v5845_v5  ;;  %v5125_v32 = vcombine.high %v6314_v30, %v6319_v31  ;;  %v5124_v34 = vcombine.low %v6314_v30, %v6319_v31  ;;  %v5870_v37 = vld [vmem:[%s8232_s1 + $0xb4] ss:$8 sps:$4 sm:$0xff]   ;;  %v6340_v38 = vld [vmem:[%s8233_s0 + $0xa8] sm:$0xff]  ;;  %v5872_v41 = vld [vmem:[%s8232_s1 + $0xb0] ss:$8 sps:$4 sm:$0xff]   ;;  %v6445_v5 = vcombine.high %v6293_v23, %v6314_v30 }
   0xc   :  { %5816 = vmatprep.subr.bf16.mxu1 %v5846_v6  ;;  %358 = vmatprep.subr.bf16.mxu0 %v5846_v6  ;;  %v6345_v39 = vld [vmem:[%s8233_s0 + $0xb0] sm:$0xff]  ;;  %v5877_v43 = vld [vmem:[%s8232_s1 + $0xc4] ss:$8 sps:$4 sm:$0xff]   ;;  %v5881_v45 = vld [vmem:[%s8233_s0] ss:$8 sps:$4 sm:$0xff]  }
   0xd   :  { %v5127_v40 = vcombine.high %v6340_v38, %v6345_v39  ;;  %v5126_v42 = vcombine.low %v6340_v38, %v6345_v39  ;;  %v5891_v44 = vld [vmem:[%s8232_s1 + $0x184] ss:$8 sps:$4 sm:$0xff]   ;;  %v17_v47 = vld [vmem:[%s8233_s0 + $0x10] sm:$0xff]  ;;  %v6373_v48 = vld [vmem:[%s8233_s0 + $0x18] sm:$0xff] }
   0xe   :  { %v5875_v49 = vld [vmem:[%s8232_s1 + $0xc0] ss:$8 sps:$4 sm:$0xff]   ;;  %v5880_v50 = vld [vmem:[%s8232_s1 + $0xd4] ss:$8 sps:$4 sm:$0xff]   ;;  %v4994_v55 = vcombine.high %v17_v47, %v6373_v48  ;;  %v5878_v58 = vld [vmem:[%s8232_s1 + $0xd0] ss:$8 sps:$4 sm:$0xff]   ;;  %v4993_v2 = vcombine.low %v17_v47, %v6373_v48 }
   0xf   :  { %5828 = vmatpush1.bf16.msra.mxu1 %v5848_v7  ;;  %359 = vmatpush1.bf16.msra.mxu0 %v5848_v7  ;;  %v5889_v52 = vld [vmem:[%s8232_s1 + $0x180] ss:$8 sps:$4 sm:$0xff]   ;;  %v5899_v53 = vld [vmem:[%s8232_s1 + $0x194] ss:$8 sps:$4 sm:$0xff]   ;;  %v5888_v60 = vld [vmem:[%s8232_s1 + $0xe4] ss:$8 sps:$4 sm:$0xff]  }
  0x10   :  { %5817 = vmatprep.subr.bf16.mxu1 %v5849_v8  ;;  %360 = vmatprep.subr.bf16.mxu0 %v5849_v8  ;;  %v6394_v54 = vld [vmem:[%s8233_s0 + $0xb8] sm:$0xff]  ;;  %v6400_v56 = vld [vmem:[%s8233_s0 + $0xc0] sm:$0xff]  ;;  %v6441_v4 = vld [vmem:[%s8233_s0 + $0x28] sm:$0xff] }
  0x11   :  { %v5129_v57 = vcombine.high %v6394_v54, %v6400_v56  ;;  %v5128_v59 = vcombine.low %v6394_v54, %v6400_v56  ;;  %v5897_v61 = vld [vmem:[%s8232_s1 + $0x190] ss:$8 sps:$4 sm:$0xff]   ;;  %v5886_v62 = vld [vmem:[%s8232_s1 + $0xe0] ss:$8 sps:$4 sm:$0xff]   ;;  %v5907_v63 = vld [vmem:[%s8232_s1 + $0x1a4] ss:$8 sps:$4 sm:$0xff]  }
  0x12   :  { %v5894_v1 = vld [vmem:[%s8232_s1 + $0xf4] ss:$8 sps:$4 sm:$0xff]   ;;  %v6436_v3 = vld [vmem:[%s8233_s0 + $0x20] sm:$0xff]  ;;  %v6972_v22 = vld [vmem:[%s8233_s0 + $0xe8] sm:$0xff] }
  0x13   :  { %5829 = vmatpush1.bf16.msra.mxu1 %v5851_v9  ;;  %361 = vmatpush1.bf16.msra.mxu0 %v5851_v9  ;;  %v5905_v6 = vld [vmem:[%s8232_s1 + $0x1a0] ss:$8 sps:$4 sm:$0xff]   ;;  %v5917_v7 = vld [vmem:[%s8232_s1 + $0x1b4] ss:$8 sps:$4 sm:$0xff]   ;;  %v4996_v8 = vcombine.high %v6436_v3, %v6441_v4  ;;  %v5904_v16 = vld [vmem:[%s8232_s1 + $0x104] ss:$8 sps:$4 sm:$0xff]  }
  0x14   :  { %5818 = vmatprep.subr.bf16.mxu1 %v5852_v10  ;;  %362 = vmatprep.subr.bf16.mxu0 %v5852_v10  ;;  %v6458_v9 = vld [vmem:[%s8233_s0 + $0xc8] sm:$0xff]  ;;  %v6463_v10 = vld [vmem:[%s8233_s0 + $0xd0] sm:$0xff]  ;;  %v6953_v12 = vld [vmem:[%s8233_s0 + $0xd8] sm:$0xff] }
  0x15   :  { %v5920_v47 = vld [vmem:[%s8232_s1 + $0x124] ss:$8 sps:$4 sm:$0xff]   ;;  %v5246_v17 = vcombine.high %v6463_v10, %v6953_v12  ;;  %vm7914_vm3 = vmor %vm4958_vm2, %vm4957_vm1 }
  0x17   :  { %5830 = vmatpush1.bf16.msra.mxu1 %v5854_v14  ;;  %363 = vmatpush1.bf16.msra.mxu0 %v5854_v14  ;;  %v5892_v14 = vld [vmem:[%s8232_s1 + $0xf0] ss:$8 sps:$4 sm:$0xff]  }
  0x18   :  { %5819 = vmatprep.subr.bf16.mxu1 %v5855_v15  ;;  %364 = vmatprep.subr.bf16.mxu0 %v5855_v15  ;;  %v5131_v15 = vcombine.high %v6458_v9, %v6463_v10 }
  0x1b   :  { %5831 = vmatpush1.bf16.msra.mxu1 %v5857_v20  ;;  %365 = vmatpush1.bf16.msra.mxu0 %v5857_v20  ;;  %v5130_v20 = vcombine.low %v6458_v9, %v6463_v10 }
  0x1c   :  { %5820 = vmatprep.subr.bf16.mxu1 %v5858_v21  ;;  %366 = vmatprep.subr.bf16.mxu0 %v5858_v21  ;;  %v5915_v21 = vld [vmem:[%s8232_s1 + $0x1b0] ss:$8 sps:$4 sm:$0xff]  }
  0x1f   :  { %5832 = vmatpush1.bf16.msra.mxu1 %v5860_v24  ;;  %367 = vmatpush1.bf16.msra.mxu0 %v5860_v24  ;;  %v5902_v24 = vld [vmem:[%s8232_s1 + $0x100] ss:$8 sps:$4 sm:$0xff]  }
  0x20   :  { %5821 = vmatprep.subr.bf16.mxu1 %v5861_v26  ;;  %368 = vmatprep.subr.bf16.mxu0 %v5861_v26  ;;  %v5923_v26 = vld [vmem:[%s8232_s1 + $0x1c4] ss:$8 sps:$4 sm:$0xff]  }
  0x23   :  { %5833 = vmatpush1.bf16.msra.mxu1 %v5863_v28  ;;  %369 = vmatpush1.bf16.msra.mxu0 %v5863_v28  ;;  %v6490_v28 = vcombine.low %v6293_v23, %v6314_v30  ;;  %v5245_v23 = vcombine.low %v6463_v10, %v6953_v12  ;;  %v6996_v30 = vld [vmem:[%s8233_s0 + $0xf8] sm:$0xff] }
  0x24   :  { %5822 = vmatprep.subr.bf16.mxu1 %v5864_v29  ;;  %370 = vmatprep.subr.bf16.mxu0 %v5864_v29  ;;  %v4995_v29 = vcombine.low %v6436_v3, %v6441_v4 }
  0x27   :  { %5834 = vmatpush1.bf16.msra.mxu1 %v5866_v33  ;;  %371 = vmatpush1.bf16.msra.mxu0 %v5866_v33  ;;  %v6497_v33 = vld [vmem:[%s8233_s0 + $0x30] sm:$0xff] }
  0x28   :  { %5823 = vmatprep.subr.bf16.mxu1 %v5867_v35  ;;  %372 = vmatprep.subr.bf16.mxu0 %v5867_v35  ;;  %v6502_v35 = vld [vmem:[%s8233_s0 + $0x38] sm:$0xff] }
  0x2b   :  { %5835 = vmatpush1.bf16.msra.mxu1 %v5869_v36  ;;  %373 = vmatpush1.bf16.msra.mxu0 %v5869_v36  ;;  %v6506_v36 = vcombine.high %v6319_v31, %v6340_v38 }
  0x2c   :  { %5824 = vmatprep.subr.bf16.mxu1 %v5870_v37  ;;  %374 = vmatprep.subr.bf16.mxu0 %v5870_v37  ;;  %v5914_v37 = vld [vmem:[%s8232_s1 + $0x114] ss:$8 sps:$4 sm:$0xff]  }
  0x2f   :  { %5836 = vmatpush1.bf16.msra.mxu1 %v5872_v41  ;;  %375 = vmatpush1.bf16.msra.mxu0 %v5872_v41  ;;  %v5921_v41 = vld [vmem:[%s8232_s1 + $0x1c0] ss:$8 sps:$4 sm:$0xff]  }
  0x30   :  { %915 = vmatprep.subr.bf16.mxu1 %v5877_v43  ;;  %1586 = vmatprep.subr.bf16.mxu0 %v5891_v44  ;;  %v6516_v43 = vcombine.high %v6497_v33, %v6502_v35  ;;  %v5933_v44 = vld [vmem:[%s8232_s1 + $0x1d4] ss:$8 sps:$4 sm:$0xff]  }
  0x32   :  { %455 = vmatmul.mubr.bf16.vlgmr.msra.gmra.mrb[0].mxu1 %v6365_v46  ;;  %385 = vmatmul.mubr.bf16.vlgmr.msra.gmra.mrb[0].mxu0 %v5881_v45  ;;  %v5912_v45 = vld [vmem:[%s8232_s1 + $0x110] ss:$8 sps:$4 sm:$0xff]  }
  0x33   :  { %916 = vmatpush1.bf16.msra.mxu1 %v5875_v49  ;;  %5051 = vmatprep.mubr.msk.bf16.mxu1 %vm309_vm0, %v6383_v51  ;;  %v5931_v49 = vld [vmem:[%s8232_s1 + $0x1d0] ss:$8 sps:$4 sm:$0xff]  }
  0x34   :  { %917 = vmatprep.subr.bf16.mxu1 %v5880_v50  ;;  %1587 = vmatpush1.bf16.msra.mxu0 %v5889_v52  ;;  %v5939_v50 = vld [vmem:[%s8232_s1 + $0x1e4] ss:$8 sps:$4 sm:$0xff]  }
  0x35   :  { %5044 = vmatprep.mubr.msk.bf16.mxu0 %vm309_vm0, %v4994_v55  ;;  %1588 = vmatprep.subr.bf16.mxu0 %v5899_v53  ;;  %v6541_v52 = vld [vmem:[%s8233_s0 + $0x40] sm:$0xff]  ;;  %v6546_v53 = vld [vmem:[%s8233_s0 + $0x48] sm:$0xff]  ;;  %v6550_v55 = vcombine.low %v6319_v31, %v6340_v38 }
  0x36   :  { %v7019_v38 = vld [vmem:[%s8233_s0 + $0x100] sm:$0xff] }
  0x37   :  { %918 = vmatpush1.bf16.msra.mxu1 %v5878_v58  ;;  %v6554_v58 = vcombine.low %v6497_v33, %v6502_v35 }
  0x38   :  { %919 = vmatprep.subr.bf16.mxu1 %v5888_v60  ;;  %1589 = vmatpush1.bf16.msra.mxu0 %v5897_v61  ;;  %v5918_v60 = vld [vmem:[%s8232_s1 + $0x120] ss:$8 sps:$4 sm:$0xff]   ;;  %v6561_v61 = vcombine.high %v6345_v39, %v6394_v54 }
  0x39   :  { %1590 = vmatprep.subr.bf16.mxu0 %v5907_v63  ;;  %v6568_v63 = vcombine.high %v6541_v52, %v6546_v53 }
  0x3a   :  { %465 = vmatmul.mubr.bf16.gmra.mrb[4].mxu1 %v6427_v0  ;;  %395 = vmatmul.mubr.bf16.gmra.mrb[4].mxu0 %v4993_v2  ;;  %v5928_v2 = vld [vmem:[%s8232_s1 + $0x130] ss:$8 sps:$4 sm:$0xff]  }
  0x3b   :  { %920 = vmatpush1.bf16.msra.mxu1 %v5886_v62  ;;  %5052 = vmatprep.mubr.msk.bf16.mxu1 %vm309_vm0, %v6445_v5  ;;  %v5930_v62 = vld [vmem:[%s8232_s1 + $0x134] ss:$8 sps:$4 sm:$0xff]  }
  0x3c   :  { %921 = vmatprep.subr.bf16.mxu1 %v5894_v1  ;;  %1591 = vmatpush1.bf16.msra.mxu0 %v5905_v6  ;;  %v5937_v1 = vld [vmem:[%s8232_s1 + $0x1e0] ss:$8 sps:$4 sm:$0xff]   ;;  %v5949_v6 = vld [vmem:[%s8232_s1 + $0x1f4] ss:$8 sps:$4 sm:$0xff]  }
  0x3d   :  { %5045 = vmatprep.mubr.msk.bf16.mxu0 %vm309_vm0, %v4996_v8  ;;  %1592 = vmatprep.subr.bf16.mxu0 %v5917_v7  ;;  %v5936_v7 = vld [vmem:[%s8232_s1 + $0x144] ss:$8 sps:$4 sm:$0xff]   ;;  %v5947_v8 = vld [vmem:[%s8232_s1 + $0x1f0] ss:$8 sps:$4 sm:$0xff]  }
  0x3f   :  { %922 = vmatpush1.bf16.msra.mxu1 %v5892_v14  ;;  %v6594_v14 = vld [vmem:[%s8233_s0 + $0x50] sm:$0xff] }
  0x40   :  { %923 = vmatprep.subr.bf16.mxu1 %v5904_v16  ;;  %1593 = vmatpush1.bf16.msra.mxu0 %v5915_v21  ;;  %v6599_v16 = vld [vmem:[%s8233_s0 + $0x58] sm:$0xff]  ;;  %v6603_v21 = vcombine.low %v6345_v39, %v6394_v54  ;;  %v5252_v54 = vcombine.high %v7019_v38, %v7019_v38 }
  0x41   :  { %1594 = vmatprep.subr.bf16.mxu0 %v5923_v26  ;;  %v5934_v26 = vld [vmem:[%s8232_s1 + $0x140] ss:$8 sps:$4 sm:$0xff]  }
  0x42   :  { %475 = vmatmul.mubr.bf16.gmra.mrb[8].mxu1 %v6490_v28  ;;  %405 = vmatmul.mubr.bf16.gmra.mrb[8].mxu0 %v4995_v29  ;;  %v6614_v29 = vcombine.high %v6400_v56, %v6458_v9 }
  0x43   :  { %924 = vmatpush1.bf16.msra.mxu1 %v5902_v24  ;;  %5053 = vmatprep.mubr.msk.bf16.mxu1 %vm309_vm0, %v6506_v36  ;;  %v6607_v24 = vcombine.low %v6541_v52, %v6546_v53 }
  0x44   :  { %925 = vmatprep.subr.bf16.mxu1 %v5914_v37  ;;  %1595 = vmatpush1.bf16.msra.mxu0 %v5921_v41  ;;  %v5946_v37 = vld [vmem:[%s8232_s1 + $0x154] ss:$8 sps:$4 sm:$0xff]   ;;  %v6621_v41 = vcombine.high %v6594_v14, %v6599_v16 }
  0x45   :  { %5046 = vmatprep.mubr.msk.bf16.mxu0 %vm309_vm0, %v6516_v43  ;;  %1596 = vmatprep.subr.bf16.mxu0 %v5933_v44  ;;  %v5959_v44 = vld [vmem:[%s8232_s1 + $0x204] ss:$8 sps:$4 sm:$0xff]  }
  0x47   :  { %926 = vmatpush1.bf16.msra.mxu1 %v5912_v45  ;;  %v5944_v45 = vld [vmem:[%s8232_s1 + $0x150] ss:$8 sps:$4 sm:$0xff]  }
  0x48   :  { %927 = vmatprep.subr.bf16.mxu1 %v5920_v47  ;;  %1597 = vmatpush1.bf16.msra.mxu0 %v5931_v49  ;;  %v5957_v47 = vld [vmem:[%s8232_s1 + $0x200] ss:$8 sps:$4 sm:$0xff]   ;;  %v5965_v49 = vld [vmem:[%s8232_s1 + $0x214] ss:$8 sps:$4 sm:$0xff]  }
  0x49   :  { %1598 = vmatprep.subr.bf16.mxu0 %v5939_v50  ;;  %v5954_v50 = vld [vmem:[%s8232_s1 + $0x164] ss:$8 sps:$4 sm:$0xff]  }
  0x4a   :  { %485 = vmatmul.mubr.bf16.gmra.mrb[12].mxu1 %v6550_v55  ;;  %415 = vmatmul.mubr.bf16.gmra.mrb[12].mxu0 %v6554_v58 }
  0x4b   :  { %928 = vmatpush1.bf16.msra.mxu1 %v5918_v60  ;;  %5054 = vmatprep.mubr.msk.bf16.mxu1 %vm309_vm0, %v6561_v61  ;;  %v6646_v60 = vcombine.low %v6400_v56, %v6458_v9  ;;  %v5134_v56 = vcombine.low %v6972_v22, %v6972_v22  ;;  %v6079_v9 = vld [vmem:[%s8232_s1 + $0x3c0] ss:$8 sps:$4 sm:$0xff]  }
  0x4c   :  { %929 = vmatprep.subr.bf16.mxu1 %v5930_v62  ;;  %5047 = vmatprep.mubr.msk.bf16.mxu0 %vm309_vm0, %v6568_v63  ;;  %v6650_v62 = vcombine.low %v6594_v14, %v6599_v16 }
  0x4d   :  { %1599 = vmatpush1.bf16.msra.mxu0 %v5937_v1  ;;  %v6655_v1 = vld [vmem:[%s8233_s0 + $0x60] sm:$0xff] }
  0x4e   :  { %1600 = vmatprep.subr.bf16.mxu0 %v5949_v6  ;;  %v5018_v6 = vcombine.high %v6463_v10, %v6463_v10 }
  0x4f   :  { %930 = vmatpush1.bf16.msra.mxu1 %v5928_v2  ;;  %v6660_v2 = vld [vmem:[%s8233_s0 + $0x68] sm:$0xff] }
  0x50   :  { %931 = vmatprep.subr.bf16.mxu1 %v5936_v7  ;;  %v5952_v7 = vld [vmem:[%s8232_s1 + $0x160] ss:$8 sps:$4 sm:$0xff]  }
  0x51   :  { %1601 = vmatpush1.bf16.msra.mxu0 %v5947_v8  ;;  %v5962_v8 = vld [vmem:[%s8232_s1 + $0x174] ss:$8 sps:$4 sm:$0xff]  }
  0x52   :  { %495 = vmatmul.mubr.bf16.gmra.mrb[16].mxu1 %v6603_v21  ;;  %425 = vmatmul.mubr.bf16.gmra.mrb[16].mxu0 %v6607_v24 }
  0x53   :  { %5055 = vmatprep.mubr.msk.bf16.mxu1 %vm309_vm0, %v6614_v29  ;;  %932 = vmatpush1.bf16.msra.mxu1 %v5934_v26  ;;  %v5963_v26 = vld [vmem:[%s8232_s1 + $0x210] ss:$8 sps:$4 sm:$0xff]  }
  0x54   :  { %933 = vmatprep.subr.bf16.mxu1 %v5946_v37  ;;  %5048 = vmatprep.mubr.msk.bf16.mxu0 %vm309_vm0, %v6621_v41  ;;  %v6675_v37 = vcombine.high %v6655_v1, %v6660_v2 }
  0x55   :  { %1602 = vmatprep.subr.bf16.mxu0 %v5959_v44  ;;  %v5972_v44 = vld [vmem:[%s8232_s1 + $0x224] ss:$8 sps:$4 sm:$0xff]  }
  0x56   :  { %1603 = vmatpush1.bf16.msra.mxu0 %v5957_v47  ;;  %v5970_v47 = vld [vmem:[%s8232_s1 + $0x220] ss:$8 sps:$4 sm:$0xff]  }
  0x57   :  { %934 = vmatpush1.bf16.msra.mxu1 %v5944_v45  ;;  %1604 = vmatprep.subr.bf16.mxu0 %v5965_v49  ;;  %v5960_v45 = vld [vmem:[%s8232_s1 + $0x170] ss:$8 sps:$4 sm:$0xff]   ;;  %v5975_v49 = vld [vmem:[%s8232_s1 + $0x244] ss:$8 sps:$4 sm:$0xff]  }
  0x58   :  { %935 = vmatprep.subr.bf16.mxu1 %v5954_v50  ;;  %v5978_v50 = vld [vmem:[%s8232_s1 + $0x234] ss:$8 sps:$4 sm:$0xff]  }
  0x5a   :  { %505 = vmatmul.mubr.bf16.gmra.mrb[20].mxu1 %v6646_v60  ;;  %435 = vmatmul.mubr.bf16.gmra.mrb[20].mxu0 %v6650_v62 }
  0x5b   :  { %5056 = vmatprep.mubr.msk.bf16.mxu1 %vm309_vm0, %v5018_v6  ;;  %936 = vmatpush1.bf16.msra.mxu1 %v5952_v7  ;;  %v5017_v6 = vcombine.low %v6463_v10, %v6463_v10  ;;  %v6701_v7 = vcombine.low %v6655_v1, %v6660_v2  ;;  %v6087_v10 = vld [vmem:[%s8232_s1 + $0x3d4] ss:$8 sps:$4 sm:$0xff]  }
  0x5c   :  { %937 = vmatprep.subr.bf16.mxu1 %v5962_v8  ;;  %1605 = vmatpush1.bf16.msra.mxu0 %v5963_v26  ;;  %v5109_v8 = vcombine.high %v6373_v48, %v6436_v3  ;;  %v5976_v26 = vld [vmem:[%s8232_s1 + $0x230] ss:$8 sps:$4 sm:$0xff]  }
  0x5d   :  { %5049 = vmatprep.mubr.msk.bf16.mxu0 %vm309_vm0, %v6675_v37  ;;  %1606 = vmatprep.subr.bf16.mxu0 %v5972_v44  ;;  %v5986_v44 = vld [vmem:[%s8232_s1 + $0x304] ss:$8 sps:$4 sm:$0xff]  }
  0x5f   :  { %938 = vmatpush1.bf16.msra.mxu1 %v5960_v45  ;;  %v5973_v45 = vld [vmem:[%s8232_s1 + $0x240] ss:$8 sps:$4 sm:$0xff]  }
  0x60   :  { %2257 = vmatprep.subr.bf16.mxu1 %v5975_v49  ;;  %1607 = vmatpush1.bf16.msra.mxu0 %v5970_v47  ;;  %v5108_v47 = vcombine.low %v6373_v48, %v6436_v3  ;;  %v5983_v49 = vld [vmem:[%s8232_s1 + $0x254] ss:$8 sps:$4 sm:$0xff]   ;;  %v5981_v48 = vld [vmem:[%s8232_s1 + $0x250] ss:$8 sps:$4 sm:$0xff]   ;;  %v5991_v3 = vld [vmem:[%s8232_s1 + $0x264] ss:$8 sps:$4 sm:$0xff]  }
  0x61   :  { %1608 = vmatprep.subr.bf16.mxu0 %v5978_v50  ;;  %v5111_v50 = vcombine.high %v6441_v4, %v6497_v33 }
  0x62   :  { %515 = vmatmul.mubr.bf16.gmra.mrb[24].mxu1 %v5017_v6  ;;  %445 = vmatmul.mubr.bf16.gmra.mrb[24].mxu0 %v6701_v7  ;;  %v5994_v6 = vld [vmem:[%s8232_s1 + $0x314] ss:$8 sps:$4 sm:$0xff]  }
  0x63   :  { %5160 = vmatprep.mubr.msk.bf16.mxu1 %vm309_vm0, %v5109_v8  ;;  %5277 = vmatprep.mubr.msk.bf16.mxu0 %vm309_vm0, %v6516_v43  ;;  %v5984_v43 = vld [vmem:[%s8232_s1 + $0x300] ss:$8 sps:$4 sm:$0xff]   ;;  %v5992_v8 = vld [vmem:[%s8232_s1 + $0x310] ss:$8 sps:$4 sm:$0xff]  }
  0x64   :  { %1609 = vmatpush1.bf16.msra.mxu0 %v5976_v26  ;;  %v6002_v26 = vld [vmem:[%s8232_s1 + $0x324] ss:$8 sps:$4 sm:$0xff]  }
  0x65   :  { %2928 = vmatprep.subr.bf16.mxu0 %v5986_v44  ;;  %v5110_v44 = vcombine.low %v6441_v4, %v6497_v33  ;;  %v6010_v4 = vld [vmem:[%s8232_s1 + $0x334] ss:$8 sps:$4 sm:$0xff]   ;;  %v5997_v33 = vld [vmem:[%s8232_s1 + $0x270] ss:$8 sps:$4 sm:$0xff]  }
  0x6a   :  { %948 = vmatmul.mubr.bf16.vlgmr.msra.gmra.mrb[28].mxu1 %v5108_v47  ;;  %1619 = vmatmul.mubr.bf16.vlgmr.msra.gmra.mrb[28].mxu0 %v6554_v58  ;;  %v5989_v58 = vld [vmem:[%s8232_s1 + $0x260] ss:$8 sps:$4 sm:$0xff]   ;;  %v5999_v47 = vld [vmem:[%s8232_s1 + $0x274] ss:$8 sps:$4 sm:$0xff]  }
  0x6b   :  { %2258 = vmatpush1.bf16.msra.mxu1 %v5973_v45  ;;  %5161 = vmatprep.mubr.msk.bf16.mxu1 %vm309_vm0, %v5111_v50  ;;  %v5113_v45 = vcombine.high %v6502_v35, %v6541_v52  ;;  %v5112_v50 = vcombine.low %v6502_v35, %v6541_v52  ;;  %v6016_v35 = vld [vmem:[%s8232_s1 + $0x294] ss:$8 sps:$4 sm:$0xff]   ;;  %v6018_v52 = vld [vmem:[%s8232_s1 + $0x340] ss:$8 sps:$4 sm:$0xff]  }
  0x6c   :  { %2259 = vmatprep.subr.bf16.mxu1 %v5983_v49  ;;  %2929 = vmatpush1.bf16.msra.mxu0 %v5984_v43  ;;  %v6007_v49 = vld [vmem:[%s8232_s1 + $0x284] ss:$8 sps:$4 sm:$0xff]   ;;  %v6780_v43 = vcombine.high %v6546_v53, %v6594_v14 }
  0x6d   :  { %5278 = vmatprep.mubr.msk.bf16.mxu0 %vm309_vm0, %v6568_v63  ;;  %2930 = vmatprep.subr.bf16.mxu0 %v5994_v6  ;;  %v6000_v63 = vld [vmem:[%s8232_s1 + $0x320] ss:$8 sps:$4 sm:$0xff]   ;;  %v6020_v6 = vld [vmem:[%s8232_s1 + $0x344] ss:$8 sps:$4 sm:$0xff]  }
  0x6f   :  { %2260 = vmatpush1.bf16.msra.mxu1 %v5981_v48  ;;  %v6028_v48 = vld [vmem:[%s8232_s1 + $0x354] ss:$8 sps:$4 sm:$0xff]  }
  0x70   :  { %2261 = vmatprep.subr.bf16.mxu1 %v5991_v3  ;;  %2931 = vmatpush1.bf16.msra.mxu0 %v5992_v8  ;;  %v6014_v3 = vld [vmem:[%s8232_s1 + $0x290] ss:$8 sps:$4 sm:$0xff]  }
  0x71   :  { %2932 = vmatprep.subr.bf16.mxu0 %v6002_v26  ;;  %v6026_v8 = vld [vmem:[%s8232_s1 + $0x350] ss:$8 sps:$4 sm:$0xff]   ;;  %v6813_v26 = vcombine.low %v6546_v53, %v6594_v14  ;;  %v6033_v53 = vld [vmem:[%s8232_s1 + $0x2b4] ss:$8 sps:$4 sm:$0xff]   ;;  %v6034_v14 = vld [vmem:[%s8232_s1 + $0x360] ss:$8 sps:$4 sm:$0xff]  }
  0x72   :  { %958 = vmatmul.mubr.bf16.gmra.mrb[32].mxu1 %v5110_v44  ;;  %1629 = vmatmul.mubr.bf16.gmra.mrb[32].mxu0 %v6607_v24  ;;  %v6008_v24 = vld [vmem:[%s8232_s1 + $0x330] ss:$8 sps:$4 sm:$0xff]   ;;  %v6023_v44 = vld [vmem:[%s8232_s1 + $0x2a0] ss:$8 sps:$4 sm:$0xff]  }
  0x73   :  { %5162 = vmatprep.mubr.msk.bf16.mxu1 %vm309_vm0, %v5113_v45  ;;  %2262 = vmatpush1.bf16.msra.mxu1 %v5989_v58  ;;  %v6817_v58 = vcombine.high %v6599_v16, %v6655_v1  ;;  %v6036_v45 = vld [vmem:[%s8232_s1 + $0x364] ss:$8 sps:$4 sm:$0xff]  }
  0x74   :  { %5279 = vmatprep.mubr.msk.bf16.mxu0 %vm309_vm0, %v6621_v41  ;;  %2263 = vmatprep.subr.bf16.mxu1 %v5999_v47  ;;  %v6005_v41 = vld [vmem:[%s8232_s1 + $0x280] ss:$8 sps:$4 sm:$0xff]   ;;  %v6044_v47 = vld [vmem:[%s8232_s1 + $0x374] ss:$8 sps:$4 sm:$0xff]  }
  0x75   :  { %2933 = vmatpush1.bf16.msra.mxu0 %v6000_v63  ;;  %v6031_v63 = vld [vmem:[%s8232_s1 + $0x2b0] ss:$8 sps:$4 sm:$0xff]  }
  0x76   :  { %2934 = vmatprep.subr.bf16.mxu0 %v6010_v4  ;;  %v6041_v4 = vld [vmem:[%s8232_s1 + $0x2c4] ss:$8 sps:$4 sm:$0xff]  }
  0x77   :  { %2264 = vmatpush1.bf16.msra.mxu1 %v5997_v33  ;;  %v6042_v33 = vld [vmem:[%s8232_s1 + $0x370] ss:$8 sps:$4 sm:$0xff]  }
  0x78   :  { %2265 = vmatprep.subr.bf16.mxu1 %v6007_v49  ;;  %v6851_v49 = vcombine.low %v6599_v16, %v6655_v1  ;;  %v6049_v16 = vld [vmem:[%s8232_s1 + $0x2d4] ss:$8 sps:$4 sm:$0xff]   ;;  %v6050_v1 = vld [vmem:[%s8232_s1 + $0x380] ss:$8 sps:$4 sm:$0xff]  }
  0x79   :  { %2935 = vmatpush1.bf16.msra.mxu0 %v6008_v24  ;;  %v6039_v24 = vld [vmem:[%s8232_s1 + $0x2c0] ss:$8 sps:$4 sm:$0xff]  }
  0x7a   :  { %968 = vmatmul.mubr.bf16.gmra.mrb[36].mxu1 %v5112_v50  ;;  %1639 = vmatmul.mubr.bf16.gmra.mrb[36].mxu0 %v6650_v62  ;;  %v6025_v62 = vld [vmem:[%s8232_s1 + $0x2a4] ss:$8 sps:$4 sm:$0xff]  }
  0x7b   :  { %5163 = vmatprep.mubr.msk.bf16.mxu1 %vm309_vm0, %v6780_v43  ;;  %5280 = vmatprep.mubr.msk.bf16.mxu0 %vm309_vm0, %v6675_v37  ;;  %v6052_v50 = vld [vmem:[%s8232_s1 + $0x384] ss:$8 sps:$4 sm:$0xff]  }
  0x7c   :  { %2266 = vmatpush1.bf16.msra.mxu1 %v6005_v41  ;;  %2936 = vmatprep.subr.bf16.mxu0 %v6020_v6  ;;  %v6062_v41 = vld [vmem:[%s8232_s1 + $0x394] ss:$8 sps:$4 sm:$0xff]   ;;  %v6047_v6 = vld [vmem:[%s8232_s1 + $0x2d0] ss:$8 sps:$4 sm:$0xff]  }
  0x7d   :  { %2267 = vmatprep.subr.bf16.mxu1 %v6016_v35  ;;  %2937 = vmatpush1.bf16.msra.mxu0 %v6018_v52  ;;  %v6060_v35 = vld [vmem:[%s8232_s1 + $0x390] ss:$8 sps:$4 sm:$0xff]   ;;  %v5118_v52 = vcombine.low %v6660_v2, %v6247_v11 }
  0x7e   :  { %2938 = vmatprep.subr.bf16.mxu0 %v6028_v48  ;;  %v6076_v48 = vld [vmem:[%s8232_s1 + $0x3a4] ss:$8 sps:$4 sm:$0xff]  }
  0x80   :  { %2268 = vmatpush1.bf16.msra.mxu1 %v6014_v3  ;;  %v6071_v3 = vld [vmem:[%s8232_s1 + $0x2f4] ss:$8 sps:$4 sm:$0xff]  }
  0x81   :  { %2269 = vmatprep.subr.bf16.mxu1 %v6025_v62  ;;  %2939 = vmatpush1.bf16.msra.mxu0 %v6026_v8  ;;  %v6084_v62 = vld [vmem:[%s8232_s1 + $0x3b4] ss:$8 sps:$4 sm:$0xff]   ;;  %v6069_v8 = vld [vmem:[%s8232_s1 + $0x2f0] ss:$8 sps:$4 sm:$0xff]  }
  0x82   :  { %978 = vmatmul.mubr.bf16.gmra.mrb[40].mxu1 %v6813_v26  ;;  %1649 = vmatmul.mubr.bf16.gmra.mrb[40].mxu0 %v6701_v7 }
  0x83   :  { %5164 = vmatprep.mubr.msk.bf16.mxu1 %vm309_vm0, %v6817_v58  ;;  %5281 = vmatprep.mubr.msk.bf16.mxu0 %vm309_vm0, %v6256_v13  ;;  %v5119_v13 = vcombine.high %v6660_v2, %v6247_v11  ;;  %v6074_v11 = vld [vmem:[%s8232_s1 + $0x3a0] ss:$8 sps:$4 sm:$0xff]  }
  0x84   :  { %2270 = vmatpush1.bf16.msra.mxu1 %v6023_v44  ;;  %2940 = vmatprep.subr.bf16.mxu0 %v6036_v45  ;;  %v6082_v44 = vld [vmem:[%s8232_s1 + $0x3b0] ss:$8 sps:$4 sm:$0xff]   ;;  %v6108_v45 = vld [vmem:[%s8232_s1 + $0x4a0] ss:$8 sps:$4 sm:$0xff]  }
  0x85   :  { %2271 = vmatprep.subr.bf16.mxu1 %v6033_v53  ;;  %2941 = vmatpush1.bf16.msra.mxu0 %v6034_v14  ;;  %v6120_v53 = vld [vmem:[%s8232_s1 + $0x4b4] ss:$8 sps:$4 sm:$0xff]   ;;  %v6105_v14 = vld [vmem:[%s8232_s1 + $0x3f0] ss:$8 sps:$4 sm:$0xff]  }
  0x86   :  { %2942 = vmatprep.subr.bf16.mxu0 %v6044_v47  ;;  %v5300_v47 = vld [vmem:[%s8233_s0 + $0x90] sm:$0xff] }
  0x88   :  { %2272 = vmatpush1.bf16.msra.mxu1 %v6031_v63  ;;  %v7117_v63 = vld [vmem:[%s8233_s0 + $0x98] sm:$0xff] }
  0x89   :  { %2273 = vmatprep.subr.bf16.mxu1 %v6041_v4  ;;  %2943 = vmatpush1.bf16.msra.mxu0 %v6042_v33  ;;  %v6117_v4 = vld [vmem:[%s8232_s1 + $0x404] ss:$8 sps:$4 sm:$0xff]   ;;  %v6118_v33 = vld [vmem:[%s8232_s1 + $0x4b0] ss:$8 sps:$4 sm:$0xff]  }
  0x8a   :  { %988 = vmatmul.mubr.bf16.gmra.mrb[44].mxu1 %v6851_v49  ;;  %1659 = vmatmul.mubr.bf16.gmra.mrb[44].mxu0 %v6365_v46  ;;  %v6059_v46 = vld [vmem:[%s8232_s1 + $0x2e4] ss:$8 sps:$4 sm:$0xff]  }
  0x8b   :  { %5165 = vmatprep.mubr.msk.bf16.mxu1 %vm309_vm0, %v5119_v13  ;;  %5282 = vmatprep.mubr.msk.bf16.mxu0 %vm309_vm0, %v6383_v51  ;;  %v6057_v51 = vld [vmem:[%s8232_s1 + $0x2e0] ss:$8 sps:$4 sm:$0xff]  }
  0x8c   :  { %2274 = vmatpush1.bf16.msra.mxu1 %v6039_v24  ;;  %2944 = vmatprep.subr.bf16.mxu0 %v6052_v50  ;;  %v7131_v50 = vcombine.high %v5300_v47, %v7117_v63 }
  0x8d   :  { %2275 = vmatprep.subr.bf16.mxu1 %v6049_v16  ;;  %2945 = vmatpush1.bf16.msra.mxu0 %v6050_v1  ;;  %v6115_v16 = vld [vmem:[%s8232_s1 + $0x400] ss:$8 sps:$4 sm:$0xff]   ;;  %v6132_v1 = vld [vmem:[%s8232_s1 + $0x4c4] ss:$8 sps:$4 sm:$0xff]  }
  0x8e   :  { %2946 = vmatprep.subr.bf16.mxu0 %v6062_v41  ;;  %v6130_v41 = vld [vmem:[%s8232_s1 + $0x4c0] ss:$8 sps:$4 sm:$0xff]  }
  0x90   :  { %2276 = vmatpush1.bf16.msra.mxu1 %v6047_v6  ;;  %v6140_v6 = vld [vmem:[%s8232_s1 + $0x4d4] ss:$8 sps:$4 sm:$0xff]  }
  0x91   :  { %2277 = vmatprep.subr.bf16.mxu1 %v6059_v46  ;;  %2947 = vmatpush1.bf16.msra.mxu0 %v6060_v35  ;;  %v5302_v46 = vld [vmem:[%s8233_s0 + $0xa0] sm:$0xff]  ;;  %v7158_v35 = vld [vmem:[%s8233_s0 + $0xa8] sm:$0xff] }
  0x92   :  { %998 = vmatmul.mubr.bf16.gmra.mrb[48].mxu1 %v5118_v52  ;;  %1669 = vmatmul.mubr.bf16.gmra.mrb[48].mxu0 %v6427_v0  ;;  %v6081_v0 = vld [vmem:[%s8232_s1 + $0x3c4] ss:$8 sps:$4 sm:$0xff]   ;;  %v6126_v52 = vld [vmem:[%s8232_s1 + $0x410] ss:$8 sps:$4 sm:$0xff]  }
  0x93   :  { %5166 = vmatprep.mubr.msk.bf16.mxu1 %vm309_vm0, %v5121_v18  ;;  %5283 = vmatprep.mubr.msk.bf16.mxu0 %vm309_vm0, %v6445_v5  ;;  %v6090_v18 = vld [vmem:[%s8232_s1 + $0x484] ss:$8 sps:$4 sm:$0xff]   ;;  %v7050_v5 = vld [vmem:[%s8233_s0 + $0x78] sm:$0xff] }
  0x94   :  { %2278 = vmatpush1.bf16.msra.mxu1 %v6057_v51  ;;  %2948 = vmatprep.subr.bf16.mxu0 %v6076_v48  ;;  %v6137_v51 = vld [vmem:[%s8232_s1 + $0x424] ss:$8 sps:$4 sm:$0xff]   ;;  %v6138_v48 = vld [vmem:[%s8232_s1 + $0x4d0] ss:$8 sps:$4 sm:$0xff]  }
  0x95   :  { %2279 = vmatprep.subr.bf16.mxu1 %v6071_v3  ;;  %2949 = vmatpush1.bf16.msra.mxu0 %v6074_v11  ;;  %v7173_v11 = vcombine.low %v5300_v47, %v7117_v63 }
  0x96   :  { %2950 = vmatprep.subr.bf16.mxu0 %v6084_v62 }
  0x98   :  { %2280 = vmatpush1.bf16.msra.mxu1 %v6069_v8  ;;  %v7179_v8 = vcombine.high %v5302_v46, %v7158_v35 }
  0x99   :  { %3599 = vmatprep.subr.bf16.mxu1 %v6081_v0  ;;  %2951 = vmatpush1.bf16.msra.mxu0 %v6082_v44  ;;  %v6135_v0 = vld [vmem:[%s8232_s1 + $0x420] ss:$8 sps:$4 sm:$0xff]   ;;  %v6146_v44 = vld [vmem:[%s8232_s1 + $0x4e4] ss:$8 sps:$4 sm:$0xff]  }
  0x9a   :  { %1008 = vmatmul.mubr.bf16.gmra.mrb[52].mxu1 %v5120_v19  ;;  %1679 = vmatmul.mubr.bf16.gmra.mrb[52].mxu0 %v6490_v28  ;;  %v5082_v19 = vld [vmem:[%s8233_s0 + $0xe0] sm:$0xff]  ;;  %v6100_v28 = vld [vmem:[%s8232_s1 + $0x494] ss:$8 sps:$4 sm:$0xff]  }
  0x9b   :  { %5167 = vmatprep.mubr.msk.bf16.mxu1 %vm309_vm0, %v5123_v25  ;;  %5284 = vmatprep.mubr.msk.bf16.mxu0 %vm309_vm0, %v6506_v36  ;;  %v6977_v25 = vcombine.high %v5082_v19, %v6972_v22  ;;  %v6999_v31 = vcombine.low %v5082_v19, %v6972_v22  ;;  %v7022_v39 = vcombine.low %v6953_v12, %v5082_v19  ;;  %v6085_v36 = vld [vmem:[%s8232_s1 + $0x3d0] ss:$8 sps:$4 sm:$0xff]  }
  0x9c   :  { %4270 = vmatprep.subr.bf16.mxu0 %v6090_v18  ;;  %v6143_v18 = vld [vmem:[%s8232_s1 + $0x434] ss:$8 sps:$4 sm:$0xff]  }
  0xa2   :  { %1018 = vmatmul.mubr.bf16.gmra.mrb[56].mxu1 %v5122_v27  ;;  %1689 = vmatmul.mubr.bf16.gmra.mrb[56].mxu0 %v6550_v55  ;;  %v6991_v27 = vld [vmem:[%s8233_s0 + $0xf0] sm:$0xff]  ;;  %v6097_v55 = vld [vmem:[%s8232_s1 + $0x3e4] ss:$8 sps:$4 sm:$0xff]  }
  0xa3   :  { %5168 = vmatprep.mubr.msk.bf16.mxu1 %vm309_vm0, %v5125_v32  ;;  %5285 = vmatprep.mubr.msk.bf16.mxu0 %vm309_vm0, %v6561_v61  ;;  %v7002_v32 = vcombine.high %v6953_v12, %v5082_v19  ;;  %v6098_v61 = vld [vmem:[%s8232_s1 + $0x490] ss:$8 sps:$4 sm:$0xff]   ;;  %v6152_v19 = vld [vmem:[%s8232_s1 + $0x4f4] ss:$8 sps:$4 sm:$0xff]  }
  0xaa   :  { %1028 = vmatmul.mubr.bf16.gmra.mrb[60].mxu1 %v5124_v34  ;;  %1699 = vmatmul.mubr.bf16.gmra.mrb[60].mxu0 %v6603_v21  ;;  %v7006_v34 = vcombine.high %v6991_v27, %v6996_v30  ;;  %v5298_v21 = vld [vmem:[%s8233_s0 + $0x80] sm:$0xff] }
  0xab   :  { %5169 = vmatprep.mubr.msk.bf16.mxu1 %vm309_vm0, %v5127_v40  ;;  %5286 = vmatprep.mubr.msk.bf16.mxu0 %vm309_vm0, %v6614_v29  ;;  %v7026_v40 = vcombine.low %v6991_v27, %v6996_v30  ;;  %v7085_v29 = vld [vmem:[%s8233_s0 + $0x88] sm:$0xff]  ;;  %v7128_v24 = vcombine.high %v7050_v5, %v5298_v21  ;;  %v7170_v3 = vcombine.low %v7050_v5, %v5298_v21 }
  0xac   :  { %v5463_v13 = vcombine.low %v5298_v21, %v7085_v29  ;;  %v7176_v62 = vcombine.high %v7085_v29, %v5300_v47 }
  0xb2   :  { %1038 = vmatmul.mubr.bf16.gmra.mrb[64].mxu1 %v5126_v42  ;;  %1709 = vmatmul.mubr.bf16.gmra.mrb[64].mxu0 %v6646_v60  ;;  %v5135_v42 = vcombine.high %v6972_v22, %v6972_v22  ;;  %v6110_v60 = vld [vmem:[%s8232_s1 + $0x4a4] ss:$8 sps:$4 sm:$0xff]  }
  0xb3   :  { %5170 = vmatprep.mubr.msk.bf16.mxu1 %vm309_vm0, %v5129_v57  ;;  %5287 = vmatprep.mubr.msk.bf16.mxu0 %vm309_vm0, %v5246_v17  ;;  %v5251_v57 = vcombine.low %v7019_v38, %v7019_v38  ;;  %v6144_v17 = vld [vmem:[%s8232_s1 + $0x4e0] ss:$8 sps:$4 sm:$0xff]  }
  0xba   :  { %1048 = vmatmul.mubr.bf16.gmra.mrb[68].mxu1 %v5128_v59  ;;  %1719 = vmatmul.mubr.bf16.gmra.mrb[68].mxu0 %v5245_v23  ;;  %v5296_v59 = vld [vmem:[%s8233_s0 + $0x70] sm:$0xff] }
  0xbb   :  { %5171 = vmatprep.mubr.msk.bf16.mxu1 %vm309_vm0, %v5131_v15  ;;  %5288 = vmatprep.mubr.msk.bf16.mxu0 %vm309_vm0, %v6977_v25  ;;  %v6088_v15 = vld [vmem:[%s8232_s1 + $0x480] ss:$8 sps:$4 sm:$0xff]   ;;  %v7205_v23 = vld [vmem:[%s8233_s0 + $0xb0] sm:$0xff] }
  0xc2   :  { %1058 = vmatmul.mubr.bf16.gmra.mrb[72].mxu1 %v5130_v20  ;;  %1729 = vmatmul.mubr.bf16.gmra.mrb[72].mxu0 %v6999_v31  ;;  %v5462_v20 = vcombine.high %v5296_v59, %v7050_v5 }
  0xc3   :  { %5172 = vmatprep.mubr.msk.bf16.mxu1 %vm309_vm0, %v7002_v32  ;;  %5289 = vmatprep.mubr.msk.bf16.mxu0 %vm309_vm0, %v7006_v34 }
  0xca   :  { %1068 = vmatmul.mubr.bf16.gmra.mrb[76].mxu1 %v7022_v39  ;;  %1739 = vmatmul.mubr.bf16.gmra.mrb[76].mxu0 %v7026_v40 }
  0xcb   :  { %5173 = vmatprep.mubr.msk.bf16.mxu1 %vm309_vm0, %v5135_v42  ;;  %5290 = vmatprep.mubr.msk.bf16.mxu0 %vm309_vm0, %v5252_v54  ;;  %v7210_v42 = vld [vmem:[%s8233_s0 + $0xb8] sm:$0xff] }
  0xcc   :  { %v6141_v54 = vld [vmem:[%s8232_s1 + $0x430] ss:$8 sps:$4 sm:$0xff]  }
  0xd2   :  { %1078 = vmatmul.mubr.bf16.gmra.mrb[80].mxu1 %v5134_v56  ;;  %1749 = vmatmul.mubr.bf16.gmra.mrb[80].mxu0 %v5251_v57  ;;  %v6149_v56 = vld [vmem:[%s8232_s1 + $0x444] ss:$8 sps:$4 sm:$0xff]   ;;  %v6150_v57 = vld [vmem:[%s8232_s1 + $0x4f0] ss:$8 sps:$4 sm:$0xff]  }
  0xd3   :  { %5394 = vmatprep.mubr.msk.bf16.mxu1 %vm309_vm0, %v6780_v43  ;;  %5511 = vmatprep.mubr.msk.bf16.mxu0 %vm309_vm0, %v6675_v37  ;;  %v5461_v37 = vcombine.low %v5296_v59, %v7050_v5  ;;  %v6095_v43 = vld [vmem:[%s8232_s1 + $0x3e0] ss:$8 sps:$4 sm:$0xff]   ;;  %v7225_v5 = vcombine.low %v5302_v46, %v7158_v35 }
  0xda   :  { %2290 = vmatmul.mubr.bf16.vlgmr.msra.gmra.mrb[84].mxu1 %v6813_v26  ;;  %2961 = vmatmul.mubr.bf16.vlgmr.msra.gmra.mrb[84].mxu0 %v6701_v7  ;;  %v5347_v7 = vcombine.high %v6660_v2, %v5296_v59  ;;  %v5464_v26 = vcombine.high %v5298_v21, %v7085_v29  ;;  %v7261_v21 = vld [vmem:[%s8233_s0 + $0xc8] sm:$0xff] }
  0xdb   :  { %3600 = vmatpush1.bf16.msra.mxu1 %v6079_v9  ;;  %5395 = vmatprep.mubr.msk.bf16.mxu1 %vm309_vm0, %v6817_v58  ;;  %v6107_v58 = vld [vmem:[%s8232_s1 + $0x3f4] ss:$8 sps:$4 sm:$0xff]   ;;  %v7228_v9 = vcombine.high %v7117_v63, %v5302_v46 }
  0xdc   :  { %3601 = vmatprep.subr.bf16.mxu1 %v6087_v10  ;;  %4271 = vmatpush1.bf16.msra.mxu0 %v6088_v15  ;;  %v7232_v10 = vcombine.high %v7205_v23, %v7210_v42  ;;  %v6147_v15 = vld [vmem:[%s8232_s1 + $0x440] ss:$8 sps:$4 sm:$0xff]  }
  0xdd   :  { %5512 = vmatprep.mubr.msk.bf16.mxu0 %vm309_vm0, %v5462_v20  ;;  %4272 = vmatprep.subr.bf16.mxu0 %v6100_v28  ;;  %v6158_v20 = vld [vmem:[%s8232_s1 + $0x504] ss:$8 sps:$4 sm:$0xff]   ;;  %v6155_v28 = vld [vmem:[%s8232_s1 + $0x454] ss:$8 sps:$4 sm:$0xff]  }
  0xdf   :  { %3602 = vmatpush1.bf16.msra.mxu1 %v6085_v36  ;;  %v6156_v36 = vld [vmem:[%s8232_s1 + $0x500] ss:$8 sps:$4 sm:$0xff]  }
  0xe0   :  { %3603 = vmatprep.subr.bf16.mxu1 %v6097_v55  ;;  %4273 = vmatpush1.bf16.msra.mxu0 %v6098_v61  ;;  %v6164_v55 = vld [vmem:[%s8232_s1 + $0x514] ss:$8 sps:$4 sm:$0xff]   ;;  %v5306_v61 = vld [vmem:[%s8233_s0 + $0xc0] sm:$0xff] }
  0xe1   :  { %4274 = vmatprep.subr.bf16.mxu0 %v6110_v60  ;;  %v6161_v60 = vld [vmem:[%s8232_s1 + $0x464] ss:$8 sps:$4 sm:$0xff]  }
  0xe2   :  { %2300 = vmatmul.mubr.bf16.gmra.mrb[88].mxu1 %v6851_v49  ;;  %2971 = vmatmul.mubr.bf16.gmra.mrb[88].mxu0 %v5461_v37  ;;  %v5346_v49 = vcombine.low %v6660_v2, %v5296_v59  ;;  %v6128_v2 = vld [vmem:[%s8232_s1 + $0x414] ss:$8 sps:$4 sm:$0xff]   ;;  %v7222_v59 = vcombine.low %v7085_v29, %v5300_v47  ;;  %v6153_v29 = vld [vmem:[%s8232_s1 + $0x450] ss:$8 sps:$4 sm:$0xff]   ;;  %v6172_v47 = vld [vmem:[%s8232_s1 + $0x520] ss:$8 sps:$4 sm:$0xff]  }
  0xe3   :  { %5396 = vmatprep.mubr.msk.bf16.mxu1 %vm309_vm0, %v5347_v7  ;;  %3604 = vmatpush1.bf16.msra.mxu1 %v6095_v43  ;;  %v6162_v37 = vld [vmem:[%s8232_s1 + $0x510] ss:$8 sps:$4 sm:$0xff]   ;;  %v7273_v7 = vcombine.low %v7117_v63, %v5302_v46  ;;  %v7277_v43 = vcombine.low %v7205_v23, %v7210_v42  ;;  %v6179_v63 = vld [vmem:[%s8232_s1 + $0x534] ss:$8 sps:$4 sm:$0xff]  }
  0xe4   :  { %5513 = vmatprep.mubr.msk.bf16.mxu0 %vm309_vm0, %v5464_v26  ;;  %3605 = vmatprep.subr.bf16.mxu1 %v6107_v58  ;;  %v7281_v26 = vcombine.high %v7158_v35, %v7205_v23  ;;  %v7284_v58 = vcombine.high %v5306_v61, %v7261_v21 }
  0xe5   :  { %4275 = vmatpush1.bf16.msra.mxu0 %v6108_v45  ;;  %v6159_v45 = vld [vmem:[%s8232_s1 + $0x460] ss:$8 sps:$4 sm:$0xff]  }
  0xe6   :  { %4276 = vmatprep.subr.bf16.mxu0 %v6120_v53  ;;  %v6174_v53 = vld [vmem:[%s8232_s1 + $0x524] ss:$8 sps:$4 sm:$0xff]  }
  0xe7   :  { %3606 = vmatpush1.bf16.msra.mxu1 %v6105_v14  ;;  %v6170_v14 = vld [vmem:[%s8232_s1 + $0x474] ss:$8 sps:$4 sm:$0xff]  }
  0xe8   :  { %3607 = vmatprep.subr.bf16.mxu1 %v6117_v4  ;;  %v7310_v4 = vld [vmem:[%s8233_s0 + $0xd0] sm:$0xff] }
  0xe9   :  { %4277 = vmatpush1.bf16.msra.mxu0 %v6118_v33  ;;  %v6168_v33 = vld [vmem:[%s8232_s1 + $0x470] ss:$8 sps:$4 sm:$0xff]  }
  0xea   :  { %2310 = vmatmul.mubr.bf16.gmra.mrb[92].mxu1 %v5346_v49  ;;  %2981 = vmatmul.mubr.bf16.gmra.mrb[92].mxu0 %v5463_v13 }
  0xeb   :  { %5397 = vmatprep.mubr.msk.bf16.mxu1 %vm309_vm0, %v7128_v24  ;;  %5514 = vmatprep.mubr.msk.bf16.mxu0 %vm309_vm0, %v7131_v50 }
  0xec   :  { %3608 = vmatpush1.bf16.msra.mxu1 %v6115_v16  ;;  %4278 = vmatprep.subr.bf16.mxu0 %v6132_v1  ;;  %v6177_v16 = vld [vmem:[%s8232_s1 + $0x530] ss:$8 sps:$4 sm:$0xff]  }
  0xed   :  { %3609 = vmatprep.subr.bf16.mxu1 %v6128_v2  ;;  %4279 = vmatpush1.bf16.msra.mxu0 %v6130_v41  ;;  %v7322_v2 = vcombine.low %v7158_v35, %v7205_v23 }
  0xee   :  { %4280 = vmatprep.subr.bf16.mxu0 %v6140_v6  ;;  %v7325_v6 = vcombine.low %v5306_v61, %v7261_v21 }
  0xf0   :  { %3610 = vmatpush1.bf16.msra.mxu1 %v6126_v52 }
  0xf1   :  { %3611 = vmatprep.subr.bf16.mxu1 %v6137_v51  ;;  %4281 = vmatpush1.bf16.msra.mxu0 %v6138_v48  ;;  %v7332_v51 = vcombine.high %v7210_v42, %v5306_v61  ;;  %v5474_v48 = vcombine.high %v7310_v4, %v6953_v12 }
  0xf2   :  { %2320 = vmatmul.mubr.bf16.gmra.mrb[96].mxu1 %v7170_v3  ;;  %2991 = vmatmul.mubr.bf16.gmra.mrb[96].mxu0 %v7173_v11 }
  0xf3   :  { %5398 = vmatprep.mubr.msk.bf16.mxu1 %vm309_vm0, %v7176_v62  ;;  %5515 = vmatprep.mubr.msk.bf16.mxu0 %vm309_vm0, %v7179_v8 }
  0xf4   :  { %3612 = vmatpush1.bf16.msra.mxu1 %v6135_v0  ;;  %4282 = vmatprep.subr.bf16.mxu0 %v6146_v44 }
  0xf5   :  { %3613 = vmatprep.subr.bf16.mxu1 %v6143_v18  ;;  %4283 = vmatpush1.bf16.msra.mxu0 %v6144_v17 }
  0xf6   :  { %4284 = vmatprep.subr.bf16.mxu0 %v6152_v19  ;;  %v7346_v19 = vcombine.low %v7210_v42, %v5306_v61 }
  0xf8   :  { %3614 = vmatpush1.bf16.msra.mxu1 %v6141_v54  ;;  %v5473_v54 = vcombine.low %v7310_v4, %v6953_v12 }
  0xf9   :  { %3615 = vmatprep.subr.bf16.mxu1 %v6149_v56  ;;  %4285 = vmatpush1.bf16.msra.mxu0 %v6150_v57 }
  0xfa   :  { %2330 = vmatmul.mubr.bf16.gmra.mrb[100].mxu1 %v7222_v59  ;;  %3001 = vmatmul.mubr.bf16.gmra.mrb[100].mxu0 %v7225_v5 }
  0xfb   :  { %5399 = vmatprep.mubr.msk.bf16.mxu1 %vm309_vm0, %v7228_v9  ;;  %5516 = vmatprep.mubr.msk.bf16.mxu0 %vm309_vm0, %v7232_v10 }
  0xfc   :  { %3616 = vmatpush1.bf16.msra.mxu1 %v6147_v15  ;;  %4286 = vmatprep.subr.bf16.mxu0 %v6158_v20  ;;  %v7356_v15 = vcombine.high %v7261_v21, %v7310_v4 }
  0xfd   :  { %3617 = vmatprep.subr.bf16.mxu1 %v6155_v28  ;;  %4287 = vmatpush1.bf16.msra.mxu0 %v6156_v36 }
  0xfe   :  { %4288 = vmatprep.subr.bf16.mxu0 %v6164_v55  ;;  %v7369_v55 = vcombine.low %v7261_v21, %v7310_v4  ;;  %v7386_v21 = vld [vmem:[%s8233_s0 + $0x108] sm:$0xff] }
 0x100   :  { %3618 = vmatpush1.bf16.msra.mxu1 %v6153_v29 }
 0x101   :  { %3619 = vmatprep.subr.bf16.mxu1 %v6161_v60  ;;  %4289 = vmatpush1.bf16.msra.mxu0 %v6162_v37 }
 0x102   :  { %2340 = vmatmul.mubr.bf16.gmra.mrb[104].mxu1 %v7273_v7  ;;  %3011 = vmatmul.mubr.bf16.gmra.mrb[104].mxu0 %v7277_v43 }
 0x103   :  { %5400 = vmatprep.mubr.msk.bf16.mxu1 %vm309_vm0, %v7281_v26  ;;  %5517 = vmatprep.mubr.msk.bf16.mxu0 %vm309_vm0, %v7284_v58 }
 0x104   :  { %3620 = vmatpush1.bf16.msra.mxu1 %v6159_v45  ;;  %4290 = vmatprep.subr.bf16.mxu0 %v6174_v53 }
 0x105   :  { %v456_v49 = vpop.f32.mrb[0].mxu1  ;;  %v7315_v13 = vpop.f32.mrb[0].mxu0  ;;  %3621 = vmatprep.subr.bf16.mxu1 %v6170_v14  ;;  %4291 = vmatpush1.bf16.msra.mxu0 %v6172_v47 }
 0x106   :  { %551 = vst [vmem:[#allocation2 + $0xe0] sm:$0xff] %v456_v49  ;;  %v458_v1 = vpop.f32.mrb[1].mxu1  ;;  %v388_v41 = vpop.f32.mrb[1].mxu0  ;;  %4292 = vmatprep.subr.bf16.mxu0 %v6179_v63  ;;  %v5480_v63 = vcombine.high %v7019_v38, %v7386_v21 }
 0x107   :  { %552 = vst.msk [vmem:[#allocation2 + $0xe8] sm:$0xff] %vm309_vm0, %v458_v1  ;;  %v460_v46 = vpop.f32.mrb[2].mxu1  ;;  %524 = vst.msk [vmem:[#allocation2 + $0x8] sm:$0xff] %vm309_vm0, %v388_v41  ;;  %v7329_v52 = vpop.f32.mrb[2].mxu0  ;;  %v7412_v1 = vld [vmem:[%s8233_s0 + $0x118] sm:$0xff] }
 0x108   :  { %553 = vst [vmem:[#allocation2 + $0xf0] sm:$0xff] %v460_v46  ;;  %v462_v35 = vpop.f32.mrb[3].mxu1  ;;  %v392_v0 = vpop.f32.mrb[3].mxu0  ;;  %3622 = vmatpush1.bf16.msra.mxu1 %v6168_v33 }
 0x109   :  { %554 = vst.msk [vmem:[#allocation2 + $0xf8] sm:$0xff] %vm309_vm0, %v462_v35  ;;  %526 = vst.msk [vmem:[#allocation2 + $0x18] sm:$0xff] %vm309_vm0, %v392_v0  ;;  %4293 = vmatpush1.bf16.msra.mxu0 %v6177_v16  ;;  %v7407_v16 = vld [vmem:[%s8233_s0 + $0x110] sm:$0xff]  ;;  %v5479_v35 = vcombine.low %v7019_v38, %v7386_v21 }
 0x10a   :  { %2350 = vmatmul.mubr.bf16.gmra.mrb[108].mxu1 %v7322_v2  ;;  %3021 = vmatmul.mubr.bf16.gmra.mrb[108].mxu0 %v7325_v6 }
 0x10b   :  { %5401 = vmatprep.mubr.msk.bf16.mxu1 %vm309_vm0, %v7332_v51  ;;  %5518 = vmatprep.mubr.msk.bf16.mxu0 %vm309_vm0, %v5474_v48 }
 0x10d   :  { %v466_v44 = vpop.f32.mrb[4].mxu1  ;;  %v7343_v18 = vpop.f32.mrb[4].mxu0 }
 0x10e   :  { %555 = vst [vmem:[#allocation2 + $0x100] sm:$0xff] %v466_v44  ;;  %v468_v17 = vpop.f32.mrb[5].mxu1  ;;  %v398_v23 = vpop.f32.mrb[5].mxu0 }
 0x10f   :  { %556 = vst.msk [vmem:[#allocation2 + $0x108] sm:$0xff] %vm309_vm0, %v468_v17  ;;  %v470_v56 = vpop.f32.mrb[6].mxu1  ;;  %528 = vst.msk [vmem:[#allocation2 + $0x28] sm:$0xff] %vm309_vm0, %v398_v23  ;;  %v7352_v57 = vpop.f32.mrb[6].mxu0  ;;  %v5365_v17 = vcombine.high %v6996_v30, %v7019_v38  ;;  %v7428_v23 = vcombine.high %v7407_v16, %v7412_v1 }
 0x110   :  { %557 = vst [vmem:[#allocation2 + $0x110] sm:$0xff] %v470_v56  ;;  %v472_v20 = vpop.f32.mrb[7].mxu1  ;;  %v402_v28 = vpop.f32.mrb[7].mxu0  ;;  %v5433_v56 = vld [vmem:[%s8233_s0 + $0x128] sm:$0xff] }
 0x111   :  { %558 = vst.msk [vmem:[#allocation2 + $0x118] sm:$0xff] %vm309_vm0, %v472_v20  ;;  %530 = vst.msk [vmem:[#allocation2 + $0x38] sm:$0xff] %vm309_vm0, %v402_v28 }
 0x112   :  { %2360 = vmatmul.mubr.bf16.gmra.mrb[112].mxu1 %v7346_v19  ;;  %3031 = vmatmul.mubr.bf16.gmra.mrb[112].mxu0 %v5473_v54  ;;  %v7438_v54 = vld [vmem:[%s8233_s0 + $0x120] sm:$0xff] }
 0x113   :  { %5402 = vmatprep.mubr.msk.bf16.mxu1 %vm309_vm0, %v7356_v15  ;;  %5519 = vmatprep.mubr.msk.bf16.mxu0 %vm309_vm0, %v6977_v25 }
 0x115   :  { %v476_v12 = vpop.f32.mrb[8].mxu1  ;;  %v7365_v42 = vpop.f32.mrb[8].mxu0 }
 0x116   :  { %559 = vst [vmem:[#allocation2 + $0x120] sm:$0xff] %v476_v12  ;;  %v478_v36 = vpop.f32.mrb[9].mxu1  ;;  %v408_v61 = vpop.f32.mrb[9].mxu0 }
 0x117   :  { %560 = vst.msk [vmem:[#allocation2 + $0x128] sm:$0xff] %vm309_vm0, %v478_v36  ;;  %v480_v29 = vpop.f32.mrb[10].mxu1  ;;  %532 = vst.msk [vmem:[#allocation2 + $0x48] sm:$0xff] %vm309_vm0, %v408_v61  ;;  %v7373_v60 = vpop.f32.mrb[10].mxu0  ;;  %v5364_v36 = vcombine.low %v6996_v30, %v7019_v38 }
 0x118   :  { %561 = vst [vmem:[#allocation2 + $0x130] sm:$0xff] %v480_v29  ;;  %v482_v37 = vpop.f32.mrb[11].mxu1  ;;  %v412_v25 = vpop.f32.mrb[11].mxu0  ;;  %v7449_v29 = vcombine.low %v7407_v16, %v7412_v1 }
 0x119   :  { %562 = vst.msk [vmem:[#allocation2 + $0x138] sm:$0xff] %vm309_vm0, %v482_v37  ;;  %534 = vst.msk [vmem:[#allocation2 + $0x58] sm:$0xff] %vm309_vm0, %v412_v25 }
 0x11a   :  { %2370 = vmatmul.mubr.bf16.gmra.mrb[116].mxu1 %v7369_v55  ;;  %3041 = vmatmul.mubr.bf16.gmra.mrb[116].mxu0 %v6999_v31 }
 0x11b   :  { %5403 = vmatprep.mubr.msk.bf16.mxu1 %vm309_vm0, %v7002_v32  ;;  %5520 = vmatprep.mubr.msk.bf16.mxu0 %vm309_vm0, %v7006_v34  ;;  %v5363_v34 = vcombine.high %v6972_v22, %v6991_v27 }
 0x11d   :  { %v486_v45 = vpop.f32.mrb[12].mxu1  ;;  %v7388_v53 = vpop.f32.mrb[12].mxu0 }
 0x11e   :  { %563 = vst [vmem:[#allocation2 + $0x140] sm:$0xff] %v486_v45  ;;  %v488_v14 = vpop.f32.mrb[13].mxu1  ;;  %v418_v47 = vpop.f32.mrb[13].mxu0  ;;  %v5367_v45 = vcombine.high %v7386_v21, %v7407_v16 }
 0x11f   :  { %564 = vst.msk [vmem:[#allocation2 + $0x148] sm:$0xff] %vm309_vm0, %v488_v14  ;;  %v490_v31 = vpop.f32.mrb[14].mxu1  ;;  %536 = vst.msk [vmem:[#allocation2 + $0x68] sm:$0xff] %vm309_vm0, %v418_v47  ;;  %v7392_v32 = vpop.f32.mrb[14].mxu0  ;;  %v7458_v14 = vcombine.high %v7438_v54, %v5433_v56  ;;  %v7469_v47 = vld [vmem:[%s8233_s0 + $0x130] sm:$0xff] }
 0x120   :  { %565 = vst [vmem:[#allocation2 + $0x150] sm:$0xff] %v490_v31  ;;  %v492_v33 = vpop.f32.mrb[15].mxu1  ;;  %v422_v49 = vpop.f32.mrb[15].mxu0 }
 0x121   :  { %566 = vst.msk [vmem:[#allocation2 + $0x158] sm:$0xff] %vm309_vm0, %v492_v33  ;;  %538 = vst.msk [vmem:[#allocation2 + $0x78] sm:$0xff] %vm309_vm0, %v422_v49  ;;  %v5366_v33 = vcombine.low %v7386_v21, %v7407_v16 }
 0x122   :  { %2380 = vmatmul.mubr.bf16.gmra.mrb[120].mxu1 %v7022_v39  ;;  %3051 = vmatmul.mubr.bf16.gmra.mrb[120].mxu0 %v7026_v40  ;;  %v5362_v40 = vcombine.low %v6972_v22, %v6991_v27 }
 0x123   :  { %5404 = vmatprep.mubr.msk.bf16.mxu1 %vm309_vm0, %v5363_v34  ;;  %5521 = vmatprep.mubr.msk.bf16.mxu0 %vm309_vm0, %v5480_v63 }
 0x125   :  { %v496_v41 = vpop.f32.mrb[16].mxu1  ;;  %v7414_v46 = vpop.f32.mrb[16].mxu0 }
 0x126   :  { %567 = vst [vmem:[#allocation2 + $0x160] sm:$0xff] %v496_v41  ;;  %v498_v39 = vpop.f32.mrb[17].mxu1  ;;  %v428_v48 = vpop.f32.mrb[17].mxu0  ;;  %v7476_v41 = vcombine.low %v7438_v54, %v5433_v56 }
 0x127   :  { %568 = vst.msk [vmem:[#allocation2 + $0x168] sm:$0xff] %vm309_vm0, %v498_v39  ;;  %v500_v0 = vpop.f32.mrb[18].mxu1  ;;  %540 = vst.msk [vmem:[#allocation2 + $0x88] sm:$0xff] %vm309_vm0, %v428_v48  ;;  %v7422_v44 = vpop.f32.mrb[18].mxu0  ;;  %v5369_v48 = vcombine.high %v7412_v1, %v7412_v1 }
 0x128   :  { %569 = vst [vmem:[#allocation2 + $0x170] sm:$0xff] %v500_v0  ;;  %v502_v22 = vpop.f32.mrb[19].mxu1  ;;  %v432_v27 = vpop.f32.mrb[19].mxu0 }
 0x129   :  { %570 = vst.msk [vmem:[#allocation2 + $0x178] sm:$0xff] %vm309_vm0, %v502_v22  ;;  %542 = vst.msk [vmem:[#allocation2 + $0x98] sm:$0xff] %vm309_vm0, %v432_v27 }
 0x12a   :  { %2390 = vmatmul.mubr.bf16.gmra.mrb[124].mxu1 %v5362_v40  ;;  %3061 = vmatmul.mubr.bf16.gmra.mrb[124].mxu0 %v5479_v35  ;;  %v5486_v35 = vcombine.high %v7469_v47, %v7469_v47 }
 0x12b   :  { %5405 = vmatprep.mubr.msk.bf16.mxu1 %vm309_vm0, %v5365_v17  ;;  %5522 = vmatprep.mubr.msk.bf16.mxu0 %vm309_vm0, %v7428_v23 }
 0x12d   :  { %v506_v20 = vpop.f32.mrb[20].mxu1  ;;  %v7443_v28 = vpop.f32.mrb[20].mxu0 }
 0x12e   :  { %571 = vst [vmem:[#allocation2 + $0x180] sm:$0xff] %v506_v20  ;;  %v508_v12 = vpop.f32.mrb[21].mxu1  ;;  %v438_v61 = vpop.f32.mrb[21].mxu0 }
 0x12f   :  { %572 = vst.msk [vmem:[#allocation2 + $0x188] sm:$0xff] %vm309_vm0, %v508_v12  ;;  %v510_v37 = vpop.f32.mrb[22].mxu1  ;;  %544 = vst.msk [vmem:[#allocation2 + $0xa8] sm:$0xff] %vm309_vm0, %v438_v61  ;;  %v7453_v25 = vpop.f32.mrb[22].mxu0  ;;  %v1087_v12 = vld [vmem:[#allocation2 + $0x8] sm:$0xff] }
 0x130   :  { %573 = vst [vmem:[#allocation2 + $0x190] sm:$0xff] %v510_v37  ;;  %v512_v30 = vpop.f32.mrb[23].mxu1  ;;  %v442_v38 = vpop.f32.mrb[23].mxu0  ;;  %v5485_v37 = vcombine.low %v7469_v47, %v7469_v47 }
 0x131   :  { %574 = vst.msk [vmem:[#allocation2 + $0x198] sm:$0xff] %vm309_vm0, %v512_v30  ;;  %546 = vst.msk [vmem:[#allocation2 + $0xb8] sm:$0xff] %vm309_vm0, %v442_v38 }
 0x132   :  { %2400 = vmatmul.mubr.bf16.gmra.mrb[128].mxu1 %v5364_v36  ;;  %3071 = vmatmul.mubr.bf16.gmra.mrb[128].mxu0 %v7449_v29  ;;  %v5368_v36 = vcombine.low %v7412_v1, %v7412_v1 }
 0x133   :  { %5406 = vmatprep.mubr.msk.bf16.mxu1 %vm309_vm0, %v5367_v45  ;;  %5523 = vmatprep.mubr.msk.bf16.mxu0 %vm309_vm0, %v7458_v14 }
 0x135   :  { %v516_v31 = vpop.f32.mrb[24].mxu1  ;;  %v7471_v34 = vpop.f32.mrb[24].mxu0 }
 0x136   :  { %575 = vst [vmem:[#allocation2 + $0x1a0] sm:$0xff] %v516_v31  ;;  %v518_v63 = vpop.f32.mrb[25].mxu1  ;;  %v448_v49 = vpop.f32.mrb[25].mxu0 }
 0x137   :  { %576 = vst.msk [vmem:[#allocation2 + $0x1a8] sm:$0xff] %vm309_vm0, %v518_v63  ;;  %v520_v39 = vpop.f32.mrb[26].mxu1  ;;  %548 = vst.msk [vmem:[#allocation2 + $0xc8] sm:$0xff] %vm309_vm0, %v448_v49  ;;  %v7480_v40 = vpop.f32.mrb[26].mxu0 }
 0x138   :  { %v521_v0 = vpop.f32.mrb[27].mxu1  ;;  %v452_v17 = vpop.f32.mrb[27].mxu0 }
 0x139   :  { %550 = vst.msk [vmem:[#allocation2 + $0xd8] sm:$0xff] %vm309_vm0, %v452_v17  ;;  %v1091_v17 = vld [vmem:[#allocation2 + $0x28] sm:$0xff] }
 0x13a   :  { %2410 = vmatmul.mubr.bf16.gmra.mrb[132].mxu1 %v5366_v33  ;;  %3081 = vmatmul.mubr.bf16.gmra.mrb[132].mxu0 %v7476_v41  ;;  %v1089_v33 = vld [vmem:[#allocation2 + $0x18] sm:$0xff] }
 0x13b   :  { %5407 = vmatprep.mubr.msk.bf16.mxu1 %vm309_vm0, %v5369_v48  ;;  %5524 = vmatprep.mubr.msk.bf16.mxu0 %vm309_vm0, %v5486_v35 }
 0x13d   :  { %v949_v22 = vpop.f32.mrb[28].mxu1  ;;  %v1620_v27 = vpop.f32.mrb[28].mxu0 }
 0x13e   :  { %v1140_v56 = vadd.f32 %v949_v22, %v7315_v13  ;;  %v951_v20 = vpop.f32.mrb[29].mxu1  ;;  %v1622_v61 = vpop.f32.mrb[29].mxu0 }
 0x13f   :  { %v1141_v45 = vadd.f32 %v1087_v12, %v951_v20  ;;  %v953_v30 = vpop.f32.mrb[30].mxu1  ;;  %v1624_v38 = vpop.f32.mrb[30].mxu0 }
 0x140   :  { %v1142_v31 = vadd.f32 %v953_v30, %v7329_v52  ;;  %v955_v63 = vpop.f32.mrb[31].mxu1  ;;  %v1811_v49 = vadd.f32 %v1620_v27, %v1140_v56  ;;  %v1626_v39 = vpop.f32.mrb[31].mxu0 }
 0x141   :  { %1195 = vst.msk [vmem:[#allocation2 + $0x8] sm:$0xff] %vm309_vm0, %v1141_v45  ;;  %v1143_v13 = vadd.f32 %v1089_v33, %v955_v63  ;;  %v1093_v45 = vld [vmem:[#allocation2 + $0x38] sm:$0xff] }
 0x142   :  { %2420 = vmatmul.mubr.bf16.gmra.mrb[136].mxu1 %v5368_v36  ;;  %1865 = vst [vmem:[#allocation2] sm:$0xff] %v1811_v49  ;;  %v1813_v48 = vadd.f32 %v1624_v38, %v1142_v31  ;;  %3091 = vmatmul.mubr.bf16.gmra.mrb[136].mxu0 %v5485_v37 }
 0x143   :  { %1197 = vst.msk [vmem:[#allocation2 + $0x18] sm:$0xff] %vm309_vm0, %v1143_v13  ;;  %5628 = vmatprep.mubr.msk.bf16.mxu1 %vm309_vm0, %v7128_v24  ;;  %5745 = vmatprep.mubr.msk.bf16.mxu0 %vm309_vm0, %v7131_v50 }
 0x144   :  { %1867 = vst [vmem:[#allocation2 + $0x10] sm:$0xff] %v1813_v48 }
 0x145   :  { %v959_v52 = vpop.f32.mrb[32].mxu1  ;;  %v1630_v1 = vpop.f32.mrb[32].mxu0 }
 0x146   :  { %v1144_v35 = vadd.f32 %v959_v52, %v7343_v18  ;;  %v961_v0 = vpop.f32.mrb[33].mxu1  ;;  %v1632_v22 = vpop.f32.mrb[33].mxu0 }
 0x147   :  { %v1145_v27 = vadd.f32 %v1091_v17, %v961_v0  ;;  %v963_v56 = vpop.f32.mrb[34].mxu1  ;;  %v1634_v20 = vpop.f32.mrb[34].mxu0 }
 0x148   :  { %v1758_v12 = vld [vmem:[#allocation2 + $0x8] sm:$0xff]  ;;  %v1146_v36 = vadd.f32 %v963_v56, %v7352_v57  ;;  %v965_v37 = vpop.f32.mrb[35].mxu1  ;;  %v1815_v24 = vadd.f32 %v1630_v1, %v1144_v35  ;;  %v1636_v30 = vpop.f32.mrb[35].mxu0  ;;  %v1097_v35 = vld [vmem:[#allocation2 + $0x58] sm:$0xff] }
 0x149   :  { %1199 = vst.msk [vmem:[#allocation2 + $0x28] sm:$0xff] %vm309_vm0, %v1145_v27  ;;  %v1812_v50 = vadd.f32 %v1758_v12, %v1622_v61  ;;  %v1147_v38 = vadd.f32 %v1093_v45, %v965_v37 }
 0x14a   :  { %v1760_v31 = vld [vmem:[#allocation2 + $0x18] sm:$0xff]  ;;  %3632 = vmatmul.mubr.bf16.vlgmr.msra.gmra.mrb[140].mxu1 %v7170_v3  ;;  %1869 = vst [vmem:[#allocation2 + $0x20] sm:$0xff] %v1815_v24  ;;  %v1817_v18 = vadd.f32 %v1634_v20, %v1146_v36  ;;  %4303 = vmatmul.mubr.bf16.vlgmr.msra.gmra.mrb[140].mxu0 %v7173_v11  ;;  %v1095_v11 = vld [vmem:[#allocation2 + $0x48] sm:$0xff] }
 0x14b   :  { %1866 = vst.msk [vmem:[#allocation2 + $0x8] sm:$0xff] %vm309_vm0, %v1812_v50  ;;  %1201 = vst.msk [vmem:[#allocation2 + $0x38] sm:$0xff] %vm309_vm0, %v1147_v38  ;;  %v1814_v57 = vadd.f32 %v1760_v31, %v1626_v39  ;;  %5629 = vmatprep.mubr.msk.bf16.mxu1 %vm309_vm0, %v7176_v62  ;;  %5746 = vmatprep.mubr.msk.bf16.mxu0 %vm309_vm0, %v7179_v8  ;;  %v1101_v38 = vld [vmem:[#allocation2 + $0x78] sm:$0xff] }
 0x14c   :  { %1871 = vst [vmem:[#allocation2 + $0x30] sm:$0xff] %v1817_v18 }
 0x14d   :  { %1868 = vst.msk [vmem:[#allocation2 + $0x18] sm:$0xff] %vm309_vm0, %v1814_v57  ;;  %v969_v61 = vpop.f32.mrb[36].mxu1  ;;  %v1640_v3 = vpop.f32.mrb[36].mxu0 }
 0x14e   :  { %v1148_v63 = vadd.f32 %v969_v61, %v7365_v42  ;;  %v971_v33 = vpop.f32.mrb[37].mxu1  ;;  %v1642_v49 = vpop.f32.mrb[37].mxu0 }
 0x14f   :  { %v1149_v13 = vadd.f32 %v1095_v11, %v971_v33  ;;  %v973_v48 = vpop.f32.mrb[38].mxu1  ;;  %v1644_v52 = vpop.f32.mrb[38].mxu0  ;;  %v1103_v11 = vld [vmem:[#allocation2 + $0x88] sm:$0xff] }
 0x150   :  { %v1762_v39 = vld [vmem:[#allocation2 + $0x28] sm:$0xff]  ;;  %v1150_v1 = vadd.f32 %v973_v48, %v7373_v60  ;;  %v975_v62 = vpop.f32.mrb[39].mxu1  ;;  %v1819_v0 = vadd.f32 %v1640_v3, %v1148_v63  ;;  %v1646_v8 = vpop.f32.mrb[39].mxu0 }
 0x151   :  { %1203 = vst.msk [vmem:[#allocation2 + $0x48] sm:$0xff] %vm309_vm0, %v1149_v13  ;;  %v1816_v17 = vadd.f32 %v1762_v39, %v1632_v22  ;;  %v1151_v27 = vadd.f32 %v1097_v35, %v975_v62  ;;  %v1105_v62 = vld [vmem:[#allocation2 + $0x98] sm:$0xff] }
 0x152   :  { %v1764_v56 = vld [vmem:[#allocation2 + $0x38] sm:$0xff]  ;;  %3642 = vmatmul.mubr.bf16.gmra.mrb[144].mxu1 %v7222_v59  ;;  %1873 = vst [vmem:[#allocation2 + $0x40] sm:$0xff] %v1819_v0  ;;  %v1821_v42 = vadd.f32 %v1644_v52, %v1150_v1  ;;  %4313 = vmatmul.mubr.bf16.gmra.mrb[144].mxu0 %v7225_v5  ;;  %v1099_v5 = vld [vmem:[#allocation2 + $0x68] sm:$0xff] }
 0x153   :  { %1870 = vst.msk [vmem:[#allocation2 + $0x28] sm:$0xff] %vm309_vm0, %v1816_v17  ;;  %1205 = vst.msk [vmem:[#allocation2 + $0x58] sm:$0xff] %vm309_vm0, %v1151_v27  ;;  %v1818_v60 = vadd.f32 %v1764_v56, %v1636_v30  ;;  %5630 = vmatprep.mubr.msk.bf16.mxu1 %vm309_vm0, %v7228_v9  ;;  %5747 = vmatprep.mubr.msk.bf16.mxu0 %vm309_vm0, %v7232_v10  ;;  %v7558_v56 = vld [vmem:[%s8233_s0 + $0xe0] sm:$0xff] }
 0x154   :  { %1875 = vst [vmem:[#allocation2 + $0x50] sm:$0xff] %v1821_v42 }
 0x155   :  { %1872 = vst.msk [vmem:[#allocation2 + $0x38] sm:$0xff] %vm309_vm0, %v1818_v60  ;;  %v979_v22 = vpop.f32.mrb[40].mxu1  ;;  %v1650_v59 = vpop.f32.mrb[40].mxu0 }
 0x156   :  { %v1152_v20 = vadd.f32 %v979_v22, %v7388_v53  ;;  %v981_v12 = vpop.f32.mrb[41].mxu1  ;;  %v1652_v36 = vpop.f32.mrb[41].mxu0  ;;  %v1107_v22 = vld [vmem:[#allocation2 + $0xa8] sm:$0xff] }
 0x157   :  { %v1153_v37 = vadd.f32 %v1099_v5, %v981_v12  ;;  %v983_v45 = vpop.f32.mrb[42].mxu1  ;;  %v1654_v24 = vpop.f32.mrb[42].mxu0 }
 0x158   :  { %v1766_v30 = vld [vmem:[#allocation2 + $0x48] sm:$0xff]  ;;  %v1154_v50 = vadd.f32 %v983_v45, %v7392_v32  ;;  %v985_v9 = vpop.f32.mrb[43].mxu1  ;;  %v1823_v31 = vadd.f32 %v1650_v59, %v1152_v20  ;;  %v1656_v10 = vpop.f32.mrb[43].mxu0 }
 0x159   :  { %1207 = vst.msk [vmem:[#allocation2 + $0x68] sm:$0xff] %vm309_vm0, %v1153_v37  ;;  %v1820_v18 = vadd.f32 %v1766_v30, %v1642_v49  ;;  %v1155_v57 = vadd.f32 %v1101_v38, %v985_v9 }
 0x15a   :  { %v1768_v61 = vld [vmem:[#allocation2 + $0x58] sm:$0xff]  ;;  %3652 = vmatmul.mubr.bf16.gmra.mrb[148].mxu1 %v7273_v7  ;;  %1877 = vst [vmem:[#allocation2 + $0x60] sm:$0xff] %v1823_v31  ;;  %v1825_v53 = vadd.f32 %v1654_v24, %v1154_v50  ;;  %4323 = vmatmul.mubr.bf16.gmra.mrb[148].mxu0 %v7277_v43 }
 0x15b   :  { %1874 = vst.msk [vmem:[#allocation2 + $0x48] sm:$0xff] %vm309_vm0, %v1820_v18  ;;  %1209 = vst.msk [vmem:[#allocation2 + $0x78] sm:$0xff] %vm309_vm0, %v1155_v57  ;;  %v1822_v32 = vadd.f32 %v1768_v61, %v1646_v8  ;;  %5631 = vmatprep.mubr.msk.bf16.mxu1 %vm309_vm0, %v7281_v26  ;;  %5748 = vmatprep.mubr.msk.bf16.mxu0 %vm309_vm0, %v7284_v58  ;;  %v7540_v7 = vld [vmem:[%s8233_s0 + $0xd8] sm:$0xff]  ;;  %v7586_v18 = vld [vmem:[%s8233_s0 + $0xf0] sm:$0xff] }
 0x15c   :  { %1879 = vst [vmem:[#allocation2 + $0x70] sm:$0xff] %v1825_v53  ;;  %v5702_v58 = vcombine.high %v7310_v4, %v7540_v7  ;;  %v5701_v20 = vcombine.low %v7310_v4, %v7540_v7  ;;  %v1109_v50 = vld [vmem:[#allocation2 + $0xb8] sm:$0xff] }
 0x15d   :  { %1876 = vst.msk [vmem:[#allocation2 + $0x58] sm:$0xff] %vm309_vm0, %v1822_v32  ;;  %v989_v43 = vpop.f32.mrb[44].mxu1  ;;  %v1660_v3 = vpop.f32.mrb[44].mxu0 }
 0x15e   :  { %v1156_v63 = vadd.f32 %v989_v43, %v7414_v46  ;;  %v991_v33 = vpop.f32.mrb[45].mxu1  ;;  %v1662_v49 = vpop.f32.mrb[45].mxu0 }
 0x15f   :  { %v1157_v13 = vadd.f32 %v1103_v11, %v991_v33  ;;  %v993_v26 = vpop.f32.mrb[46].mxu1  ;;  %v1664_v48 = vpop.f32.mrb[46].mxu0 }
 0x160   :  { %v1770_v52 = vld [vmem:[#allocation2 + $0x68] sm:$0xff]  ;;  %v1158_v39 = vadd.f32 %v993_v26, %v7422_v44  ;;  %v995_v1 = vpop.f32.mrb[47].mxu1  ;;  %v1827_v35 = vadd.f32 %v1660_v3, %v1156_v63  ;;  %v1666_v0 = vpop.f32.mrb[47].mxu0 }
 0x161   :  { %1211 = vst.msk [vmem:[#allocation2 + $0x88] sm:$0xff] %vm309_vm0, %v1157_v13  ;;  %v1824_v8 = vadd.f32 %v1770_v52, %v1652_v36  ;;  %v1159_v46 = vadd.f32 %v1105_v62, %v995_v1 }
 0x162   :  { %v1772_v17 = vld [vmem:[#allocation2 + $0x78] sm:$0xff]  ;;  %3662 = vmatmul.mubr.bf16.gmra.mrb[152].mxu1 %v7322_v2  ;;  %1881 = vst [vmem:[#allocation2 + $0x80] sm:$0xff] %v1827_v35  ;;  %v1829_v27 = vadd.f32 %v1664_v48, %v1158_v39  ;;  %4333 = vmatmul.mubr.bf16.gmra.mrb[152].mxu0 %v7325_v6  ;;  %v7563_v2 = vld [vmem:[%s8233_s0 + $0xe8] sm:$0xff] }
 0x163   :  { %1878 = vst.msk [vmem:[#allocation2 + $0x68] sm:$0xff] %vm309_vm0, %v1824_v8  ;;  %1213 = vst.msk [vmem:[#allocation2 + $0x98] sm:$0xff] %vm309_vm0, %v1159_v46  ;;  %v1826_v44 = vadd.f32 %v1772_v17, %v1656_v10  ;;  %5632 = vmatprep.mubr.msk.bf16.mxu1 %vm309_vm0, %v7332_v51  ;;  %5749 = vmatprep.mubr.msk.bf16.mxu0 %vm309_vm0, %v5702_v58  ;;  %v5704_v37 = vcombine.high %v7558_v56, %v7563_v2  ;;  %v7615_v8 = vld [vmem:[%s8233_s0 + $0x100] sm:$0xff] }
 0x164   :  { %1883 = vst [vmem:[#allocation2 + $0x90] sm:$0xff] %v1829_v27  ;;  %v5703_v3 = vcombine.low %v7558_v56, %v7563_v2  ;;  %v1114_v46 = vld [vmem:[#allocation2 + $0xe0] sm:$0xff] }
 0x165   :  { %1880 = vst.msk [vmem:[#allocation2 + $0x78] sm:$0xff] %vm309_vm0, %v1826_v44  ;;  %v999_v6 = vpop.f32.mrb[48].mxu1  ;;  %v1670_v42 = vpop.f32.mrb[48].mxu0 }
 0x166   :  { %v1160_v60 = vadd.f32 %v999_v6, %v7443_v28  ;;  %v1001_v51 = vpop.f32.mrb[49].mxu1  ;;  %v1672_v59 = vpop.f32.mrb[49].mxu0  ;;  %v1115_v6 = vld [vmem:[#allocation2 + $0xe8] sm:$0xff] }
 0x167   :  { %v1161_v12 = vadd.f32 %v1107_v22, %v1001_v51  ;;  %v1003_v5 = vpop.f32.mrb[50].mxu1  ;;  %v1674_v36 = vpop.f32.mrb[50].mxu0 }
 0x168   :  { %v1774_v45 = vld [vmem:[#allocation2 + $0x88] sm:$0xff]  ;;  %v1162_v24 = vadd.f32 %v1003_v5, %v7453_v25  ;;  %v1005_v30 = vpop.f32.mrb[51].mxu1  ;;  %v7572_v9 = vadd.f32 %v1670_v42, %v1160_v60  ;;  %v1676_v28 = vpop.f32.mrb[51].mxu0  ;;  %v5588_v42 = vcombine.low %v7540_v7, %v7558_v56  ;;  %v5591_v5 = vcombine.high %v7563_v2, %v7586_v18 }
 0x169   :  { %1215 = vst.msk [vmem:[#allocation2 + $0xa8] sm:$0xff] %vm309_vm0, %v1161_v12  ;;  %v1828_v38 = vadd.f32 %v1774_v45, %v1662_v49  ;;  %v1163_v31 = vadd.f32 %v1109_v50, %v1005_v30  ;;  %v5589_v49 = vcombine.high %v7540_v7, %v7558_v56  ;;  %v1117_v30 = vld [vmem:[#allocation2 + $0xf8] sm:$0xff] }
 0x16a   :  { %v1776_v10 = vld [vmem:[#allocation2 + $0x98] sm:$0xff]  ;;  %3672 = vmatmul.mubr.bf16.gmra.mrb[156].mxu1 %v7346_v19  ;;  %v7576_v4 = vadd.f32 %v1674_v36, %v1162_v24  ;;  %4343 = vmatmul.mubr.bf16.gmra.mrb[156].mxu0 %v5701_v20  ;;  %v1116_v20 = vld [vmem:[#allocation2 + $0xf0] sm:$0xff]  ;;  %v5708_v36 = vcombine.high %v7615_v8, %v7386_v21 }
 0x16b   :  { %1882 = vst.msk [vmem:[#allocation2 + $0x88] sm:$0xff] %vm309_vm0, %v1828_v38  ;;  %1217 = vst.msk [vmem:[#allocation2 + $0xb8] sm:$0xff] %vm309_vm0, %v1163_v31  ;;  %v1830_v25 = vadd.f32 %v1776_v10, %v1666_v0  ;;  %5633 = vmatprep.mubr.msk.bf16.mxu1 %vm309_vm0, %v7356_v15  ;;  %5750 = vmatprep.mubr.msk.bf16.mxu0 %vm309_vm0, %v5704_v37  ;;  %v7591_v19 = vld [vmem:[%s8233_s0 + $0xf8] sm:$0xff]  ;;  %v1111_v15 = vld [vmem:[#allocation2 + $0xc8] sm:$0xff] }
 0x16c   :  { %v5706_v13 = vcombine.high %v7586_v18, %v7591_v19  ;;  %v5705_v51 = vcombine.low %v7586_v18, %v7591_v19 }
 0x16d   :  { %1884 = vst.msk [vmem:[#allocation2 + $0x98] sm:$0xff] %vm309_vm0, %v1830_v25  ;;  %v1009_v57 = vpop.f32.mrb[52].mxu1  ;;  %v1680_v61 = vpop.f32.mrb[52].mxu0 }
 0x16e   :  { %v1164_v53 = vadd.f32 %v1009_v57, %v7471_v34  ;;  %v1011_v32 = vpop.f32.mrb[53].mxu1  ;;  %v1682_v43 = vpop.f32.mrb[53].mxu0  ;;  %v1113_v34 = vld [vmem:[#allocation2 + $0xd8] sm:$0xff]  ;;  %v1118_v57 = vld [vmem:[#allocation2 + $0x100] sm:$0xff] }
 0x16f   :  { %v1165_v63 = vadd.f32 %v1111_v15, %v1011_v32  ;;  %v1013_v33 = vpop.f32.mrb[54].mxu1  ;;  %v1684_v11 = vpop.f32.mrb[54].mxu0  ;;  %v1119_v15 = vld [vmem:[#allocation2 + $0x108] sm:$0xff] }
 0x170   :  { %v1778_v26 = vld [vmem:[#allocation2 + $0xa8] sm:$0xff]  ;;  %v1166_v48 = vadd.f32 %v1013_v33, %v7480_v40  ;;  %v1015_v58 = vpop.f32.mrb[55].mxu1  ;;  %v7602_v52 = vadd.f32 %v1680_v61, %v1164_v53  ;;  %v1686_v39 = vpop.f32.mrb[55].mxu0 }
 0x171   :  { %1219 = vst.msk [vmem:[#allocation2 + $0xc8] sm:$0xff] %vm309_vm0, %v1165_v63  ;;  %v1832_v1 = vadd.f32 %v1778_v26, %v1672_v59  ;;  %v1167_v62 = vadd.f32 %v1113_v34, %v1015_v58  ;;  %v5707_v63 = vcombine.low %v7615_v8, %v7386_v21  ;;  %v5593_v26 = vcombine.high %v7591_v19, %v7615_v8 }
 0x172   :  { %v1780_v35 = vld [vmem:[#allocation2 + $0xb8] sm:$0xff]  ;;  %3682 = vmatmul.mubr.bf16.gmra.mrb[160].mxu1 %v7369_v55  ;;  %v7606_v0 = vadd.f32 %v1684_v11, %v1166_v48  ;;  %4353 = vmatmul.mubr.bf16.gmra.mrb[160].mxu0 %v5703_v3 }
 0x173   :  { %1886 = vst.msk [vmem:[#allocation2 + $0xa8] sm:$0xff] %vm309_vm0, %v1832_v1  ;;  %1221 = vst.msk [vmem:[#allocation2 + $0xd8] sm:$0xff] %vm309_vm0, %v1167_v62  ;;  %v1834_v40 = vadd.f32 %v1780_v35, %v1676_v28  ;;  %5634 = vmatprep.mubr.msk.bf16.mxu1 %vm309_vm0, %v5589_v49  ;;  %5751 = vmatprep.mubr.msk.bf16.mxu0 %vm309_vm0, %v5706_v13  ;;  %v1120_v49 = vld [vmem:[#allocation2 + $0x110] sm:$0xff] }
 0x175   :  { %1888 = vst.msk [vmem:[#allocation2 + $0xb8] sm:$0xff] %vm309_vm0, %v1834_v40  ;;  %v1019_v55 = vpop.f32.mrb[56].mxu1  ;;  %v1690_v17 = vpop.f32.mrb[56].mxu0 }
 0x176   :  { %v1168_v27 = vadd.f32 %v1114_v46, %v1019_v55  ;;  %v1021_v44 = vpop.f32.mrb[57].mxu1  ;;  %v1692_v60 = vpop.f32.mrb[57].mxu0  ;;  %v5543_v55 = vld [vmem:[%s8233_s0 + $0x108] sm:$0xff] }
 0x177   :  { %v1169_v22 = vadd.f32 %v1115_v6, %v1021_v44  ;;  %v1023_v59 = vpop.f32.mrb[58].mxu1  ;;  %v1694_v12 = vpop.f32.mrb[58].mxu0 }
 0x178   :  { %v1782_v37 = vld [vmem:[#allocation2 + $0xc8] sm:$0xff]  ;;  %v1170_v45 = vadd.f32 %v1116_v20, %v1023_v59  ;;  %v1025_v24 = vpop.f32.mrb[59].mxu1  ;;  %v7626_v50 = vadd.f32 %v1690_v17, %v1168_v27  ;;  %v1696_v7 = vpop.f32.mrb[59].mxu0  ;;  %v1122_v17 = vld [vmem:[#allocation2 + $0x120] sm:$0xff]  ;;  %v1124_v20 = vld [vmem:[#allocation2 + $0x130] sm:$0xff] }
 0x179   :  { %1223 = vst.msk [vmem:[#allocation2 + $0xe8] sm:$0xff] %vm309_vm0, %v1169_v22  ;;  %v1836_v56 = vadd.f32 %v1782_v37, %v1682_v43  ;;  %v1171_v28 = vadd.f32 %v1117_v30, %v1025_v24  ;;  %v5590_v43 = vcombine.low %v7563_v2, %v7586_v18 }
 0x17a   :  { %v1784_v38 = vld [vmem:[#allocation2 + $0xd8] sm:$0xff]  ;;  %3692 = vmatmul.mubr.bf16.gmra.mrb[164].mxu1 %v5588_v42  ;;  %v7629_v31 = vadd.f32 %v1694_v12, %v1170_v45  ;;  %4363 = vmatmul.mubr.bf16.gmra.mrb[164].mxu0 %v5705_v51  ;;  %v1123_v42 = vld [vmem:[#allocation2 + $0x128] sm:$0xff]  ;;  %v5595_v12 = vcombine.high %v5543_v55, %v7407_v16 }
 0x17b   :  { %1890 = vst.msk [vmem:[#allocation2 + $0xc8] sm:$0xff] %vm309_vm0, %v1836_v56  ;;  %1225 = vst.msk [vmem:[#allocation2 + $0xf8] sm:$0xff] %vm309_vm0, %v1171_v28  ;;  %v1838_v10 = vadd.f32 %v1784_v38, %v1686_v39  ;;  %5635 = vmatprep.mubr.msk.bf16.mxu1 %vm309_vm0, %v5591_v5  ;;  %5752 = vmatprep.mubr.msk.bf16.mxu0 %vm309_vm0, %v5708_v36  ;;  %v1121_v39 = vld [vmem:[#allocation2 + $0x118] sm:$0xff] }
 0x17c   :  { %v1125_v45 = vld [vmem:[#allocation2 + $0x138] sm:$0xff] }
 0x17d   :  { %1892 = vst.msk [vmem:[#allocation2 + $0xd8] sm:$0xff] %vm309_vm0, %v1838_v10  ;;  %v1029_v25 = vpop.f32.mrb[60].mxu1  ;;  %v1700_v61 = vpop.f32.mrb[60].mxu0  ;;  %v7673_v38 = vld [vmem:[%s8233_s0 + $0x118] sm:$0xff] }
 0x17e   :  { %v1172_v53 = vadd.f32 %v1118_v57, %v1029_v25  ;;  %v1031_v32 = vpop.f32.mrb[61].mxu1  ;;  %v1702_v3 = vpop.f32.mrb[61].mxu0  ;;  %v7678_v10 = vld [vmem:[%s8233_s0 + $0x138] sm:$0xff]  ;;  %v1126_v25 = vld [vmem:[#allocation2 + $0x140] sm:$0xff] }
 0x17f   :  { %v1173_v33 = vadd.f32 %v1119_v15, %v1031_v32  ;;  %v1033_v11 = vpop.f32.mrb[62].mxu1  ;;  %v1704_v13 = vpop.f32.mrb[62].mxu0  ;;  %v1127_v32 = vld [vmem:[#allocation2 + $0x148] sm:$0xff] }
 0x180   :  { %v1786_v48 = vld [vmem:[#allocation2 + $0xe8] sm:$0xff]  ;;  %v1174_v58 = vadd.f32 %v1120_v49, %v1033_v11  ;;  %v1035_v34 = vpop.f32.mrb[63].mxu1  ;;  %v7642_v1 = vadd.f32 %v1700_v61, %v1172_v53  ;;  %v1706_v62 = vpop.f32.mrb[63].mxu0  ;;  %v5597_v11 = vcombine.high %v7673_v38, %v7438_v54  ;;  %v5714_v49 = vcombine.high %v7469_v47, %v7678_v10 }
 0x181   :  { %1227 = vst.msk [vmem:[#allocation2 + $0x108] sm:$0xff] %vm309_vm0, %v1173_v33  ;;  %v1840_v2 = vadd.f32 %v1786_v48, %v1692_v60  ;;  %v1175_v18 = vadd.f32 %v1121_v39, %v1035_v34  ;;  %v5592_v60 = vcombine.low %v7591_v19, %v7615_v8 }
 0x182   :  { %v1788_v35 = vld [vmem:[#allocation2 + $0xf8] sm:$0xff]  ;;  %3702 = vmatmul.mubr.bf16.gmra.mrb[168].mxu1 %v5590_v43  ;;  %v7645_v21 = vadd.f32 %v1704_v13, %v1174_v58  ;;  %4373 = vmatmul.mubr.bf16.gmra.mrb[168].mxu0 %v5707_v63  ;;  %v1128_v63 = vld [vmem:[#allocation2 + $0x150] sm:$0xff] }
 0x183   :  { %1894 = vst.msk [vmem:[#allocation2 + $0xe8] sm:$0xff] %vm309_vm0, %v1840_v2  ;;  %1229 = vst.msk [vmem:[#allocation2 + $0x118] sm:$0xff] %vm309_vm0, %v1175_v18  ;;  %v1842_v40 = vadd.f32 %v1788_v35, %v1696_v7  ;;  %5636 = vmatprep.mubr.msk.bf16.mxu1 %vm309_vm0, %v5593_v26  ;;  %5753 = vmatprep.mubr.msk.bf16.mxu0 %vm309_vm0, %v7428_v23  ;;  %v1129_v58 = vld [vmem:[#allocation2 + $0x158] sm:$0xff] }
 0x185   :  { %1896 = vst.msk [vmem:[#allocation2 + $0xf8] sm:$0xff] %vm309_vm0, %v1842_v40  ;;  %v1039_v46 = vpop.f32.mrb[64].mxu1  ;;  %v1710_v27 = vpop.f32.mrb[64].mxu0  ;;  %v7699_v40 = vld [vmem:[%s8233_s0 + $0x128] sm:$0xff] }
 0x186   :  { %v1176_v44 = vadd.f32 %v1122_v17, %v1039_v46  ;;  %v1041_v6 = vpop.f32.mrb[65].mxu1  ;;  %v1712_v51 = vpop.f32.mrb[65].mxu0  ;;  %v1130_v17 = vld [vmem:[#allocation2 + $0x160] sm:$0xff] }
 0x187   :  { %v1177_v22 = vadd.f32 %v1123_v42, %v1041_v6  ;;  %v1043_v59 = vpop.f32.mrb[66].mxu1  ;;  %v1714_v23 = vpop.f32.mrb[66].mxu0  ;;  %v1131_v42 = vld [vmem:[#allocation2 + $0x168] sm:$0xff] }
 0x188   :  { %v1790_v5 = vld [vmem:[#allocation2 + $0x108] sm:$0xff]  ;;  %v1178_v36 = vadd.f32 %v1124_v20, %v1043_v59  ;;  %v1045_v37 = vpop.f32.mrb[67].mxu1  ;;  %v7659_v24 = vadd.f32 %v1710_v27, %v1176_v44  ;;  %v1716_v30 = vpop.f32.mrb[67].mxu0 }
 0x189   :  { %1231 = vst.msk [vmem:[#allocation2 + $0x128] sm:$0xff] %vm309_vm0, %v1177_v22  ;;  %v1844_v7 = vadd.f32 %v1790_v5, %v1702_v3  ;;  %v1179_v56 = vadd.f32 %v1125_v45, %v1045_v37  ;;  %v5713_v22 = vcombine.low %v7469_v47, %v7678_v10  ;;  %v5599_v5 = vcombine.high %v7699_v40, %v7469_v47 }
 0x18a   :  { %v1792_v28 = vld [vmem:[#allocation2 + $0x118] sm:$0xff]  ;;  %3712 = vmatmul.mubr.bf16.gmra.mrb[172].mxu1 %v5592_v60  ;;  %v7662_v19 = vadd.f32 %v1714_v23, %v1178_v36  ;;  %4383 = vmatmul.mubr.bf16.gmra.mrb[172].mxu0 %v7449_v29  ;;  %v5596_v60 = vcombine.low %v7673_v38, %v7438_v54  ;;  %v1132_v23 = vld [vmem:[#allocation2 + $0x170] sm:$0xff] }
 0x18b   :  { %1898 = vst.msk [vmem:[#allocation2 + $0x108] sm:$0xff] %vm309_vm0, %v1844_v7  ;;  %1233 = vst.msk [vmem:[#allocation2 + $0x138] sm:$0xff] %vm309_vm0, %v1179_v56  ;;  %v1846_v8 = vadd.f32 %v1792_v28, %v1706_v62  ;;  %5637 = vmatprep.mubr.msk.bf16.mxu1 %vm309_vm0, %v5595_v12  ;;  %5754 = vmatprep.mubr.msk.bf16.mxu0 %vm309_vm0, %v7458_v14  ;;  %v5594_v14 = vcombine.low %v5543_v55, %v7407_v16  ;;  %v7704_v55 = vld [vmem:[%s8233_s0 + $0x140] sm:$0xff]  ;;  %v1133_v7 = vld [vmem:[#allocation2 + $0x178] sm:$0xff] }
 0x18d   :  { %1900 = vst.msk [vmem:[#allocation2 + $0x118] sm:$0xff] %vm309_vm0, %v1846_v8  ;;  %v1049_v29 = vpop.f32.mrb[68].mxu1  ;;  %v1720_v57 = vpop.f32.mrb[68].mxu0 }
 0x18e   :  { %v1180_v61 = vadd.f32 %v1126_v25, %v1049_v29  ;;  %v1051_v53 = vpop.f32.mrb[69].mxu1  ;;  %v1722_v15 = vpop.f32.mrb[69].mxu0 }
 0x18f   :  { %v1181_v43 = vadd.f32 %v1127_v32, %v1051_v53  ;;  %v1053_v3 = vpop.f32.mrb[70].mxu1  ;;  %v1724_v33 = vpop.f32.mrb[70].mxu0 }
 0x190   :  { %v1794_v13 = vld [vmem:[#allocation2 + $0x128] sm:$0xff]  ;;  %v1182_v26 = vadd.f32 %v1128_v63, %v1053_v3  ;;  %v1055_v48 = vpop.f32.mrb[71].mxu1  ;;  %v7686_v34 = vadd.f32 %v1720_v57, %v1180_v61  ;;  %v1726_v39 = vpop.f32.mrb[71].mxu0  ;;  %v1134_v61 = vld [vmem:[#allocation2 + $0x180] sm:$0xff] }
 0x191   :  { %1235 = vst.msk [vmem:[#allocation2 + $0x148] sm:$0xff] %vm309_vm0, %v1181_v43  ;;  %v1848_v16 = vadd.f32 %v1794_v13, %v1712_v51  ;;  %v1183_v62 = vadd.f32 %v1129_v58, %v1055_v48  ;;  %v5598_v43 = vcombine.low %v7699_v40, %v7469_v47  ;;  %v6186_v48 = vld [vmem:[%s8233_s0 + $0x154] ss:$8 sps:$4 sm:$0xff]  }
 0x192   :  { %v1796_v2 = vld [vmem:[#allocation2 + $0x138] sm:$0xff]  ;;  %3722 = vmatmul.mubr.bf16.gmra.mrb[176].mxu1 %v5594_v14  ;;  %v7689_v18 = vadd.f32 %v1724_v33, %v1182_v26  ;;  %4393 = vmatmul.mubr.bf16.gmra.mrb[176].mxu0 %v7476_v41  ;;  %v7709_v41 = vld [vmem:[%s8233_s0 + $0x148] sm:$0xff]  ;;  %v5601_v26 = vcombine.high %v7678_v10, %v7704_v55 }
 0x193   :  { %1902 = vst.msk [vmem:[#allocation2 + $0x128] sm:$0xff] %vm309_vm0, %v1848_v16  ;;  %1237 = vst.msk [vmem:[#allocation2 + $0x158] sm:$0xff] %vm309_vm0, %v1183_v62  ;;  %v1850_v35 = vadd.f32 %v1796_v2, %v1716_v30  ;;  %5638 = vmatprep.mubr.msk.bf16.mxu1 %vm309_vm0, %v5597_v11  ;;  %5755 = vmatprep.mubr.msk.bf16.mxu0 %vm309_vm0, %v5714_v49  ;;  %v5716_v36 = vcombine.high %v7704_v55, %v7709_v41  ;;  %v1136_v49 = vld [vmem:[#allocation2 + $0x190] sm:$0xff]  ;;  %v1137_v62 = vld [vmem:[#allocation2 + $0x198] sm:$0xff] }
 0x194   :  { %v5715_v63 = vcombine.low %v7704_v55, %v7709_v41 }
 0x195   :  { %1904 = vst.msk [vmem:[#allocation2 + $0x138] sm:$0xff] %vm309_vm0, %v1850_v35  ;;  %v1059_v46 = vpop.f32.mrb[72].mxu1  ;;  %v1730_v27 = vpop.f32.mrb[72].mxu0 }
 0x196   :  { %v1184_v44 = vadd.f32 %v1130_v17, %v1059_v46  ;;  %v1061_v6 = vpop.f32.mrb[73].mxu1  ;;  %v1732_v51 = vpop.f32.mrb[73].mxu0 }
 0x197   :  { %v1185_v59 = vadd.f32 %v1131_v42, %v1061_v6  ;;  %v1063_v20 = vpop.f32.mrb[74].mxu1  ;;  %v1734_v12 = vpop.f32.mrb[74].mxu0  ;;  %v1138_v42 = vld [vmem:[#allocation2 + $0x1a0] sm:$0xff] }
 0x198   :  { %v1798_v37 = vld [vmem:[#allocation2 + $0x148] sm:$0xff]  ;;  %v1186_v45 = vadd.f32 %v1132_v23, %v1063_v20  ;;  %v1065_v30 = vpop.f32.mrb[75].mxu1  ;;  %v7720_v56 = vadd.f32 %v1730_v27, %v1184_v44  ;;  %v1736_v54 = vpop.f32.mrb[75].mxu0  ;;  %v5668_v44 = vld [vmem:[%s8233_s0 + $0x160] sm:$0xff]  ;;  %v5600_v20 = vcombine.low %v7678_v10, %v7704_v55 }
 0x199   :  { %1239 = vst.msk [vmem:[#allocation2 + $0x168] sm:$0xff] %vm309_vm0, %v1185_v59  ;;  %v1852_v28 = vadd.f32 %v1798_v37, %v1722_v15  ;;  %v1187_v8 = vadd.f32 %v1133_v7, %v1065_v30  ;;  %v1135_v15 = vld [vmem:[#allocation2 + $0x188] sm:$0xff]  ;;  %v5720_v30 = vcombine.high %v5668_v44, %v5668_v44 }
 0x19a   :  { %v1800_v38 = vld [vmem:[#allocation2 + $0x158] sm:$0xff]  ;;  %3732 = vmatmul.mubr.bf16.gmra.mrb[180].mxu1 %v5596_v60  ;;  %v7723_v29 = vadd.f32 %v1734_v12, %v1186_v45  ;;  %4403 = vmatmul.mubr.bf16.gmra.mrb[180].mxu0 %v5713_v22  ;;  %v1139_v59 = vld [vmem:[#allocation2 + $0x1a8] sm:$0xff]  ;;  %v5603_v45 = vcombine.high %v7709_v41, %v7709_v41 }
 0x19b   :  { %1906 = vst.msk [vmem:[#allocation2 + $0x148] sm:$0xff] %vm309_vm0, %v1852_v28  ;;  %1241 = vst.msk [vmem:[#allocation2 + $0x178] sm:$0xff] %vm309_vm0, %v1187_v8  ;;  %v1854_v25 = vadd.f32 %v1800_v38, %v1726_v39  ;;  %5639 = vmatprep.mubr.msk.bf16.mxu1 %vm309_vm0, %v5599_v5  ;;  %5756 = vmatprep.mubr.msk.bf16.mxu0 %vm309_vm0, %v5716_v36  ;;  %v6188_v12 = vld [vmem:[%s8233_s0 + $0x150] ss:$8 sps:$4 sm:$0xff]  }
 0x19d   :  { %1908 = vst.msk [vmem:[#allocation2 + $0x158] sm:$0xff] %vm309_vm0, %v1854_v25  ;;  %v1069_v57 = vpop.f32.mrb[76].mxu1  ;;  %v1740_v53 = vpop.f32.mrb[76].mxu0 }
 0x19e   :  { %v1188_v32 = vadd.f32 %v1134_v61, %v1069_v57  ;;  %v1071_v14 = vpop.f32.mrb[77].mxu1  ;;  %v1742_v3 = vpop.f32.mrb[77].mxu0  ;;  %v2428_v57 = vld [vmem:[#allocation2] sm:$0xff] }
 0x19f   :  { %v1189_v33 = vadd.f32 %v1135_v15, %v1071_v14  ;;  %v1073_v11 = vpop.f32.mrb[78].mxu1  ;;  %v1744_v13 = vpop.f32.mrb[78].mxu0  ;;  %v2429_v14 = vld [vmem:[#allocation2 + $0x8] sm:$0xff]  ;;  %v5602_v15 = vcombine.low %v7709_v41, %v7709_v41 }
 0x1a0   :  { %v1802_v58 = vld [vmem:[#allocation2 + $0x168] sm:$0xff]  ;;  %v1190_v39 = vadd.f32 %v1136_v49, %v1073_v11  ;;  %v1075_v16 = vpop.f32.mrb[79].mxu1  ;;  %v7739_v47 = vadd.f32 %v1740_v53, %v1188_v32  ;;  %v1746_v2 = vpop.f32.mrb[79].mxu0  ;;  %v2430_v11 = vld [vmem:[#allocation2 + $0x10] sm:$0xff] }
 0x1a1   :  { %1243 = vst.msk [vmem:[#allocation2 + $0x188] sm:$0xff] %vm309_vm0, %v1189_v33  ;;  %v1856_v35 = vadd.f32 %v1802_v58, %v1732_v51  ;;  %v1191_v40 = vadd.f32 %v1137_v62, %v1075_v16  ;;  %v2431_v58 = vld [vmem:[#allocation2 + $0x18] sm:$0xff] }
 0x1a2   :  { %v1804_v46 = vld [vmem:[#allocation2 + $0x178] sm:$0xff]  ;;  %3742 = vmatmul.mubr.bf16.gmra.mrb[184].mxu1 %v5598_v43  ;;  %v7742_v17 = vadd.f32 %v1744_v13, %v1190_v39  ;;  %4413 = vmatmul.mubr.bf16.gmra.mrb[184].mxu0 %v5715_v63 }
 0x1a3   :  { %1910 = vst.msk [vmem:[#allocation2 + $0x168] sm:$0xff] %vm309_vm0, %v1856_v35  ;;  %1245 = vst.msk [vmem:[#allocation2 + $0x198] sm:$0xff] %vm309_vm0, %v1191_v40  ;;  %v1858_v27 = vadd.f32 %v1804_v46, %v1736_v54  ;;  %5640 = vmatprep.mubr.msk.bf16.mxu1 %vm309_vm0, %v5601_v26  ;;  %5757 = vmatprep.mubr.msk.bf16.mxu0 %vm309_vm0, %v6186_v48  ;;  %v2432_v40 = vld [vmem:[#allocation2 + $0x20] sm:$0xff] }
 0x1a5   :  { %1912 = vst.msk [vmem:[#allocation2 + $0x178] sm:$0xff] %vm309_vm0, %v1858_v27  ;;  %v1079_v6 = vpop.f32.mrb[80].mxu1  ;;  %v1750_v60 = vpop.f32.mrb[80].mxu0 }
 0x1a6   :  { %v1192_v51 = vadd.f32 %v1138_v42, %v1079_v6  ;;  %v1081_v22 = vpop.f32.mrb[81].mxu1  ;;  %v1752_v23 = vpop.f32.mrb[81].mxu0  ;;  %v2433_v6 = vld [vmem:[#allocation2 + $0x28] sm:$0xff] }
 0x1a7   :  { %v1193_v5 = vadd.f32 %v1139_v59, %v1081_v22  ;;  %v1083_v36 = vpop.f32.mrb[82].mxu1  ;;  %v1754_v37 = vpop.f32.mrb[82].mxu0  ;;  %v2434_v22 = vld [vmem:[#allocation2 + $0x30] sm:$0xff] }
 0x1a8   :  { %v1806_v7 = vld [vmem:[#allocation2 + $0x188] sm:$0xff]  ;;  %v1084_v54 = vpop.f32.mrb[83].mxu1  ;;  %v7759_v28 = vadd.f32 %v1750_v60, %v1192_v51  ;;  %v1755_v8 = vpop.f32.mrb[83].mxu0 }
 0x1a9   :  { %1247 = vst.msk [vmem:[#allocation2 + $0x1a8] sm:$0xff] %vm309_vm0, %v1193_v5  ;;  %v1860_v10 = vadd.f32 %v1806_v7, %v1742_v3  ;;  %v5719_v3 = vcombine.low %v5668_v44, %v5668_v44  ;;  %v2435_v5 = vld [vmem:[#allocation2 + $0x38] sm:$0xff] }
 0x1aa   :  { %v1808_v55 = vld [vmem:[#allocation2 + $0x198] sm:$0xff]  ;;  %3752 = vmatmul.mubr.bf16.gmra.mrb[188].mxu1 %v5600_v20  ;;  %4423 = vmatmul.mubr.bf16.gmra.mrb[188].mxu0 %v6188_v12 }
 0x1ab   :  { %1914 = vst.msk [vmem:[#allocation2 + $0x188] sm:$0xff] %vm309_vm0, %v1860_v10  ;;  %v1862_v38 = vadd.f32 %v1808_v55, %v1746_v2  ;;  %5641 = vmatprep.mubr.msk.bf16.mxu1 %vm309_vm0, %v5603_v45  ;;  %5758 = vmatprep.mubr.msk.bf16.mxu0 %vm309_vm0, %v5720_v30  ;;  %v2436_v55 = vld [vmem:[#allocation2 + $0x40] sm:$0xff] }
 0x1ad   :  { %1916 = vst.msk [vmem:[#allocation2 + $0x198] sm:$0xff] %vm309_vm0, %v1862_v38  ;;  %v2291_v25 = vpop.f32.mrb[84].mxu1  ;;  %v2962_v61 = vpop.f32.mrb[84].mxu0 }
 0x1ae   :  { %v2482_v53 = vadd.f32 %v2428_v57, %v2291_v25  ;;  %v2293_v32 = vpop.f32.mrb[85].mxu1  ;;  %v2964_v43 = vpop.f32.mrb[85].mxu0 }
 0x1af   :  { %v2483_v63 = vadd.f32 %v2429_v14, %v2293_v32  ;;  %v2295_v33 = vpop.f32.mrb[86].mxu1  ;;  %v2966_v49 = vpop.f32.mrb[86].mxu0 }
 0x1b0   :  { %v1810_v13 = vld [vmem:[#allocation2 + $0x1a8] sm:$0xff]  ;;  %v2484_v26 = vadd.f32 %v2430_v11, %v2295_v33  ;;  %v2297_v48 = vpop.f32.mrb[87].mxu1  ;;  %v7768_v39 = vadd.f32 %v2962_v61, %v2482_v53  ;;  %v2968_v16 = vpop.f32.mrb[87].mxu0  ;;  %v2439_v11 = vld [vmem:[#allocation2 + $0x58] sm:$0xff] }
 0x1b1   :  { %v1864_v62 = vadd.f32 %v1810_v13, %v1752_v23  ;;  %2537 = vst.msk [vmem:[#allocation2 + $0x8] sm:$0xff] %vm309_vm0, %v2483_v63  ;;  %v2485_v2 = vadd.f32 %v2431_v58, %v2297_v48  ;;  %v2437_v61 = vld [vmem:[#allocation2 + $0x48] sm:$0xff] }
 0x1b2   :  { %3762 = vmatmul.mubr.bf16.gmra.mrb[192].mxu1 %v5602_v15  ;;  %v7771_v35 = vadd.f32 %v2966_v49, %v2484_v26  ;;  %4433 = vmatmul.mubr.bf16.gmra.mrb[192].mxu0 %v5719_v3  ;;  %v2438_v15 = vld [vmem:[#allocation2 + $0x50] sm:$0xff] }
 0x1b3   :  { %1918 = vst.msk [vmem:[#allocation2 + $0x1a8] sm:$0xff] %vm309_vm0, %v1864_v62  ;;  %2539 = vst.msk [vmem:[#allocation2 + $0x18] sm:$0xff] %vm309_vm0, %v2485_v2 }
 0x1b5   :  { %v2301_v41 = vpop.f32.mrb[88].mxu1  ;;  %v2972_v46 = vpop.f32.mrb[88].mxu0 }
 0x1b6   :  { %v2486_v27 = vadd.f32 %v2432_v40, %v2301_v41  ;;  %v2303_v44 = vpop.f32.mrb[89].mxu1  ;;  %v2974_v42 = vpop.f32.mrb[89].mxu0  ;;  %v2440_v41 = vld [vmem:[#allocation2 + $0x60] sm:$0xff] }
 0x1b7   :  { %v2487_v60 = vadd.f32 %v2433_v6, %v2303_v44  ;;  %v2305_v51 = vpop.f32.mrb[90].mxu1  ;;  %v2976_v59 = vpop.f32.mrb[90].mxu0  ;;  %v2441_v44 = vld [vmem:[#allocation2 + $0x68] sm:$0xff] }
 0x1b8   :  { %v3100_v20 = vld [vmem:[#allocation2 + $0x8] sm:$0xff]  ;;  %v2488_v23 = vadd.f32 %v2434_v22, %v2305_v51  ;;  %v2307_v12 = vpop.f32.mrb[91].mxu1  ;;  %v7775_v36 = vadd.f32 %v2972_v46, %v2486_v27  ;;  %v2978_v37 = vpop.f32.mrb[91].mxu0  ;;  %v2442_v51 = vld [vmem:[#allocation2 + $0x70] sm:$0xff] }
 0x1b9   :  { %2541 = vst.msk [vmem:[#allocation2 + $0x28] sm:$0xff] %vm309_vm0, %v2487_v60  ;;  %v3154_v45 = vadd.f32 %v3100_v20, %v2964_v43  ;;  %v2489_v30 = vadd.f32 %v2435_v5, %v2307_v12  ;;  %v2443_v12 = vld [vmem:[#allocation2 + $0x78] sm:$0xff] }
 0x1ba   :  { %v3102_v7 = vld [vmem:[#allocation2 + $0x18] sm:$0xff]  ;;  %v7778_v54 = vadd.f32 %v2976_v59, %v2488_v23 }
 0x1bb   :  { %3208 = vst.msk [vmem:[#allocation2 + $0x8] sm:$0xff] %vm309_vm0, %v3154_v45  ;;  %2543 = vst.msk [vmem:[#allocation2 + $0x38] sm:$0xff] %vm309_vm0, %v2489_v30  ;;  %v3156_v8 = vadd.f32 %v3102_v7, %v2968_v16 }
 0x1bd   :  { %3210 = vst.msk [vmem:[#allocation2 + $0x18] sm:$0xff] %vm309_vm0, %v3156_v8  ;;  %v2311_v10 = vpop.f32.mrb[92].mxu1  ;;  %v2982_v38 = vpop.f32.mrb[92].mxu0 }
 0x1be   :  { %v2490_v25 = vadd.f32 %v2436_v55, %v2311_v10  ;;  %v2313_v57 = vpop.f32.mrb[93].mxu1  ;;  %v2984_v53 = vpop.f32.mrb[93].mxu0 }
 0x1bf   :  { %v2491_v32 = vadd.f32 %v2437_v61, %v2313_v57  ;;  %v2315_v14 = vpop.f32.mrb[94].mxu1  ;;  %v2986_v43 = vpop.f32.mrb[94].mxu0 }
 0x1c0   :  { %v3104_v3 = vld [vmem:[#allocation2 + $0x28] sm:$0xff]  ;;  %v2492_v63 = vadd.f32 %v2438_v15, %v2315_v14  ;;  %v2317_v33 = vpop.f32.mrb[95].mxu1  ;;  %v7783_v49 = vadd.f32 %v2982_v38, %v2490_v25  ;;  %v2988_v13 = vpop.f32.mrb[95].mxu0  ;;  %v2444_v38 = vld [vmem:[#allocation2 + $0x80] sm:$0xff] }
 0x1c1   :  { %2545 = vst.msk [vmem:[#allocation2 + $0x48] sm:$0xff] %vm309_vm0, %v2491_v32  ;;  %v3158_v26 = vadd.f32 %v3104_v3, %v2974_v42  ;;  %v2493_v48 = vadd.f32 %v2439_v11, %v2317_v33  ;;  %v2445_v32 = vld [vmem:[#allocation2 + $0x88] sm:$0xff] }
 0x1c2   :  { %v3106_v58 = vld [vmem:[#allocation2 + $0x38] sm:$0xff]  ;;  %v7786_v16 = vadd.f32 %v2986_v43, %v2492_v63  ;;  %v2446_v43 = vld [vmem:[#allocation2 + $0x90] sm:$0xff] }
 0x1c3   :  { %3212 = vst.msk [vmem:[#allocation2 + $0x28] sm:$0xff] %vm309_vm0, %v3158_v26  ;;  %2547 = vst.msk [vmem:[#allocation2 + $0x58] sm:$0xff] %vm309_vm0, %v2493_v48  ;;  %v3160_v62 = vadd.f32 %v3106_v58, %v2978_v37  ;;  %v2447_v26 = vld [vmem:[#allocation2 + $0x98] sm:$0xff] }
 0x1c5   :  { %3214 = vst.msk [vmem:[#allocation2 + $0x38] sm:$0xff] %vm309_vm0, %v3160_v62  ;;  %v2321_v2 = vpop.f32.mrb[96].mxu1  ;;  %v2992_v40 = vpop.f32.mrb[96].mxu0 }
 0x1c6   :  { %v2494_v46 = vadd.f32 %v2440_v41, %v2321_v2  ;;  %v2323_v27 = vpop.f32.mrb[97].mxu1  ;;  %v2994_v6 = vpop.f32.mrb[97].mxu0 }
 0x1c7   :  { %v2495_v60 = vadd.f32 %v2441_v44, %v2323_v27  ;;  %v2325_v42 = vpop.f32.mrb[98].mxu1  ;;  %v2996_v22 = vpop.f32.mrb[98].mxu0 }
 0x1c8   :  { %v3108_v59 = vld [vmem:[#allocation2 + $0x48] sm:$0xff]  ;;  %v2496_v20 = vadd.f32 %v2442_v51, %v2325_v42  ;;  %v2327_v23 = vpop.f32.mrb[99].mxu1  ;;  %v7791_v5 = vadd.f32 %v2992_v40, %v2494_v46  ;;  %v2998_v37 = vpop.f32.mrb[99].mxu0 }
 0x1c9   :  { %2549 = vst.msk [vmem:[#allocation2 + $0x68] sm:$0xff] %vm309_vm0, %v2495_v60  ;;  %v3162_v45 = vadd.f32 %v3108_v59, %v2984_v53  ;;  %v2497_v30 = vadd.f32 %v2443_v12, %v2327_v23  ;;  %v2449_v42 = vld [vmem:[#allocation2 + $0xa8] sm:$0xff] }
 0x1ca   :  { %v3110_v7 = vld [vmem:[#allocation2 + $0x58] sm:$0xff]  ;;  %v7794_v8 = vadd.f32 %v2996_v22, %v2496_v20 }
 0x1cb   :  { %3216 = vst.msk [vmem:[#allocation2 + $0x48] sm:$0xff] %vm309_vm0, %v3162_v45  ;;  %2551 = vst.msk [vmem:[#allocation2 + $0x78] sm:$0xff] %vm309_vm0, %v2497_v30  ;;  %v3164_v10 = vadd.f32 %v3110_v7, %v2988_v13  ;;  %v2451_v45 = vld [vmem:[#allocation2 + $0xb8] sm:$0xff] }
 0x1cd   :  { %3218 = vst.msk [vmem:[#allocation2 + $0x58] sm:$0xff] %vm309_vm0, %v3164_v10  ;;  %v2331_v55 = vpop.f32.mrb[100].mxu1  ;;  %v3002_v25 = vpop.f32.mrb[100].mxu0 }
 0x1ce   :  { %v2498_v57 = vadd.f32 %v2444_v38, %v2331_v55  ;;  %v2333_v61 = vpop.f32.mrb[101].mxu1  ;;  %v3004_v14 = vpop.f32.mrb[101].mxu0 }
 0x1cf   :  { %v2499_v15 = vadd.f32 %v2445_v32, %v2333_v61  ;;  %v2335_v53 = vpop.f32.mrb[102].mxu1  ;;  %v3006_v3 = vpop.f32.mrb[102].mxu0  ;;  %v2453_v32 = vld [vmem:[#allocation2 + $0xc8] sm:$0xff] }
 0x1d0   :  { %v3112_v63 = vld [vmem:[#allocation2 + $0x68] sm:$0xff]  ;;  %v2500_v33 = vadd.f32 %v2446_v43, %v2335_v53  ;;  %v2337_v11 = vpop.f32.mrb[103].mxu1  ;;  %v7799_v48 = vadd.f32 %v3002_v25, %v2498_v57  ;;  %v3008_v13 = vpop.f32.mrb[103].mxu0 }
 0x1d1   :  { %2553 = vst.msk [vmem:[#allocation2 + $0x88] sm:$0xff] %vm309_vm0, %v2499_v15  ;;  %v3166_v58 = vadd.f32 %v3112_v63, %v2994_v6  ;;  %v2501_v62 = vadd.f32 %v2447_v26, %v2337_v11  ;;  %v2455_v11 = vld [vmem:[#allocation2 + $0xd8] sm:$0xff] }
 0x1d2   :  { %v3114_v2 = vld [vmem:[#allocation2 + $0x78] sm:$0xff]  ;;  %v7802_v41 = vadd.f32 %v3006_v3, %v2500_v33 }
 0x1d3   :  { %3220 = vst.msk [vmem:[#allocation2 + $0x68] sm:$0xff] %vm309_vm0, %v3166_v58  ;;  %2555 = vst.msk [vmem:[#allocation2 + $0x98] sm:$0xff] %vm309_vm0, %v2501_v62  ;;  %v3168_v40 = vadd.f32 %v3114_v2, %v2998_v37 }
 0x1d5   :  { %3222 = vst.msk [vmem:[#allocation2 + $0x78] sm:$0xff] %vm309_vm0, %v3168_v40  ;;  %v2341_v46 = vpop.f32.mrb[104].mxu1  ;;  %v3012_v27 = vpop.f32.mrb[104].mxu0 }
 0x1d6   :  { %v2502_v44 = vadd.f32 %v2341_v46, %v7572_v9  ;;  %v2343_v60 = vpop.f32.mrb[105].mxu1  ;;  %v3014_v51 = vpop.f32.mrb[105].mxu0 }
 0x1d7   :  { %v2503_v22 = vadd.f32 %v2449_v42, %v2343_v60  ;;  %v2345_v6 = vpop.f32.mrb[106].mxu1  ;;  %v3016_v59 = vpop.f32.mrb[106].mxu0  ;;  %v2457_v60 = vld [vmem:[#allocation2 + $0xe8] sm:$0xff] }
 0x1d8   :  { %v3116_v20 = vld [vmem:[#allocation2 + $0x88] sm:$0xff]  ;;  %v2504_v23 = vadd.f32 %v2345_v6, %v7576_v4  ;;  %v2347_v12 = vpop.f32.mrb[107].mxu1  ;;  %v7809_v30 = vadd.f32 %v3012_v27, %v2502_v44  ;;  %v3018_v37 = vpop.f32.mrb[107].mxu0 }
 0x1d9   :  { %2557 = vst.msk [vmem:[#allocation2 + $0xa8] sm:$0xff] %vm309_vm0, %v2503_v22  ;;  %v3170_v7 = vadd.f32 %v3116_v20, %v3004_v14  ;;  %v2505_v10 = vadd.f32 %v2451_v45, %v2347_v12  ;;  %v2459_v12 = vld [vmem:[#allocation2 + $0xf8] sm:$0xff] }
 0x1da   :  { %v3118_v55 = vld [vmem:[#allocation2 + $0x98] sm:$0xff]  ;;  %v7812_v9 = vadd.f32 %v3016_v59, %v2504_v23 }
 0x1db   :  { %3224 = vst.msk [vmem:[#allocation2 + $0x88] sm:$0xff] %vm309_vm0, %v3170_v7  ;;  %2559 = vst.msk [vmem:[#allocation2 + $0xb8] sm:$0xff] %vm309_vm0, %v2505_v10  ;;  %v3172_v38 = vadd.f32 %v3118_v55, %v3008_v13 }
 0x1dd   :  { %3226 = vst.msk [vmem:[#allocation2 + $0x98] sm:$0xff] %vm309_vm0, %v3172_v38  ;;  %v2351_v4 = vpop.f32.mrb[108].mxu1  ;;  %v3022_v25 = vpop.f32.mrb[108].mxu0 }
 0x1de   :  { %v2506_v57 = vadd.f32 %v2351_v4, %v7602_v52  ;;  %v2353_v61 = vpop.f32.mrb[109].mxu1  ;;  %v3024_v15 = vpop.f32.mrb[109].mxu0 }
 0x1df   :  { %v2507_v53 = vadd.f32 %v2453_v32, %v2353_v61  ;;  %v2355_v14 = vpop.f32.mrb[110].mxu1  ;;  %v3026_v43 = vpop.f32.mrb[110].mxu0  ;;  %v2461_v61 = vld [vmem:[#allocation2 + $0x108] sm:$0xff] }
 0x1e0   :  { %v3120_v3 = vld [vmem:[#allocation2 + $0xa8] sm:$0xff]  ;;  %v2508_v63 = vadd.f32 %v2355_v14, %v7606_v0  ;;  %v2357_v33 = vpop.f32.mrb[111].mxu1  ;;  %v7819_v26 = vadd.f32 %v3022_v25, %v2506_v57  ;;  %v3028_v13 = vpop.f32.mrb[111].mxu0 }
 0x1e1   :  { %2561 = vst.msk [vmem:[#allocation2 + $0xc8] sm:$0xff] %vm309_vm0, %v2507_v53  ;;  %v3174_v58 = vadd.f32 %v3120_v3, %v3014_v51  ;;  %v2509_v62 = vadd.f32 %v2455_v11, %v2357_v33  ;;  %v2463_v33 = vld [vmem:[#allocation2 + $0x118] sm:$0xff] }
 0x1e2   :  { %v3122_v2 = vld [vmem:[#allocation2 + $0xb8] sm:$0xff]  ;;  %v7822_v52 = vadd.f32 %v3026_v43, %v2508_v63 }
 0x1e3   :  { %3228 = vst.msk [vmem:[#allocation2 + $0xa8] sm:$0xff] %vm309_vm0, %v3174_v58  ;;  %2563 = vst.msk [vmem:[#allocation2 + $0xd8] sm:$0xff] %vm309_vm0, %v2509_v62  ;;  %v3176_v40 = vadd.f32 %v3122_v2, %v3018_v37 }
 0x1e5   :  { %3230 = vst.msk [vmem:[#allocation2 + $0xb8] sm:$0xff] %vm309_vm0, %v3176_v40  ;;  %v2361_v0 = vpop.f32.mrb[112].mxu1  ;;  %v3032_v46 = vpop.f32.mrb[112].mxu0 }
 0x1e6   :  { %v2510_v27 = vadd.f32 %v2361_v0, %v7626_v50  ;;  %v2363_v44 = vpop.f32.mrb[113].mxu1  ;;  %v3034_v42 = vpop.f32.mrb[113].mxu0 }
 0x1e7   :  { %v2511_v22 = vadd.f32 %v2457_v60, %v2363_v44  ;;  %v2365_v51 = vpop.f32.mrb[114].mxu1  ;;  %v3036_v6 = vpop.f32.mrb[114].mxu0  ;;  %v2465_v44 = vld [vmem:[#allocation2 + $0x128] sm:$0xff] }
 0x1e8   :  { %v3124_v59 = vld [vmem:[#allocation2 + $0xc8] sm:$0xff]  ;;  %v2512_v20 = vadd.f32 %v2365_v51, %v7629_v31  ;;  %v2367_v23 = vpop.f32.mrb[115].mxu1  ;;  %v7829_v45 = vadd.f32 %v3032_v46, %v2510_v27  ;;  %v3038_v37 = vpop.f32.mrb[115].mxu0 }
 0x1e9   :  { %2565 = vst.msk [vmem:[#allocation2 + $0xe8] sm:$0xff] %vm309_vm0, %v2511_v22  ;;  %v3178_v7 = vadd.f32 %v3124_v59, %v3024_v15  ;;  %v2513_v10 = vadd.f32 %v2459_v12, %v2367_v23  ;;  %v2467_v23 = vld [vmem:[#allocation2 + $0x138] sm:$0xff] }
 0x1ea   :  { %v3126_v55 = vld [vmem:[#allocation2 + $0xd8] sm:$0xff]  ;;  %v3183_v50 = vadd.f32 %v3036_v6, %v2512_v20 }
 0x1eb   :  { %3232 = vst.msk [vmem:[#allocation2 + $0xc8] sm:$0xff] %vm309_vm0, %v3178_v7  ;;  %2567 = vst.msk [vmem:[#allocation2 + $0xf8] sm:$0xff] %vm309_vm0, %v2513_v10  ;;  %v3180_v38 = vadd.f32 %v3126_v55, %v3028_v13 }
 0x1ec   :  { %3237 = vst [vmem:[#allocation2 + $0xf0] sm:$0xff] %v3183_v50 }
 0x1ed   :  { %3234 = vst.msk [vmem:[#allocation2 + $0xd8] sm:$0xff] %vm309_vm0, %v3180_v38  ;;  %v2371_v31 = vpop.f32.mrb[116].mxu1  ;;  %v3042_v4 = vpop.f32.mrb[116].mxu0 }
 0x1ee   :  { %v2514_v25 = vadd.f32 %v2371_v31, %v7642_v1  ;;  %v2373_v57 = vpop.f32.mrb[117].mxu1  ;;  %v3044_v32 = vpop.f32.mrb[117].mxu0 }
 0x1ef   :  { %v2515_v53 = vadd.f32 %v2461_v61, %v2373_v57  ;;  %v2375_v15 = vpop.f32.mrb[118].mxu1  ;;  %v3046_v14 = vpop.f32.mrb[118].mxu0 }
 0x1f0   :  { %v3128_v43 = vld [vmem:[#allocation2 + $0xe8] sm:$0xff]  ;;  %v2516_v3 = vadd.f32 %v2375_v15, %v7645_v21  ;;  %v2377_v63 = vpop.f32.mrb[119].mxu1  ;;  %v3185_v11 = vadd.f32 %v3042_v4, %v2514_v25  ;;  %v3048_v13 = vpop.f32.mrb[119].mxu0 }
 0x1f1   :  { %2569 = vst.msk [vmem:[#allocation2 + $0x108] sm:$0xff] %vm309_vm0, %v2515_v53  ;;  %v3182_v58 = vadd.f32 %v3128_v43, %v3034_v42  ;;  %v2517_v62 = vadd.f32 %v2463_v33, %v2377_v63  ;;  %v2469_v25 = vld [vmem:[#allocation2 + $0x148] sm:$0xff] }
 0x1f2   :  { %v3130_v2 = vld [vmem:[#allocation2 + $0xf8] sm:$0xff]  ;;  %3239 = vst [vmem:[#allocation2 + $0x100] sm:$0xff] %v3185_v11  ;;  %v3187_v1 = vadd.f32 %v3046_v14, %v2516_v3 }
 0x1f3   :  { %3236 = vst.msk [vmem:[#allocation2 + $0xe8] sm:$0xff] %vm309_vm0, %v3182_v58  ;;  %2571 = vst.msk [vmem:[#allocation2 + $0x118] sm:$0xff] %vm309_vm0, %v2517_v62  ;;  %v3184_v40 = vadd.f32 %v3130_v2, %v3038_v37  ;;  %v2471_v3 = vld [vmem:[#allocation2 + $0x158] sm:$0xff] }
 0x1f4   :  { %3241 = vst [vmem:[#allocation2 + $0x110] sm:$0xff] %v3187_v1 }
 0x1f5   :  { %3238 = vst.msk [vmem:[#allocation2 + $0xf8] sm:$0xff] %vm309_vm0, %v3184_v40  ;;  %v2381_v21 = vpop.f32.mrb[120].mxu1  ;;  %v3052_v0 = vpop.f32.mrb[120].mxu0 }
 0x1f6   :  { %v2518_v46 = vadd.f32 %v2381_v21, %v7659_v24  ;;  %v2383_v27 = vpop.f32.mrb[121].mxu1  ;;  %v3054_v60 = vpop.f32.mrb[121].mxu0  ;;  %v2473_v21 = vld [vmem:[#allocation2 + $0x168] sm:$0xff] }
 0x1f7   :  { %v2519_v42 = vadd.f32 %v2465_v44, %v2383_v27  ;;  %v2385_v22 = vpop.f32.mrb[122].mxu1  ;;  %v3056_v51 = vpop.f32.mrb[122].mxu0 }
 0x1f8   :  { %v3132_v6 = vld [vmem:[#allocation2 + $0x108] sm:$0xff]  ;;  %v2520_v59 = vadd.f32 %v2385_v22, %v7662_v19  ;;  %v2387_v20 = vpop.f32.mrb[123].mxu1  ;;  %v3189_v12 = vadd.f32 %v3052_v0, %v2518_v46  ;;  %v3058_v37 = vpop.f32.mrb[123].mxu0 }
 0x1f9   :  { %2573 = vst.msk [vmem:[#allocation2 + $0x128] sm:$0xff] %vm309_vm0, %v2519_v42  ;;  %v3186_v7 = vadd.f32 %v3132_v6, %v3044_v32  ;;  %v2521_v10 = vadd.f32 %v2467_v23, %v2387_v20 }
 0x1fa   :  { %v3134_v55 = vld [vmem:[#allocation2 + $0x118] sm:$0xff]  ;;  %3243 = vst [vmem:[#allocation2 + $0x120] sm:$0xff] %v3189_v12  ;;  %v3191_v24 = vadd.f32 %v3056_v51, %v2520_v59 }
 0x1fb   :  { %3240 = vst.msk [vmem:[#allocation2 + $0x108] sm:$0xff] %vm309_vm0, %v3186_v7  ;;  %2575 = vst.msk [vmem:[#allocation2 + $0x138] sm:$0xff] %vm309_vm0, %v2521_v10  ;;  %v3188_v50 = vadd.f32 %v3134_v55, %v3048_v13  ;;  %v2475_v51 = vld [vmem:[#allocation2 + $0x178] sm:$0xff] }
 0x1fc   :  { %3245 = vst [vmem:[#allocation2 + $0x130] sm:$0xff] %v3191_v24  ;;  %v2477_v24 = vld [vmem:[#allocation2 + $0x188] sm:$0xff] }
 0x1fd   :  { %3242 = vst.msk [vmem:[#allocation2 + $0x118] sm:$0xff] %vm309_vm0, %v3188_v50  ;;  %v2391_v19 = vpop.f32.mrb[124].mxu1  ;;  %v3062_v38 = vpop.f32.mrb[124].mxu0 }
 0x1fe   :  { %v2522_v31 = vadd.f32 %v2391_v19, %v7686_v34  ;;  %v2393_v4 = vpop.f32.mrb[125].mxu1  ;;  %v3064_v57 = vpop.f32.mrb[125].mxu0 }
 0x1ff   :  { %v2523_v61 = vadd.f32 %v2469_v25, %v2393_v4  ;;  %v2395_v32 = vpop.f32.mrb[126].mxu1  ;;  %v3066_v53 = vpop.f32.mrb[126].mxu0 }
 0x200   :  { %v3136_v15 = vld [vmem:[#allocation2 + $0x128] sm:$0xff]  ;;  %v2524_v14 = vadd.f32 %v2395_v32, %v7689_v18  ;;  %v2397_v43 = vpop.f32.mrb[127].mxu1  ;;  %v3193_v63 = vadd.f32 %v3062_v38, %v2522_v31  ;;  %v3068_v33 = vpop.f32.mrb[127].mxu0 }
 0x201   :  { %2577 = vst.msk [vmem:[#allocation2 + $0x148] sm:$0xff] %vm309_vm0, %v2523_v61  ;;  %v3190_v11 = vadd.f32 %v3136_v15, %v3054_v60  ;;  %v2525_v13 = vadd.f32 %v2471_v3, %v2397_v43  ;;  %v2479_v61 = vld [vmem:[#allocation2 + $0x198] sm:$0xff] }
 0x202   :  { %v3138_v58 = vld [vmem:[#allocation2 + $0x138] sm:$0xff]  ;;  %3247 = vst [vmem:[#allocation2 + $0x140] sm:$0xff] %v3193_v63  ;;  %v3195_v34 = vadd.f32 %v3066_v53, %v2524_v14 }
 0x203   :  { %3244 = vst.msk [vmem:[#allocation2 + $0x128] sm:$0xff] %vm309_vm0, %v3190_v11  ;;  %2579 = vst.msk [vmem:[#allocation2 + $0x158] sm:$0xff] %vm309_vm0, %v2525_v13  ;;  %v3192_v62 = vadd.f32 %v3138_v58, %v3058_v37  ;;  %v2481_v13 = vld [vmem:[#allocation2 + $0x1a8] sm:$0xff] }
 0x204   :  { %3249 = vst [vmem:[#allocation2 + $0x150] sm:$0xff] %v3195_v34 }
 0x205   :  { %3246 = vst.msk [vmem:[#allocation2 + $0x138] sm:$0xff] %vm309_vm0, %v3192_v62  ;;  %v2401_v18 = vpop.f32.mrb[128].mxu1  ;;  %v3072_v2 = vpop.f32.mrb[128].mxu0 }
 0x206   :  { %v2526_v1 = vadd.f32 %v2401_v18, %v7720_v56  ;;  %v2403_v40 = vpop.f32.mrb[129].mxu1  ;;  %v3074_v0 = vpop.f32.mrb[129].mxu0 }
 0x207   :  { %v2527_v46 = vadd.f32 %v2473_v21, %v2403_v40  ;;  %v2405_v27 = vpop.f32.mrb[130].mxu1  ;;  %v3076_v44 = vpop.f32.mrb[130].mxu0 }
 0x208   :  { %v3140_v60 = vld [vmem:[#allocation2 + $0x148] sm:$0xff]  ;;  %v2528_v42 = vadd.f32 %v2405_v27, %v7723_v29  ;;  %v2407_v22 = vpop.f32.mrb[131].mxu1  ;;  %v3197_v6 = vadd.f32 %v3072_v2, %v2526_v1  ;;  %v3078_v59 = vpop.f32.mrb[131].mxu0 }
 0x209   :  { %2581 = vst.msk [vmem:[#allocation2 + $0x168] sm:$0xff] %vm309_vm0, %v2527_v46  ;;  %v3194_v20 = vadd.f32 %v3140_v60, %v3064_v57  ;;  %v2529_v23 = vadd.f32 %v2475_v51, %v2407_v22  ;;  %v3771_v22 = vld [vmem:[#allocation2 + $0x8] sm:$0xff] }
 0x20a   :  { %v3142_v12 = vld [vmem:[#allocation2 + $0x158] sm:$0xff]  ;;  %3251 = vst [vmem:[#allocation2 + $0x160] sm:$0xff] %v3197_v6  ;;  %v3199_v56 = vadd.f32 %v3076_v44, %v2528_v42 }
 0x20b   :  { %3248 = vst.msk [vmem:[#allocation2 + $0x148] sm:$0xff] %vm309_vm0, %v3194_v20  ;;  %2583 = vst.msk [vmem:[#allocation2 + $0x178] sm:$0xff] %vm309_vm0, %v2529_v23  ;;  %v3196_v37 = vadd.f32 %v3142_v12, %v3068_v33 }
 0x20c   :  { %3253 = vst [vmem:[#allocation2 + $0x170] sm:$0xff] %v3199_v56 }
 0x20d   :  { %3250 = vst.msk [vmem:[#allocation2 + $0x158] sm:$0xff] %vm309_vm0, %v3196_v37  ;;  %v2411_v29 = vpop.f32.mrb[132].mxu1  ;;  %v3082_v7 = vpop.f32.mrb[132].mxu0  ;;  %v3773_v37 = vld [vmem:[#allocation2 + $0x18] sm:$0xff] }
 0x20e   :  { %v2530_v10 = vadd.f32 %v2411_v29, %v7739_v47  ;;  %v2413_v55 = vpop.f32.mrb[133].mxu1  ;;  %v3084_v50 = vpop.f32.mrb[133].mxu0 }
 0x20f   :  { %v2531_v19 = vadd.f32 %v2477_v24, %v2413_v55  ;;  %v2415_v38 = vpop.f32.mrb[134].mxu1  ;;  %v3086_v31 = vpop.f32.mrb[134].mxu0  ;;  %v4659_v24 = vlaneseq }
 0x210   :  { %v3144_v4 = vld [vmem:[#allocation2 + $0x168] sm:$0xff]  ;;  %v2532_v25 = vadd.f32 %v2415_v38, %v7742_v17  ;;  %v2417_v57 = vpop.f32.mrb[135].mxu1  ;;  %v3201_v32 = vadd.f32 %v3082_v7, %v2530_v10  ;;  %v3088_v53 = vpop.f32.mrb[135].mxu0 }
 0x211   :  { %2585 = vst.msk [vmem:[#allocation2 + $0x188] sm:$0xff] %vm309_vm0, %v2531_v19  ;;  %v3198_v15 = vadd.f32 %v3144_v4, %v3074_v0  ;;  %v2533_v14 = vadd.f32 %v2479_v61, %v2417_v57  ;;  %v3775_v4 = vld [vmem:[#allocation2 + $0x28] sm:$0xff] }
 0x212   :  { %v3146_v43 = vld [vmem:[#allocation2 + $0x178] sm:$0xff]  ;;  %3255 = vst [vmem:[#allocation2 + $0x180] sm:$0xff] %v3201_v32  ;;  %v3203_v47 = vadd.f32 %v3086_v31, %v2532_v25 }
 0x213   :  { %3252 = vst.msk [vmem:[#allocation2 + $0x168] sm:$0xff] %vm309_vm0, %v3198_v15  ;;  %2587 = vst.msk [vmem:[#allocation2 + $0x198] sm:$0xff] %vm309_vm0, %v2533_v14  ;;  %v3200_v3 = vadd.f32 %v3146_v43, %v3078_v59  ;;  %v3777_v43 = vld [vmem:[#allocation2 + $0x38] sm:$0xff] }
 0x214   :  { %3257 = vst [vmem:[#allocation2 + $0x190] sm:$0xff] %v3203_v47 }
 0x215   :  { %3254 = vst.msk [vmem:[#allocation2 + $0x178] sm:$0xff] %vm309_vm0, %v3200_v3  ;;  %v2421_v17 = vpop.f32.mrb[136].mxu1  ;;  %v3092_v63 = vpop.f32.mrb[136].mxu0 }
 0x216   :  { %v2534_v33 = vadd.f32 %v2421_v17, %v7759_v28  ;;  %v2423_v11 = vpop.f32.mrb[137].mxu1  ;;  %v3094_v58 = vpop.f32.mrb[137].mxu0 }
 0x217   :  { %v2535_v34 = vadd.f32 %v2481_v13, %v2423_v11  ;;  %v2425_v62 = vpop.f32.mrb[138].mxu1  ;;  %v3096_v18 = vpop.f32.mrb[138].mxu0 }
 0x218   :  { %v3148_v2 = vld [vmem:[#allocation2 + $0x188] sm:$0xff]  ;;  %v2426_v1 = vpop.f32.mrb[139].mxu1  ;;  %v3205_v40 = vadd.f32 %v3092_v63, %v2534_v33  ;;  %v3097_v21 = vpop.f32.mrb[139].mxu0 }
 0x219   :  { %2589 = vst.msk [vmem:[#allocation2 + $0x1a8] sm:$0xff] %vm309_vm0, %v2535_v34  ;;  %v3202_v0 = vadd.f32 %v3148_v2, %v3084_v50 }
 0x21a   :  { %v3150_v46 = vld [vmem:[#allocation2 + $0x198] sm:$0xff]  ;;  %3259 = vst [vmem:[#allocation2 + $0x1a0] sm:$0xff] %v3205_v40  ;;  %v3779_v40 = vld [vmem:[#allocation2 + $0x48] sm:$0xff] }
 0x21b   :  { %3256 = vst.msk [vmem:[#allocation2 + $0x188] sm:$0xff] %vm309_vm0, %v3202_v0  ;;  %v3204_v27 = vadd.f32 %v3150_v46, %v3088_v53 }
 0x21d   :  { %3258 = vst.msk [vmem:[#allocation2 + $0x198] sm:$0xff] %vm309_vm0, %v3204_v27  ;;  %v3633_v28 = vpop.f32.mrb[140].mxu1  ;;  %v4304_v44 = vpop.f32.mrb[140].mxu0 }
 0x21e   :  { %v3824_v60 = vadd.f32 %v3633_v28, %v7768_v39  ;;  %v3635_v42 = vpop.f32.mrb[141].mxu1  ;;  %v4306_v51 = vpop.f32.mrb[141].mxu0 }
 0x21f   :  { %v3825_v6 = vadd.f32 %v3771_v22, %v3635_v42  ;;  %v3637_v59 = vpop.f32.mrb[142].mxu1  ;;  %v4308_v20 = vpop.f32.mrb[142].mxu0  ;;  %v3781_v22 = vld [vmem:[#allocation2 + $0x58] sm:$0xff] }
 0x220   :  { %v3152_v23 = vld [vmem:[#allocation2 + $0x1a8] sm:$0xff]  ;;  %v3826_v12 = vadd.f32 %v3637_v59, %v7771_v35  ;;  %v3639_v56 = vpop.f32.mrb[143].mxu1  ;;  %v4495_v29 = vadd.f32 %v4304_v44, %v3824_v60  ;;  %v4310_v7 = vpop.f32.mrb[143].mxu0  ;;  %v4660_v35 = vshrl.u32 %v4659_v24, 7 }
 0x221   :  { %v3206_v10 = vadd.f32 %v3152_v23, %v3094_v58  ;;  %3879 = vst.msk [vmem:[#allocation2 + $0x8] sm:$0xff] %vm309_vm0, %v3825_v6  ;;  %v3827_v55 = vadd.f32 %v3773_v37, %v3639_v56 }
 0x222   :  { %4549 = vst [vmem:[#allocation2] sm:$0xff] %v4495_v29  ;;  %v7872_v39 = vadd.f32 %v4308_v20, %v3826_v12  ;;  %v4661_v17 = vsub.s32 0, %v4660_v35 }
 0x223   :  { %3260 = vst.msk [vmem:[#allocation2 + $0x1a8] sm:$0xff] %vm309_vm0, %v3206_v10  ;;  %3881 = vst.msk [vmem:[#allocation2 + $0x18] sm:$0xff] %vm309_vm0, %v3827_v55 }
 0x224   :  { %4551 = vst [vmem:[#allocation2 + $0x10] sm:$0xff] %v7872_v39 }
 0x225   :  { %v3643_v50 = vpop.f32.mrb[144].mxu1  ;;  %v4314_v19 = vpop.f32.mrb[144].mxu0 }
 0x226   :  { %v3828_v38 = vadd.f32 %v3643_v50, %v7775_v36  ;;  %v3645_v31 = vpop.f32.mrb[145].mxu1  ;;  %v4316_v25 = vpop.f32.mrb[145].mxu0  ;;  %v4657_v36 = vld [vmem:[%s8234_s2] sm:$0x3] }
 0x227   :  { %v3829_v57 = vadd.f32 %v3775_v4, %v3645_v31  ;;  %v3647_v61 = vpop.f32.mrb[146].mxu1  ;;  %v4318_v32 = vpop.f32.mrb[146].mxu0  ;;  %v7891_v34 = vrot.slane %v4657_v36, %v4661_v17  ;;  %v3783_v31 = vld [vmem:[#allocation2 + $0x68] sm:$0xff]  ;;  %v3785_v17 = vld [vmem:[#allocation2 + $0x78] sm:$0xff] }
 0x228   :  { %v4442_v53 = vld [vmem:[#allocation2 + $0x8] sm:$0xff]  ;;  %v3830_v15 = vadd.f32 %v3647_v61, %v7778_v54  ;;  %v3649_v14 = vpop.f32.mrb[147].mxu1  ;;  %v7879_v47 = vadd.f32 %v4314_v19, %v3828_v38  ;;  %v4320_v3 = vpop.f32.mrb[147].mxu0  ;;  %v4665_v54 = vsub.s32 1, %v4660_v35 }
 0x229   :  { %3883 = vst.msk [vmem:[#allocation2 + $0x28] sm:$0xff] %vm309_vm0, %v3829_v57  ;;  %v4496_v63 = vadd.f32 %v4442_v53, %v4306_v51  ;;  %v3831_v33 = vadd.f32 %v3777_v43, %v3649_v14  ;;  %v4669_v59 = vadd.f32 %v7891_v34, %v4495_v29  ;;  %v4671_v37 = vadd.f32 %v7891_v34, %v7872_v39 }
 0x22a   :  { %v4444_v11 = vld [vmem:[#allocation2 + $0x18] sm:$0xff]  ;;  %4553 = vst [vmem:[#allocation2 + $0x20] sm:$0xff] %v7879_v47  ;;  %v7886_v13 = vadd.f32 %v4318_v32, %v3830_v15  ;;  %v7895_v0 = vrot.slane %v4657_v36, %v4665_v54  ;;  %v4673_v36 = vadd.f32 %v7891_v34, %v7879_v47 }
 0x22b   :  { %4550 = vst.msk [vmem:[#allocation2 + $0x8] sm:$0xff] %vm309_vm0, %v4496_v63  ;;  %3885 = vst.msk [vmem:[#allocation2 + $0x38] sm:$0xff] %vm309_vm0, %v3831_v33  ;;  %v4498_v58 = vadd.f32 %v4444_v11, %v4310_v7  ;;  %v4723_v10 = vmax.f32 %v4669_v59, 0.0  ;;  %v4725_v57 = vmax.f32 %v4671_v37, 0.0 }
 0x22c   :  { %4555 = vst [vmem:[#allocation2 + $0x30] sm:$0xff] %v7886_v13  ;;  %v4675_v47 = vadd.f32 %v7891_v34, %v7886_v13  ;;  %v3787_v13 = vld [vmem:[#allocation2 + $0x88] sm:$0xff] }
 0x22d   :  { %4552 = vst.msk [vmem:[#allocation2 + $0x18] sm:$0xff] %vm309_vm0, %v4498_v58  ;;  %v3653_v62 = vpop.f32.mrb[148].mxu1  ;;  %v4324_v18 = vpop.f32.mrb[148].mxu0 }
 0x22e   :  { %v3832_v2 = vadd.f32 %v3653_v62, %v7783_v49  ;;  %v3655_v1 = vpop.f32.mrb[149].mxu1  ;;  %v4326_v21 = vpop.f32.mrb[149].mxu0  ;;  %v4729_v59 = vmax.f32 %v4675_v47, 0.0 }
 0x22f   :  { %v3833_v46 = vadd.f32 %v3779_v40, %v3655_v1  ;;  %v3657_v27 = vpop.f32.mrb[150].mxu1  ;;  %v4328_v28 = vpop.f32.mrb[150].mxu0  ;;  %v4727_v40 = vmax.f32 %v4673_v36, 0.0 }
 0x230   :  { %v4446_v44 = vld [vmem:[#allocation2 + $0x28] sm:$0xff]  ;;  %v3834_v60 = vadd.f32 %v3657_v27, %v7786_v16  ;;  %v3659_v42 = vpop.f32.mrb[151].mxu1  ;;  %v7898_v51 = vadd.f32 %v4324_v18, %v3832_v2  ;;  %v4330_v6 = vpop.f32.mrb[151].mxu0 }
 0x231   :  { %3887 = vst.msk [vmem:[#allocation2 + $0x48] sm:$0xff] %vm309_vm0, %v3833_v46  ;;  %v4500_v49 = vadd.f32 %v4446_v44, %v4316_v25  ;;  %v3835_v20 = vadd.f32 %v3781_v22, %v3659_v42 }
 0x232   :  { %v4604_v23 = vld [vmem:[#allocation2 + $0x8] sm:$0xff]  ;;  %v4448_v12 = vld [vmem:[#allocation2 + $0x38] sm:$0xff]  ;;  %4557 = vst [vmem:[#allocation2 + $0x40] sm:$0xff] %v7898_v51  ;;  %v7903_v56 = vadd.f32 %v4328_v28, %v3834_v60 }
 0x233   :  { %v4670_v16 = vadd.f32 %v7895_v0, %v4604_v23  ;;  %4554 = vst.msk [vmem:[#allocation2 + $0x28] sm:$0xff] %vm309_vm0, %v4500_v49  ;;  %3889 = vst.msk [vmem:[#allocation2 + $0x58] sm:$0xff] %vm309_vm0, %v3835_v20  ;;  %v4502_v29 = vadd.f32 %v4448_v12, %v4320_v3 }
 0x234   :  { %v4606_v7 = vld [vmem:[#allocation2 + $0x18] sm:$0xff]  ;;  %4559 = vst [vmem:[#allocation2 + $0x50] sm:$0xff] %v7903_v56 }
 0x235   :  { %v4724_v55 = vmax.f32 %v4670_v16, 0.0  ;;  %v4672_v24 = vadd.f32 %v7895_v0, %v4606_v7  ;;  %4556 = vst.msk [vmem:[#allocation2 + $0x38] sm:$0xff] %vm309_vm0, %v4502_v29  ;;  %v3663_v50 = vpop.f32.mrb[152].mxu1  ;;  %v4334_v35 = vpop.f32.mrb[152].mxu0  ;;  %v3789_v29 = vld [vmem:[#allocation2 + $0x98] sm:$0xff] }
 0x236   :  { %v3836_v39 = vadd.f32 %v3663_v50, %v7791_v5  ;;  %v3665_v38 = vpop.f32.mrb[153].mxu1  ;;  %v4336_v4 = vpop.f32.mrb[153].mxu0 }
 0x237   :  { %v5786_v25 = vpack.c.bf16 %v4724_v55, %v4723_v10  ;;  %v4726_v61 = vmax.f32 %v4672_v24, 0.0  ;;  %v3837_v32 = vadd.f32 %v3783_v31, %v3665_v38  ;;  %v3667_v53 = vpop.f32.mrb[154].mxu1  ;;  %v4338_v15 = vpop.f32.mrb[154].mxu0  ;;  %v4677_v55 = vadd.f32 %v7891_v34, %v7898_v51 }
 0x238   :  { %v4450_v14 = vld [vmem:[#allocation2 + $0x48] sm:$0xff]  ;;  %v3838_v43 = vadd.f32 %v3667_v53, %v7794_v8  ;;  %v3669_v3 = vpop.f32.mrb[155].mxu1  ;;  %v7920_v63 = vadd.f32 %v4334_v35, %v3836_v39  ;;  %v4340_v33 = vpop.f32.mrb[155].mxu0  ;;  %v4679_v51 = vadd.f32 %v7891_v34, %v7903_v56 }
 0x239   :  { %4960 = vst.msk [vmem:[%s8235_s3] sm:$0xff] %vm7914_vm3, %v5786_v25  ;;  %v5787_v5 = vpack.c.bf16 %v4726_v61, %v4725_v57  ;;  %v4504_v11 = vadd.f32 %v4450_v14, %v4326_v21  ;;  %v3839_v54 = vadd.f32 %v3785_v17, %v3669_v3  ;;  %v4731_v25 = vmax.f32 %v4677_v55, 0.0  ;;  %v3791_v56 = vld [vmem:[#allocation2 + $0xa8] sm:$0xff] }
 0x23a   :  { %3891 = vst.msk [vmem:[#allocation2 + $0x68] sm:$0xff] %vm309_vm0, %v3837_v32  ;;  %v4608_v8 = vld [vmem:[#allocation2 + $0x28] sm:$0xff]  ;;  %v4452_v58 = vld [vmem:[#allocation2 + $0x58] sm:$0xff]  ;;  %4561 = vst [vmem:[#allocation2 + $0x60] sm:$0xff] %v7920_v63  ;;  %v7931_v62 = vadd.f32 %v4338_v15, %v3838_v43  ;;  %v4733_v17 = vmax.f32 %v4679_v51, 0.0 }
 0x23b   :  { %4961 = vst.msk [vmem:[%s8235_s3 + $0x8] sm:$0xff] %vm7914_vm3, %v5787_v5  ;;  %v4674_v18 = vadd.f32 %v7895_v0, %v4608_v8  ;;  %v4506_v2 = vadd.f32 %v4452_v58, %v4330_v6 }
 0x23c   :  { %4558 = vst.msk [vmem:[#allocation2 + $0x48] sm:$0xff] %vm309_vm0, %v4504_v11  ;;  %3893 = vst.msk [vmem:[#allocation2 + $0x78] sm:$0xff] %vm309_vm0, %v3839_v54  ;;  %v4610_v1 = vld [vmem:[#allocation2 + $0x38] sm:$0xff] }
 0x23d   :  { %4563 = vst [vmem:[#allocation2 + $0x70] sm:$0xff] %v7931_v62  ;;  %v4728_v21 = vmax.f32 %v4674_v18, 0.0  ;;  %v4676_v46 = vadd.f32 %v7895_v0, %v4610_v1  ;;  %4560 = vst.msk [vmem:[#allocation2 + $0x58] sm:$0xff] %vm309_vm0, %v4506_v2  ;;  %v3673_v27 = vpop.f32.mrb[156].mxu1  ;;  %v4344_v28 = vpop.f32.mrb[156].mxu0  ;;  %v3793_v18 = vld [vmem:[#allocation2 + $0xb8] sm:$0xff]  ;;  %v4681_v1 = vadd.f32 %v7891_v34, %v7920_v63 }
 0x23e   :  { %v3840_v44 = vadd.f32 %v3673_v27, %v7799_v48  ;;  %v3675_v60 = vpop.f32.mrb[157].mxu1  ;;  %v4346_v42 = vpop.f32.mrb[157].mxu0 }
 0x23f   :  { %v5788_v22 = vpack.c.bf16 %v4728_v21, %v4727_v40  ;;  %v4730_v49 = vmax.f32 %v4676_v46, 0.0  ;;  %v3841_v6 = vadd.f32 %v3787_v13, %v3675_v60  ;;  %v3677_v20 = vpop.f32.mrb[158].mxu1  ;;  %v4348_v23 = vpop.f32.mrb[158].mxu0  ;;  %v4735_v13 = vmax.f32 %v4681_v1, 0.0 }
 0x240   :  { %v3842_v16 = vadd.f32 %v3677_v20, %v7802_v41  ;;  %v3679_v37 = vpop.f32.mrb[159].mxu1  ;;  %v7948_v7 = vadd.f32 %v4344_v28, %v3840_v44  ;;  %v4350_v10 = vpop.f32.mrb[159].mxu0  ;;  %v4683_v44 = vadd.f32 %v7891_v34, %v7931_v62 }
 0x241   :  { %v4454_v12 = vld [vmem:[#allocation2 + $0x68] sm:$0xff]  ;;  %4962 = vst.msk [vmem:[%s8235_s3 + $0x10] sm:$0xff] %vm7914_vm3, %v5788_v22  ;;  %v5789_v48 = vpack.c.bf16 %v4730_v49, %v4729_v59  ;;  %v3843_v50 = vadd.f32 %v3789_v29, %v3679_v37 }
 0x242   :  { %3895 = vst.msk [vmem:[#allocation2 + $0x88] sm:$0xff] %vm309_vm0, %v3841_v6  ;;  %v4508_v24 = vadd.f32 %v4454_v12, %v4336_v4  ;;  %4565 = vst [vmem:[#allocation2 + $0x80] sm:$0xff] %v7948_v7  ;;  %v7959_v39 = vadd.f32 %v4348_v23, %v3842_v16  ;;  %v3795_v23 = vld [vmem:[#allocation2 + $0xc8] sm:$0xff]  ;;  %v4737_v16 = vmax.f32 %v4683_v44, 0.0  ;;  %v4685_v51 = vadd.f32 %v7891_v34, %v7948_v7 }
 0x243   :  { %v4612_v41 = vld [vmem:[#allocation2 + $0x48] sm:$0xff]  ;;  %v4456_v35 = vld [vmem:[#allocation2 + $0x78] sm:$0xff]  ;;  %4963 = vst.msk [vmem:[%s8235_s3 + $0x18] sm:$0xff] %vm7914_vm3, %v5789_v48 }
 0x244   :  { %v4678_v38 = vadd.f32 %v7895_v0, %v4612_v41  ;;  %4562 = vst.msk [vmem:[#allocation2 + $0x68] sm:$0xff] %vm309_vm0, %v4508_v24  ;;  %3897 = vst.msk [vmem:[#allocation2 + $0x98] sm:$0xff] %vm309_vm0, %v3843_v50  ;;  %v4510_v31 = vadd.f32 %v4456_v35, %v4340_v33  ;;  %v4614_v4 = vld [vmem:[#allocation2 + $0x58] sm:$0xff] }
 0x245   :  { %4567 = vst [vmem:[#allocation2 + $0x90] sm:$0xff] %v7959_v39  ;;  %v4680_v61 = vadd.f32 %v7895_v0, %v4614_v4  ;;  %v3683_v32 = vpop.f32.mrb[160].mxu1  ;;  %v4354_v53 = vpop.f32.mrb[160].mxu0  ;;  %v3797_v41 = vld [vmem:[#allocation2 + $0xd8] sm:$0xff] }
 0x246   :  { %v4732_v57 = vmax.f32 %v4678_v38, 0.0  ;;  %4564 = vst.msk [vmem:[#allocation2 + $0x78] sm:$0xff] %vm309_vm0, %v4510_v31  ;;  %v3844_v15 = vadd.f32 %v3683_v32, %v7809_v30  ;;  %v3685_v14 = vpop.f32.mrb[161].mxu1  ;;  %v4356_v43 = vpop.f32.mrb[161].mxu0  ;;  %v4687_v32 = vadd.f32 %v7891_v34, %v7959_v39 }
 0x247   :  { %v4734_v5 = vmax.f32 %v4680_v61, 0.0  ;;  %v3845_v33 = vadd.f32 %v3791_v56, %v3685_v14  ;;  %v3687_v36 = vpop.f32.mrb[162].mxu1  ;;  %v4358_v11 = vpop.f32.mrb[162].mxu0 }
 0x248   :  { %v5790_v3 = vpack.c.bf16 %v4732_v57, %v4731_v25  ;;  %v3846_v8 = vadd.f32 %v3687_v36, %v7812_v9  ;;  %v3689_v58 = vpop.f32.mrb[163].mxu1  ;;  %v7976_v47 = vadd.f32 %v4354_v53, %v3844_v15  ;;  %v4360_v2 = vpop.f32.mrb[163].mxu0  ;;  %v4739_v15 = vmax.f32 %v4685_v51, 0.0 }
 0x249   :  { %v4458_v54 = vld [vmem:[#allocation2 + $0x88] sm:$0xff]  ;;  %v5791_v30 = vpack.c.bf16 %v4734_v5, %v4733_v17  ;;  %3899 = vst.msk [vmem:[#allocation2 + $0xa8] sm:$0xff] %vm309_vm0, %v3845_v33  ;;  %v3847_v21 = vadd.f32 %v3793_v18, %v3689_v58  ;;  %v3800_v18 = vld [vmem:[#allocation2 + $0xf0] sm:$0xff] }
 0x24a   :  { %4964 = vst.msk [vmem:[%s8235_s3 + $0x20] sm:$0xff] %vm7914_vm3, %v5790_v3  ;;  %v4512_v40 = vadd.f32 %v4458_v54, %v4346_v42  ;;  %v7986_v27 = vadd.f32 %v4358_v11, %v3846_v8  ;;  %v3799_v33 = vld [vmem:[#allocation2 + $0xe8] sm:$0xff]  ;;  %v4741_v11 = vmax.f32 %v4687_v32, 0.0 }
 0x24b   :  { %v4616_v9 = vld [vmem:[#allocation2 + $0x68] sm:$0xff]  ;;  %v4460_v46 = vld [vmem:[#allocation2 + $0x98] sm:$0xff]  ;;  %4965 = vst.msk [vmem:[%s8235_s3 + $0x28] sm:$0xff] %vm7914_vm3, %v5791_v30 }
 0x24c   :  { %v4682_v28 = vadd.f32 %v7895_v0, %v4616_v9  ;;  %4566 = vst.msk [vmem:[#allocation2 + $0x88] sm:$0xff] %vm309_vm0, %v4512_v40  ;;  %3901 = vst.msk [vmem:[#allocation2 + $0xb8] sm:$0xff] %vm309_vm0, %v3847_v21  ;;  %v4514_v63 = vadd.f32 %v4460_v46, %v4350_v10  ;;  %v3801_v21 = vld [vmem:[#allocation2 + $0xf8] sm:$0xff] }
 0x24d   :  { %v4618_v60 = vld [vmem:[#allocation2 + $0x78] sm:$0xff]  ;;  %v3693_v59 = vpop.f32.mrb[164].mxu1  ;;  %v4364_v49 = vpop.f32.mrb[164].mxu0 }
 0x24e   :  { %v4736_v42 = vmax.f32 %v4682_v28, 0.0  ;;  %v4684_v22 = vadd.f32 %v7895_v0, %v4618_v60  ;;  %4568 = vst.msk [vmem:[#allocation2 + $0x98] sm:$0xff] %vm309_vm0, %v4514_v63  ;;  %v3848_v6 = vadd.f32 %v3693_v59, %v7819_v26  ;;  %v3695_v20 = vpop.f32.mrb[165].mxu1  ;;  %v4366_v12 = vpop.f32.mrb[165].mxu0  ;;  %v4689_v28 = vadd.f32 %v7891_v34, %v7976_v47 }
 0x24f   :  { %v3849_v29 = vadd.f32 %v3795_v23, %v3695_v20  ;;  %v3697_v48 = vpop.f32.mrb[166].mxu1  ;;  %v4368_v10 = vpop.f32.mrb[166].mxu0  ;;  %v4691_v47 = vadd.f32 %v7891_v34, %v7986_v27  ;;  %v3803_v27 = vld [vmem:[#allocation2 + $0x108] sm:$0xff] }
 0x250   :  { %v5792_v62 = vpack.c.bf16 %v4736_v42, %v4735_v13  ;;  %v4738_v37 = vmax.f32 %v4684_v22, 0.0  ;;  %v4462_v55 = vld [vmem:[#allocation2 + $0xa8] sm:$0xff]  ;;  %v3850_v24 = vadd.f32 %v3697_v48, %v7822_v52  ;;  %v3699_v50 = vpop.f32.mrb[167].mxu1  ;;  %v8002_v35 = vadd.f32 %v4364_v49, %v3848_v6  ;;  %v4370_v38 = vpop.f32.mrb[167].mxu0 }
 0x251   :  { %3903 = vst.msk [vmem:[#allocation2 + $0xc8] sm:$0xff] %vm309_vm0, %v3849_v29  ;;  %v4516_v31 = vadd.f32 %v4462_v55, %v4356_v43  ;;  %v3851_v4 = vadd.f32 %v3797_v41, %v3699_v50  ;;  %v4743_v6 = vmax.f32 %v4689_v28, 0.0  ;;  %v4745_v55 = vmax.f32 %v4691_v47, 0.0 }
 0x252   :  { %4966 = vst.msk [vmem:[%s8235_s3 + $0x30] sm:$0xff] %vm7914_vm3, %v5792_v62  ;;  %v5793_v26 = vpack.c.bf16 %v4738_v37, %v4737_v16  ;;  %v8012_v57 = vadd.f32 %v4368_v10, %v3850_v24  ;;  %v3802_v62 = vld [vmem:[#allocation2 + $0x100] sm:$0xff] }
 0x253   :  { %v4620_v52 = vld [vmem:[#allocation2 + $0x88] sm:$0xff]  ;;  %v4464_v25 = vld [vmem:[#allocation2 + $0xb8] sm:$0xff]  ;;  %4570 = vst.msk [vmem:[#allocation2 + $0xa8] sm:$0xff] %vm309_vm0, %v4516_v31  ;;  %3905 = vst.msk [vmem:[#allocation2 + $0xd8] sm:$0xff] %vm309_vm0, %v3851_v4 }
 0x254   :  { %4967 = vst.msk [vmem:[%s8235_s3 + $0x38] sm:$0xff] %vm7914_vm3, %v5793_v26  ;;  %v4686_v61 = vadd.f32 %v7895_v0, %v4620_v52  ;;  %v4518_v7 = vadd.f32 %v4464_v25, %v4360_v2  ;;  %v3805_v52 = vld [vmem:[#allocation2 + $0x118] sm:$0xff] }
 0x255   :  { %v4622_v53 = vld [vmem:[#allocation2 + $0x98] sm:$0xff]  ;;  %v3703_v43 = vpop.f32.mrb[168].mxu1  ;;  %v4374_v3 = vpop.f32.mrb[168].mxu0 }
 0x256   :  { %v4740_v14 = vmax.f32 %v4686_v61, 0.0  ;;  %v4688_v56 = vadd.f32 %v7895_v0, %v4622_v53  ;;  %4572 = vst.msk [vmem:[#allocation2 + $0xb8] sm:$0xff] %vm309_vm0, %v4518_v7  ;;  %v3852_v17 = vadd.f32 %v3703_v43, %v7829_v45  ;;  %v3705_v5 = vpop.f32.mrb[169].mxu1  ;;  %v4376_v36 = vpop.f32.mrb[169].mxu0  ;;  %v4693_v7 = vadd.f32 %v7891_v34, %v8002_v35 }
 0x257   :  { %v3853_v8 = vadd.f32 %v3799_v33, %v3705_v5  ;;  %v3707_v58 = vpop.f32.mrb[170].mxu1  ;;  %v4378_v2 = vpop.f32.mrb[170].mxu0  ;;  %v4695_v35 = vadd.f32 %v7891_v34, %v8012_v57  ;;  %v3807_v57 = vld [vmem:[#allocation2 + $0x128] sm:$0xff] }
 0x258   :  { %v5794_v39 = vpack.c.bf16 %v4740_v14, %v4739_v15  ;;  %v4742_v54 = vmax.f32 %v4688_v56, 0.0  ;;  %v4466_v30 = vld [vmem:[#allocation2 + $0xc8] sm:$0xff]  ;;  %v3854_v1 = vadd.f32 %v3800_v18, %v3707_v58  ;;  %v3709_v40 = vpop.f32.mrb[171].mxu1  ;;  %v8027_v9 = vadd.f32 %v4374_v3, %v3852_v17  ;;  %v4380_v46 = vpop.f32.mrb[171].mxu0 }
 0x259   :  { %3907 = vst.msk [vmem:[#allocation2 + $0xe8] sm:$0xff] %vm309_vm0, %v3853_v8  ;;  %v4520_v44 = vadd.f32 %v4466_v30, %v4366_v12  ;;  %v3855_v63 = vadd.f32 %v3801_v21, %v3709_v40  ;;  %v4747_v33 = vmax.f32 %v4693_v7, 0.0 }
 0x25a   :  { %4968 = vst.msk [vmem:[%s8235_s3 + $0x40] sm:$0xff] %vm7914_vm3, %v5794_v39  ;;  %v5795_v45 = vpack.c.bf16 %v4742_v54, %v4741_v11  ;;  %v4624_v60 = vld [vmem:[#allocation2 + $0xa8] sm:$0xff]  ;;  %v4468_v13 = vld [vmem:[#allocation2 + $0xd8] sm:$0xff]  ;;  %4577 = vst [vmem:[#allocation2 + $0xe0] sm:$0xff] %v8027_v9  ;;  %v8038_v42 = vadd.f32 %v4378_v2, %v3854_v1  ;;  %v4749_v1 = vmax.f32 %v4695_v35, 0.0 }
 0x25b   :  { %v4690_v22 = vadd.f32 %v7895_v0, %v4624_v60  ;;  %4574 = vst.msk [vmem:[#allocation2 + $0xc8] sm:$0xff] %vm309_vm0, %v4520_v44  ;;  %3909 = vst.msk [vmem:[#allocation2 + $0xf8] sm:$0xff] %vm309_vm0, %v3855_v63  ;;  %v4522_v59 = vadd.f32 %v4468_v13, %v4370_v38  ;;  %v3804_v38 = vld [vmem:[#allocation2 + $0x110] sm:$0xff]  ;;  %v3806_v54 = vld [vmem:[#allocation2 + $0x120] sm:$0xff] }
 0x25c   :  { %4969 = vst.msk [vmem:[%s8235_s3 + $0x48] sm:$0xff] %vm7914_vm3, %v5795_v45  ;;  %4579 = vst [vmem:[#allocation2 + $0xf0] sm:$0xff] %v8038_v42  ;;  %v3808_v45 = vld [vmem:[#allocation2 + $0x130] sm:$0xff]  ;;  %v3809_v13 = vld [vmem:[#allocation2 + $0x138] sm:$0xff] }
 0x25d   :  { %v4626_v49 = vld [vmem:[#allocation2 + $0xb8] sm:$0xff]  ;;  %v4744_v20 = vmax.f32 %v4690_v22, 0.0  ;;  %4576 = vst.msk [vmem:[#allocation2 + $0xd8] sm:$0xff] %vm309_vm0, %v4522_v59  ;;  %v3713_v12 = vpop.f32.mrb[172].mxu1  ;;  %v4384_v16 = vpop.f32.mrb[172].mxu0 }
 0x25e   :  { %v4692_v23 = vadd.f32 %v7895_v0, %v4626_v49  ;;  %v3856_v37 = vadd.f32 %v3802_v62, %v3713_v12  ;;  %v3715_v29 = vpop.f32.mrb[173].mxu1  ;;  %v4386_v48 = vpop.f32.mrb[173].mxu0  ;;  %v4697_v49 = vadd.f32 %v7891_v34, %v8027_v9  ;;  %v4699_v9 = vadd.f32 %v7891_v34, %v8038_v42  ;;  %v3811_v42 = vld [vmem:[#allocation2 + $0x148] sm:$0xff] }
 0x25f   :  { %v5796_v10 = vpack.c.bf16 %v4744_v20, %v4743_v6  ;;  %v3857_v50 = vadd.f32 %v3803_v27, %v3715_v29  ;;  %v3717_v41 = vpop.f32.mrb[174].mxu1  ;;  %v4388_v26 = vpop.f32.mrb[174].mxu0 }
 0x260   :  { %v4746_v24 = vmax.f32 %v4692_v23, 0.0  ;;  %v4470_v51 = vld [vmem:[#allocation2 + $0xe8] sm:$0xff]  ;;  %v3858_v31 = vadd.f32 %v3804_v38, %v3717_v41  ;;  %v3719_v4 = vpop.f32.mrb[175].mxu1  ;;  %v8053_v25 = vadd.f32 %v4384_v16, %v3856_v37  ;;  %v4390_v61 = vpop.f32.mrb[175].mxu0  ;;  %v4751_v27 = vmax.f32 %v4697_v49, 0.0 }
 0x261   :  { %4970 = vst.msk [vmem:[%s8235_s3 + $0x50] sm:$0xff] %vm7914_vm3, %v5796_v10  ;;  %v4524_v53 = vadd.f32 %v4470_v51, %v4376_v36  ;;  %v3859_v15 = vadd.f32 %v3805_v52, %v3719_v4 }
 0x262   :  { %v5797_v32 = vpack.c.bf16 %v4746_v24, %v4745_v55  ;;  %3911 = vst.msk [vmem:[#allocation2 + $0x108] sm:$0xff] %vm309_vm0, %v3857_v50  ;;  %v4628_v14 = vld [vmem:[#allocation2 + $0xc8] sm:$0xff]  ;;  %v4472_v56 = vld [vmem:[#allocation2 + $0xf8] sm:$0xff]  ;;  %4581 = vst [vmem:[#allocation2 + $0x100] sm:$0xff] %v8053_v25  ;;  %v8064_v43 = vadd.f32 %v4388_v26, %v3858_v31  ;;  %v4753_v31 = vmax.f32 %v4699_v9, 0.0 }
 0x263   :  { %v4694_v3 = vadd.f32 %v7895_v0, %v4628_v14  ;;  %4578 = vst.msk [vmem:[#allocation2 + $0xe8] sm:$0xff] %vm309_vm0, %v4524_v53  ;;  %3913 = vst.msk [vmem:[#allocation2 + $0x118] sm:$0xff] %vm309_vm0, %v3859_v15  ;;  %v4526_v17 = vadd.f32 %v4472_v56, %v4380_v46  ;;  %v3810_v24 = vld [vmem:[#allocation2 + $0x140] sm:$0xff]  ;;  %v3813_v56 = vld [vmem:[#allocation2 + $0x158] sm:$0xff] }
 0x264   :  { %4971 = vst.msk [vmem:[%s8235_s3 + $0x58] sm:$0xff] %vm7914_vm3, %v5797_v32  ;;  %v4630_v5 = vld [vmem:[#allocation2 + $0xd8] sm:$0xff]  ;;  %4583 = vst [vmem:[#allocation2 + $0x110] sm:$0xff] %v8064_v43  ;;  %v3812_v32 = vld [vmem:[#allocation2 + $0x150] sm:$0xff] }
 0x265   :  { %v4748_v36 = vmax.f32 %v4694_v3, 0.0  ;;  %v4696_v39 = vadd.f32 %v7895_v0, %v4630_v5  ;;  %4580 = vst.msk [vmem:[#allocation2 + $0xf8] sm:$0xff] %vm309_vm0, %v4526_v17  ;;  %v3723_v11 = vpop.f32.mrb[176].mxu1  ;;  %v4394_v8 = vpop.f32.mrb[176].mxu0  ;;  %v4701_v5 = vadd.f32 %v7891_v34, %v8053_v25  ;;  %v4703_v25 = vadd.f32 %v7891_v34, %v8064_v43  ;;  %v3815_v43 = vld [vmem:[#allocation2 + $0x168] sm:$0xff] }
 0x266   :  { %v3860_v58 = vadd.f32 %v3806_v54, %v3723_v11  ;;  %v3725_v18 = vpop.f32.mrb[177].mxu1  ;;  %v4396_v2 = vpop.f32.mrb[177].mxu0 }
 0x267   :  { %v5798_v30 = vpack.c.bf16 %v4748_v36, %v4747_v33  ;;  %v4750_v40 = vmax.f32 %v4696_v39, 0.0  ;;  %v3861_v21 = vadd.f32 %v3807_v57, %v3725_v18  ;;  %v3727_v46 = vpop.f32.mrb[178].mxu1  ;;  %v4398_v28 = vpop.f32.mrb[178].mxu0  ;;  %v4755_v57 = vmax.f32 %v4701_v5, 0.0 }
 0x268   :  { %v3862_v63 = vadd.f32 %v3808_v45, %v3727_v46  ;;  %v3729_v60 = vpop.f32.mrb[179].mxu1  ;;  %v8079_v22 = vadd.f32 %v4394_v8, %v3860_v58  ;;  %v4400_v47 = vpop.f32.mrb[179].mxu0 }
 0x269   :  { %v4474_v44 = vld [vmem:[#allocation2 + $0x108] sm:$0xff]  ;;  %4972 = vst.msk [vmem:[%s8235_s3 + $0x60] sm:$0xff] %vm7914_vm3, %v5798_v30  ;;  %v5799_v59 = vpack.c.bf16 %v4750_v40, %v4749_v1  ;;  %v3863_v20 = vadd.f32 %v3809_v13, %v3729_v60  ;;  %v3814_v40 = vld [vmem:[#allocation2 + $0x160] sm:$0xff] }
 0x26a   :  { %3915 = vst.msk [vmem:[#allocation2 + $0x128] sm:$0xff] %vm309_vm0, %v3861_v21  ;;  %v4528_v6 = vadd.f32 %v4474_v44, %v4386_v48  ;;  %v4632_v23 = vld [vmem:[#allocation2 + $0xe8] sm:$0xff]  ;;  %v4476_v12 = vld [vmem:[#allocation2 + $0x118] sm:$0xff]  ;;  %4585 = vst [vmem:[#allocation2 + $0x120] sm:$0xff] %v8079_v22  ;;  %v8090_v62 = vadd.f32 %v4398_v28, %v3862_v63  ;;  %v4757_v63 = vmax.f32 %v4703_v25, 0.0 }
 0x26b   :  { %4973 = vst.msk [vmem:[%s8235_s3 + $0x68] sm:$0xff] %vm7914_vm3, %v5799_v59  ;;  %v4698_v16 = vadd.f32 %v7895_v0, %v4632_v23  ;;  %v4530_v37 = vadd.f32 %v4476_v12, %v4390_v61  ;;  %v3816_v59 = vld [vmem:[#allocation2 + $0x170] sm:$0xff]  ;;  %v3817_v12 = vld [vmem:[#allocation2 + $0x178] sm:$0xff] }
 0x26c   :  { %4582 = vst.msk [vmem:[#allocation2 + $0x108] sm:$0xff] %vm309_vm0, %v4528_v6  ;;  %3917 = vst.msk [vmem:[#allocation2 + $0x138] sm:$0xff] %vm309_vm0, %v3863_v20  ;;  %v4634_v29 = vld [vmem:[#allocation2 + $0xf8] sm:$0xff] }
 0x26d   :  { %4587 = vst [vmem:[#allocation2 + $0x130] sm:$0xff] %v8090_v62  ;;  %v4752_v48 = vmax.f32 %v4698_v16, 0.0  ;;  %v4700_v10 = vadd.f32 %v7895_v0, %v4634_v29  ;;  %4584 = vst.msk [vmem:[#allocation2 + $0x118] sm:$0xff] %vm309_vm0, %v4530_v37  ;;  %v3733_v55 = vpop.f32.mrb[180].mxu1  ;;  %v4404_v50 = vpop.f32.mrb[180].mxu0  ;;  %v4705_v29 = vadd.f32 %v7891_v34, %v8079_v22  ;;  %v4707_v22 = vadd.f32 %v7891_v34, %v8090_v62  ;;  %v3819_v62 = vld [vmem:[#allocation2 + $0x188] sm:$0xff] }
 0x26e   :  { %v3864_v41 = vadd.f32 %v3810_v24, %v3733_v55  ;;  %v3735_v38 = vpop.f32.mrb[181].mxu1  ;;  %v4406_v26 = vpop.f32.mrb[181].mxu0 }
 0x26f   :  { %v5800_v51 = vpack.c.bf16 %v4752_v48, %v4751_v27  ;;  %v4754_v4 = vmax.f32 %v4700_v10, 0.0  ;;  %v3865_v52 = vadd.f32 %v3811_v42, %v3735_v38  ;;  %v3737_v61 = vpop.f32.mrb[182].mxu1  ;;  %v4408_v7 = vpop.f32.mrb[182].mxu0  ;;  %v4759_v42 = vmax.f32 %v4705_v29, 0.0 }
 0x270   :  { %v3866_v15 = vadd.f32 %v3812_v32, %v3737_v61  ;;  %v3739_v14 = vpop.f32.mrb[183].mxu1  ;;  %v8105_v3 = vadd.f32 %v4404_v50, %v3864_v41  ;;  %v4410_v35 = vpop.f32.mrb[183].mxu0 }
 0x271   :  { %v4478_v53 = vld [vmem:[#allocation2 + $0x128] sm:$0xff]  ;;  %4974 = vst.msk [vmem:[%s8235_s3 + $0x70] sm:$0xff] %vm7914_vm3, %v5800_v51  ;;  %v5801_v17 = vpack.c.bf16 %v4754_v4, %v4753_v31  ;;  %v3867_v36 = vadd.f32 %v3813_v56, %v3739_v14  ;;  %v3818_v4 = vld [vmem:[#allocation2 + $0x180] sm:$0xff] }
 0x272   :  { %3919 = vst.msk [vmem:[#allocation2 + $0x148] sm:$0xff] %vm309_vm0, %v3865_v52  ;;  %v4532_v33 = vadd.f32 %v4478_v53, %v4396_v2  ;;  %4589 = vst [vmem:[#allocation2 + $0x140] sm:$0xff] %v8105_v3  ;;  %v8116_v54 = vadd.f32 %v4408_v7, %v3866_v15  ;;  %v4761_v15 = vmax.f32 %v4707_v22, 0.0 }
 0x273   :  { %v4636_v39 = vld [vmem:[#allocation2 + $0x108] sm:$0xff]  ;;  %v4480_v11 = vld [vmem:[#allocation2 + $0x138] sm:$0xff]  ;;  %4975 = vst.msk [vmem:[%s8235_s3 + $0x78] sm:$0xff] %vm7914_vm3, %v5801_v17  ;;  %v3820_v17 = vld [vmem:[#allocation2 + $0x190] sm:$0xff] }
 0x274   :  { %v4702_v8 = vadd.f32 %v7895_v0, %v4636_v39  ;;  %4586 = vst.msk [vmem:[#allocation2 + $0x128] sm:$0xff] %vm309_vm0, %v4532_v33  ;;  %3921 = vst.msk [vmem:[#allocation2 + $0x158] sm:$0xff] %vm309_vm0, %v3867_v36  ;;  %v4534_v58 = vadd.f32 %v4480_v11, %v4400_v47  ;;  %v4638_v18 = vld [vmem:[#allocation2 + $0x118] sm:$0xff] }
 0x275   :  { %4591 = vst [vmem:[#allocation2 + $0x150] sm:$0xff] %v8116_v54  ;;  %v4704_v30 = vadd.f32 %v7895_v0, %v4638_v18  ;;  %v3743_v1 = vpop.f32.mrb[184].mxu1  ;;  %v4414_v21 = vpop.f32.mrb[184].mxu0  ;;  %v3821_v11 = vld [vmem:[#allocation2 + $0x198] sm:$0xff]  ;;  %v4709_v18 = vadd.f32 %v7891_v34, %v8105_v3  ;;  %v4711_v3 = vadd.f32 %v7891_v34, %v8116_v54 }
 0x276   :  { %v4756_v2 = vmax.f32 %v4702_v8, 0.0  ;;  %4588 = vst.msk [vmem:[#allocation2 + $0x138] sm:$0xff] %vm309_vm0, %v4534_v58  ;;  %v3868_v46 = vadd.f32 %v3814_v40, %v3743_v1  ;;  %v3745_v45 = vpop.f32.mrb[185].mxu1  ;;  %v4416_v28 = vpop.f32.mrb[185].mxu0 }
 0x277   :  { %v4758_v60 = vmax.f32 %v4704_v30, 0.0  ;;  %v3869_v13 = vadd.f32 %v3815_v43, %v3745_v45  ;;  %v3747_v47 = vpop.f32.mrb[186].mxu1  ;;  %v4418_v49 = vpop.f32.mrb[186].mxu0  ;;  %v4763_v43 = vmax.f32 %v4709_v18, 0.0 }
 0x278   :  { %v5802_v44 = vpack.c.bf16 %v4756_v2, %v4755_v57  ;;  %v3870_v20 = vadd.f32 %v3816_v59, %v3747_v47  ;;  %v3749_v23 = vpop.f32.mrb[187].mxu1  ;;  %v8131_v16 = vadd.f32 %v4414_v21, %v3868_v46  ;;  %v4420_v9 = vpop.f32.mrb[187].mxu0 }
 0x279   :  { %v4482_v6 = vld [vmem:[#allocation2 + $0x148] sm:$0xff]  ;;  %v5803_v37 = vpack.c.bf16 %v4758_v60, %v4757_v63  ;;  %3923 = vst.msk [vmem:[#allocation2 + $0x168] sm:$0xff] %vm309_vm0, %v3869_v13  ;;  %v3871_v48 = vadd.f32 %v3817_v12, %v3749_v23  ;;  %v3822_v60 = vld [vmem:[#allocation2 + $0x1a0] sm:$0xff] }
 0x27a   :  { %4976 = vst.msk [vmem:[%s8235_s3 + $0x80] sm:$0xff] %vm7914_vm3, %v5802_v44  ;;  %v4536_v27 = vadd.f32 %v4482_v6, %v4406_v26  ;;  %4593 = vst [vmem:[#allocation2 + $0x160] sm:$0xff] %v8131_v16  ;;  %v8142_v24 = vadd.f32 %v4418_v49, %v3870_v20  ;;  %v3823_v49 = vld [vmem:[#allocation2 + $0x1a8] sm:$0xff]  ;;  %v4765_v20 = vmax.f32 %v4711_v3, 0.0 }
 0x27b   :  { %v4640_v10 = vld [vmem:[#allocation2 + $0x128] sm:$0xff]  ;;  %v4484_v55 = vld [vmem:[#allocation2 + $0x158] sm:$0xff]  ;;  %4977 = vst.msk [vmem:[%s8235_s3 + $0x88] sm:$0xff] %vm7914_vm3, %v5803_v37 }
 0x27c   :  { %v4706_v50 = vadd.f32 %v7895_v0, %v4640_v10  ;;  %4590 = vst.msk [vmem:[#allocation2 + $0x148] sm:$0xff] %vm309_vm0, %v4536_v27  ;;  %3925 = vst.msk [vmem:[#allocation2 + $0x178] sm:$0xff] %vm309_vm0, %v3871_v48  ;;  %v4538_v41 = vadd.f32 %v4484_v55, %v4410_v35 }
 0x27d   :  { %v4642_v38 = vld [vmem:[#allocation2 + $0x138] sm:$0xff]  ;;  %4595 = vst [vmem:[#allocation2 + $0x170] sm:$0xff] %v8142_v24  ;;  %v3753_v31 = vpop.f32.mrb[188].mxu1  ;;  %v4424_v52 = vpop.f32.mrb[188].mxu0 }
 0x27e   :  { %v4760_v26 = vmax.f32 %v4706_v50, 0.0  ;;  %v4708_v51 = vadd.f32 %v7895_v0, %v4642_v38  ;;  %4592 = vst.msk [vmem:[#allocation2 + $0x158] sm:$0xff] %vm309_vm0, %v4538_v41  ;;  %v3872_v61 = vadd.f32 %v3818_v4, %v3753_v31  ;;  %v3755_v32 = vpop.f32.mrb[189].mxu1  ;;  %v4426_v7 = vpop.f32.mrb[189].mxu0  ;;  %v4713_v50 = vadd.f32 %v7891_v34, %v8131_v16 }
 0x27f   :  { %v3873_v56 = vadd.f32 %v3819_v62, %v3755_v32  ;;  %v3757_v35 = vpop.f32.mrb[190].mxu1  ;;  %v4428_v5 = vpop.f32.mrb[190].mxu0 }
 0x280   :  { %v5804_v53 = vpack.c.bf16 %v4760_v26, %v4759_v42  ;;  %v4762_v14 = vmax.f32 %v4708_v51, 0.0  ;;  %v4486_v33 = vld [vmem:[#allocation2 + $0x168] sm:$0xff]  ;;  %v3874_v36 = vadd.f32 %v3820_v17, %v3757_v35  ;;  %v3759_v39 = vpop.f32.mrb[191].mxu1  ;;  %v8157_v8 = vadd.f32 %v4424_v52, %v3872_v61  ;;  %v4430_v25 = vpop.f32.mrb[191].mxu0 }
 0x281   :  { %3927 = vst.msk [vmem:[#allocation2 + $0x188] sm:$0xff] %vm309_vm0, %v3873_v56  ;;  %v4540_v57 = vadd.f32 %v4486_v33, %v4416_v28  ;;  %v3875_v2 = vadd.f32 %v3821_v11, %v3759_v39  ;;  %v4715_v26 = vadd.f32 %v7891_v34, %v8142_v24  ;;  %v4767_v31 = vmax.f32 %v4713_v50, 0.0 }
 0x282   :  { %4978 = vst.msk [vmem:[%s8235_s3 + $0x90] sm:$0xff] %vm7914_vm3, %v5804_v53  ;;  %v5805_v58 = vpack.c.bf16 %v4762_v14, %v4761_v15  ;;  %4597 = vst [vmem:[#allocation2 + $0x180] sm:$0xff] %v8157_v8  ;;  %v4545_v40 = vadd.f32 %v4428_v5, %v3874_v36  ;;  %v4717_v53 = vadd.f32 %v7891_v34, %v8157_v8 }
 0x283   :  { %v4644_v30 = vld [vmem:[#allocation2 + $0x148] sm:$0xff]  ;;  %v4488_v1 = vld [vmem:[#allocation2 + $0x178] sm:$0xff]  ;;  %4594 = vst.msk [vmem:[#allocation2 + $0x168] sm:$0xff] %vm309_vm0, %v4540_v57  ;;  %3929 = vst.msk [vmem:[#allocation2 + $0x198] sm:$0xff] %vm309_vm0, %v3875_v2  ;;  %v4769_v32 = vmax.f32 %v4715_v26, 0.0 }
 0x284   :  { %4979 = vst.msk [vmem:[%s8235_s3 + $0x98] sm:$0xff] %vm7914_vm3, %v5805_v58  ;;  %v4710_v21 = vadd.f32 %v7895_v0, %v4644_v30  ;;  %v4542_v46 = vadd.f32 %v4488_v1, %v4420_v9  ;;  %4599 = vst [vmem:[#allocation2 + $0x190] sm:$0xff] %v4545_v40  ;;  %v4719_v35 = vadd.f32 %v7891_v34, %v4545_v40  ;;  %v4771_v5 = vmax.f32 %v4717_v53, 0.0 }
 0x285   :  { %v4646_v45 = vld [vmem:[#allocation2 + $0x158] sm:$0xff]  ;;  %v3763_v63 = vpop.f32.mrb[192].mxu1  ;;  %v4434_v13 = vpop.f32.mrb[192].mxu0 }
 0x286   :  { %v4764_v28 = vmax.f32 %v4710_v21, 0.0  ;;  %v4712_v44 = vadd.f32 %v7895_v0, %v4646_v45  ;;  %4596 = vst.msk [vmem:[#allocation2 + $0x178] sm:$0xff] %vm309_vm0, %v4542_v46  ;;  %v3876_v47 = vadd.f32 %v3822_v60, %v3763_v63  ;;  %v3765_v59 = vpop.f32.mrb[193].mxu1  ;;  %v4436_v54 = vpop.f32.mrb[193].mxu0  ;;  %v4773_v11 = vmax.f32 %v4719_v35, 0.0 }
 0x287   :  { %v3877_v12 = vadd.f32 %v3823_v49, %v3765_v59  ;;  %v3767_v9 = vpop.f32.mrb[194].mxu1  ;;  %v4438_v37 = vpop.f32.mrb[194].mxu0 }
 0x288   :  { %v5806_v6 = vpack.c.bf16 %v4764_v28, %v4763_v43  ;;  %v4766_v23 = vmax.f32 %v4712_v44, 0.0  ;;  %v4490_v29 = vld [vmem:[#allocation2 + $0x188] sm:$0xff]  ;;  %v3768_v27 = vpop.f32.mrb[195].mxu1  ;;  %v4547_v48 = vadd.f32 %v4434_v13, %v3876_v47  ;;  %v4439_v10 = vpop.f32.mrb[195].mxu0 }
 0x289   :  { %3931 = vst.msk [vmem:[#allocation2 + $0x1a8] sm:$0xff] %vm309_vm0, %v3877_v12  ;;  %v4544_v22 = vadd.f32 %v4490_v29, %v4426_v7 }
 0x28a   :  { %4980 = vst.msk [vmem:[%s8235_s3 + $0xa0] sm:$0xff] %vm7914_vm3, %v5806_v6  ;;  %v5807_v55 = vpack.c.bf16 %v4766_v23, %v4765_v20  ;;  %v4648_v41 = vld [vmem:[#allocation2 + $0x168] sm:$0xff]  ;;  %v4492_v38 = vld [vmem:[#allocation2 + $0x198] sm:$0xff]  ;;  %4601 = vst [vmem:[#allocation2 + $0x1a0] sm:$0xff] %v4547_v48  ;;  %v4721_v58 = vadd.f32 %v7891_v34, %v4547_v48 }
 0x28b   :  { %v4714_v42 = vadd.f32 %v7895_v0, %v4648_v41  ;;  %4598 = vst.msk [vmem:[#allocation2 + $0x188] sm:$0xff] %vm309_vm0, %v4544_v22  ;;  %v4546_v16 = vadd.f32 %v4492_v38, %v4430_v25 }
 0x28c   :  { %4981 = vst.msk [vmem:[%s8235_s3 + $0xa8] sm:$0xff] %vm7914_vm3, %v5807_v55  ;;  %v4775_v2 = vmax.f32 %v4721_v58, 0.0 }
 0x28d   :  { %v4650_v51 = vld [vmem:[#allocation2 + $0x178] sm:$0xff]  ;;  %v4768_v4 = vmax.f32 %v4714_v42, 0.0  ;;  %4600 = vst.msk [vmem:[#allocation2 + $0x198] sm:$0xff] %vm309_vm0, %v4546_v16 }
 0x28e   :  { %v4716_v52 = vadd.f32 %v7895_v0, %v4650_v51 }
 0x28f   :  { %v5808_v61 = vpack.c.bf16 %v4768_v4, %v4767_v31 }
 0x290   :  { %v4770_v62 = vmax.f32 %v4716_v52, 0.0  ;;  %v4494_v7 = vld [vmem:[#allocation2 + $0x1a8] sm:$0xff] }
 0x291   :  { %4982 = vst.msk [vmem:[%s8235_s3 + $0xb0] sm:$0xff] %vm7914_vm3, %v5808_v61  ;;  %v4548_v15 = vadd.f32 %v4494_v7, %v4436_v54 }
 0x292   :  { %v5809_v24 = vpack.c.bf16 %v4770_v62, %v4769_v32  ;;  %v4652_v14 = vld [vmem:[#allocation2 + $0x188] sm:$0xff] }
 0x293   :  { %v4718_v56 = vadd.f32 %v7895_v0, %v4652_v14  ;;  %4602 = vst.msk [vmem:[#allocation2 + $0x1a8] sm:$0xff] %vm309_vm0, %v4548_v15 }
 0x294   :  { %4983 = vst.msk [vmem:[%s8235_s3 + $0xb8] sm:$0xff] %vm7914_vm3, %v5809_v24  ;;  %v4654_v17 = vld [vmem:[#allocation2 + $0x198] sm:$0xff] }
 0x295   :  { %v4772_v33 = vmax.f32 %v4718_v56, 0.0  ;;  %v4720_v36 = vadd.f32 %v7895_v0, %v4654_v17 }
 0x297   :  { %v5810_v39 = vpack.c.bf16 %v4772_v33, %v4771_v5  ;;  %v4774_v8 = vmax.f32 %v4720_v36, 0.0 }
 0x299   :  { %4984 = vst.msk [vmem:[%s8235_s3 + $0xc0] sm:$0xff] %vm7914_vm3, %v5810_v39  ;;  %v5811_v25 = vpack.c.bf16 %v4774_v8, %v4773_v11 }
 0x29a   :  { %v4656_v18 = vld [vmem:[#allocation2 + $0x1a8] sm:$0xff] }
 0x29b   :  { %4985 = vst.msk [vmem:[%s8235_s3 + $0xc8] sm:$0xff] %vm7914_vm3, %v5811_v25  ;;  %v4722_v57 = vadd.f32 %v7895_v0, %v4656_v18 }
 0x29d   :  { %v4776_v30 = vmax.f32 %v4722_v57, 0.0 }
 0x29f   :  { %v5812_v1 = vpack.c.bf16 %v4776_v30, %v4775_v2 }
 0x2a1   :  { %4986 = vst.msk [vmem:[%s8235_s3 + $0xd0] sm:$0xff] %vm7914_vm3, %v5812_v1 }

// kernel: inception_d_forward.10
= control target key start
LH: loop header
LB: loop body
LE: loop exit
PB: predicated region body
PF: predicated region fallthrough
CT: control target
= control target key end

     0   :  { %vm1489_vm0 = vcmask 523264   ;;  %s3364_s1 = inlined_call_operand.vmem [shape: bf16[1728,192], index: 1, kind: input, shape index: {}]   ;;  %s3365_s0 = inlined_call_operand.vmem [shape: bf16[32,1728], index: 0, kind: input, shape index: {}]   ;;  %s3366_s2 = inlined_call_operand.vmem [shape: f32[1,192], index: 2, kind: input, shape index: {}]   ;;  %s3367_s3 = inlined_call_operand.vmem [shape: f32[32,192], index: 3, kind: output, shape index: {}]  }
   0x1   :  { %v2213_v0 = vld [vmem:[%s3364_s1 + $0x4] ss:$8 sps:$4 sm:$0xff]   ;;  %v2217_v2 = vld [vmem:[%s3364_s1] ss:$8 sps:$4 sm:$0xff]   ;;  %v2219_v4 = vld [vmem:[%s3364_s1 + $0x14] ss:$8 sps:$4 sm:$0xff]  }
   0x2   :  { %v2215_v1 = vld [vmem:[%s3364_s1 + $0x304] ss:$8 sps:$4 sm:$0xff]   ;;  %1496 = vmatprep.subr.bf16.mxu1 %v2213_v0  ;;  %v2218_v3 = vld [vmem:[%s3364_s1 + $0x300] ss:$8 sps:$4 sm:$0xff]   ;;  %v2221_v5 = vld [vmem:[%s3364_s1 + $0x314] ss:$8 sps:$4 sm:$0xff]  }
   0x3   :  { %1655 = vmatprep.subr.bf16.mxu0 %v2215_v1  ;;  %1497 = vmatpush1.bf16.msra.mxu1 %v2217_v2  ;;  %v2223_v6 = vld [vmem:[%s3364_s1 + $0x10] ss:$8 sps:$4 sm:$0xff]   ;;  %v2225_v8 = vld [vmem:[%s3364_s1 + $0x24] ss:$8 sps:$4 sm:$0xff]   ;;  %v2229_v10 = vld [vmem:[%s3364_s1 + $0x20] ss:$8 sps:$4 sm:$0xff]  }
   0x4   :  { %1656 = vmatpush1.bf16.msra.mxu0 %v2218_v3  ;;  %1498 = vmatprep.subr.bf16.mxu1 %v2219_v4  ;;  %v2224_v7 = vld [vmem:[%s3364_s1 + $0x310] ss:$8 sps:$4 sm:$0xff]   ;;  %v2227_v9 = vld [vmem:[%s3364_s1 + $0x324] ss:$8 sps:$4 sm:$0xff]   ;;  %v2230_v11 = vld [vmem:[%s3364_s1 + $0x320] ss:$8 sps:$4 sm:$0xff]  }
   0x5   :  { %1657 = vmatprep.subr.bf16.mxu0 %v2221_v5  ;;  %v2231_v12 = vld [vmem:[%s3364_s1 + $0x34] ss:$8 sps:$4 sm:$0xff]   ;;  %v2235_v14 = vld [vmem:[%s3364_s1 + $0x30] ss:$8 sps:$4 sm:$0xff]   ;;  %v2237_v16 = vld [vmem:[%s3364_s1 + $0x44] ss:$8 sps:$4 sm:$0xff]  }
   0x6   :  { %v2233_v13 = vld [vmem:[%s3364_s1 + $0x334] ss:$8 sps:$4 sm:$0xff]   ;;  %v2236_v15 = vld [vmem:[%s3364_s1 + $0x330] ss:$8 sps:$4 sm:$0xff]   ;;  %v2239_v17 = vld [vmem:[%s3364_s1 + $0x344] ss:$8 sps:$4 sm:$0xff]  }
   0x7   :  { %1499 = vmatpush1.bf16.msra.mxu1 %v2223_v6  ;;  %v2241_v18 = vld [vmem:[%s3364_s1 + $0x40] ss:$8 sps:$4 sm:$0xff]   ;;  %v2243_v20 = vld [vmem:[%s3364_s1 + $0x54] ss:$8 sps:$4 sm:$0xff]   ;;  %v2247_v22 = vld [vmem:[%s3364_s1 + $0x50] ss:$8 sps:$4 sm:$0xff]  }
   0x8   :  { %1658 = vmatpush1.bf16.msra.mxu0 %v2224_v7  ;;  %1500 = vmatprep.subr.bf16.mxu1 %v2225_v8  ;;  %v2242_v19 = vld [vmem:[%s3364_s1 + $0x340] ss:$8 sps:$4 sm:$0xff]   ;;  %v2245_v21 = vld [vmem:[%s3364_s1 + $0x354] ss:$8 sps:$4 sm:$0xff]   ;;  %v2248_v23 = vld [vmem:[%s3364_s1 + $0x350] ss:$8 sps:$4 sm:$0xff]  }
   0x9   :  { %1659 = vmatprep.subr.bf16.mxu0 %v2227_v9  ;;  %v2249_v24 = vld [vmem:[%s3364_s1 + $0x64] ss:$8 sps:$4 sm:$0xff]   ;;  %v2253_v26 = vld [vmem:[%s3364_s1 + $0x60] ss:$8 sps:$4 sm:$0xff]   ;;  %v2255_v28 = vld [vmem:[%s3364_s1 + $0x74] ss:$8 sps:$4 sm:$0xff]  }
   0xa   :  { %v2251_v25 = vld [vmem:[%s3364_s1 + $0x364] ss:$8 sps:$4 sm:$0xff]   ;;  %v2254_v27 = vld [vmem:[%s3364_s1 + $0x360] ss:$8 sps:$4 sm:$0xff]   ;;  %v2257_v29 = vld [vmem:[%s3364_s1 + $0x374] ss:$8 sps:$4 sm:$0xff]  }
   0xb   :  { %1501 = vmatpush1.bf16.msra.mxu1 %v2229_v10  ;;  %v2259_v30 = vld [vmem:[%s3364_s1 + $0x70] ss:$8 sps:$4 sm:$0xff]   ;;  %v2261_v32 = vld [vmem:[%s3364_s1 + $0x84] ss:$8 sps:$4 sm:$0xff]   ;;  %v2265_v34 = vld [vmem:[%s3364_s1 + $0x80] ss:$8 sps:$4 sm:$0xff]  }
   0xc   :  { %1660 = vmatpush1.bf16.msra.mxu0 %v2230_v11  ;;  %1502 = vmatprep.subr.bf16.mxu1 %v2231_v12  ;;  %v2260_v31 = vld [vmem:[%s3364_s1 + $0x370] ss:$8 sps:$4 sm:$0xff]   ;;  %v2263_v33 = vld [vmem:[%s3364_s1 + $0x384] ss:$8 sps:$4 sm:$0xff]   ;;  %v2266_v35 = vld [vmem:[%s3364_s1 + $0x380] ss:$8 sps:$4 sm:$0xff]  }
   0xd   :  { %1661 = vmatprep.subr.bf16.mxu0 %v2233_v13  ;;  %v2267_v36 = vld [vmem:[%s3364_s1 + $0x94] ss:$8 sps:$4 sm:$0xff]   ;;  %v2271_v38 = vld [vmem:[%s3364_s1 + $0x90] ss:$8 sps:$4 sm:$0xff]   ;;  %v2273_v40 = vld [vmem:[%s3364_s1 + $0xa4] ss:$8 sps:$4 sm:$0xff]  }
   0xe   :  { %v2269_v37 = vld [vmem:[%s3364_s1 + $0x394] ss:$8 sps:$4 sm:$0xff]   ;;  %v2272_v39 = vld [vmem:[%s3364_s1 + $0x390] ss:$8 sps:$4 sm:$0xff]   ;;  %v2275_v41 = vld [vmem:[%s3364_s1 + $0x3a4] ss:$8 sps:$4 sm:$0xff]  }
   0xf   :  { %1503 = vmatpush1.bf16.msra.mxu1 %v2235_v14  ;;  %v2277_v42 = vld [vmem:[%s3364_s1 + $0xa0] ss:$8 sps:$4 sm:$0xff]   ;;  %v2279_v44 = vld [vmem:[%s3364_s1 + $0xb4] ss:$8 sps:$4 sm:$0xff]   ;;  %v2283_v46 = vld [vmem:[%s3364_s1 + $0xb0] ss:$8 sps:$4 sm:$0xff]  }
  0x10   :  { %1662 = vmatpush1.bf16.msra.mxu0 %v2236_v15  ;;  %1504 = vmatprep.subr.bf16.mxu1 %v2237_v16  ;;  %v2278_v43 = vld [vmem:[%s3364_s1 + $0x3a0] ss:$8 sps:$4 sm:$0xff]   ;;  %v2281_v45 = vld [vmem:[%s3364_s1 + $0x3b4] ss:$8 sps:$4 sm:$0xff]   ;;  %v2284_v47 = vld [vmem:[%s3364_s1 + $0x3b0] ss:$8 sps:$4 sm:$0xff]  }
  0x11   :  { %1663 = vmatprep.subr.bf16.mxu0 %v2239_v17  ;;  %v2311_v48 = vld [vmem:[%s3365_s0 + $0x4] ss:$56 sps:$4 sm:$0xff]   ;;  %v2289_v52 = vld [vmem:[%s3364_s1 + $0xc0] ss:$8 sps:$4 sm:$0xff]   ;;  %v2295_v56 = vld [vmem:[%s3364_s1 + $0xd0] ss:$8 sps:$4 sm:$0xff]  }
  0x12   :  { %v2285_v49 = vld [vmem:[%s3364_s1 + $0xc4] ss:$8 sps:$4 sm:$0xff]   ;;  %1528 = vmatprep.mubr.bf16.mxu1 %v2311_v48  ;;  %v2317_v51 = vld [vmem:[%s3365_s0 + $0x1c] ss:$56 sps:$4 sm:$0xff]   ;;  %v2290_v53 = vld [vmem:[%s3364_s1 + $0x3c0] ss:$8 sps:$4 sm:$0xff]  }
  0x13   :  { %1505 = vmatpush1.bf16.msra.mxu1 %v2241_v18  ;;  %v2287_v50 = vld [vmem:[%s3364_s1 + $0x3c4] ss:$8 sps:$4 sm:$0xff]   ;;  %v2291_v54 = vld [vmem:[%s3364_s1 + $0xd4] ss:$8 sps:$4 sm:$0xff]   ;;  %1687 = vmatprep.mubr.bf16.mxu0 %v2317_v51  ;;  %v2296_v57 = vld [vmem:[%s3364_s1 + $0x3d0] ss:$8 sps:$4 sm:$0xff]  }
  0x14   :  { %1664 = vmatpush1.bf16.msra.mxu0 %v2242_v19  ;;  %1506 = vmatprep.subr.bf16.mxu1 %v2243_v20  ;;  %v2293_v55 = vld [vmem:[%s3364_s1 + $0x3d4] ss:$8 sps:$4 sm:$0xff]   ;;  %v2297_v58 = vld [vmem:[%s3364_s1 + $0xe4] ss:$8 sps:$4 sm:$0xff]   ;;  %v2301_v60 = vld [vmem:[%s3364_s1 + $0xe0] ss:$8 sps:$4 sm:$0xff]  }
  0x15   :  { %1665 = vmatprep.subr.bf16.mxu0 %v2245_v21  ;;  %v2299_v59 = vld [vmem:[%s3364_s1 + $0x3e4] ss:$8 sps:$4 sm:$0xff]   ;;  %v2302_v61 = vld [vmem:[%s3364_s1 + $0x3e0] ss:$8 sps:$4 sm:$0xff]   ;;  %v2303_v62 = vld [vmem:[%s3364_s1 + $0xf4] ss:$8 sps:$4 sm:$0xff]  }
  0x16   :  { %v2305_v63 = vld [vmem:[%s3364_s1 + $0x3f4] ss:$8 sps:$4 sm:$0xff]   ;;  %v2307_v0 = vld [vmem:[%s3364_s1 + $0xf0] ss:$8 sps:$4 sm:$0xff]   ;;  %v2314_v2 = vld [vmem:[%s3364_s1 + $0x104] ss:$8 sps:$4 sm:$0xff]  }
  0x17   :  { %1507 = vmatpush1.bf16.msra.mxu1 %v2247_v22  ;;  %v2308_v1 = vld [vmem:[%s3364_s1 + $0x3f0] ss:$8 sps:$4 sm:$0xff]   ;;  %v2320_v3 = vld [vmem:[%s3364_s1 + $0x404] ss:$8 sps:$4 sm:$0xff]   ;;  %v2312_v5 = vld [vmem:[%s3364_s1 + $0x100] ss:$8 sps:$4 sm:$0xff]  }
  0x18   :  { %1666 = vmatpush1.bf16.msra.mxu0 %v2248_v23  ;;  %1508 = vmatprep.subr.bf16.mxu1 %v2249_v24  ;;  %v2309_v4 = vld [vmem:[%s3365_s0] ss:$56 sps:$4 sm:$0xff]   ;;  %v2323_v8 = vld [vmem:[%s3364_s1 + $0x114] ss:$8 sps:$4 sm:$0xff]   ;;  %v2329_v12 = vld [vmem:[%s3364_s1 + $0x124] ss:$8 sps:$4 sm:$0xff]  }
  0x19   :  { %1667 = vmatprep.subr.bf16.mxu0 %v2251_v25  ;;  %v2315_v6 = vld [vmem:[%s3365_s0 + $0x18] ss:$56 sps:$4 sm:$0xff]   ;;  %v2318_v7 = vld [vmem:[%s3364_s1 + $0x400] ss:$8 sps:$4 sm:$0xff]   ;;  %v2326_v9 = vld [vmem:[%s3364_s1 + $0x414] ss:$8 sps:$4 sm:$0xff]  }
  0x1a   :  { %v2321_v10 = vld [vmem:[%s3364_s1 + $0x110] ss:$8 sps:$4 sm:$0xff]   ;;  %v2332_v13 = vld [vmem:[%s3364_s1 + $0x424] ss:$8 sps:$4 sm:$0xff]   ;;  %v2327_v14 = vld [vmem:[%s3364_s1 + $0x120] ss:$8 sps:$4 sm:$0xff]  }
  0x1b   :  { %1509 = vmatpush1.bf16.msra.mxu1 %v2253_v26  ;;  %v2324_v11 = vld [vmem:[%s3364_s1 + $0x410] ss:$8 sps:$4 sm:$0xff]   ;;  %v2330_v15 = vld [vmem:[%s3364_s1 + $0x420] ss:$8 sps:$4 sm:$0xff]   ;;  %v2335_v16 = vld [vmem:[%s3364_s1 + $0x134] ss:$8 sps:$4 sm:$0xff]  }
  0x1c   :  { %1668 = vmatpush1.bf16.msra.mxu0 %v2254_v27  ;;  %1510 = vmatprep.subr.bf16.mxu1 %v2255_v28  ;;  %v2338_v17 = vld [vmem:[%s3364_s1 + $0x434] ss:$8 sps:$4 sm:$0xff]   ;;  %v2333_v18 = vld [vmem:[%s3364_s1 + $0x130] ss:$8 sps:$4 sm:$0xff]   ;;  %v2341_v20 = vld [vmem:[%s3364_s1 + $0x144] ss:$8 sps:$4 sm:$0xff]  }
  0x1d   :  { %1669 = vmatprep.subr.bf16.mxu0 %v2257_v29  ;;  %v2336_v19 = vld [vmem:[%s3364_s1 + $0x430] ss:$8 sps:$4 sm:$0xff]   ;;  %v2344_v21 = vld [vmem:[%s3364_s1 + $0x444] ss:$8 sps:$4 sm:$0xff]   ;;  %v2339_v22 = vld [vmem:[%s3364_s1 + $0x140] ss:$8 sps:$4 sm:$0xff]  }
  0x1e   :  { %v2342_v23 = vld [vmem:[%s3364_s1 + $0x440] ss:$8 sps:$4 sm:$0xff]   ;;  %v2347_v24 = vld [vmem:[%s3364_s1 + $0x154] ss:$8 sps:$4 sm:$0xff]   ;;  %v2345_v26 = vld [vmem:[%s3364_s1 + $0x150] ss:$8 sps:$4 sm:$0xff]  }
  0x1f   :  { %1511 = vmatpush1.bf16.msra.mxu1 %v2259_v30  ;;  %v2350_v25 = vld [vmem:[%s3364_s1 + $0x454] ss:$8 sps:$4 sm:$0xff]   ;;  %v2348_v27 = vld [vmem:[%s3364_s1 + $0x450] ss:$8 sps:$4 sm:$0xff]   ;;  %v2353_v29 = vld [vmem:[%s3364_s1 + $0x164] ss:$8 sps:$4 sm:$0xff]  }
  0x20   :  { %1670 = vmatpush1.bf16.msra.mxu0 %v2260_v31  ;;  %1512 = vmatprep.subr.bf16.mxu1 %v2261_v32  ;;  %v2399_v28 = vld [vmem:[%s3365_s0 + $0x74] ss:$56 sps:$4 sm:$0xff]   ;;  %v2351_v32 = vld [vmem:[%s3364_s1 + $0x160] ss:$8 sps:$4 sm:$0xff]   ;;  %v2369_v48 = vld [vmem:[%s3364_s1 + $0x190] ss:$8 sps:$4 sm:$0xff]  }
  0x21   :  { %1671 = vmatprep.subr.bf16.mxu0 %v2263_v33  ;;  %v2356_v30 = vld [vmem:[%s3364_s1 + $0x464] ss:$8 sps:$4 sm:$0xff]   ;;  %v2354_v33 = vld [vmem:[%s3364_s1 + $0x460] ss:$8 sps:$4 sm:$0xff]  }
  0x22   :  { %v2404_v31 = vld [vmem:[%s3365_s0 + $0x8c] ss:$56 sps:$4 sm:$0xff]  }
  0x23   :  { %1513 = vmatpush1.bf16.msra.mxu1 %v2265_v34  ;;  %v2409_v34 = vld [vmem:[%s3365_s0 + $0x70] ss:$56 sps:$4 sm:$0xff]   ;;  %v2380_v51 = vld [vmem:[%s3364_s1 + $0x4a4] ss:$8 sps:$4 sm:$0xff]  }
  0x24   :  { %1672 = vmatpush1.bf16.msra.mxu0 %v2266_v35  ;;  %1514 = vmatprep.subr.bf16.mxu1 %v2267_v36  ;;  %v2410_v35 = vld [vmem:[%s3365_s0 + $0x88] ss:$56 sps:$4 sm:$0xff]   ;;  %v2359_v36 = vld [vmem:[%s3364_s1 + $0x174] ss:$8 sps:$4 sm:$0xff]  }
  0x25   :  { %1673 = vmatprep.subr.bf16.mxu0 %v2269_v37  ;;  %v2362_v37 = vld [vmem:[%s3364_s1 + $0x474] ss:$8 sps:$4 sm:$0xff]  }
  0x27   :  { %1515 = vmatpush1.bf16.msra.mxu1 %v2271_v38  ;;  %v2357_v38 = vld [vmem:[%s3364_s1 + $0x170] ss:$8 sps:$4 sm:$0xff]  }
  0x28   :  { %1674 = vmatpush1.bf16.msra.mxu0 %v2272_v39  ;;  %1516 = vmatprep.subr.bf16.mxu1 %v2273_v40  ;;  %v2360_v39 = vld [vmem:[%s3364_s1 + $0x470] ss:$8 sps:$4 sm:$0xff]   ;;  %v2419_v40 = vld [vmem:[%s3365_s0 + $0xc] ss:$56 sps:$4 sm:$0xff]  }
  0x29   :  { %1675 = vmatprep.subr.bf16.mxu0 %v2275_v41  ;;  %v2365_v41 = vld [vmem:[%s3364_s1 + $0x184] ss:$8 sps:$4 sm:$0xff]  }
  0x2b   :  { %1517 = vmatpush1.bf16.msra.mxu1 %v2277_v42  ;;  %v2368_v42 = vld [vmem:[%s3364_s1 + $0x484] ss:$8 sps:$4 sm:$0xff]  }
  0x2c   :  { %1676 = vmatpush1.bf16.msra.mxu0 %v2278_v43  ;;  %1518 = vmatprep.subr.bf16.mxu1 %v2279_v44  ;;  %v2425_v43 = vld [vmem:[%s3365_s0 + $0x24] ss:$56 sps:$4 sm:$0xff]   ;;  %v2363_v44 = vld [vmem:[%s3364_s1 + $0x180] ss:$8 sps:$4 sm:$0xff]  }
  0x2d   :  { %1677 = vmatprep.subr.bf16.mxu0 %v2281_v45  ;;  %v2366_v45 = vld [vmem:[%s3364_s1 + $0x480] ss:$8 sps:$4 sm:$0xff]  }
  0x2f   :  { %1519 = vmatpush1.bf16.msra.mxu1 %v2283_v46  ;;  %v2371_v46 = vld [vmem:[%s3364_s1 + $0x194] ss:$8 sps:$4 sm:$0xff]  }
  0x30   :  { %1678 = vmatpush1.bf16.msra.mxu0 %v2284_v47  ;;  %1520 = vmatprep.subr.bf16.mxu1 %v2285_v49  ;;  %v2374_v47 = vld [vmem:[%s3364_s1 + $0x494] ss:$8 sps:$4 sm:$0xff]   ;;  %v2372_v49 = vld [vmem:[%s3364_s1 + $0x490] ss:$8 sps:$4 sm:$0xff]  }
  0x31   :  { %1679 = vmatprep.subr.bf16.mxu0 %v2287_v50  ;;  %v2377_v50 = vld [vmem:[%s3364_s1 + $0x1a4] ss:$8 sps:$4 sm:$0xff]  }
  0x33   :  { %1521 = vmatpush1.bf16.msra.mxu1 %v2289_v52  ;;  %v2375_v52 = vld [vmem:[%s3364_s1 + $0x1a0] ss:$8 sps:$4 sm:$0xff]  }
  0x34   :  { %1680 = vmatpush1.bf16.msra.mxu0 %v2290_v53  ;;  %1522 = vmatprep.subr.bf16.mxu1 %v2291_v54  ;;  %v2378_v53 = vld [vmem:[%s3364_s1 + $0x4a0] ss:$8 sps:$4 sm:$0xff]   ;;  %v2383_v54 = vld [vmem:[%s3364_s1 + $0x1b4] ss:$8 sps:$4 sm:$0xff]  }
  0x35   :  { %1681 = vmatprep.subr.bf16.mxu0 %v2293_v55  ;;  %v2386_v55 = vld [vmem:[%s3364_s1 + $0x4b4] ss:$8 sps:$4 sm:$0xff]  }
  0x37   :  { %1523 = vmatpush1.bf16.msra.mxu1 %v2295_v56  ;;  %v2381_v56 = vld [vmem:[%s3364_s1 + $0x1b0] ss:$8 sps:$4 sm:$0xff]  }
  0x38   :  { %1682 = vmatpush1.bf16.msra.mxu0 %v2296_v57  ;;  %1524 = vmatprep.subr.bf16.mxu1 %v2297_v58  ;;  %v2384_v57 = vld [vmem:[%s3364_s1 + $0x4b0] ss:$8 sps:$4 sm:$0xff]   ;;  %v2389_v58 = vld [vmem:[%s3364_s1 + $0x1c4] ss:$8 sps:$4 sm:$0xff]  }
  0x39   :  { %1683 = vmatprep.subr.bf16.mxu0 %v2299_v59  ;;  %v2392_v59 = vld [vmem:[%s3364_s1 + $0x4c4] ss:$8 sps:$4 sm:$0xff]  }
  0x3b   :  { %1525 = vmatpush1.bf16.msra.mxu1 %v2301_v60  ;;  %v2387_v60 = vld [vmem:[%s3364_s1 + $0x1c0] ss:$8 sps:$4 sm:$0xff]  }
  0x3c   :  { %1684 = vmatpush1.bf16.msra.mxu0 %v2302_v61  ;;  %1526 = vmatprep.subr.bf16.mxu1 %v2303_v62  ;;  %v2390_v61 = vld [vmem:[%s3364_s1 + $0x4c0] ss:$8 sps:$4 sm:$0xff]   ;;  %v2395_v62 = vld [vmem:[%s3364_s1 + $0x1d4] ss:$8 sps:$4 sm:$0xff]  }
  0x3d   :  { %1685 = vmatprep.subr.bf16.mxu0 %v2305_v63  ;;  %v2398_v63 = vld [vmem:[%s3364_s1 + $0x4d4] ss:$8 sps:$4 sm:$0xff]  }
  0x3f   :  { %1527 = vmatpush1.bf16.msra.mxu1 %v2307_v0  ;;  %v2393_v0 = vld [vmem:[%s3364_s1 + $0x1d0] ss:$8 sps:$4 sm:$0xff]  }
  0x40   :  { %1686 = vmatpush1.bf16.msra.mxu0 %v2308_v1  ;;  %1549 = vmatprep.subr.bf16.mxu1 %v2314_v2  ;;  %v2396_v1 = vld [vmem:[%s3364_s1 + $0x4d0] ss:$8 sps:$4 sm:$0xff]   ;;  %v2403_v2 = vld [vmem:[%s3364_s1 + $0x1e4] ss:$8 sps:$4 sm:$0xff]  }
  0x41   :  { %1708 = vmatprep.subr.bf16.mxu0 %v2320_v3  ;;  %v2408_v3 = vld [vmem:[%s3364_s1 + $0x4e4] ss:$8 sps:$4 sm:$0xff]  }
  0x42   :  { %1529 = vmatmul.mubr.bf16.vlgmr.msra.gmra.mrb[0].mxu1 %v2309_v4  ;;  %v2401_v4 = vld [vmem:[%s3364_s1 + $0x1e0] ss:$8 sps:$4 sm:$0xff]  }
  0x43   :  { %1688 = vmatmul.mubr.bf16.vlgmr.msra.gmra.mrb[0].mxu0 %v2315_v6  ;;  %1550 = vmatpush1.bf16.msra.mxu1 %v2312_v5  ;;  %v2406_v5 = vld [vmem:[%s3364_s1 + $0x4e0] ss:$8 sps:$4 sm:$0xff]   ;;  %v2413_v6 = vld [vmem:[%s3364_s1 + $0x1f4] ss:$8 sps:$4 sm:$0xff]  }
  0x44   :  { %1709 = vmatpush1.bf16.msra.mxu0 %v2318_v7  ;;  %1551 = vmatprep.subr.bf16.mxu1 %v2323_v8  ;;  %v2416_v7 = vld [vmem:[%s3364_s1 + $0x4f4] ss:$8 sps:$4 sm:$0xff]   ;;  %v2411_v8 = vld [vmem:[%s3364_s1 + $0x1f0] ss:$8 sps:$4 sm:$0xff]  }
  0x45   :  { %1710 = vmatprep.subr.bf16.mxu0 %v2326_v9  ;;  %1538 = vmatprep.mubr.bf16.mxu1 %v2399_v28  ;;  %v2414_v9 = vld [vmem:[%s3364_s1 + $0x4f0] ss:$8 sps:$4 sm:$0xff]   ;;  %v2443_v28 = vld [vmem:[%s3364_s1 + $0x234] ss:$8 sps:$4 sm:$0xff]  }
  0x46   :  { %1697 = vmatprep.mubr.bf16.mxu0 %v2404_v31  ;;  %v2444_v31 = vld [vmem:[%s3364_s1 + $0x530] ss:$8 sps:$4 sm:$0xff]  }
  0x47   :  { %1552 = vmatpush1.bf16.msra.mxu1 %v2321_v10  ;;  %v2422_v10 = vld [vmem:[%s3364_s1 + $0x204] ss:$8 sps:$4 sm:$0xff]  }
  0x48   :  { %1711 = vmatpush1.bf16.msra.mxu0 %v2324_v11  ;;  %1553 = vmatprep.subr.bf16.mxu1 %v2329_v12  ;;  %v2428_v11 = vld [vmem:[%s3364_s1 + $0x504] ss:$8 sps:$4 sm:$0xff]   ;;  %v2417_v12 = vld [vmem:[%s3365_s0 + $0x8] ss:$56 sps:$4 sm:$0xff]  }
  0x49   :  { %1712 = vmatprep.subr.bf16.mxu0 %v2332_v13  ;;  %v2420_v13 = vld [vmem:[%s3364_s1 + $0x200] ss:$8 sps:$4 sm:$0xff]  }
  0x4a   :  { %1539 = vmatmul.mubr.bf16.gmra.mrb[4].mxu1 %v2409_v34  ;;  %v2452_v34 = vld [vmem:[%s3364_s1 + $0x544] ss:$8 sps:$4 sm:$0xff]  }
  0x4b   :  { %1554 = vmatpush1.bf16.msra.mxu1 %v2327_v14  ;;  %1698 = vmatmul.mubr.bf16.gmra.mrb[4].mxu0 %v2410_v35  ;;  %v2423_v14 = vld [vmem:[%s3365_s0 + $0x20] ss:$56 sps:$4 sm:$0xff]   ;;  %v2530_v35 = vld [vmem:[%s3365_s0 + $0x2c] ss:$56 sps:$4 sm:$0xff]  }
  0x4c   :  { %1713 = vmatpush1.bf16.msra.mxu0 %v2330_v15  ;;  %1555 = vmatprep.subr.bf16.mxu1 %v2335_v16  ;;  %v2426_v15 = vld [vmem:[%s3364_s1 + $0x500] ss:$8 sps:$4 sm:$0xff]   ;;  %v2431_v16 = vld [vmem:[%s3364_s1 + $0x214] ss:$8 sps:$4 sm:$0xff]  }
  0x4d   :  { %1714 = vmatprep.subr.bf16.mxu0 %v2338_v17  ;;  %1581 = vmatprep.mubr.bf16.mxu1 %v2419_v40  ;;  %v2434_v17 = vld [vmem:[%s3364_s1 + $0x514] ss:$8 sps:$4 sm:$0xff]   ;;  %v2453_v40 = vld [vmem:[%s3364_s1 + $0x250] ss:$8 sps:$4 sm:$0xff]  }
  0x4e   :  { %1740 = vmatprep.mubr.bf16.mxu0 %v2425_v43  ;;  %v2464_v43 = vld [vmem:[%s3364_s1 + $0x564] ss:$8 sps:$4 sm:$0xff]  }
  0x4f   :  { %1556 = vmatpush1.bf16.msra.mxu1 %v2333_v18  ;;  %v2429_v18 = vld [vmem:[%s3364_s1 + $0x210] ss:$8 sps:$4 sm:$0xff]  }
  0x50   :  { %1715 = vmatpush1.bf16.msra.mxu0 %v2336_v19  ;;  %1557 = vmatprep.subr.bf16.mxu1 %v2341_v20  ;;  %v2432_v19 = vld [vmem:[%s3364_s1 + $0x510] ss:$8 sps:$4 sm:$0xff]   ;;  %v2507_v20 = vld [vmem:[%s3365_s0 + $0x7c] ss:$56 sps:$4 sm:$0xff]  }
  0x51   :  { %1716 = vmatprep.subr.bf16.mxu0 %v2344_v21  ;;  %v2437_v21 = vld [vmem:[%s3364_s1 + $0x224] ss:$8 sps:$4 sm:$0xff]  }
  0x53   :  { %1558 = vmatpush1.bf16.msra.mxu1 %v2339_v22  ;;  %v2509_v22 = vld [vmem:[%s3365_s0 + $0x94] ss:$56 sps:$4 sm:$0xff]  }
  0x54   :  { %1717 = vmatpush1.bf16.msra.mxu0 %v2342_v23  ;;  %1559 = vmatprep.subr.bf16.mxu1 %v2347_v24  ;;  %v2440_v23 = vld [vmem:[%s3364_s1 + $0x524] ss:$8 sps:$4 sm:$0xff]   ;;  %v2435_v24 = vld [vmem:[%s3364_s1 + $0x220] ss:$8 sps:$4 sm:$0xff]  }
  0x55   :  { %1718 = vmatprep.subr.bf16.mxu0 %v2350_v25  ;;  %v2438_v25 = vld [vmem:[%s3364_s1 + $0x520] ss:$8 sps:$4 sm:$0xff]  }
  0x57   :  { %1560 = vmatpush1.bf16.msra.mxu1 %v2345_v26  ;;  %v2511_v26 = vld [vmem:[%s3365_s0 + $0x78] ss:$56 sps:$4 sm:$0xff]  }
  0x58   :  { %1719 = vmatpush1.bf16.msra.mxu0 %v2348_v27  ;;  %1561 = vmatprep.subr.bf16.mxu1 %v2353_v29  ;;  %v2515_v27 = vld [vmem:[%s3365_s0 + $0x90] ss:$56 sps:$4 sm:$0xff]   ;;  %v2446_v29 = vld [vmem:[%s3364_s1 + $0x534] ss:$8 sps:$4 sm:$0xff]  }
  0x59   :  { %1720 = vmatprep.subr.bf16.mxu0 %v2356_v30  ;;  %v2441_v30 = vld [vmem:[%s3364_s1 + $0x230] ss:$8 sps:$4 sm:$0xff]  }
  0x5b   :  { %1562 = vmatpush1.bf16.msra.mxu1 %v2351_v32  ;;  %v2449_v32 = vld [vmem:[%s3364_s1 + $0x244] ss:$8 sps:$4 sm:$0xff]  }
  0x5c   :  { %1721 = vmatpush1.bf16.msra.mxu0 %v2354_v33  ;;  %1563 = vmatprep.subr.bf16.mxu1 %v2359_v36  ;;  %v2527_v33 = vld [vmem:[%s3365_s0 + $0x14] ss:$56 sps:$4 sm:$0xff]   ;;  %v2447_v36 = vld [vmem:[%s3364_s1 + $0x240] ss:$8 sps:$4 sm:$0xff]  }
  0x5d   :  { %1722 = vmatprep.subr.bf16.mxu0 %v2362_v37  ;;  %v2450_v37 = vld [vmem:[%s3364_s1 + $0x540] ss:$8 sps:$4 sm:$0xff]  }
  0x5f   :  { %1564 = vmatpush1.bf16.msra.mxu1 %v2357_v38  ;;  %v2455_v38 = vld [vmem:[%s3364_s1 + $0x254] ss:$8 sps:$4 sm:$0xff]  }
  0x60   :  { %1723 = vmatpush1.bf16.msra.mxu0 %v2360_v39  ;;  %1565 = vmatprep.subr.bf16.mxu1 %v2365_v41  ;;  %v2458_v39 = vld [vmem:[%s3364_s1 + $0x554] ss:$8 sps:$4 sm:$0xff]   ;;  %v2456_v41 = vld [vmem:[%s3364_s1 + $0x550] ss:$8 sps:$4 sm:$0xff]  }
  0x61   :  { %1724 = vmatprep.subr.bf16.mxu0 %v2368_v42  ;;  %v2461_v42 = vld [vmem:[%s3364_s1 + $0x264] ss:$8 sps:$4 sm:$0xff]  }
  0x63   :  { %1566 = vmatpush1.bf16.msra.mxu1 %v2363_v44  ;;  %v2459_v44 = vld [vmem:[%s3364_s1 + $0x260] ss:$8 sps:$4 sm:$0xff]  }
  0x64   :  { %1725 = vmatpush1.bf16.msra.mxu0 %v2366_v45  ;;  %1567 = vmatprep.subr.bf16.mxu1 %v2371_v46  ;;  %v2462_v45 = vld [vmem:[%s3364_s1 + $0x560] ss:$8 sps:$4 sm:$0xff]   ;;  %v2467_v46 = vld [vmem:[%s3364_s1 + $0x274] ss:$8 sps:$4 sm:$0xff]  }
  0x65   :  { %1726 = vmatprep.subr.bf16.mxu0 %v2374_v47  ;;  %v2470_v47 = vld [vmem:[%s3364_s1 + $0x574] ss:$8 sps:$4 sm:$0xff]  }
  0x67   :  { %1568 = vmatpush1.bf16.msra.mxu1 %v2369_v48  ;;  %v2465_v48 = vld [vmem:[%s3364_s1 + $0x270] ss:$8 sps:$4 sm:$0xff]  }
  0x68   :  { %1727 = vmatpush1.bf16.msra.mxu0 %v2372_v49  ;;  %1569 = vmatprep.subr.bf16.mxu1 %v2377_v50  ;;  %v2468_v49 = vld [vmem:[%s3364_s1 + $0x570] ss:$8 sps:$4 sm:$0xff]   ;;  %v2473_v50 = vld [vmem:[%s3364_s1 + $0x284] ss:$8 sps:$4 sm:$0xff]  }
  0x69   :  { %1728 = vmatprep.subr.bf16.mxu0 %v2380_v51  ;;  %v2476_v51 = vld [vmem:[%s3364_s1 + $0x584] ss:$8 sps:$4 sm:$0xff]  }
  0x6b   :  { %1570 = vmatpush1.bf16.msra.mxu1 %v2375_v52  ;;  %v2471_v52 = vld [vmem:[%s3364_s1 + $0x280] ss:$8 sps:$4 sm:$0xff]  }
  0x6c   :  { %1729 = vmatpush1.bf16.msra.mxu0 %v2378_v53  ;;  %1571 = vmatprep.subr.bf16.mxu1 %v2383_v54  ;;  %v2474_v53 = vld [vmem:[%s3364_s1 + $0x580] ss:$8 sps:$4 sm:$0xff]   ;;  %v2479_v54 = vld [vmem:[%s3364_s1 + $0x294] ss:$8 sps:$4 sm:$0xff]  }
  0x6d   :  { %1730 = vmatprep.subr.bf16.mxu0 %v2386_v55  ;;  %v2482_v55 = vld [vmem:[%s3364_s1 + $0x594] ss:$8 sps:$4 sm:$0xff]  }
  0x6f   :  { %1572 = vmatpush1.bf16.msra.mxu1 %v2381_v56  ;;  %v2477_v56 = vld [vmem:[%s3364_s1 + $0x290] ss:$8 sps:$4 sm:$0xff]  }
  0x70   :  { %1731 = vmatpush1.bf16.msra.mxu0 %v2384_v57  ;;  %1573 = vmatprep.subr.bf16.mxu1 %v2389_v58  ;;  %v2480_v57 = vld [vmem:[%s3364_s1 + $0x590] ss:$8 sps:$4 sm:$0xff]   ;;  %v2485_v58 = vld [vmem:[%s3364_s1 + $0x2a4] ss:$8 sps:$4 sm:$0xff]  }
  0x71   :  { %1732 = vmatprep.subr.bf16.mxu0 %v2392_v59  ;;  %v2488_v59 = vld [vmem:[%s3364_s1 + $0x5a4] ss:$8 sps:$4 sm:$0xff]  }
  0x73   :  { %1574 = vmatpush1.bf16.msra.mxu1 %v2387_v60  ;;  %v2483_v60 = vld [vmem:[%s3364_s1 + $0x2a0] ss:$8 sps:$4 sm:$0xff]  }
  0x74   :  { %1733 = vmatpush1.bf16.msra.mxu0 %v2390_v61  ;;  %1575 = vmatprep.subr.bf16.mxu1 %v2395_v62  ;;  %v2486_v61 = vld [vmem:[%s3364_s1 + $0x5a0] ss:$8 sps:$4 sm:$0xff]   ;;  %v2491_v62 = vld [vmem:[%s3364_s1 + $0x2b4] ss:$8 sps:$4 sm:$0xff]  }
  0x75   :  { %1734 = vmatprep.subr.bf16.mxu0 %v2398_v63  ;;  %v2494_v63 = vld [vmem:[%s3364_s1 + $0x5b4] ss:$8 sps:$4 sm:$0xff]  }
  0x77   :  { %1576 = vmatpush1.bf16.msra.mxu1 %v2393_v0  ;;  %v2489_v0 = vld [vmem:[%s3364_s1 + $0x2b0] ss:$8 sps:$4 sm:$0xff]  }
  0x78   :  { %1735 = vmatpush1.bf16.msra.mxu0 %v2396_v1  ;;  %1577 = vmatprep.subr.bf16.mxu1 %v2403_v2  ;;  %v2492_v1 = vld [vmem:[%s3364_s1 + $0x5b0] ss:$8 sps:$4 sm:$0xff]   ;;  %v2497_v2 = vld [vmem:[%s3364_s1 + $0x2c4] ss:$8 sps:$4 sm:$0xff]  }
  0x79   :  { %1736 = vmatprep.subr.bf16.mxu0 %v2408_v3  ;;  %v2500_v3 = vld [vmem:[%s3364_s1 + $0x5c4] ss:$8 sps:$4 sm:$0xff]  }
  0x7b   :  { %1578 = vmatpush1.bf16.msra.mxu1 %v2401_v4  ;;  %v2495_v4 = vld [vmem:[%s3364_s1 + $0x2c0] ss:$8 sps:$4 sm:$0xff]  }
  0x7c   :  { %1737 = vmatpush1.bf16.msra.mxu0 %v2406_v5  ;;  %1579 = vmatprep.subr.bf16.mxu1 %v2413_v6  ;;  %v2498_v5 = vld [vmem:[%s3364_s1 + $0x5c0] ss:$8 sps:$4 sm:$0xff]   ;;  %v2503_v6 = vld [vmem:[%s3364_s1 + $0x2d4] ss:$8 sps:$4 sm:$0xff]  }
  0x7d   :  { %1738 = vmatprep.subr.bf16.mxu0 %v2416_v7  ;;  %v2506_v7 = vld [vmem:[%s3364_s1 + $0x5d4] ss:$8 sps:$4 sm:$0xff]  }
  0x7f   :  { %1580 = vmatpush1.bf16.msra.mxu1 %v2411_v8  ;;  %v2501_v8 = vld [vmem:[%s3364_s1 + $0x2d0] ss:$8 sps:$4 sm:$0xff]  }
  0x80   :  { %1739 = vmatpush1.bf16.msra.mxu0 %v2414_v9  ;;  %1602 = vmatprep.subr.bf16.mxu1 %v2422_v10  ;;  %v2504_v9 = vld [vmem:[%s3364_s1 + $0x5d0] ss:$8 sps:$4 sm:$0xff]   ;;  %v2514_v10 = vld [vmem:[%s3364_s1 + $0x2e4] ss:$8 sps:$4 sm:$0xff]  }
  0x81   :  { %1761 = vmatprep.subr.bf16.mxu0 %v2428_v11  ;;  %v2518_v11 = vld [vmem:[%s3364_s1 + $0x5e4] ss:$8 sps:$4 sm:$0xff]  }
  0x82   :  { %1582 = vmatmul.mubr.bf16.vlgmr.msra.gmra.mrb[0].mxu1 %v2417_v12  ;;  %v2512_v12 = vld [vmem:[%s3364_s1 + $0x2e0] ss:$8 sps:$4 sm:$0xff]  }
  0x83   :  { %1741 = vmatmul.mubr.bf16.vlgmr.msra.gmra.mrb[0].mxu0 %v2423_v14  ;;  %1603 = vmatpush1.bf16.msra.mxu1 %v2420_v13  ;;  %v2516_v13 = vld [vmem:[%s3364_s1 + $0x5e0] ss:$8 sps:$4 sm:$0xff]   ;;  %v2521_v14 = vld [vmem:[%s3364_s1 + $0x2f4] ss:$8 sps:$4 sm:$0xff]  }
  0x84   :  { %1762 = vmatpush1.bf16.msra.mxu0 %v2426_v15  ;;  %1604 = vmatprep.subr.bf16.mxu1 %v2431_v16  ;;  %v2524_v15 = vld [vmem:[%s3364_s1 + $0x5f4] ss:$8 sps:$4 sm:$0xff]   ;;  %v2519_v16 = vld [vmem:[%s3364_s1 + $0x2f0] ss:$8 sps:$4 sm:$0xff]  }
  0x85   :  { %1763 = vmatprep.subr.bf16.mxu0 %v2434_v17  ;;  %1591 = vmatprep.mubr.bf16.mxu1 %v2507_v20  ;;  %v2522_v17 = vld [vmem:[%s3364_s1 + $0x5f0] ss:$8 sps:$4 sm:$0xff]   ;;  %v2528_v20 = vld [vmem:[%s3365_s0 + $0x28] ss:$56 sps:$4 sm:$0xff]  }
  0x86   :  { %1750 = vmatprep.mubr.bf16.mxu0 %v2509_v22  ;;  %v2536_v22 = vld [vmem:[%s3364_s1 + $0x614] ss:$8 sps:$4 sm:$0xff]  }
  0x87   :  { %1605 = vmatpush1.bf16.msra.mxu1 %v2429_v18  ;;  %v2533_v18 = vld [vmem:[%s3364_s1 + $0x604] ss:$8 sps:$4 sm:$0xff]  }
  0x88   :  { %1764 = vmatpush1.bf16.msra.mxu0 %v2432_v19  ;;  %1606 = vmatprep.subr.bf16.mxu1 %v2437_v21  ;;  %v2525_v19 = vld [vmem:[%s3365_s0 + $0x10] ss:$56 sps:$4 sm:$0xff]  }
  0x89   :  { %1765 = vmatprep.subr.bf16.mxu0 %v2440_v23  ;;  %v2531_v21 = vld [vmem:[%s3364_s1 + $0x600] ss:$8 sps:$4 sm:$0xff]   ;;  %v2537_v23 = vld [vmem:[%s3365_s0 + $0x84] ss:$56 sps:$4 sm:$0xff]  }
  0x8a   :  { %1592 = vmatmul.mubr.bf16.gmra.mrb[4].mxu1 %v2511_v26  ;;  %v2545_v26 = vld [vmem:[%s3364_s1 + $0x624] ss:$8 sps:$4 sm:$0xff]  }
  0x8b   :  { %1751 = vmatmul.mubr.bf16.gmra.mrb[4].mxu0 %v2515_v27  ;;  %1607 = vmatpush1.bf16.msra.mxu1 %v2435_v24  ;;  %v2539_v24 = vld [vmem:[%s3365_s0 + $0x9c] ss:$56 sps:$4 sm:$0xff]   ;;  %v2541_v27 = vld [vmem:[%s3365_s0 + $0x80] ss:$56 sps:$4 sm:$0xff]  }
  0x8c   :  { %1766 = vmatpush1.bf16.msra.mxu0 %v2438_v25  ;;  %1608 = vmatprep.subr.bf16.mxu1 %v2443_v28  ;;  %v2534_v25 = vld [vmem:[%s3364_s1 + $0x610] ss:$8 sps:$4 sm:$0xff]  }
  0x8d   :  { %1767 = vmatprep.subr.bf16.mxu0 %v2446_v29  ;;  %1634 = vmatprep.mubr.bf16.mxu1 %v2527_v33  ;;  %v2542_v28 = vld [vmem:[%s3365_s0 + $0x98] ss:$56 sps:$4 sm:$0xff]   ;;  %v2543_v29 = vld [vmem:[%s3364_s1 + $0x620] ss:$8 sps:$4 sm:$0xff]  }
  0x8e   :  { %1793 = vmatprep.mubr.bf16.mxu0 %v2530_v35  ;;  %v2546_v33 = vld [vmem:[%s3364_s1 + $0x630] ss:$8 sps:$4 sm:$0xff]   ;;  %v2549_v35 = vld [vmem:[%s3364_s1 + $0x640] ss:$8 sps:$4 sm:$0xff]  }
  0x8f   :  { %1609 = vmatpush1.bf16.msra.mxu1 %v2441_v30  ;;  %v2548_v30 = vld [vmem:[%s3364_s1 + $0x634] ss:$8 sps:$4 sm:$0xff]  }
  0x90   :  { %1768 = vmatpush1.bf16.msra.mxu0 %v2444_v31  ;;  %1610 = vmatprep.subr.bf16.mxu1 %v2449_v32  ;;  %v2575_v31 = vld [vmem:[%s3365_s0 + $0x34] ss:$56 sps:$4 sm:$0xff]   ;;  %v2578_v32 = vld [vmem:[%s3365_s0 + $0xa4] ss:$56 sps:$4 sm:$0xff]  }
  0x91   :  { %1769 = vmatprep.subr.bf16.mxu0 %v2452_v34  ;;  %v2551_v34 = vld [vmem:[%s3364_s1 + $0x644] ss:$8 sps:$4 sm:$0xff]  }
  0x93   :  { %1611 = vmatpush1.bf16.msra.mxu1 %v2447_v36  ;;  %v2554_v36 = vld [vmem:[%s3364_s1 + $0x654] ss:$8 sps:$4 sm:$0xff]  }
  0x94   :  { %1770 = vmatpush1.bf16.msra.mxu0 %v2450_v37  ;;  %1612 = vmatprep.subr.bf16.mxu1 %v2455_v38  ;;  %v2552_v37 = vld [vmem:[%s3364_s1 + $0x650] ss:$8 sps:$4 sm:$0xff]   ;;  %v2557_v38 = vld [vmem:[%s3364_s1 + $0x664] ss:$8 sps:$4 sm:$0xff]  }
  0x95   :  { %1771 = vmatprep.subr.bf16.mxu0 %v2458_v39  ;;  %v2555_v39 = vld [vmem:[%s3364_s1 + $0x660] ss:$8 sps:$4 sm:$0xff]  }
  0x97   :  { %1613 = vmatpush1.bf16.msra.mxu1 %v2453_v40  ;;  %v2560_v40 = vld [vmem:[%s3364_s1 + $0x674] ss:$8 sps:$4 sm:$0xff]  }
  0x98   :  { %1772 = vmatpush1.bf16.msra.mxu0 %v2456_v41  ;;  %1614 = vmatprep.subr.bf16.mxu1 %v2461_v42  ;;  %v2558_v41 = vld [vmem:[%s3364_s1 + $0x670] ss:$8 sps:$4 sm:$0xff]   ;;  %v2563_v42 = vld [vmem:[%s3364_s1 + $0x684] ss:$8 sps:$4 sm:$0xff]  }
  0x99   :  { %1773 = vmatprep.subr.bf16.mxu0 %v2464_v43  ;;  %v2561_v43 = vld [vmem:[%s3364_s1 + $0x680] ss:$8 sps:$4 sm:$0xff]  }
  0x9b   :  { %1615 = vmatpush1.bf16.msra.mxu1 %v2459_v44  ;;  %v2566_v44 = vld [vmem:[%s3364_s1 + $0x694] ss:$8 sps:$4 sm:$0xff]  }
  0x9c   :  { %1774 = vmatpush1.bf16.msra.mxu0 %v2462_v45  ;;  %1616 = vmatprep.subr.bf16.mxu1 %v2467_v46  ;;  %v2564_v45 = vld [vmem:[%s3364_s1 + $0x690] ss:$8 sps:$4 sm:$0xff]   ;;  %v2569_v46 = vld [vmem:[%s3364_s1 + $0x6a4] ss:$8 sps:$4 sm:$0xff]  }
  0x9d   :  { %1775 = vmatprep.subr.bf16.mxu0 %v2470_v47  ;;  %v2567_v47 = vld [vmem:[%s3364_s1 + $0x6a0] ss:$8 sps:$4 sm:$0xff]  }
  0x9f   :  { %1617 = vmatpush1.bf16.msra.mxu1 %v2465_v48  ;;  %v2572_v48 = vld [vmem:[%s3364_s1 + $0x6b4] ss:$8 sps:$4 sm:$0xff]  }
  0xa0   :  { %1776 = vmatpush1.bf16.msra.mxu0 %v2468_v49  ;;  %1618 = vmatprep.subr.bf16.mxu1 %v2473_v50  ;;  %v2570_v49 = vld [vmem:[%s3364_s1 + $0x6b0] ss:$8 sps:$4 sm:$0xff]  }
  0xa1   :  { %1777 = vmatprep.subr.bf16.mxu0 %v2476_v51  ;;  %v2573_v50 = vld [vmem:[%s3365_s0 + $0x30] ss:$56 sps:$4 sm:$0xff]   ;;  %v2576_v51 = vld [vmem:[%s3365_s0 + $0xa0] ss:$56 sps:$4 sm:$0xff]  }
  0xa3   :  { %1619 = vmatpush1.bf16.msra.mxu1 %v2471_v52  ;;  %v261_v52 = vlaneseq }
  0xa4   :  { %1778 = vmatpush1.bf16.msra.mxu0 %v2474_v53  ;;  %1620 = vmatprep.subr.bf16.mxu1 %v2479_v54 }
  0xa5   :  { %1779 = vmatprep.subr.bf16.mxu0 %v2482_v55  ;;  %v262_v53 = vshrl.u32 %v261_v52, 7 }
  0xa7   :  { %1621 = vmatpush1.bf16.msra.mxu1 %v2477_v56 }
  0xa8   :  { %1780 = vmatpush1.bf16.msra.mxu0 %v2480_v57  ;;  %1622 = vmatprep.subr.bf16.mxu1 %v2485_v58  ;;  %v263_v57 = vsub.s32 0, %v262_v53 }
  0xa9   :  { %1781 = vmatprep.subr.bf16.mxu0 %v2488_v59  ;;  %v259_v59 = vld [vmem:[%s3366_s2] sm:$0x3] }
  0xab   :  { %1623 = vmatpush1.bf16.msra.mxu1 %v2483_v60  ;;  %v267_v60 = vsub.s32 1, %v262_v53 }
  0xac   :  { %1782 = vmatpush1.bf16.msra.mxu0 %v2486_v61  ;;  %1624 = vmatprep.subr.bf16.mxu1 %v2491_v62  ;;  %v264_v61 = vrot.slane %v259_v59, %v263_v57 }
  0xad   :  { %1783 = vmatprep.subr.bf16.mxu0 %v2494_v63  ;;  %v268_v62 = vrot.slane %v259_v59, %v267_v60 }
  0xaf   :  { %1625 = vmatpush1.bf16.msra.mxu1 %v2489_v0 }
  0xb0   :  { %1784 = vmatpush1.bf16.msra.mxu0 %v2492_v1  ;;  %1626 = vmatprep.subr.bf16.mxu1 %v2497_v2 }
  0xb1   :  { %1785 = vmatprep.subr.bf16.mxu0 %v2500_v3 }
  0xb3   :  { %1627 = vmatpush1.bf16.msra.mxu1 %v2495_v4 }
  0xb4   :  { %1786 = vmatpush1.bf16.msra.mxu0 %v2498_v5  ;;  %1628 = vmatprep.subr.bf16.mxu1 %v2503_v6 }
  0xb5   :  { %1787 = vmatprep.subr.bf16.mxu0 %v2506_v7 }
  0xb7   :  { %1629 = vmatpush1.bf16.msra.mxu1 %v2501_v8 }
  0xb8   :  { %1788 = vmatpush1.bf16.msra.mxu0 %v2504_v9  ;;  %1630 = vmatprep.subr.bf16.mxu1 %v2514_v10 }
  0xb9   :  { %1789 = vmatprep.subr.bf16.mxu0 %v2518_v11 }
  0xbb   :  { %1631 = vmatpush1.bf16.msra.mxu1 %v2512_v12 }
  0xbc   :  { %1790 = vmatpush1.bf16.msra.mxu0 %v2516_v13  ;;  %1632 = vmatprep.subr.bf16.mxu1 %v2521_v14 }
  0xbd   :  { %1791 = vmatprep.subr.bf16.mxu0 %v2524_v15 }
  0xbf   :  { %1633 = vmatpush1.bf16.msra.mxu1 %v2519_v16 }
  0xc0   :  { %1792 = vmatpush1.bf16.msra.mxu0 %v2522_v17  ;;  %2133 = vmatprep.subr.bf16.mxu1 %v2533_v18 }
  0xc1   :  { %1814 = vmatprep.subr.bf16.mxu0 %v2533_v18 }
  0xc2   :  { %1635 = vmatmul.mubr.bf16.vlgmr.msra.gmra.mrb[0].mxu1 %v2525_v19 }
  0xc3   :  { %1794 = vmatmul.mubr.bf16.vlgmr.msra.gmra.mrb[0].mxu0 %v2528_v20  ;;  %2145 = vmatpush1.bf16.msra.mxu1 %v2531_v21 }
  0xc4   :  { %1815 = vmatpush1.bf16.msra.mxu0 %v2531_v21  ;;  %2134 = vmatprep.subr.bf16.mxu1 %v2536_v22 }
  0xc5   :  { %1816 = vmatprep.subr.bf16.mxu0 %v2536_v22  ;;  %1644 = vmatprep.mubr.bf16.mxu1 %v2537_v23 }
  0xc6   :  { %1803 = vmatprep.mubr.bf16.mxu0 %v2539_v24 }
  0xc7   :  { %2146 = vmatpush1.bf16.msra.mxu1 %v2534_v25 }
  0xc8   :  { %1817 = vmatpush1.bf16.msra.mxu0 %v2534_v25  ;;  %2135 = vmatprep.subr.bf16.mxu1 %v2545_v26 }
  0xc9   :  { %1818 = vmatprep.subr.bf16.mxu0 %v2545_v26 }
  0xca   :  { %1645 = vmatmul.mubr.bf16.gmra.mrb[4].mxu1 %v2541_v27 }
  0xcb   :  { %1804 = vmatmul.mubr.bf16.gmra.mrb[4].mxu0 %v2542_v28  ;;  %2147 = vmatpush1.bf16.msra.mxu1 %v2543_v29 }
  0xcc   :  { %1819 = vmatpush1.bf16.msra.mxu0 %v2543_v29  ;;  %2136 = vmatprep.subr.bf16.mxu1 %v2548_v30 }
  0xcd   :  { %1820 = vmatprep.subr.bf16.mxu0 %v2548_v30  ;;  %2131 = vmatprep.mubr.msk.bf16.mxu0 %vm1489_vm0, %v2575_v31 }
  0xce   :  { %2132 = vmatprep.mubr.msk.bf16.mxu1 %vm1489_vm0, %v2578_v32 }
  0xcf   :  { %2148 = vmatpush1.bf16.msra.mxu1 %v2546_v33 }
  0xd0   :  { %1821 = vmatpush1.bf16.msra.mxu0 %v2546_v33  ;;  %2137 = vmatprep.subr.bf16.mxu1 %v2551_v34 }
  0xd1   :  { %1822 = vmatprep.subr.bf16.mxu0 %v2551_v34 }
  0xd3   :  { %2149 = vmatpush1.bf16.msra.mxu1 %v2549_v35 }
  0xd4   :  { %1823 = vmatpush1.bf16.msra.mxu0 %v2549_v35  ;;  %2138 = vmatprep.subr.bf16.mxu1 %v2554_v36 }
  0xd5   :  { %1824 = vmatprep.subr.bf16.mxu0 %v2554_v36 }
  0xd7   :  { %2150 = vmatpush1.bf16.msra.mxu1 %v2552_v37 }
  0xd8   :  { %1825 = vmatpush1.bf16.msra.mxu0 %v2552_v37  ;;  %2139 = vmatprep.subr.bf16.mxu1 %v2557_v38 }
  0xd9   :  { %1826 = vmatprep.subr.bf16.mxu0 %v2557_v38 }
  0xdb   :  { %2151 = vmatpush1.bf16.msra.mxu1 %v2555_v39 }
  0xdc   :  { %1827 = vmatpush1.bf16.msra.mxu0 %v2555_v39  ;;  %2140 = vmatprep.subr.bf16.mxu1 %v2560_v40 }
  0xdd   :  { %1828 = vmatprep.subr.bf16.mxu0 %v2560_v40 }
  0xdf   :  { %2152 = vmatpush1.bf16.msra.mxu1 %v2558_v41 }
  0xe0   :  { %1829 = vmatpush1.bf16.msra.mxu0 %v2558_v41  ;;  %2141 = vmatprep.subr.bf16.mxu1 %v2563_v42 }
  0xe1   :  { %1830 = vmatprep.subr.bf16.mxu0 %v2563_v42 }
  0xe3   :  { %2153 = vmatpush1.bf16.msra.mxu1 %v2561_v43 }
  0xe4   :  { %1831 = vmatpush1.bf16.msra.mxu0 %v2561_v43  ;;  %2142 = vmatprep.subr.bf16.mxu1 %v2566_v44 }
  0xe5   :  { %1832 = vmatprep.subr.bf16.mxu0 %v2566_v44 }
  0xe7   :  { %2154 = vmatpush1.bf16.msra.mxu1 %v2564_v45 }
  0xe8   :  { %1833 = vmatpush1.bf16.msra.mxu0 %v2564_v45  ;;  %2143 = vmatprep.subr.bf16.mxu1 %v2569_v46 }
  0xe9   :  { %1834 = vmatprep.subr.bf16.mxu0 %v2569_v46 }
  0xeb   :  { %2155 = vmatpush1.bf16.msra.mxu1 %v2567_v47 }
  0xec   :  { %1835 = vmatpush1.bf16.msra.mxu0 %v2567_v47  ;;  %2144 = vmatprep.subr.bf16.mxu1 %v2572_v48 }
  0xed   :  { %1836 = vmatprep.subr.bf16.mxu0 %v2572_v48 }
  0xef   :  { %2156 = vmatpush1.bf16.msra.mxu1 %v2570_v49 }
  0xf0   :  { %1837 = vmatpush1.bf16.msra.mxu0 %v2570_v49 }
  0xf2   :  { %1857 = vmatmul.mubr.bf16.vlgmr.msra.gmra.mrb[8].mxu1 %v2576_v51 }
  0xf3   :  { %1847 = vmatmul.mubr.bf16.vlgmr.msra.gmra.mrb[0].mxu0 %v2573_v50 }
 0x195   :  { %v1636_v54 = vpop.f32.mrb[0].mxu1 }
 0x196   :  { %v1638_v55 = vpop.f32.mrb[1].mxu1  ;;  %v2157_v15 = vadd.f32 %v1636_v54, %v264_v61 }
 0x197   :  { %v1640_v56 = vpop.f32.mrb[2].mxu1  ;;  %v2159_v16 = vadd.f32 %v1638_v55, %v268_v62 }
 0x198   :  { %v1642_v58 = vpop.f32.mrb[3].mxu1  ;;  %v2161_v19 = vadd.f32 %v1640_v56, %v264_v61 }
 0x199   :  { %v2163_v24 = vadd.f32 %v1642_v58, %v268_v62 }
 0x19d   :  { %v1646_v63 = vpop.f32.mrb[4].mxu1 }
 0x19e   :  { %v1805_v0 = vpop.f32.mrb[4].mxu0  ;;  %v2165_v1 = vadd.f32 %v1646_v63, %v264_v61  ;;  %v1648_v2 = vpop.f32.mrb[5].mxu1 }
 0x19f   :  { %v1807_v3 = vpop.f32.mrb[5].mxu0  ;;  %v2168_v4 = vadd.f32 %v1648_v2, %v268_v62  ;;  %v1650_v5 = vpop.f32.mrb[6].mxu1 }
 0x1a0   :  { %v1809_v6 = vpop.f32.mrb[6].mxu0  ;;  %v2166_v7 = vadd.f32 %v2165_v1, %v1805_v0  ;;  %v2171_v8 = vadd.f32 %v1650_v5, %v264_v61  ;;  %v1652_v9 = vpop.f32.mrb[7].mxu1 }
 0x1a1   :  { %v1811_v10 = vpop.f32.mrb[7].mxu0  ;;  %v2169_v11 = vadd.f32 %v2168_v4, %v1807_v3  ;;  %v2174_v12 = vadd.f32 %v1652_v9, %v268_v62 }
 0x1a2   :  { %v2172_v13 = vadd.f32 %v2171_v8, %v1809_v6 }
 0x1a3   :  { %v2175_v14 = vadd.f32 %v2174_v12, %v1811_v10 }
 0x1c5   :  { %v1858_v18 = vpop.f32.mrb[8].mxu1 }
 0x1c6   :  { %v1848_v17 = vpop.f32.mrb[0].mxu0  ;;  %v2167_v21 = vadd.f32 %v2166_v7, %v1858_v18  ;;  %v1860_v23 = vpop.f32.mrb[9].mxu1 }
 0x1c7   :  { %v2158_v20 = vadd.f32 %v2157_v15, %v1848_v17  ;;  %v1850_v22 = vpop.f32.mrb[1].mxu0  ;;  %v2170_v26 = vadd.f32 %v2169_v11, %v1860_v23  ;;  %v1862_v28 = vpop.f32.mrb[10].mxu1 }
 0x1c8   :  { %v2160_v25 = vadd.f32 %v2159_v16, %v1850_v22  ;;  %v1852_v27 = vpop.f32.mrb[2].mxu0  ;;  %v1871_v30 = vmax.f32 %v2167_v21, 0.0  ;;  %v2173_v32 = vadd.f32 %v2172_v13, %v1862_v28  ;;  %v1864_v34 = vpop.f32.mrb[11].mxu1 }
 0x1c9   :  { %v1867_v29 = vmax.f32 %v2158_v20, 0.0  ;;  %v2162_v31 = vadd.f32 %v2161_v19, %v1852_v27  ;;  %v1854_v33 = vpop.f32.mrb[3].mxu0  ;;  %v1872_v36 = vmax.f32 %v2170_v26, 0.0  ;;  %v2176_v38 = vadd.f32 %v2175_v14, %v1864_v34 }
 0x1ca   :  { %v1868_v35 = vmax.f32 %v2160_v25, 0.0  ;;  %v2164_v37 = vadd.f32 %v2163_v24, %v1854_v33  ;;  %1879 = vst [vmem:[%s3367_s3 + $0x20] sm:$0xff] %v1871_v30  ;;  %v1873_v40 = vmax.f32 %v2173_v32, 0.0 }
 0x1cb   :  { %1875 = vst [vmem:[%s3367_s3] sm:$0xff] %v1867_v29  ;;  %v1869_v39 = vmax.f32 %v2162_v31, 0.0  ;;  %1880 = vst.msk [vmem:[%s3367_s3 + $0x28] sm:$0xff] %vm1489_vm0, %v1872_v36  ;;  %v1874_v42 = vmax.f32 %v2176_v38, 0.0 }
 0x1cc   :  { %1876 = vst.msk [vmem:[%s3367_s3 + $0x8] sm:$0xff] %vm1489_vm0, %v1868_v35  ;;  %v1870_v41 = vmax.f32 %v2164_v37, 0.0  ;;  %1881 = vst [vmem:[%s3367_s3 + $0x30] sm:$0xff] %v1873_v40 }
 0x1cd   :  { %1877 = vst [vmem:[%s3367_s3 + $0x10] sm:$0xff] %v1869_v39  ;;  %1882 = vst.msk [vmem:[%s3367_s3 + $0x38] sm:$0xff] %vm1489_vm0, %v1874_v42 }
 0x1ce   :  { %1878 = vst.msk [vmem:[%s3367_s3 + $0x18] sm:$0xff] %vm1489_vm0, %v1870_v41 }

// kernel: inception_d_forward.11
= control target key start
LH: loop header
LB: loop body
LE: loop exit
PB: predicated region body
PF: predicated region fallthrough
CT: control target
= control target key end

     0   :  { %s340_s6 = smov 0   ;;  %s397_s0 = inlined_call_operand.vmem [shape: f32[2,9,9,16], index: 0, kind: input, shape index: {}]   ;;  %s398_s1 = inlined_call_operand.vmem [shape: f32[2,4,4,16], index: 1, kind: output, shape index: {}]  }
   0x1 LB: > { %s302_s7 = sadd.s32 4294967295, %s328_s6   ;;  %p306_p0 = scmp.ge.s32.totalorder %s328_s6, 1  ;;  %s328_s6 = sphi %s340_s6, %s11_s6  }
   0x2   : > { %p87_p1 = scmp.lt.s32.totalorder %s328_s6, 3 }
   0x4   : > { %p88_p2 = pnand %p306_p0, %p87_p1 }
   0x5   : > { %p107_p3 = scmp.lt.s32.totalorder (!%p88_p2), %s302_s7, 1  ;;  %vm227_vm0 = vcmask (!%p88_p2), 1040384   ;;  %vm232_vm1 = vcmask (!%p88_p2), 1041408   ;;  %vm237_vm2 = vcmask (!%p88_p2), 1042432   ;;  %vm242_vm3 = vcmask (!%p88_p2), 125952  }
   0x6   : > { %91 = sbr.rel (%p88_p2) target bundleno = 42 (0x2a), region = 24 }
   0xd   : > { %s400_s7 = smov (!%p107_p3, %s302_s7), 1 }
   0xe   : > { %s313_s8 = smul.u32 144, %s400_s7  ;;  %s312_s12 = sshll.u32 %s400_s7, 4 }
   0xf   : > { %s116_s15 = scalar_lea.vmem %s398_s1, %s312_s12 }
  0x10   : > { %s354_s11 = scalar_lea.vmem %s397_s0, %s313_s8 }
  0x11   : > { %v117_v0 = vld [vmem:[%s354_s11] sm:$0xff]  ;;  %v118_v1 = vld [vmem:[%s354_s11 + $0x8] sm:$0x1]  ;;  %v119_v2 = vld [vmem:[%s354_s11 + $0x10] sm:$0xff] }
  0x12   : > { %v120_v3 = vld [vmem:[%s354_s11 + $0x18] sm:$0x1]  ;;  %v121_v4 = vld [vmem:[%s354_s11 + $0x20] sm:$0xff]  ;;  %v122_v5 = vld [vmem:[%s354_s11 + $0x28] sm:$0x1]  ;;  %v135_v6 = vmax.f32 %v117_v0, %v119_v2 }
  0x13   : > { %v136_v7 = vmax.f32 %v118_v1, %v120_v3  ;;  %v123_v8 = vld [vmem:[%s354_s11 + $0x30] sm:$0xff]  ;;  %v124_v9 = vld [vmem:[%s354_s11 + $0x38] sm:$0x1]  ;;  %v125_v10 = vld [vmem:[%s354_s11 + $0x40] sm:$0xff] }
  0x14   : > { %v143_v11 = vmax.f32 %v135_v6, %v121_v4  ;;  %v126_v12 = vld [vmem:[%s354_s11 + $0x48] sm:$0x1]  ;;  %v137_v13 = vmax.f32 %v121_v4, %v123_v8  ;;  %v138_v14 = vmax.f32 %v122_v5, %v124_v9  ;;  %v127_v15 = vld [vmem:[%s354_s11 + $0x50] sm:$0xff]  ;;  %v128_v16 = vld [vmem:[%s354_s11 + $0x58] sm:$0x1] }
  0x15   : > { %v144_v17 = vmax.f32 %v136_v7, %v122_v5  ;;  %v129_v18 = vld [vmem:[%s354_s11 + $0x60] sm:$0xff]  ;;  %v139_v19 = vmax.f32 %v125_v10, %v127_v15  ;;  %v140_v20 = vmax.f32 %v126_v12, %v128_v16  ;;  %v131_v21 = vld [vmem:[%s354_s11 + $0x70] sm:$0xff]  ;;  %v130_v26 = vld [vmem:[%s354_s11 + $0x68] sm:$0x1] }
  0x16   : > { %v155_v22 = vrot.slane %v143_v11, 1  ;;  %v167_v23 = vrot.slane %v143_v11, 2  ;;  %v145_v24 = vmax.f32 %v137_v13, %v125_v10  ;;  %v146_v25 = vmax.f32 %v138_v14, %v126_v12  ;;  %v132_v27 = vld [vmem:[%s354_s11 + $0x78] sm:$0x1]  ;;  %v133_v31 = vld [vmem:[%s354_s11 + $0x80] sm:$0xff] }
  0x17   : > { %v183_v28 = vrot.slane %v144_v17, 2  ;;  %v147_v29 = vmax.f32 %v139_v19, %v129_v18  ;;  %v148_v30 = vmax.f32 %v140_v20, %v130_v26  ;;  %v141_v32 = vmax.f32 %v129_v18, %v131_v21  ;;  %v134_v37 = vld [vmem:[%s354_s11 + $0x88] sm:$0x1] }
  0x18   : > { %v163_v33 = vmax.f32 %v143_v11, %v155_v22  ;;  %v156_v34 = vrot.slane %v145_v24, 1  ;;  %v168_v35 = vrot.slane %v145_v24, 2  ;;  %v184_v36 = vrot.slane %v146_v25, 2 }
  0x19   : > { %v157_v38 = vrot.slane %v147_v29, 1  ;;  %v169_v39 = vrot.slane %v147_v29, 2  ;;  %v185_v40 = vrot.slane %v148_v30, 2  ;;  %v142_v41 = vmax.f32 %v130_v26, %v132_v27 }
  0x1a   : > { %v175_v42 = vmax.f32 %v163_v33, %v167_v23  ;;  %v191_v43 = vmax.f32 %v163_v33, %v183_v28  ;;  %v164_v44 = vmax.f32 %v145_v24, %v156_v34  ;;  %v149_v45 = vmax.f32 %v141_v32, %v133_v31 }
  0x1b   : > { %v165_v46 = vmax.f32 %v147_v29, %v157_v38  ;;  %v150_v47 = vmax.f32 %v142_v41, %v134_v37 }
  0x1c   : > { %v199_v48 = vrot.slane %v175_v42, 1  ;;  %v207_v49 = vrot.slane %v175_v42, 2  ;;  %v219_v50 = vrot.slane %v191_v43, 3  ;;  %v176_v51 = vmax.f32 %v164_v44, %v168_v35 }
  0x1d   : > { %v192_v52 = vmax.f32 %v164_v44, %v184_v36  ;;  %v177_v53 = vmax.f32 %v165_v46, %v169_v39  ;;  %v193_v54 = vmax.f32 %v165_v46, %v185_v40  ;;  %v158_v55 = vrot.slane %v149_v45, 1 }
  0x1e   : > { %v228_v56 = vsel %vm227_vm0, %v175_v42, %v199_v48  ;;  %v200_v57 = vrot.slane %v176_v51, 1  ;;  %v208_v58 = vrot.slane %v176_v51, 2  ;;  %v170_v59 = vrot.slane %v149_v45, 2 }
  0x1f   : > { %v233_v60 = vsel %vm232_vm1, %v228_v56, %v207_v49  ;;  %v220_v61 = vrot.slane %v192_v52, 3  ;;  %v201_v62 = vrot.slane %v177_v53, 1  ;;  %v209_v63 = vrot.slane %v177_v53, 2 }
  0x20   : > { %v238_v0 = vsel %vm237_vm2, %v233_v60, %v219_v50  ;;  %v229_v1 = vsel %vm227_vm0, %v176_v51, %v200_v57  ;;  %v221_v2 = vrot.slane %v193_v54, 3  ;;  %v166_v3 = vmax.f32 %v149_v45, %v158_v55 }
  0x21   : > { %243 = vst.msk [vmem:[%s116_s15] sm:$0xf] %vm242_vm3, %v238_v0  ;;  %v234_v4 = vsel %vm232_vm1, %v229_v1, %v208_v58  ;;  %v230_v5 = vsel %vm227_vm0, %v177_v53, %v201_v62  ;;  %v186_v6 = vrot.slane %v150_v47, 2 }
  0x22   : > { %v239_v7 = vsel %vm237_vm2, %v234_v4, %v220_v61  ;;  %v235_v8 = vsel %vm232_vm1, %v230_v5, %v209_v63  ;;  %v178_v9 = vmax.f32 %v166_v3, %v170_v59 }
  0x23   : > { %244 = vst.msk [vmem:[%s116_s15 + $0x4] sm:$0xf] %vm242_vm3, %v239_v7  ;;  %v240_v10 = vsel %vm237_vm2, %v235_v8, %v221_v2  ;;  %v194_v11 = vmax.f32 %v166_v3, %v186_v6 }
  0x24   : > { %245 = vst.msk [vmem:[%s116_s15 + $0x8] sm:$0xf] %vm242_vm3, %v240_v10  ;;  %v202_v12 = vrot.slane %v178_v9, 1  ;;  %v210_v13 = vrot.slane %v178_v9, 2 }
  0x25   : > { %v222_v14 = vrot.slane %v194_v11, 3 }
  0x26   : > { %v231_v15 = vsel %vm227_vm0, %v178_v9, %v202_v12 }
  0x27   : > { %v236_v16 = vsel %vm232_vm1, %v231_v15, %v210_v13 }
  0x28   : > { %v241_v17 = vsel %vm237_vm2, %v236_v16, %v222_v14 }
  0x29   : > { %246 = vst.msk [vmem:[%s116_s15 + $0xc] sm:$0xf] %vm242_vm3, %v241_v17 }
  0x2a PF: > { %s11_s6 = sadd.s32 1, %s328_s6  }
  0x2b   : > { %p8_p4 = scmp.ge.s32.totalorder %s11_s6, 4  }
  0x2d   :  { %10 = sbr.rel (!%p8_p4) target bundleno = 1 (0x1), region = 54 }

// kernel: inception_d_forward.7
= control target key start
LH: loop header
LB: loop body
LE: loop exit
PB: predicated region body
PF: predicated region fallthrough
CT: control target
= control target key end

     0   :  { %vm2358_vm0 = vcmask 523264   ;;  %s5449_s1 = inlined_call_operand.vmem [shape: bf16[1728,320], index: 1, kind: input, shape index: {}]   ;;  %s5450_s0 = inlined_call_operand.vmem [shape: bf16[32,1728], index: 0, kind: input, shape index: {}]   ;;  %s5451_s2 = inlined_call_operand.vmem [shape: f32[1,320], index: 2, kind: input, shape index: {}]   ;;  %s5452_s3 = inlined_call_operand.vmem [shape: f32[32,320], index: 3, kind: output, shape index: {}]  }
   0x1   :  { %v3688_v0 = vld [vmem:[%s5449_s1 + $0x4] ss:$12 sps:$4 sm:$0xff]   ;;  %v3692_v2 = vld [vmem:[%s5449_s1] ss:$12 sps:$4 sm:$0xff]   ;;  %v3694_v4 = vld [vmem:[%s5449_s1 + $0x1c] ss:$12 sps:$4 sm:$0xff]  }
   0x2   :  { %v3690_v1 = vld [vmem:[%s5449_s1 + $0x184] ss:$12 sps:$4 sm:$0xff]   ;;  %2365 = vmatprep.subr.bf16.mxu1 %v3688_v0  ;;  %v3693_v3 = vld [vmem:[%s5449_s1 + $0x180] ss:$12 sps:$4 sm:$0xff]   ;;  %v3696_v5 = vld [vmem:[%s5449_s1 + $0x19c] ss:$12 sps:$4 sm:$0xff]  }
   0x3   :  { %2418 = vmatprep.subr.bf16.mxu0 %v3690_v1  ;;  %2366 = vmatpush1.bf16.msra.mxu1 %v3692_v2  ;;  %v3698_v6 = vld [vmem:[%s5449_s1 + $0x18] ss:$12 sps:$4 sm:$0xff]   ;;  %v3700_v8 = vld [vmem:[%s5449_s1 + $0x34] ss:$12 sps:$4 sm:$0xff]   ;;  %v3704_v10 = vld [vmem:[%s5449_s1 + $0x30] ss:$12 sps:$4 sm:$0xff]  }
   0x4   :  { %2419 = vmatpush1.bf16.msra.mxu0 %v3693_v3  ;;  %2367 = vmatprep.subr.bf16.mxu1 %v3694_v4  ;;  %v3699_v7 = vld [vmem:[%s5449_s1 + $0x198] ss:$12 sps:$4 sm:$0xff]   ;;  %v3702_v9 = vld [vmem:[%s5449_s1 + $0x1b4] ss:$12 sps:$4 sm:$0xff]   ;;  %v3705_v11 = vld [vmem:[%s5449_s1 + $0x1b0] ss:$12 sps:$4 sm:$0xff]  }
   0x5   :  { %2420 = vmatprep.subr.bf16.mxu0 %v3696_v5  ;;  %v3706_v12 = vld [vmem:[%s5449_s1 + $0x4c] ss:$12 sps:$4 sm:$0xff]   ;;  %v3710_v14 = vld [vmem:[%s5449_s1 + $0x48] ss:$12 sps:$4 sm:$0xff]   ;;  %v3712_v16 = vld [vmem:[%s5449_s1 + $0x64] ss:$12 sps:$4 sm:$0xff]  }
   0x6   :  { %v3708_v13 = vld [vmem:[%s5449_s1 + $0x1cc] ss:$12 sps:$4 sm:$0xff]   ;;  %v3711_v15 = vld [vmem:[%s5449_s1 + $0x1c8] ss:$12 sps:$4 sm:$0xff]   ;;  %v3714_v17 = vld [vmem:[%s5449_s1 + $0x1e4] ss:$12 sps:$4 sm:$0xff]  }
   0x7   :  { %2368 = vmatpush1.bf16.msra.mxu1 %v3698_v6  ;;  %v3716_v18 = vld [vmem:[%s5449_s1 + $0x60] ss:$12 sps:$4 sm:$0xff]   ;;  %v3718_v20 = vld [vmem:[%s5449_s1 + $0x7c] ss:$12 sps:$4 sm:$0xff]   ;;  %v3722_v22 = vld [vmem:[%s5449_s1 + $0x78] ss:$12 sps:$4 sm:$0xff]  }
   0x8   :  { %2421 = vmatpush1.bf16.msra.mxu0 %v3699_v7  ;;  %2369 = vmatprep.subr.bf16.mxu1 %v3700_v8  ;;  %v3717_v19 = vld [vmem:[%s5449_s1 + $0x1e0] ss:$12 sps:$4 sm:$0xff]   ;;  %v3720_v21 = vld [vmem:[%s5449_s1 + $0x1fc] ss:$12 sps:$4 sm:$0xff]   ;;  %v3723_v23 = vld [vmem:[%s5449_s1 + $0x1f8] ss:$12 sps:$4 sm:$0xff]  }
   0x9   :  { %2422 = vmatprep.subr.bf16.mxu0 %v3702_v9  ;;  %v3724_v24 = vld [vmem:[%s5449_s1 + $0x94] ss:$12 sps:$4 sm:$0xff]   ;;  %v3728_v26 = vld [vmem:[%s5449_s1 + $0x90] ss:$12 sps:$4 sm:$0xff]   ;;  %v3730_v28 = vld [vmem:[%s5449_s1 + $0xac] ss:$12 sps:$4 sm:$0xff]  }
   0xa   :  { %v3726_v25 = vld [vmem:[%s5449_s1 + $0x214] ss:$12 sps:$4 sm:$0xff]   ;;  %v3729_v27 = vld [vmem:[%s5449_s1 + $0x210] ss:$12 sps:$4 sm:$0xff]   ;;  %v3732_v29 = vld [vmem:[%s5449_s1 + $0x22c] ss:$12 sps:$4 sm:$0xff]  }
   0xb   :  { %2370 = vmatpush1.bf16.msra.mxu1 %v3704_v10  ;;  %v3734_v30 = vld [vmem:[%s5449_s1 + $0xa8] ss:$12 sps:$4 sm:$0xff]   ;;  %v3736_v32 = vld [vmem:[%s5449_s1 + $0xc4] ss:$12 sps:$4 sm:$0xff]   ;;  %v3740_v34 = vld [vmem:[%s5449_s1 + $0xc0] ss:$12 sps:$4 sm:$0xff]  }
   0xc   :  { %2423 = vmatpush1.bf16.msra.mxu0 %v3705_v11  ;;  %2371 = vmatprep.subr.bf16.mxu1 %v3706_v12  ;;  %v3735_v31 = vld [vmem:[%s5449_s1 + $0x228] ss:$12 sps:$4 sm:$0xff]   ;;  %v3738_v33 = vld [vmem:[%s5449_s1 + $0x244] ss:$12 sps:$4 sm:$0xff]   ;;  %v3741_v35 = vld [vmem:[%s5449_s1 + $0x240] ss:$12 sps:$4 sm:$0xff]  }
   0xd   :  { %2424 = vmatprep.subr.bf16.mxu0 %v3708_v13  ;;  %v3742_v36 = vld [vmem:[%s5449_s1 + $0xdc] ss:$12 sps:$4 sm:$0xff]   ;;  %v3746_v38 = vld [vmem:[%s5449_s1 + $0xd8] ss:$12 sps:$4 sm:$0xff]   ;;  %v3748_v40 = vld [vmem:[%s5449_s1 + $0xf4] ss:$12 sps:$4 sm:$0xff]  }
   0xe   :  { %v3744_v37 = vld [vmem:[%s5449_s1 + $0x25c] ss:$12 sps:$4 sm:$0xff]   ;;  %v3747_v39 = vld [vmem:[%s5449_s1 + $0x258] ss:$12 sps:$4 sm:$0xff]   ;;  %v3750_v41 = vld [vmem:[%s5449_s1 + $0x274] ss:$12 sps:$4 sm:$0xff]  }
   0xf   :  { %2372 = vmatpush1.bf16.msra.mxu1 %v3710_v14  ;;  %v3752_v42 = vld [vmem:[%s5449_s1 + $0xf0] ss:$12 sps:$4 sm:$0xff]   ;;  %v3754_v44 = vld [vmem:[%s5449_s1 + $0x10c] ss:$12 sps:$4 sm:$0xff]   ;;  %v3758_v46 = vld [vmem:[%s5449_s1 + $0x108] ss:$12 sps:$4 sm:$0xff]  }
  0x10   :  { %2425 = vmatpush1.bf16.msra.mxu0 %v3711_v15  ;;  %2373 = vmatprep.subr.bf16.mxu1 %v3712_v16  ;;  %v3753_v43 = vld [vmem:[%s5449_s1 + $0x270] ss:$12 sps:$4 sm:$0xff]   ;;  %v3756_v45 = vld [vmem:[%s5449_s1 + $0x28c] ss:$12 sps:$4 sm:$0xff]   ;;  %v3759_v47 = vld [vmem:[%s5449_s1 + $0x288] ss:$12 sps:$4 sm:$0xff]  }
  0x11   :  { %2426 = vmatprep.subr.bf16.mxu0 %v3714_v17  ;;  %v3760_v48 = vld [vmem:[%s5449_s1 + $0x124] ss:$12 sps:$4 sm:$0xff]   ;;  %v3764_v52 = vld [vmem:[%s5449_s1 + $0x120] ss:$12 sps:$4 sm:$0xff]   ;;  %v3766_v54 = vld [vmem:[%s5449_s1 + $0x13c] ss:$12 sps:$4 sm:$0xff]  }
  0x12   :  { %v4337_v49 = vld [vmem:[%s5450_s0 + $0x4] ss:$56 sps:$4 sm:$0xff]   ;;  %v3765_v53 = vld [vmem:[%s5449_s1 + $0x2a0] ss:$12 sps:$4 sm:$0xff]   ;;  %v3782_v0 = vld [vmem:[%s5449_s1 + $0x168] ss:$12 sps:$4 sm:$0xff]  }
  0x13   :  { %2374 = vmatpush1.bf16.msra.mxu1 %v3716_v18  ;;  %v3762_v50 = vld [vmem:[%s5449_s1 + $0x2a4] ss:$12 sps:$4 sm:$0xff]   ;;  %2397 = vmatprep.mubr.bf16.mxu1 %v4337_v49  ;;  %v3768_v55 = vld [vmem:[%s5449_s1 + $0x2bc] ss:$12 sps:$4 sm:$0xff]   ;;  %v3772_v58 = vld [vmem:[%s5449_s1 + $0x154] ss:$12 sps:$4 sm:$0xff]  }
  0x14   :  { %2427 = vmatpush1.bf16.msra.mxu0 %v3717_v19  ;;  %2375 = vmatprep.subr.bf16.mxu1 %v3718_v20  ;;  %v4345_v51 = vld [vmem:[%s5450_s0 + $0xc] ss:$56 sps:$4 sm:$0xff]   ;;  %v3774_v59 = vld [vmem:[%s5449_s1 + $0x2d4] ss:$12 sps:$4 sm:$0xff]   ;;  %v3776_v60 = vld [vmem:[%s5449_s1 + $0x150] ss:$12 sps:$4 sm:$0xff]  }
  0x15   :  { %2428 = vmatprep.subr.bf16.mxu0 %v3720_v21  ;;  %2450 = vmatprep.mubr.bf16.mxu0 %v4345_v51  ;;  %v3770_v56 = vld [vmem:[%s5449_s1 + $0x138] ss:$12 sps:$4 sm:$0xff]   ;;  %v3777_v61 = vld [vmem:[%s5449_s1 + $0x2d0] ss:$12 sps:$4 sm:$0xff]   ;;  %v3783_v1 = vld [vmem:[%s5449_s1 + $0x2e8] ss:$12 sps:$4 sm:$0xff]  }
  0x16   :  { %v3771_v57 = vld [vmem:[%s5449_s1 + $0x2b8] ss:$12 sps:$4 sm:$0xff]   ;;  %v4405_v5 = vld [vmem:[%s5450_s0 + $0x8] ss:$56 sps:$4 sm:$0xff]   ;;  %v3802_v14 = vld [vmem:[%s5449_s1 + $0x330] ss:$12 sps:$4 sm:$0xff]  }
  0x17   :  { %2376 = vmatpush1.bf16.msra.mxu1 %v3722_v22  ;;  %v3778_v62 = vld [vmem:[%s5449_s1 + $0x16c] ss:$12 sps:$4 sm:$0xff]   ;;  %v3792_v2 = vld [vmem:[%s5449_s1 + $0x304] ss:$12 sps:$4 sm:$0xff]   ;;  %v3798_v8 = vld [vmem:[%s5449_s1 + $0x31c] ss:$12 sps:$4 sm:$0xff]  }
  0x18   :  { %2429 = vmatpush1.bf16.msra.mxu0 %v3723_v23  ;;  %2377 = vmatprep.subr.bf16.mxu1 %v3724_v24  ;;  %v3780_v63 = vld [vmem:[%s5449_s1 + $0x2ec] ss:$12 sps:$4 sm:$0xff]   ;;  %v3795_v3 = vld [vmem:[%s5449_s1 + $0x904] ss:$12 sps:$4 sm:$0xff]   ;;  %v3801_v9 = vld [vmem:[%s5449_s1 + $0x91c] ss:$12 sps:$4 sm:$0xff]  }
  0x19   :  { %2430 = vmatprep.subr.bf16.mxu0 %v3726_v25  ;;  %v4400_v4 = vld [vmem:[%s5450_s0] ss:$56 sps:$4 sm:$0xff]   ;;  %v3805_v15 = vld [vmem:[%s5449_s1 + $0x930] ss:$12 sps:$4 sm:$0xff]   ;;  %v4448_v18 = vld [vmem:[%s5450_s0 + $0x74] ss:$56 sps:$4 sm:$0xff]  }
  0x1a   :  { %v3790_v6 = vld [vmem:[%s5449_s1 + $0x300] ss:$12 sps:$4 sm:$0xff]   ;;  %v3796_v10 = vld [vmem:[%s5449_s1 + $0x318] ss:$12 sps:$4 sm:$0xff]   ;;  %v4453_v19 = vld [vmem:[%s5450_s0 + $0x70] ss:$56 sps:$4 sm:$0xff]  }
  0x1b   :  { %2378 = vmatpush1.bf16.msra.mxu1 %v3728_v26  ;;  %v3793_v7 = vld [vmem:[%s5449_s1 + $0x900] ss:$12 sps:$4 sm:$0xff]   ;;  %v3799_v11 = vld [vmem:[%s5449_s1 + $0x918] ss:$12 sps:$4 sm:$0xff]   ;;  %v3808_v20 = vld [vmem:[%s5449_s1 + $0x348] ss:$12 sps:$4 sm:$0xff]  }
  0x1c   :  { %2431 = vmatpush1.bf16.msra.mxu0 %v3729_v27  ;;  %2379 = vmatprep.subr.bf16.mxu1 %v3730_v28  ;;  %v3804_v12 = vld [vmem:[%s5449_s1 + $0x334] ss:$12 sps:$4 sm:$0xff]   ;;  %v3810_v16 = vld [vmem:[%s5449_s1 + $0x34c] ss:$12 sps:$4 sm:$0xff]   ;;  %v3816_v22 = vld [vmem:[%s5449_s1 + $0x364] ss:$12 sps:$4 sm:$0xff]  }
  0x1d   :  { %2432 = vmatprep.subr.bf16.mxu0 %v3732_v29  ;;  %v3807_v13 = vld [vmem:[%s5449_s1 + $0x934] ss:$12 sps:$4 sm:$0xff]   ;;  %v3813_v17 = vld [vmem:[%s5449_s1 + $0x94c] ss:$12 sps:$4 sm:$0xff]   ;;  %v3819_v23 = vld [vmem:[%s5449_s1 + $0x964] ss:$12 sps:$4 sm:$0xff]  }
  0x1e   :  { %v3811_v21 = vld [vmem:[%s5449_s1 + $0x948] ss:$12 sps:$4 sm:$0xff]   ;;  %v3814_v24 = vld [vmem:[%s5449_s1 + $0x360] ss:$12 sps:$4 sm:$0xff]   ;;  %v3820_v29 = vld [vmem:[%s5449_s1 + $0x378] ss:$12 sps:$4 sm:$0xff]  }
  0x1f   :  { %2380 = vmatpush1.bf16.msra.mxu1 %v3734_v30  ;;  %v3817_v25 = vld [vmem:[%s5449_s1 + $0x960] ss:$12 sps:$4 sm:$0xff]   ;;  %v3822_v27 = vld [vmem:[%s5449_s1 + $0x37c] ss:$12 sps:$4 sm:$0xff]   ;;  %v3823_v30 = vld [vmem:[%s5449_s1 + $0x978] ss:$12 sps:$4 sm:$0xff]  }
  0x20   :  { %2433 = vmatpush1.bf16.msra.mxu0 %v3735_v31  ;;  %2381 = vmatprep.subr.bf16.mxu1 %v3736_v32  ;;  %v3867_v26 = vld [vmem:[%s5450_s0 + $0x34] ss:$56 sps:$4 sm:$0xff]   ;;  %v3825_v28 = vld [vmem:[%s5449_s1 + $0x97c] ss:$12 sps:$4 sm:$0xff]  }
  0x21   :  { %2434 = vmatprep.subr.bf16.mxu0 %v3738_v33  ;;  %v3828_v31 = vld [vmem:[%s5449_s1 + $0x394] ss:$12 sps:$4 sm:$0xff]   ;;  %v3826_v33 = vld [vmem:[%s5449_s1 + $0x390] ss:$12 sps:$4 sm:$0xff]  }
  0x22   :  { %v3831_v32 = vld [vmem:[%s5449_s1 + $0x994] ss:$12 sps:$4 sm:$0xff]  }
  0x23   :  { %2382 = vmatpush1.bf16.msra.mxu1 %v3740_v34  ;;  %v4503_v34 = vld [vmem:[%s5450_s0 + $0x7c] ss:$56 sps:$4 sm:$0xff]  }
  0x24   :  { %2435 = vmatpush1.bf16.msra.mxu0 %v3741_v35  ;;  %2383 = vmatprep.subr.bf16.mxu1 %v3742_v36  ;;  %v3829_v35 = vld [vmem:[%s5449_s1 + $0x990] ss:$12 sps:$4 sm:$0xff]   ;;  %v3834_v36 = vld [vmem:[%s5449_s1 + $0x3ac] ss:$12 sps:$4 sm:$0xff]  }
  0x25   :  { %2436 = vmatprep.subr.bf16.mxu0 %v3744_v37  ;;  %v3837_v37 = vld [vmem:[%s5449_s1 + $0x9ac] ss:$12 sps:$4 sm:$0xff]  }
  0x27   :  { %2384 = vmatpush1.bf16.msra.mxu1 %v3746_v38  ;;  %v4518_v38 = vld [vmem:[%s5450_s0 + $0x78] ss:$56 sps:$4 sm:$0xff]  }
  0x28   :  { %2437 = vmatpush1.bf16.msra.mxu0 %v3747_v39  ;;  %2385 = vmatprep.subr.bf16.mxu1 %v3748_v40  ;;  %v3832_v39 = vld [vmem:[%s5449_s1 + $0x3a8] ss:$12 sps:$4 sm:$0xff]  }
  0x29   :  { %2438 = vmatprep.subr.bf16.mxu0 %v3750_v41  ;;  %v3835_v40 = vld [vmem:[%s5449_s1 + $0x9a8] ss:$12 sps:$4 sm:$0xff]   ;;  %v3840_v41 = vld [vmem:[%s5449_s1 + $0x3c4] ss:$12 sps:$4 sm:$0xff]  }
  0x2b   :  { %2386 = vmatpush1.bf16.msra.mxu1 %v3752_v42  ;;  %v3843_v42 = vld [vmem:[%s5449_s1 + $0x9c4] ss:$12 sps:$4 sm:$0xff]  }
  0x2c   :  { %2439 = vmatpush1.bf16.msra.mxu0 %v3753_v43  ;;  %2387 = vmatprep.subr.bf16.mxu1 %v3754_v44  ;;  %v3838_v43 = vld [vmem:[%s5449_s1 + $0x3c0] ss:$12 sps:$4 sm:$0xff]  }
  0x2d   :  { %2440 = vmatprep.subr.bf16.mxu0 %v3756_v45  ;;  %v3841_v44 = vld [vmem:[%s5449_s1 + $0x9c0] ss:$12 sps:$4 sm:$0xff]  }
  0x2e   :  { %v4542_v45 = vld [vmem:[%s5450_s0 + $0x14] ss:$56 sps:$4 sm:$0xff]  }
  0x2f   :  { %2388 = vmatpush1.bf16.msra.mxu1 %v3758_v46  ;;  %v3846_v46 = vld [vmem:[%s5449_s1 + $0x3dc] ss:$12 sps:$4 sm:$0xff]  }
  0x30   :  { %2441 = vmatpush1.bf16.msra.mxu0 %v3759_v47  ;;  %2389 = vmatprep.subr.bf16.mxu1 %v3760_v48  ;;  %v3849_v47 = vld [vmem:[%s5449_s1 + $0x9dc] ss:$12 sps:$4 sm:$0xff]   ;;  %v3844_v48 = vld [vmem:[%s5449_s1 + $0x3d8] ss:$12 sps:$4 sm:$0xff]  }
  0x31   :  { %2442 = vmatprep.subr.bf16.mxu0 %v3762_v50  ;;  %v3847_v50 = vld [vmem:[%s5449_s1 + $0x9d8] ss:$12 sps:$4 sm:$0xff]  }
  0x33   :  { %2390 = vmatpush1.bf16.msra.mxu1 %v3764_v52  ;;  %v3855_v52 = vld [vmem:[%s5449_s1 + $0x3f4] ss:$12 sps:$4 sm:$0xff]  }
  0x34   :  { %2443 = vmatpush1.bf16.msra.mxu0 %v3765_v53  ;;  %2391 = vmatprep.subr.bf16.mxu1 %v3766_v54  ;;  %v3858_v53 = vld [vmem:[%s5449_s1 + $0x9f4] ss:$12 sps:$4 sm:$0xff]   ;;  %v3853_v54 = vld [vmem:[%s5449_s1 + $0x3f0] ss:$12 sps:$4 sm:$0xff]  }
  0x35   :  { %2444 = vmatprep.subr.bf16.mxu0 %v3768_v55  ;;  %v3856_v55 = vld [vmem:[%s5449_s1 + $0x9f0] ss:$12 sps:$4 sm:$0xff]  }
  0x37   :  { %2392 = vmatpush1.bf16.msra.mxu1 %v3770_v56  ;;  %v3861_v56 = vld [vmem:[%s5449_s1 + $0x40c] ss:$12 sps:$4 sm:$0xff]  }
  0x38   :  { %2445 = vmatpush1.bf16.msra.mxu0 %v3771_v57  ;;  %2393 = vmatprep.subr.bf16.mxu1 %v3772_v58  ;;  %v3864_v57 = vld [vmem:[%s5449_s1 + $0xa0c] ss:$12 sps:$4 sm:$0xff]   ;;  %v3859_v58 = vld [vmem:[%s5449_s1 + $0x408] ss:$12 sps:$4 sm:$0xff]  }
  0x39   :  { %2446 = vmatprep.subr.bf16.mxu0 %v3774_v59  ;;  %v3862_v59 = vld [vmem:[%s5449_s1 + $0xa08] ss:$12 sps:$4 sm:$0xff]  }
  0x3b   :  { %2394 = vmatpush1.bf16.msra.mxu1 %v3776_v60  ;;  %v3870_v60 = vld [vmem:[%s5449_s1 + $0x424] ss:$12 sps:$4 sm:$0xff]  }
  0x3c   :  { %2447 = vmatpush1.bf16.msra.mxu0 %v3777_v61  ;;  %2395 = vmatprep.subr.bf16.mxu1 %v3778_v62  ;;  %v3871_v61 = vld [vmem:[%s5449_s1 + $0xc8] ss:$12 sps:$4 sm:$0xff]  }
  0x3d   :  { %2448 = vmatprep.subr.bf16.mxu0 %v3780_v63  ;;  %v3865_v62 = vld [vmem:[%s5450_s0 + $0x30] ss:$56 sps:$4 sm:$0xff]   ;;  %v3868_v63 = vld [vmem:[%s5449_s1 + $0x420] ss:$12 sps:$4 sm:$0xff]  }
  0x3f   :  { %2396 = vmatpush1.bf16.msra.mxu1 %v3782_v0  ;;  %v3872_v0 = vld [vmem:[%s5449_s1 + $0x8] ss:$12 sps:$4 sm:$0xff]  }
  0x40   :  { %2449 = vmatpush1.bf16.msra.mxu0 %v3783_v1  ;;  %2683 = vmatprep.subr.bf16.mxu1 %v3795_v3  ;;  %v3875_v1 = vld [vmem:[%s5449_s1 + $0x43c] ss:$12 sps:$4 sm:$0xff]   ;;  %v3873_v3 = vld [vmem:[%s5449_s1 + $0x438] ss:$12 sps:$4 sm:$0xff]  }
  0x41   :  { %2471 = vmatprep.subr.bf16.mxu0 %v3792_v2  ;;  %v3876_v2 = vld [vmem:[%s5449_s1 + $0xe0] ss:$12 sps:$4 sm:$0xff]  }
  0x42   :  { %2398 = vmatmul.mubr.bf16.vlgmr.msra.gmra.mrb[0].mxu1 %v4400_v4 }
  0x43   :  { %2451 = vmatmul.mubr.bf16.vlgmr.msra.gmra.mrb[0].mxu0 %v4405_v5  ;;  %2684 = vmatpush1.bf16.msra.mxu1 %v3793_v7  ;;  %v3877_v7 = vld [vmem:[%s5449_s1 + $0x20] ss:$12 sps:$4 sm:$0xff]  }
  0x44   :  { %2472 = vmatpush1.bf16.msra.mxu0 %v3790_v6  ;;  %2685 = vmatprep.subr.bf16.mxu1 %v3801_v9  ;;  %v3903_v6 = vld [vmem:[%s5450_s0 + $0xa4] ss:$56 sps:$4 sm:$0xff]  }
  0x45   :  { %2473 = vmatprep.subr.bf16.mxu0 %v3798_v8  ;;  %2407 = vmatprep.mubr.bf16.mxu1 %v4448_v18  ;;  %v3882_v8 = vld [vmem:[%s5449_s1 + $0x454] ss:$12 sps:$4 sm:$0xff]   ;;  %v3883_v9 = vld [vmem:[%s5449_s1 + $0xf8] ss:$12 sps:$4 sm:$0xff]  }
  0x46   :  { %2460 = vmatprep.mubr.bf16.mxu0 %v4503_v34 }
  0x47   :  { %2686 = vmatpush1.bf16.msra.mxu1 %v3799_v11  ;;  %v3906_v11 = vld [vmem:[%s5450_s0 + $0xa0] ss:$56 sps:$4 sm:$0xff]  }
  0x48   :  { %2474 = vmatpush1.bf16.msra.mxu0 %v3796_v10  ;;  %2687 = vmatprep.subr.bf16.mxu1 %v3807_v13  ;;  %v3880_v10 = vld [vmem:[%s5449_s1 + $0x450] ss:$12 sps:$4 sm:$0xff]   ;;  %v3888_v13 = vld [vmem:[%s5449_s1 + $0x46c] ss:$12 sps:$4 sm:$0xff]  }
  0x49   :  { %2475 = vmatprep.subr.bf16.mxu0 %v3804_v12  ;;  %v3885_v12 = vld [vmem:[%s5449_s1 + $0x38] ss:$12 sps:$4 sm:$0xff]  }
  0x4a   :  { %2408 = vmatmul.mubr.bf16.gmra.mrb[4].mxu1 %v4453_v19 }
  0x4b   :  { %2688 = vmatpush1.bf16.msra.mxu1 %v3805_v15  ;;  %3459 = vmatprep.mubr.msk.bf16.mxu1 %vm2358_vm0, %v3867_v26  ;;  %v3886_v15 = vld [vmem:[%s5449_s1 + $0x468] ss:$12 sps:$4 sm:$0xff]   ;;  %v3905_v26 = vld [vmem:[%s5449_s1 + $0x80] ss:$12 sps:$4 sm:$0xff]  }
  0x4c   :  { %2476 = vmatpush1.bf16.msra.mxu0 %v3802_v14  ;;  %2689 = vmatprep.subr.bf16.mxu1 %v3813_v17  ;;  %v3889_v14 = vld [vmem:[%s5449_s1 + $0x110] ss:$12 sps:$4 sm:$0xff]  }
  0x4d   :  { %2477 = vmatprep.subr.bf16.mxu0 %v3810_v16  ;;  %2461 = vmatmul.mubr.bf16.gmra.mrb[4].mxu0 %v4518_v38  ;;  %v3890_v16 = vld [vmem:[%s5449_s1 + $0x50] ss:$12 sps:$4 sm:$0xff]  }
  0x4e   :  { %2503 = vmatprep.mubr.bf16.mxu0 %v4542_v45  ;;  %v3896_v17 = vld [vmem:[%s5449_s1 + $0x484] ss:$12 sps:$4 sm:$0xff]  }
  0x4f   :  { %2690 = vmatpush1.bf16.msra.mxu1 %v3811_v21  ;;  %v4648_v21 = vld [vmem:[%s5450_s0 + $0x10] ss:$56 sps:$4 sm:$0xff]  }
  0x50   :  { %2478 = vmatpush1.bf16.msra.mxu0 %v3808_v20  ;;  %2691 = vmatprep.subr.bf16.mxu1 %v3819_v23  ;;  %v3897_v20 = vld [vmem:[%s5449_s1 + $0x128] ss:$12 sps:$4 sm:$0xff]  }
  0x51   :  { %2479 = vmatprep.subr.bf16.mxu0 %v3816_v22  ;;  %v3894_v22 = vld [vmem:[%s5449_s1 + $0x480] ss:$12 sps:$4 sm:$0xff]   ;;  %v3898_v23 = vld [vmem:[%s5449_s1 + $0x68] ss:$12 sps:$4 sm:$0xff]  }
  0x53   :  { %2692 = vmatpush1.bf16.msra.mxu1 %v3817_v25  ;;  %v3899_v25 = vld [vmem:[%s5449_s1 + $0x498] ss:$12 sps:$4 sm:$0xff]  }
  0x54   :  { %2480 = vmatpush1.bf16.msra.mxu0 %v3814_v24  ;;  %2693 = vmatprep.subr.bf16.mxu1 %v3825_v28  ;;  %v3901_v24 = vld [vmem:[%s5449_s1 + $0x49c] ss:$12 sps:$4 sm:$0xff]   ;;  %v3910_v28 = vld [vmem:[%s5449_s1 + $0x158] ss:$12 sps:$4 sm:$0xff]  }
  0x55   :  { %2481 = vmatprep.subr.bf16.mxu0 %v3822_v27  ;;  %v3909_v27 = vld [vmem:[%s5449_s1 + $0x4b4] ss:$12 sps:$4 sm:$0xff]  }
  0x57   :  { %2694 = vmatpush1.bf16.msra.mxu1 %v3823_v30  ;;  %v3911_v30 = vld [vmem:[%s5449_s1 + $0x98] ss:$12 sps:$4 sm:$0xff]  }
  0x58   :  { %2482 = vmatpush1.bf16.msra.mxu0 %v3820_v29  ;;  %2695 = vmatprep.subr.bf16.mxu1 %v3831_v32  ;;  %v3907_v29 = vld [vmem:[%s5449_s1 + $0x4b0] ss:$12 sps:$4 sm:$0xff]  }
  0x59   :  { %2483 = vmatprep.subr.bf16.mxu0 %v3828_v31  ;;  %v3914_v31 = vld [vmem:[%s5449_s1 + $0x4cc] ss:$12 sps:$4 sm:$0xff]   ;;  %v3915_v32 = vld [vmem:[%s5449_s1 + $0x170] ss:$12 sps:$4 sm:$0xff]  }
  0x5b   :  { %2696 = vmatpush1.bf16.msra.mxu1 %v3829_v35  ;;  %v3916_v35 = vld [vmem:[%s5449_s1 + $0xb0] ss:$12 sps:$4 sm:$0xff]  }
  0x5c   :  { %2484 = vmatpush1.bf16.msra.mxu0 %v3826_v33  ;;  %2697 = vmatprep.subr.bf16.mxu1 %v3837_v37  ;;  %v3912_v33 = vld [vmem:[%s5449_s1 + $0x4c8] ss:$12 sps:$4 sm:$0xff]  }
  0x5d   :  { %2485 = vmatprep.subr.bf16.mxu0 %v3834_v36  ;;  %v3919_v36 = vld [vmem:[%s5449_s1 + $0x4e4] ss:$12 sps:$4 sm:$0xff]   ;;  %v3920_v37 = vld [vmem:[%s5449_s1 + $0x248] ss:$12 sps:$4 sm:$0xff]  }
  0x5f   :  { %2698 = vmatpush1.bf16.msra.mxu1 %v3835_v40  ;;  %v3921_v40 = vld [vmem:[%s5449_s1 + $0x188] ss:$12 sps:$4 sm:$0xff]  }
  0x60   :  { %2486 = vmatpush1.bf16.msra.mxu0 %v3832_v39  ;;  %2699 = vmatprep.subr.bf16.mxu1 %v3843_v42  ;;  %v3917_v39 = vld [vmem:[%s5449_s1 + $0x4e0] ss:$12 sps:$4 sm:$0xff]   ;;  %v4712_v42 = vld [vmem:[%s5450_s0 + $0x84] ss:$56 sps:$4 sm:$0xff]  }
  0x61   :  { %2487 = vmatprep.subr.bf16.mxu0 %v3840_v41  ;;  %v3924_v41 = vld [vmem:[%s5449_s1 + $0x4fc] ss:$12 sps:$4 sm:$0xff]  }
  0x63   :  { %2700 = vmatpush1.bf16.msra.mxu1 %v3841_v44  ;;  %v3922_v44 = vld [vmem:[%s5449_s1 + $0x4f8] ss:$12 sps:$4 sm:$0xff]  }
  0x64   :  { %2488 = vmatpush1.bf16.msra.mxu0 %v3838_v43  ;;  %2701 = vmatprep.subr.bf16.mxu1 %v3849_v47  ;;  %v3925_v43 = vld [vmem:[%s5449_s1 + $0x260] ss:$12 sps:$4 sm:$0xff]  }
  0x65   :  { %2489 = vmatprep.subr.bf16.mxu0 %v3846_v46  ;;  %v4725_v46 = vld [vmem:[%s5450_s0 + $0x80] ss:$56 sps:$4 sm:$0xff]  }
  0x66   :  { %v3926_v47 = vld [vmem:[%s5449_s1 + $0x1a0] ss:$12 sps:$4 sm:$0xff]  }
  0x67   :  { %2702 = vmatpush1.bf16.msra.mxu1 %v3847_v50  ;;  %v3927_v50 = vld [vmem:[%s5449_s1 + $0x510] ss:$12 sps:$4 sm:$0xff]  }
  0x68   :  { %2490 = vmatpush1.bf16.msra.mxu0 %v3844_v48  ;;  %2703 = vmatprep.subr.bf16.mxu1 %v3858_v53  ;;  %v3930_v48 = vld [vmem:[%s5449_s1 + $0x278] ss:$12 sps:$4 sm:$0xff]  }
  0x69   :  { %2491 = vmatprep.subr.bf16.mxu0 %v3855_v52  ;;  %v3931_v52 = vld [vmem:[%s5449_s1 + $0x1b8] ss:$12 sps:$4 sm:$0xff]  }
  0x6a   :  { %v3934_v53 = vld [vmem:[%s5449_s1 + $0x52c] ss:$12 sps:$4 sm:$0xff]  }
  0x6b   :  { %2704 = vmatpush1.bf16.msra.mxu1 %v3856_v55  ;;  %v4753_v55 = vld [vmem:[%s5450_s0 + $0x1c] ss:$56 sps:$4 sm:$0xff]  }
  0x6c   :  { %2492 = vmatpush1.bf16.msra.mxu0 %v3853_v54  ;;  %2705 = vmatprep.subr.bf16.mxu1 %v3864_v57  ;;  %v3935_v54 = vld [vmem:[%s5449_s1 + $0x290] ss:$12 sps:$4 sm:$0xff]  }
  0x6d   :  { %2493 = vmatprep.subr.bf16.mxu0 %v3861_v56  ;;  %v3936_v56 = vld [vmem:[%s5449_s1 + $0x1d0] ss:$12 sps:$4 sm:$0xff]  }
  0x6e   :  { %v3939_v57 = vld [vmem:[%s5449_s1 + $0x544] ss:$12 sps:$4 sm:$0xff]  }
  0x6f   :  { %2706 = vmatpush1.bf16.msra.mxu1 %v3862_v59  ;;  %v3941_v59 = vld [vmem:[%s5449_s1 + $0x1e8] ss:$12 sps:$4 sm:$0xff]  }
  0x70   :  { %2494 = vmatpush1.bf16.msra.mxu0 %v3859_v58  ;;  %3463 = vmatprep.subr.bf16.mxu1 %v3871_v61  ;;  %v3940_v58 = vld [vmem:[%s5449_s1 + $0x2a8] ss:$12 sps:$4 sm:$0xff]   ;;  %v3945_v61 = vld [vmem:[%s5449_s1 + $0x2c0] ss:$12 sps:$4 sm:$0xff]  }
  0x71   :  { %2495 = vmatprep.subr.bf16.mxu0 %v3870_v60  ;;  %v3944_v60 = vld [vmem:[%s5449_s1 + $0x55c] ss:$12 sps:$4 sm:$0xff]  }
  0x72   :  { %2716 = vmatmul.mubr.bf16.vlgmr.msra.gmra.mrb[8].mxu1 %v3865_v62  ;;  %v3946_v62 = vld [vmem:[%s5449_s1 + $0x200] ss:$12 sps:$4 sm:$0xff]  }
  0x73   :  { %3464 = vmatpush3.bf16.msra.mxu1 %v3872_v0  ;;  %3460 = vmatprep.mubr.msk.bf16.mxu1 %vm2358_vm0, %v3903_v6  ;;  %v3950_v0 = vld [vmem:[%s5449_s1 + $0x2d8] ss:$12 sps:$4 sm:$0xff]   ;;  %v3955_v6 = vld [vmem:[%s5449_s1 + $0x2f0] ss:$12 sps:$4 sm:$0xff]  }
  0x74   :  { %2496 = vmatpush1.bf16.msra.mxu0 %v3868_v63  ;;  %3465 = vmatprep.subr.bf16.mxu1 %v3876_v2  ;;  %v3949_v63 = vld [vmem:[%s5449_s1 + $0x574] ss:$12 sps:$4 sm:$0xff]   ;;  %v3951_v2 = vld [vmem:[%s5449_s1 + $0x218] ss:$12 sps:$4 sm:$0xff]  }
  0x75   :  { %2497 = vmatprep.subr.bf16.mxu0 %v3875_v1  ;;  %v3947_v1 = vld [vmem:[%s5449_s1 + $0x570] ss:$12 sps:$4 sm:$0xff]  }
  0x77   :  { %3466 = vmatpush3.bf16.msra.mxu1 %v3877_v7  ;;  %v3952_v7 = vld [vmem:[%s5449_s1 + $0x588] ss:$12 sps:$4 sm:$0xff]  }
  0x78   :  { %2498 = vmatpush1.bf16.msra.mxu0 %v3873_v3  ;;  %3467 = vmatprep.subr.bf16.mxu1 %v3883_v9  ;;  %v3954_v3 = vld [vmem:[%s5449_s1 + $0x58c] ss:$12 sps:$4 sm:$0xff]   ;;  %v3959_v9 = vld [vmem:[%s5449_s1 + $0x5a4] ss:$12 sps:$4 sm:$0xff]  }
  0x79   :  { %2499 = vmatprep.subr.bf16.mxu0 %v3882_v8  ;;  %v3956_v8 = vld [vmem:[%s5449_s1 + $0x230] ss:$12 sps:$4 sm:$0xff]  }
  0x7a   :  { %2726 = vmatmul.mubr.bf16.gmra.mrb[12].mxu1 %v3906_v11  ;;  %v3957_v11 = vld [vmem:[%s5449_s1 + $0x5a0] ss:$12 sps:$4 sm:$0xff]  }
  0x7b   :  { %3468 = vmatpush3.bf16.msra.mxu1 %v3885_v12  ;;  %2768 = vmatprep.mubr.bf16.mxu1 %v4337_v49  ;;  %v3902_v49 = vld [vmem:[%s5449_s1 + $0x140] ss:$12 sps:$4 sm:$0xff]   ;;  %v3961_v12 = vld [vmem:[%s5449_s1 + $0x308] ss:$12 sps:$4 sm:$0xff]  }
  0x7c   :  { %2500 = vmatpush1.bf16.msra.mxu0 %v3880_v10  ;;  %3469 = vmatprep.subr.bf16.mxu1 %v3889_v14  ;;  %v3960_v10 = vld [vmem:[%s5449_s1 + $0x3c8] ss:$12 sps:$4 sm:$0xff]   ;;  %v3965_v14 = vld [vmem:[%s5449_s1 + $0x3e0] ss:$12 sps:$4 sm:$0xff]  }
  0x7d   :  { %2501 = vmatprep.subr.bf16.mxu0 %v3888_v13  ;;  %v3964_v13 = vld [vmem:[%s5449_s1 + $0x5bc] ss:$12 sps:$4 sm:$0xff]  }
  0x7f   :  { %3470 = vmatpush3.bf16.msra.mxu1 %v3890_v16  ;;  %v3966_v16 = vld [vmem:[%s5449_s1 + $0x320] ss:$12 sps:$4 sm:$0xff]  }
  0x80   :  { %2502 = vmatpush1.bf16.msra.mxu0 %v3886_v15  ;;  %3471 = vmatprep.subr.bf16.mxu1 %v3897_v20  ;;  %v3962_v15 = vld [vmem:[%s5449_s1 + $0x5b8] ss:$12 sps:$4 sm:$0xff]  }
  0x81   :  { %2524 = vmatprep.subr.bf16.mxu0 %v3896_v17  ;;  %v3971_v17 = vld [vmem:[%s5449_s1 + $0x5d4] ss:$12 sps:$4 sm:$0xff]   ;;  %v3972_v20 = vld [vmem:[%s5449_s1 + $0x3f8] ss:$12 sps:$4 sm:$0xff]  }
  0x83   :  { %2504 = vmatmul.mubr.bf16.vlgmr.msra.gmra.mrb[0].mxu0 %v4648_v21  ;;  %3472 = vmatpush3.bf16.msra.mxu1 %v3898_v23  ;;  %v3977_v23 = vld [vmem:[%s5449_s1 + $0x5ec] ss:$12 sps:$4 sm:$0xff]  }
  0x84   :  { %2525 = vmatpush1.bf16.msra.mxu0 %v3894_v22  ;;  %3473 = vmatprep.subr.bf16.mxu1 %v3902_v49  ;;  %v3974_v22 = vld [vmem:[%s5449_s1 + $0x338] ss:$12 sps:$4 sm:$0xff]   ;;  %v3979_v49 = vld [vmem:[%s5449_s1 + $0x350] ss:$12 sps:$4 sm:$0xff]  }
  0x85   :  { %2526 = vmatprep.subr.bf16.mxu0 %v3901_v24  ;;  %2513 = vmatprep.mubr.bf16.mxu0 %v4712_v42  ;;  %v3975_v24 = vld [vmem:[%s5449_s1 + $0x5e8] ss:$12 sps:$4 sm:$0xff]  }
  0x87   :  { %3474 = vmatpush3.bf16.msra.mxu1 %v3905_v26  ;;  %v3986_v26 = vld [vmem:[%s5449_s1 + $0x428] ss:$12 sps:$4 sm:$0xff]  }
  0x88   :  { %2527 = vmatpush1.bf16.msra.mxu0 %v3899_v25  ;;  %3475 = vmatprep.subr.bf16.mxu1 %v3910_v28  ;;  %v3985_v25 = vld [vmem:[%s5449_s1 + $0x604] ss:$12 sps:$4 sm:$0xff]   ;;  %v3987_v28 = vld [vmem:[%s5449_s1 + $0x368] ss:$12 sps:$4 sm:$0xff]  }
  0x89   :  { %2528 = vmatprep.subr.bf16.mxu0 %v3909_v27  ;;  %v3983_v27 = vld [vmem:[%s5449_s1 + $0x600] ss:$12 sps:$4 sm:$0xff]  }
  0x8b   :  { %3476 = vmatpush3.bf16.msra.mxu1 %v3911_v30  ;;  %2514 = vmatmul.mubr.bf16.gmra.mrb[4].mxu0 %v4725_v46  ;;  %v3991_v30 = vld [vmem:[%s5449_s1 + $0x440] ss:$12 sps:$4 sm:$0xff]  }
  0x8c   :  { %2529 = vmatpush1.bf16.msra.mxu0 %v3907_v29  ;;  %3477 = vmatprep.subr.bf16.mxu1 %v3915_v32  ;;  %v3990_v29 = vld [vmem:[%s5449_s1 + $0x61c] ss:$12 sps:$4 sm:$0xff]   ;;  %v3995_v32 = vld [vmem:[%s5449_s1 + $0x634] ss:$12 sps:$4 sm:$0xff]  }
  0x8d   :  { %2530 = vmatprep.subr.bf16.mxu0 %v3914_v31  ;;  %2556 = vmatprep.mubr.bf16.mxu0 %v4753_v55  ;;  %v3992_v31 = vld [vmem:[%s5449_s1 + $0x380] ss:$12 sps:$4 sm:$0xff]  }
  0x8f   :  { %3478 = vmatpush3.bf16.msra.mxu1 %v3916_v35  ;;  %v3993_v35 = vld [vmem:[%s5449_s1 + $0x630] ss:$12 sps:$4 sm:$0xff]  }
  0x90   :  { %2531 = vmatpush1.bf16.msra.mxu0 %v3912_v33  ;;  %3491 = vmatprep.subr.bf16.mxu1 %v3920_v37  ;;  %v3996_v33 = vld [vmem:[%s5449_s1 + $0x458] ss:$12 sps:$4 sm:$0xff]  }
  0x91   :  { %2532 = vmatprep.subr.bf16.mxu0 %v3919_v36  ;;  %v3997_v36 = vld [vmem:[%s5449_s1 + $0x398] ss:$12 sps:$4 sm:$0xff]  }
  0x92   :  { %2769 = vmatmul.mubr.bf16.vlgmr.msra.gmra.mrb[16].mxu1 %v4400_v4  ;;  %v3929_v4 = vld [vmem:[%s5449_s1 + $0x514] ss:$12 sps:$4 sm:$0xff]   ;;  %v4000_v37 = vld [vmem:[%s5449_s1 + $0x64c] ss:$12 sps:$4 sm:$0xff]  }
  0x93   :  { %3492 = vmatpush3.bf16.msra.mxu1 %v3921_v40  ;;  %2776 = vmatprep.mubr.bf16.mxu1 %v4448_v18  ;;  %v3932_v18 = vld [vmem:[%s5449_s1 + $0x528] ss:$12 sps:$4 sm:$0xff]   ;;  %v4001_v40 = vld [vmem:[%s5449_s1 + $0x470] ss:$12 sps:$4 sm:$0xff]  }
  0x94   :  { %2533 = vmatpush1.bf16.msra.mxu0 %v3917_v39  ;;  %3493 = vmatprep.subr.bf16.mxu1 %v3925_v43  ;;  %v4912_v39 = vld [vmem:[%s5450_s0 + $0x8c] ss:$56 sps:$4 sm:$0xff]   ;;  %v3998_v43 = vld [vmem:[%s5449_s1 + $0x648] ss:$12 sps:$4 sm:$0xff]  }
  0x95   :  { %2534 = vmatprep.subr.bf16.mxu0 %v3924_v41  ;;  %v4921_v41 = vld [vmem:[%s5450_s0 + $0x88] ss:$56 sps:$4 sm:$0xff]  }
  0x97   :  { %3494 = vmatpush3.bf16.msra.mxu1 %v3926_v47  ;;  %v4005_v47 = vld [vmem:[%s5449_s1 + $0x664] ss:$12 sps:$4 sm:$0xff]  }
  0x98   :  { %2535 = vmatpush1.bf16.msra.mxu0 %v3922_v44  ;;  %3495 = vmatprep.subr.bf16.mxu1 %v3930_v48  ;;  %v4002_v44 = vld [vmem:[%s5449_s1 + $0x3b0] ss:$12 sps:$4 sm:$0xff]   ;;  %v4003_v48 = vld [vmem:[%s5449_s1 + $0x660] ss:$12 sps:$4 sm:$0xff]  }
  0x99   :  { %2536 = vmatprep.subr.bf16.mxu0 %v3929_v4  ;;  %v4006_v4 = vld [vmem:[%s5449_s1 + $0x548] ss:$12 sps:$4 sm:$0xff]  }
  0x9a   :  { %2777 = vmatmul.mubr.bf16.gmra.mrb[20].mxu1 %v4453_v19  ;;  %v3937_v19 = vld [vmem:[%s5449_s1 + $0x540] ss:$12 sps:$4 sm:$0xff]  }
  0x9b   :  { %3496 = vmatpush3.bf16.msra.mxu1 %v3931_v52  ;;  %2817 = vmatprep.mubr.bf16.mxu1 %v4345_v51  ;;  %v3942_v51 = vld [vmem:[%s5449_s1 + $0x558] ss:$12 sps:$4 sm:$0xff]   ;;  %v4010_v52 = vld [vmem:[%s5449_s1 + $0x67c] ss:$12 sps:$4 sm:$0xff]  }
  0x9c   :  { %2537 = vmatpush1.bf16.msra.mxu0 %v3927_v50  ;;  %3497 = vmatprep.subr.bf16.mxu1 %v3935_v54  ;;  %v4007_v50 = vld [vmem:[%s5449_s1 + $0x488] ss:$12 sps:$4 sm:$0xff]   ;;  %v4951_v54 = vld [vmem:[%s5450_s0 + $0x24] ss:$56 sps:$4 sm:$0xff]  }
  0x9d   :  { %2538 = vmatprep.subr.bf16.mxu0 %v3934_v53  ;;  %v4011_v53 = vld [vmem:[%s5449_s1 + $0x560] ss:$12 sps:$4 sm:$0xff]  }
  0x9f   :  { %3498 = vmatpush3.bf16.msra.mxu1 %v3936_v56  ;;  %v4012_v56 = vld [vmem:[%s5449_s1 + $0x4a0] ss:$12 sps:$4 sm:$0xff]  }
  0xa0   :  { %2539 = vmatpush1.bf16.msra.mxu0 %v3932_v18  ;;  %3499 = vmatprep.subr.bf16.mxu1 %v3940_v58  ;;  %v4008_v18 = vld [vmem:[%s5449_s1 + $0x678] ss:$12 sps:$4 sm:$0xff]   ;;  %v4013_v58 = vld [vmem:[%s5449_s1 + $0x690] ss:$12 sps:$4 sm:$0xff]  }
  0xa1   :  { %2540 = vmatprep.subr.bf16.mxu0 %v3939_v57  ;;  %v4015_v57 = vld [vmem:[%s5449_s1 + $0x694] ss:$12 sps:$4 sm:$0xff]  }
  0xa3   :  { %3500 = vmatpush3.bf16.msra.mxu1 %v3941_v59  ;;  %v4020_v59 = vld [vmem:[%s5449_s1 + $0x6ac] ss:$12 sps:$4 sm:$0xff]  }
  0xa4   :  { %2541 = vmatpush1.bf16.msra.mxu0 %v3937_v19  ;;  %3501 = vmatprep.subr.bf16.mxu1 %v3945_v61  ;;  %v4017_v19 = vld [vmem:[%s5449_s1 + $0x4b8] ss:$12 sps:$4 sm:$0xff]   ;;  %v4022_v61 = vld [vmem:[%s5449_s1 + $0x4d0] ss:$12 sps:$4 sm:$0xff]  }
  0xa5   :  { %2542 = vmatprep.subr.bf16.mxu0 %v3944_v60  ;;  %v4018_v60 = vld [vmem:[%s5449_s1 + $0x6a8] ss:$12 sps:$4 sm:$0xff]  }
  0xa7   :  { %3502 = vmatpush3.bf16.msra.mxu1 %v3946_v62  ;;  %v4023_v62 = vld [vmem:[%s5449_s1 + $0x6c0] ss:$12 sps:$4 sm:$0xff]  }
  0xa8   :  { %2543 = vmatpush1.bf16.msra.mxu0 %v3942_v51  ;;  %3503 = vmatprep.subr.bf16.mxu1 %v3950_v0  ;;  %v4025_v51 = vld [vmem:[%s5449_s1 + $0x6c4] ss:$12 sps:$4 sm:$0xff]   ;;  %v4030_v0 = vld [vmem:[%s5449_s1 + $0x6dc] ss:$12 sps:$4 sm:$0xff]  }
  0xa9   :  { %2544 = vmatprep.subr.bf16.mxu0 %v3949_v63  ;;  %v4027_v63 = vld [vmem:[%s5449_s1 + $0x4e8] ss:$12 sps:$4 sm:$0xff]  }
  0xab   :  { %3504 = vmatpush3.bf16.msra.mxu1 %v3951_v2  ;;  %v4032_v2 = vld [vmem:[%s5449_s1 + $0x500] ss:$12 sps:$4 sm:$0xff]  }
  0xac   :  { %2545 = vmatpush1.bf16.msra.mxu0 %v3947_v1  ;;  %3505 = vmatprep.subr.bf16.mxu1 %v3955_v6  ;;  %v4028_v1 = vld [vmem:[%s5449_s1 + $0x6d8] ss:$12 sps:$4 sm:$0xff]  }
  0xad   :  { %2546 = vmatprep.subr.bf16.mxu0 %v3954_v3  ;;  %v4035_v3 = vld [vmem:[%s5449_s1 + $0x6f4] ss:$12 sps:$4 sm:$0xff]   ;;  %v4036_v6 = vld [vmem:[%s5449_s1 + $0x5d8] ss:$12 sps:$4 sm:$0xff]  }
  0xaf   :  { %3506 = vmatpush3.bf16.msra.mxu1 %v3956_v8  ;;  %v4037_v8 = vld [vmem:[%s5449_s1 + $0x518] ss:$12 sps:$4 sm:$0xff]  }
  0xb0   :  { %2547 = vmatpush1.bf16.msra.mxu0 %v3952_v7  ;;  %3519 = vmatprep.subr.bf16.mxu1 %v3960_v10  ;;  %v4033_v7 = vld [vmem:[%s5449_s1 + $0x6f0] ss:$12 sps:$4 sm:$0xff]  }
  0xb1   :  { %2548 = vmatprep.subr.bf16.mxu0 %v3959_v9  ;;  %v4040_v9 = vld [vmem:[%s5449_s1 + $0x70c] ss:$12 sps:$4 sm:$0xff]   ;;  %v4041_v10 = vld [vmem:[%s5449_s1 + $0x5f0] ss:$12 sps:$4 sm:$0xff]  }
  0xb2   :  { %2818 = vmatmul.mubr.bf16.vlgmr.msra.gmra.mrb[24].mxu1 %v4405_v5  ;;  %v3969_v5 = vld [vmem:[%s5449_s1 + $0x5d0] ss:$12 sps:$4 sm:$0xff]  }
  0xb3   :  { %3520 = vmatpush3.bf16.msra.mxu1 %v3961_v12  ;;  %2825 = vmatprep.mubr.bf16.mxu1 %v4503_v34  ;;  %v3978_v34 = vld [vmem:[%s5449_s1 + $0x410] ss:$12 sps:$4 sm:$0xff]  }
  0xb4   :  { %2549 = vmatpush1.bf16.msra.mxu0 %v3957_v11  ;;  %3521 = vmatprep.subr.bf16.mxu1 %v3965_v14  ;;  %v4038_v11 = vld [vmem:[%s5449_s1 + $0x708] ss:$12 sps:$4 sm:$0xff]   ;;  %v4042_v12 = vld [vmem:[%s5449_s1 + $0x530] ss:$12 sps:$4 sm:$0xff]  }
  0xb5   :  { %2550 = vmatprep.subr.bf16.mxu0 %v3964_v13  ;;  %v4045_v13 = vld [vmem:[%s5449_s1 + $0x724] ss:$12 sps:$4 sm:$0xff]   ;;  %v4046_v14 = vld [vmem:[%s5449_s1 + $0x6c8] ss:$12 sps:$4 sm:$0xff]  }
  0xb7   :  { %3522 = vmatpush3.bf16.msra.mxu1 %v3966_v16  ;;  %v4047_v16 = vld [vmem:[%s5449_s1 + $0x608] ss:$12 sps:$4 sm:$0xff]  }
  0xb8   :  { %2551 = vmatpush1.bf16.msra.mxu0 %v3962_v15  ;;  %3523 = vmatprep.subr.bf16.mxu1 %v3972_v20  ;;  %v4043_v15 = vld [vmem:[%s5449_s1 + $0x720] ss:$12 sps:$4 sm:$0xff]  }
  0xb9   :  { %2552 = vmatprep.subr.bf16.mxu0 %v3971_v17  ;;  %v4050_v17 = vld [vmem:[%s5449_s1 + $0x73c] ss:$12 sps:$4 sm:$0xff]   ;;  %v4051_v20 = vld [vmem:[%s5449_s1 + $0x6e0] ss:$12 sps:$4 sm:$0xff]  }
  0xba   :  { %2826 = vmatmul.mubr.bf16.gmra.mrb[28].mxu1 %v4518_v38  ;;  %v4869_v38 = vld [vmem:[%s5450_s0 + $0x18] ss:$56 sps:$4 sm:$0xff]  }
  0xbb   :  { %3524 = vmatpush3.bf16.msra.mxu1 %v3974_v22  ;;  %2866 = vmatprep.mubr.bf16.mxu1 %v4542_v45  ;;  %v3988_v45 = vld [vmem:[%s5449_s1 + $0x618] ss:$12 sps:$4 sm:$0xff]   ;;  %v4052_v22 = vld [vmem:[%s5449_s1 + $0x620] ss:$12 sps:$4 sm:$0xff]  }
  0xbc   :  { %2553 = vmatpush1.bf16.msra.mxu0 %v3969_v5  ;;  %3525 = vmatprep.subr.bf16.mxu1 %v3978_v34  ;;  %v4048_v5 = vld [vmem:[%s5449_s1 + $0x738] ss:$12 sps:$4 sm:$0xff]  }
  0xbd   :  { %2554 = vmatprep.subr.bf16.mxu0 %v3977_v23  ;;  %v4057_v23 = vld [vmem:[%s5449_s1 + $0x754] ss:$12 sps:$4 sm:$0xff]   ;;  %v4059_v34 = vld [vmem:[%s5449_s1 + $0x6f8] ss:$12 sps:$4 sm:$0xff]  }
  0xbf   :  { %3526 = vmatpush3.bf16.msra.mxu1 %v3979_v49  ;;  %v4060_v49 = vld [vmem:[%s5449_s1 + $0x638] ss:$12 sps:$4 sm:$0xff]  }
  0xc0   :  { %2555 = vmatpush1.bf16.msra.mxu0 %v3975_v24  ;;  %3527 = vmatprep.subr.bf16.mxu1 %v3986_v26  ;;  %v4055_v24 = vld [vmem:[%s5449_s1 + $0x750] ss:$12 sps:$4 sm:$0xff]   ;;  %v4061_v26 = vld [vmem:[%s5449_s1 + $0x768] ss:$12 sps:$4 sm:$0xff]  }
  0xc1   :  { %2577 = vmatprep.subr.bf16.mxu0 %v3985_v25  ;;  %v4063_v25 = vld [vmem:[%s5449_s1 + $0x76c] ss:$12 sps:$4 sm:$0xff]  }
  0xc3   :  { %2557 = vmatmul.mubr.bf16.vlgmr.msra.gmra.mrb[0].mxu0 %v4869_v38  ;;  %3528 = vmatpush3.bf16.msra.mxu1 %v3987_v28  ;;  %v4071_v28 = vld [vmem:[%s5449_s1 + $0x784] ss:$12 sps:$4 sm:$0xff]  }
  0xc4   :  { %2578 = vmatpush1.bf16.msra.mxu0 %v3983_v27  ;;  %3529 = vmatprep.subr.bf16.mxu1 %v3991_v30  ;;  %v4065_v27 = vld [vmem:[%s5449_s1 + $0x650] ss:$12 sps:$4 sm:$0xff]   ;;  %v4066_v30 = vld [vmem:[%s5450_s0 + $0x20] ss:$56 sps:$4 sm:$0xff]  }
  0xc5   :  { %2579 = vmatprep.subr.bf16.mxu0 %v3990_v29  ;;  %2566 = vmatprep.mubr.bf16.mxu0 %v4912_v39  ;;  %v4072_v29 = vld [vmem:[%s5449_s1 + $0x728] ss:$12 sps:$4 sm:$0xff]  }
  0xc7   :  { %3530 = vmatpush3.bf16.msra.mxu1 %v3992_v31  ;;  %v4073_v31 = vld [vmem:[%s5449_s1 + $0x668] ss:$12 sps:$4 sm:$0xff]  }
  0xc8   :  { %2580 = vmatpush1.bf16.msra.mxu0 %v3988_v45  ;;  %3531 = vmatprep.subr.bf16.mxu1 %v3996_v33  ;;  %v4069_v45 = vld [vmem:[%s5449_s1 + $0x780] ss:$12 sps:$4 sm:$0xff]  }
  0xc9   :  { %2581 = vmatprep.subr.bf16.mxu0 %v3995_v32  ;;  %v4076_v32 = vld [vmem:[%s5449_s1 + $0x79c] ss:$12 sps:$4 sm:$0xff]   ;;  %v4077_v33 = vld [vmem:[%s5449_s1 + $0x740] ss:$12 sps:$4 sm:$0xff]  }
  0xcb   :  { %3532 = vmatpush3.bf16.msra.mxu1 %v3997_v36  ;;  %2567 = vmatmul.mubr.bf16.gmra.mrb[4].mxu0 %v4921_v41  ;;  %v4078_v36 = vld [vmem:[%s5449_s1 + $0x680] ss:$12 sps:$4 sm:$0xff]  }
  0xcc   :  { %2582 = vmatpush1.bf16.msra.mxu0 %v3993_v35  ;;  %3533 = vmatprep.subr.bf16.mxu1 %v4001_v40  ;;  %v4074_v35 = vld [vmem:[%s5449_s1 + $0x798] ss:$12 sps:$4 sm:$0xff]  }
  0xcd   :  { %2583 = vmatprep.subr.bf16.mxu0 %v4000_v37  ;;  %2609 = vmatprep.mubr.bf16.mxu0 %v4951_v54  ;;  %v4099_v37 = vld [vmem:[%s5450_s0 + $0x94] ss:$56 sps:$4 sm:$0xff]   ;;  %v4082_v40 = vld [vmem:[%s5449_s1 + $0x758] ss:$12 sps:$4 sm:$0xff]  }
  0xcf   :  { %3534 = vmatpush3.bf16.msra.mxu1 %v4002_v44  ;;  %v4086_v44 = vld [vmem:[%s5449_s1 + $0x7cc] ss:$12 sps:$4 sm:$0xff]  }
  0xd0   :  { %2584 = vmatpush1.bf16.msra.mxu0 %v3998_v43  ;;  %3547 = vmatprep.subr.bf16.mxu1 %v4006_v4  ;;  %v4083_v43 = vld [vmem:[%s5449_s1 + $0x698] ss:$12 sps:$4 sm:$0xff]   ;;  %v4104_v4 = vld [vmem:[%s5450_s0 + $0x90] ss:$56 sps:$4 sm:$0xff]  }
  0xd1   :  { %2585 = vmatprep.subr.bf16.mxu0 %v4005_v47  ;;  %v4087_v47 = vld [vmem:[%s5449_s1 + $0x770] ss:$12 sps:$4 sm:$0xff]  }
  0xd2   :  { %2867 = vmatmul.mubr.bf16.vlgmr.msra.gmra.mrb[32].mxu1 %v4648_v21  ;;  %v4016_v21 = vld [vmem:[%s5449_s1 + $0x578] ss:$12 sps:$4 sm:$0xff]  }
  0xd3   :  { %3548 = vmatpush3.bf16.msra.mxu1 %v4007_v50  ;;  %2874 = vmatprep.mubr.bf16.mxu1 %v4712_v42  ;;  %v4021_v42 = vld [vmem:[%s5449_s1 + $0x590] ss:$12 sps:$4 sm:$0xff]  }
  0xd4   :  { %2586 = vmatpush1.bf16.msra.mxu0 %v4003_v48  ;;  %3549 = vmatprep.subr.bf16.mxu1 %v4011_v53  ;;  %v4084_v48 = vld [vmem:[%s5449_s1 + $0x7c8] ss:$12 sps:$4 sm:$0xff]   ;;  %v4088_v50 = vld [vmem:[%s5449_s1 + $0x6b0] ss:$12 sps:$4 sm:$0xff]   ;;  %v4134_v53 = vld [vmem:[%s5450_s0 + $0x2c] ss:$56 sps:$4 sm:$0xff]  }
  0xd5   :  { %2587 = vmatprep.subr.bf16.mxu0 %v4010_v52  ;;  %v4091_v52 = vld [vmem:[%s5449_s1 + $0x7e4] ss:$12 sps:$4 sm:$0xff]  }
  0xd7   :  { %3550 = vmatpush3.bf16.msra.mxu1 %v4012_v56  ;;  %v4093_v56 = vld [vmem:[%s5449_s1 + $0x788] ss:$12 sps:$4 sm:$0xff]  }
  0xd8   :  { %2588 = vmatpush1.bf16.msra.mxu0 %v4008_v18  ;;  %3551 = vmatprep.subr.bf16.mxu1 %v4016_v21  ;;  %v4089_v18 = vld [vmem:[%s5449_s1 + $0x7e0] ss:$12 sps:$4 sm:$0xff]  }
  0xd9   :  { %2589 = vmatprep.subr.bf16.mxu0 %v4015_v57  ;;  %v4096_v57 = vld [vmem:[%s5449_s1 + $0x7fc] ss:$12 sps:$4 sm:$0xff]   ;;  %v4097_v21 = vld [vmem:[%s5449_s1 + $0x860] ss:$12 sps:$4 sm:$0xff]  }
  0xda   :  { %2875 = vmatmul.mubr.bf16.gmra.mrb[36].mxu1 %v4725_v46  ;;  %v4026_v46 = vld [vmem:[%s5449_s1 + $0x5a8] ss:$12 sps:$4 sm:$0xff]  }
  0xdb   :  { %3552 = vmatpush3.bf16.msra.mxu1 %v4017_v19  ;;  %2915 = vmatprep.mubr.bf16.mxu1 %v4753_v55  ;;  %v4031_v55 = vld [vmem:[%s5449_s1 + $0x5c0] ss:$12 sps:$4 sm:$0xff]  }
  0xdc   :  { %2590 = vmatpush1.bf16.msra.mxu0 %v4013_v58  ;;  %3553 = vmatprep.subr.bf16.mxu1 %v4021_v42  ;;  %v4094_v58 = vld [vmem:[%s5449_s1 + $0x7f8] ss:$12 sps:$4 sm:$0xff]   ;;  %v4098_v19 = vld [vmem:[%s5449_s1 + $0x7a0] ss:$12 sps:$4 sm:$0xff]  }
  0xdd   :  { %2591 = vmatprep.subr.bf16.mxu0 %v4020_v59  ;;  %v4103_v59 = vld [vmem:[%s5449_s1 + $0x814] ss:$12 sps:$4 sm:$0xff]   ;;  %v4105_v42 = vld [vmem:[%s5449_s1 + $0x878] ss:$12 sps:$4 sm:$0xff]  }
  0xdf   :  { %3554 = vmatpush3.bf16.msra.mxu1 %v4022_v61 }
  0xe0   :  { %2592 = vmatpush1.bf16.msra.mxu0 %v4018_v60  ;;  %3555 = vmatprep.subr.bf16.mxu1 %v4026_v46  ;;  %v4101_v46 = vld [vmem:[%s5449_s1 + $0x810] ss:$12 sps:$4 sm:$0xff]  }
  0xe1   :  { %2593 = vmatprep.subr.bf16.mxu0 %v4025_v51 }
  0xe3   :  { %3556 = vmatpush3.bf16.msra.mxu1 %v4027_v63 }
  0xe4   :  { %2594 = vmatpush1.bf16.msra.mxu0 %v4023_v62  ;;  %3557 = vmatprep.subr.bf16.mxu1 %v4031_v55  ;;  %v4106_v62 = vld [vmem:[%s5449_s1 + $0x7b8] ss:$12 sps:$4 sm:$0xff]   ;;  %v4110_v55 = vld [vmem:[%s5449_s1 + $0x890] ss:$12 sps:$4 sm:$0xff]  }
  0xe5   :  { %2595 = vmatprep.subr.bf16.mxu0 %v4030_v0  ;;  %v4109_v0 = vld [vmem:[%s5449_s1 + $0x82c] ss:$12 sps:$4 sm:$0xff]  }
  0xe7   :  { %3558 = vmatpush3.bf16.msra.mxu1 %v4032_v2  ;;  %v4111_v2 = vld [vmem:[%s5449_s1 + $0x7d0] ss:$12 sps:$4 sm:$0xff]  }
  0xe8   :  { %2596 = vmatpush1.bf16.msra.mxu0 %v4028_v1  ;;  %3559 = vmatprep.subr.bf16.mxu1 %v4036_v6  ;;  %v4107_v1 = vld [vmem:[%s5449_s1 + $0x828] ss:$12 sps:$4 sm:$0xff]  }
  0xe9   :  { %2597 = vmatprep.subr.bf16.mxu0 %v4035_v3  ;;  %v4114_v3 = vld [vmem:[%s5449_s1 + $0x844] ss:$12 sps:$4 sm:$0xff]   ;;  %v4115_v6 = vld [vmem:[%s5449_s1 + $0x8a8] ss:$12 sps:$4 sm:$0xff]  }
  0xeb   :  { %3560 = vmatpush3.bf16.msra.mxu1 %v4037_v8 }
  0xec   :  { %2598 = vmatpush1.bf16.msra.mxu0 %v4033_v7  ;;  %3561 = vmatprep.subr.bf16.mxu1 %v4041_v10  ;;  %v4116_v10 = vld [vmem:[%s5449_s1 + $0x7e8] ss:$12 sps:$4 sm:$0xff]  }
  0xed   :  { %2599 = vmatprep.subr.bf16.mxu0 %v4040_v9  ;;  %v4112_v9 = vld [vmem:[%s5449_s1 + $0x840] ss:$12 sps:$4 sm:$0xff]  }
  0xef   :  { %3562 = vmatpush3.bf16.msra.mxu1 %v4042_v12  ;;  %v4119_v12 = vld [vmem:[%s5449_s1 + $0x85c] ss:$12 sps:$4 sm:$0xff]  }
  0xf0   :  { %2600 = vmatpush1.bf16.msra.mxu0 %v4038_v11  ;;  %3575 = vmatprep.subr.bf16.mxu1 %v4046_v14 }
  0xf1   :  { %2601 = vmatprep.subr.bf16.mxu0 %v4045_v13  ;;  %v4120_v13 = vld [vmem:[%s5449_s1 + $0x8c0] ss:$12 sps:$4 sm:$0xff]  }
  0xf2   :  { %2916 = vmatmul.mubr.bf16.vlgmr.msra.gmra.mrb[40].mxu1 %v4869_v38  ;;  %v4064_v38 = vld [vmem:[%s5449_s1 + $0x710] ss:$12 sps:$4 sm:$0xff]  }
  0xf3   :  { %3576 = vmatpush3.bf16.msra.mxu1 %v4047_v16  ;;  %2923 = vmatprep.mubr.bf16.mxu1 %v4912_v39  ;;  %v4081_v39 = vld [vmem:[%s5449_s1 + $0x7b4] ss:$12 sps:$4 sm:$0xff]  }
  0xf4   :  { %2602 = vmatpush1.bf16.msra.mxu0 %v4043_v15  ;;  %3577 = vmatprep.subr.bf16.mxu1 %v4051_v20  ;;  %v4117_v15 = vld [vmem:[%s5449_s1 + $0x858] ss:$12 sps:$4 sm:$0xff]   ;;  %v4121_v16 = vld [vmem:[%s5449_s1 + $0x800] ss:$12 sps:$4 sm:$0xff]  }
  0xf5   :  { %2603 = vmatprep.subr.bf16.mxu0 %v4050_v17  ;;  %v4124_v17 = vld [vmem:[%s5449_s1 + $0x874] ss:$12 sps:$4 sm:$0xff]   ;;  %v4125_v20 = vld [vmem:[%s5449_s1 + $0x8d8] ss:$12 sps:$4 sm:$0xff]  }
  0xf7   :  { %3578 = vmatpush3.bf16.msra.mxu1 %v4052_v22  ;;  %v4126_v22 = vld [vmem:[%s5449_s1 + $0x818] ss:$12 sps:$4 sm:$0xff]  }
  0xf8   :  { %2604 = vmatpush1.bf16.msra.mxu0 %v4048_v5  ;;  %3579 = vmatprep.subr.bf16.mxu1 %v4059_v34  ;;  %v4122_v5 = vld [vmem:[%s5449_s1 + $0x870] ss:$12 sps:$4 sm:$0xff]  }
  0xf9   :  { %2605 = vmatprep.subr.bf16.mxu0 %v4057_v23  ;;  %v4129_v23 = vld [vmem:[%s5449_s1 + $0x88c] ss:$12 sps:$4 sm:$0xff]   ;;  %v4130_v34 = vld [vmem:[%s5449_s1 + $0x8f0] ss:$12 sps:$4 sm:$0xff]  }
  0xfa   :  { %2924 = vmatmul.mubr.bf16.gmra.mrb[44].mxu1 %v4921_v41  ;;  %v4079_v41 = vld [vmem:[%s5449_s1 + $0x7b0] ss:$12 sps:$4 sm:$0xff]  }
  0xfb   :  { %3580 = vmatpush3.bf16.msra.mxu1 %v4060_v49  ;;  %2964 = vmatprep.mubr.bf16.mxu1 %v4951_v54  ;;  %v4092_v54 = vld [vmem:[%s5449_s1 + $0x848] ss:$12 sps:$4 sm:$0xff]   ;;  %v4131_v49 = vld [vmem:[%s5449_s1 + $0x830] ss:$12 sps:$4 sm:$0xff]  }
  0xfc   :  { %2606 = vmatpush1.bf16.msra.mxu0 %v4055_v24  ;;  %3581 = vmatprep.subr.bf16.mxu1 %v4064_v38  ;;  %v4127_v24 = vld [vmem:[%s5449_s1 + $0x888] ss:$12 sps:$4 sm:$0xff]  }
  0xfd   :  { %2607 = vmatprep.subr.bf16.mxu0 %v4063_v25  ;;  %v4137_v25 = vld [vmem:[%s5449_s1 + $0x8a4] ss:$12 sps:$4 sm:$0xff]   ;;  %v4132_v38 = vld [vmem:[%s5450_s0 + $0x28] ss:$56 sps:$4 sm:$0xff]  }
  0xff   :  { %3582 = vmatpush3.bf16.msra.mxu1 %v4065_v27  ;;  %v4138_v27 = vld [vmem:[%s5449_s1 + $0x908] ss:$12 sps:$4 sm:$0xff]  }
 0x100   :  { %2608 = vmatpush1.bf16.msra.mxu0 %v4061_v26  ;;  %3583 = vmatprep.subr.bf16.mxu1 %v4072_v29  ;;  %v4135_v26 = vld [vmem:[%s5449_s1 + $0x8a0] ss:$12 sps:$4 sm:$0xff]   ;;  %v4141_v29 = vld [vmem:[%s5449_s1 + $0x8bc] ss:$12 sps:$4 sm:$0xff]  }
 0x101   :  { %2630 = vmatprep.subr.bf16.mxu0 %v4071_v28  ;;  %v4166_v28 = vmov 0  }
 0x103   :  { %2610 = vmatmul.mubr.bf16.vlgmr.msra.gmra.mrb[0].mxu0 %v4066_v30  ;;  %3584 = vmatpush3.bf16.msra.mxu1 %v4073_v31  ;;  %v4142_v31 = vld [vmem:[%s5449_s1 + $0x920] ss:$12 sps:$4 sm:$0xff]  }
 0x104   :  { %2631 = vmatpush1.bf16.msra.mxu0 %v4069_v45  ;;  %3585 = vmatprep.subr.bf16.mxu1 %v4077_v33  ;;  %v4139_v45 = vld [vmem:[%s5449_s1 + $0x8b8] ss:$12 sps:$4 sm:$0xff]  }
 0x105   :  { %2632 = vmatprep.subr.bf16.mxu0 %v4076_v32  ;;  %2619 = vmatprep.mubr.bf16.mxu0 %v4099_v37  ;;  %v4147_v32 = vld [vmem:[%s5449_s1 + $0x8d4] ss:$12 sps:$4 sm:$0xff]   ;;  %v4148_v33 = vld [vmem:[%s5450_s0 + $0x98] ss:$56 sps:$4 sm:$0xff]  }
 0x107   :  { %3586 = vmatpush3.bf16.msra.mxu1 %v4078_v36  ;;  %v4149_v36 = vld [vmem:[%s5449_s1 + $0x938] ss:$12 sps:$4 sm:$0xff]  }
 0x108   :  { %2633 = vmatpush1.bf16.msra.mxu0 %v4074_v35  ;;  %3587 = vmatprep.subr.bf16.mxu1 %v4082_v40  ;;  %v4145_v35 = vld [vmem:[%s5449_s1 + $0x8d0] ss:$12 sps:$4 sm:$0xff]  }
 0x109   :  { %2634 = vmatprep.subr.bf16.mxu0 %v4081_v39  ;;  %v4150_v39 = vld [vmem:[%s5449_s1 + $0x8e8] ss:$12 sps:$4 sm:$0xff]   ;;  %v4153_v40 = vld [vmem:[%s5449_s1 + $0x950] ss:$12 sps:$4 sm:$0xff]  }
 0x10b   :  { %2620 = vmatmul.mubr.bf16.gmra.mrb[4].mxu0 %v4104_v4  ;;  %3588 = vmatpush3.bf16.msra.mxu1 %v4083_v43  ;;  %v4154_v43 = vld [vmem:[%s5449_s1 + $0x968] ss:$12 sps:$4 sm:$0xff]  }
 0x10c   :  { %2635 = vmatpush1.bf16.msra.mxu0 %v4079_v41  ;;  %3589 = vmatprep.subr.bf16.mxu1 %v4087_v47  ;;  %v4162_v41 = vld [vmem:[%s5450_s0 + $0x34] ss:$56 sps:$4 sm:$0xff]  }
 0x10d   :  { %2636 = vmatprep.subr.bf16.mxu0 %v4086_v44  ;;  %2662 = vmatprep.mubr.bf16.mxu0 %v4134_v53  ;;  %v4155_v44 = vld [vmem:[%s5449_s1 + $0x980] ss:$12 sps:$4 sm:$0xff]  }
 0x10f   :  { %3590 = vmatpush3.bf16.msra.mxu1 %v4088_v50  ;;  %v4156_v50 = vld [vmem:[%s5449_s1 + $0x998] ss:$12 sps:$4 sm:$0xff]  }
 0x110   :  { %2637 = vmatpush1.bf16.msra.mxu0 %v4084_v48  ;;  %3603 = vmatprep.subr.bf16.mxu1 %v4092_v54 }
 0x111   :  { %2638 = vmatprep.subr.bf16.mxu0 %v4091_v52 }
 0x112   :  { %2965 = vmatmul.mubr.bf16.vlgmr.msra.gmra.mrb[48].mxu1 %v4066_v30  ;;  %v4143_v30 = vld [vmem:[%s5450_s0 + $0x9c] ss:$56 sps:$4 sm:$0xff]  }
 0x113   :  { %3604 = vmatpush3.bf16.msra.mxu1 %v4093_v56  ;;  %2972 = vmatprep.mubr.bf16.mxu1 %v4099_v37  ;;  %v4152_v37 = vld [vmem:[%s5449_s1 + $0x8ec] ss:$12 sps:$4 sm:$0xff]   ;;  %v4158_v56 = vld [vmem:[%s5449_s1 + $0x9c8] ss:$12 sps:$4 sm:$0xff]  }
 0x114   :  { %2639 = vmatpush1.bf16.msra.mxu0 %v4089_v18  ;;  %3605 = vmatprep.subr.bf16.mxu1 %v4097_v21 }
 0x115   :  { %2640 = vmatprep.subr.bf16.mxu0 %v4096_v57  ;;  %v5178_v60 = vpop.f32.mrb[0].mxu1 }
 0x116   :  { %v5180_v61 = vpop.f32.mrb[1].mxu1 }
 0x117   :  { %v5182_v51 = vpop.f32.mrb[2].mxu1  ;;  %3606 = vmatpush3.bf16.msra.mxu1 %v4098_v19  ;;  %v4160_v19 = vld [vmem:[%s5449_s1 + $0x9f8] ss:$12 sps:$4 sm:$0xff]  }
 0x118   :  { %2641 = vmatpush1.bf16.msra.mxu0 %v4094_v58  ;;  %v5190_v63 = vpop.f32.mrb[3].mxu1  ;;  %3607 = vmatprep.subr.bf16.mxu1 %v4105_v42  ;;  %v4159_v58 = vld [vmem:[%s5449_s1 + $0x9e0] ss:$12 sps:$4 sm:$0xff]   ;;  %v4163_v42 = vld [vmem:[%s5450_s0 + $0x30] ss:$56 sps:$4 sm:$0xff]  }
 0x119   :  { %2642 = vmatprep.subr.bf16.mxu0 %v4103_v59  ;;  %v4161_v59 = vld [vmem:[%s5449_s1 + $0xa10] ss:$12 sps:$4 sm:$0xff]  }
 0x11a   :  { %2973 = vmatmul.mubr.bf16.gmra.mrb[52].mxu1 %v4104_v4 }
 0x11b   :  { %3608 = vmatpush3.bf16.msra.mxu1 %v4106_v62  ;;  %3013 = vmatprep.mubr.bf16.mxu1 %v4134_v53  ;;  %v4157_v53 = vld [vmem:[%s5449_s1 + $0x9b0] ss:$12 sps:$4 sm:$0xff]  }
 0x11c   :  { %2643 = vmatpush1.bf16.msra.mxu0 %v4101_v46  ;;  %3609 = vmatprep.subr.bf16.mxu1 %v4110_v55  ;;  %v4164_v46 = vld [vmem:[%s5450_s0 + $0xa4] ss:$56 sps:$4 sm:$0xff]  }
 0x11d   :  { %2644 = vmatprep.subr.bf16.mxu0 %v4109_v0  ;;  %v5210_v7 = vpop.f32.mrb[4].mxu1 }
 0x11e   :  { %v5212_v8 = vpop.f32.mrb[5].mxu1 }
 0x11f   :  { %3610 = vmatpush3.bf16.msra.mxu1 %v4111_v2  ;;  %v5220_v11 = vpop.f32.mrb[6].mxu1 }
 0x120   :  { %2645 = vmatpush1.bf16.msra.mxu0 %v4107_v1  ;;  %3611 = vmatprep.subr.bf16.mxu1 %v4115_v6  ;;  %v5228_v14 = vpop.f32.mrb[7].mxu1  ;;  %v4165_v6 = vld [vmem:[%s5450_s0 + $0xa0] ss:$56 sps:$4 sm:$0xff]  }
 0x121   :  { %2646 = vmatprep.subr.bf16.mxu0 %v4114_v3 }
 0x123   :  { %3612 = vmatpush3.bf16.msra.mxu1 %v4116_v10 }
 0x124   :  { %2647 = vmatpush1.bf16.msra.mxu0 %v4112_v9  ;;  %3613 = vmatprep.subr.bf16.mxu1 %v4120_v13 }
 0x125   :  { %2648 = vmatprep.subr.bf16.mxu0 %v4119_v12 }
 0x127   :  { %3614 = vmatpush3.bf16.msra.mxu1 %v4121_v16 }
 0x128   :  { %2649 = vmatpush1.bf16.msra.mxu0 %v4117_v15  ;;  %3615 = vmatprep.subr.bf16.mxu1 %v4125_v20 }
 0x129   :  { %2650 = vmatprep.subr.bf16.mxu0 %v4124_v17  ;;  %v477_v17 = vlaneseq }
 0x12b   :  { %3616 = vmatpush3.bf16.msra.mxu1 %v4126_v22  ;;  %v5371_v20 = vshrl.u32 %v477_v17, 7  ;;  %v5377_v22 = vld [vmem:[%s5451_s2] sm:$0x7] }
 0x12c   :  { %2651 = vmatpush1.bf16.msra.mxu0 %v4122_v5  ;;  %3617 = vmatprep.subr.bf16.mxu1 %v4130_v34 }
 0x12d   :  { %2652 = vmatprep.subr.bf16.mxu0 %v4129_v23  ;;  %v487_v5 = vsub.s32 2, %v5371_v20 }
 0x12f   :  { %3618 = vmatpush3.bf16.msra.mxu1 %v4131_v49  ;;  %v488_v23 = vrot.slane %v5377_v22, %v487_v5 }
 0x130   :  { %2653 = vmatpush1.bf16.msra.mxu0 %v4127_v24  ;;  %3030 = vmatprep.subr.bf16.mxu1 %v4166_v28 }
 0x131   :  { %2654 = vmatprep.subr.bf16.mxu0 %v4137_v25 }
 0x132   :  { %3014 = vmatmul.mubr.bf16.vlgmr.msra.gmra.mrb[56].mxu1 %v4132_v38 }
 0x133   :  { %3031 = vmatpush1.bf16.msra.mxu1 %v4138_v27  ;;  %3021 = vmatprep.mubr.bf16.mxu1 %v4143_v30 }
 0x134   :  { %2655 = vmatpush1.bf16.msra.mxu0 %v4135_v26  ;;  %3032 = vmatprep.subr.bf16.mxu1 %v4166_v28 }
 0x135   :  { %2656 = vmatprep.subr.bf16.mxu0 %v4141_v29 }
 0x137   :  { %3033 = vmatpush1.bf16.msra.mxu1 %v4142_v31 }
 0x138   :  { %2657 = vmatpush1.bf16.msra.mxu0 %v4139_v45  ;;  %3034 = vmatprep.subr.bf16.mxu1 %v4166_v28 }
 0x139   :  { %2658 = vmatprep.subr.bf16.mxu0 %v4147_v32 }
 0x13a   :  { %3022 = vmatmul.mubr.bf16.gmra.mrb[60].mxu1 %v4148_v33 }
 0x13b   :  { %3035 = vmatpush1.bf16.msra.mxu1 %v4149_v36  ;;  %3461 = vmatprep.mubr.msk.bf16.mxu1 %vm2358_vm0, %v4162_v41 }
 0x13c   :  { %2659 = vmatpush1.bf16.msra.mxu0 %v4145_v35  ;;  %3036 = vmatprep.subr.bf16.mxu1 %v4166_v28 }
 0x13d   :  { %2660 = vmatprep.subr.bf16.mxu0 %v4152_v37 }
 0x13f   :  { %3037 = vmatpush1.bf16.msra.mxu1 %v4153_v40 }
 0x140   :  { %2661 = vmatpush1.bf16.msra.mxu0 %v4150_v39  ;;  %3038 = vmatprep.subr.bf16.mxu1 %v4166_v28 }
 0x143   :  { %2663 = vmatmul.mubr.bf16.vlgmr.msra.gmra.mrb[0].mxu0 %v4132_v38  ;;  %3039 = vmatpush1.bf16.msra.mxu1 %v4154_v43 }
 0x144   :  { %2672 = vmatprep.mubr.bf16.mxu0 %v4143_v30  ;;  %3040 = vmatprep.subr.bf16.mxu1 %v4166_v28 }
 0x145   :  { %v5321_v47 = vpop.f32.mrb[8].mxu1 }
 0x146   :  { %v5323_v4 = vpop.f32.mrb[9].mxu1 }
 0x147   :  { %v5325_v48 = vpop.f32.mrb[10].mxu1  ;;  %3041 = vmatpush1.bf16.msra.mxu1 %v4155_v44 }
 0x148   :  { %v5330_v52 = vpop.f32.mrb[11].mxu1  ;;  %3042 = vmatprep.subr.bf16.mxu1 %v4166_v28 }
 0x14b   :  { %2673 = vmatmul.mubr.bf16.gmra.mrb[4].mxu0 %v4148_v33  ;;  %3043 = vmatpush1.bf16.msra.mxu1 %v4156_v50 }
 0x14c   :  { %3044 = vmatprep.subr.bf16.mxu1 %v4166_v28 }
 0x14d   :  { %v5337_v54 = vpop.f32.mrb[12].mxu1 }
 0x14e   :  { %v5339_v18 = vpop.f32.mrb[13].mxu1 }
 0x14f   :  { %3045 = vmatpush1.bf16.msra.mxu1 %v4157_v53  ;;  %v5344_v57 = vpop.f32.mrb[14].mxu1 }
 0x150   :  { %3046 = vmatprep.subr.bf16.mxu1 %v4166_v28  ;;  %v5347_v21 = vpop.f32.mrb[15].mxu1 }
 0x153   :  { %3047 = vmatpush1.bf16.msra.mxu1 %v4158_v56 }
 0x154   :  { %3048 = vmatprep.subr.bf16.mxu1 %v4166_v28 }
 0x157   :  { %3049 = vmatpush1.bf16.msra.mxu1 %v4159_v58 }
 0x158   :  { %3050 = vmatprep.subr.bf16.mxu1 %v4166_v28 }
 0x15b   :  { %3051 = vmatpush1.bf16.msra.mxu1 %v4160_v19 }
 0x15c   :  { %3052 = vmatprep.subr.bf16.mxu1 %v4166_v28 }
 0x15f   :  { %3053 = vmatpush1.bf16.msra.mxu1 %v4161_v59 }
 0x162   :  { %3063 = vmatmul.mubr.bf16.vlgmr.msra.gmra.mrb[64].mxu1 %v4163_v42 }
 0x163   :  { %3462 = vmatprep.mubr.msk.bf16.mxu1 %vm2358_vm0, %v4164_v46 }
 0x165   :  { %v3479_v62 = vpop.f32.mrb[16].mxu1 }
 0x166   :  { %v3480_v0 = vpop.f32.mrb[17].mxu1 }
 0x167   :  { %v3481_v55 = vadd.f32 %v3480_v0, %v3479_v62  ;;  %v3482_v1 = vpop.f32.mrb[18].mxu1 }
 0x168   :  { %v3483_v2 = vpop.f32.mrb[19].mxu1 }
 0x169   :  { %v3484_v3 = vadd.f32 %v3483_v2, %v3482_v1  ;;  %v2771_v49 = vadd.f32 %v3481_v55, %v488_v23 }
 0x16a   :  { %3071 = vmatmul.mubr.bf16.gmra.mrb[68].mxu1 %v4165_v6 }
 0x16b   :  { %v2774_v27 = vadd.f32 %v3484_v3, %v488_v23 }
 0x16d   :  { %v3485_v9 = vpop.f32.mrb[20].mxu1 }
 0x16e   :  { %v3486_v10 = vpop.f32.mrb[21].mxu1 }
 0x16f   :  { %v3487_v12 = vadd.f32 %v3486_v10, %v3485_v9  ;;  %v3488_v13 = vpop.f32.mrb[22].mxu1 }
 0x170   :  { %v3489_v15 = vpop.f32.mrb[23].mxu1 }
 0x171   :  { %v3490_v16 = vadd.f32 %v3489_v15, %v3488_v13  ;;  %v2779_v32 = vadd.f32 %v3487_v12, %v488_v23 }
 0x173   :  { %v2782_v37 = vadd.f32 %v3490_v16, %v488_v23 }
 0x185   :  { %v3507_v34 = vpop.f32.mrb[24].mxu1 }
 0x186   :  { %v3508_v24 = vpop.f32.mrb[25].mxu1 }
 0x187   :  { %v3509_v25 = vadd.f32 %v3508_v24, %v3507_v34  ;;  %v3510_v38 = vpop.f32.mrb[26].mxu1 }
 0x188   :  { %v3511_v26 = vpop.f32.mrb[27].mxu1 }
 0x189   :  { %v2820_v28 = vadd.f32 %v3509_v25, %v2771_v49  ;;  %v3512_v29 = vadd.f32 %v3511_v26, %v3510_v38 }
 0x18b   :  { %v2823_v30 = vadd.f32 %v3512_v29, %v2774_v27 }
 0x18d   :  { %v3513_v45 = vpop.f32.mrb[28].mxu1 }
 0x18e   :  { %v3514_v31 = vpop.f32.mrb[29].mxu1 }
 0x18f   :  { %v3515_v33 = vadd.f32 %v3514_v31, %v3513_v45  ;;  %v3516_v35 = vpop.f32.mrb[30].mxu1 }
 0x190   :  { %v3517_v36 = vpop.f32.mrb[31].mxu1 }
 0x191   :  { %v2828_v39 = vadd.f32 %v3515_v33, %v2779_v32  ;;  %v3518_v40 = vadd.f32 %v3517_v36, %v3516_v35 }
 0x193   :  { %v2831_v41 = vadd.f32 %v3518_v40, %v2782_v37 }
 0x1a5   :  { %v3535_v43 = vpop.f32.mrb[32].mxu1 }
 0x1a6   :  { %v3536_v44 = vpop.f32.mrb[33].mxu1 }
 0x1a7   :  { %v3537_v50 = vadd.f32 %v3536_v44, %v3535_v43  ;;  %v3538_v53 = vpop.f32.mrb[34].mxu1 }
 0x1a8   :  { %v3539_v56 = vpop.f32.mrb[35].mxu1 }
 0x1a9   :  { %v2869_v58 = vadd.f32 %v3537_v50, %v2820_v28  ;;  %v3540_v19 = vadd.f32 %v3539_v56, %v3538_v53 }
 0x1ab   :  { %v2872_v59 = vadd.f32 %v3540_v19, %v2823_v30 }
 0x1ad   :  { %v3541_v42 = vpop.f32.mrb[36].mxu1 }
 0x1ae   :  { %v3542_v46 = vpop.f32.mrb[37].mxu1 }
 0x1af   :  { %v3543_v62 = vadd.f32 %v3542_v46, %v3541_v42  ;;  %v3544_v0 = vpop.f32.mrb[38].mxu1 }
 0x1b0   :  { %v3545_v55 = vpop.f32.mrb[39].mxu1 }
 0x1b1   :  { %v2877_v1 = vadd.f32 %v3543_v62, %v2828_v39  ;;  %v3546_v2 = vadd.f32 %v3545_v55, %v3544_v0  ;;  %v479_v62 = vsub.s32 0, %v5371_v20  ;;  %v483_v0 = vsub.s32 1, %v5371_v20 }
 0x1b3   :  { %v2880_v3 = vadd.f32 %v3546_v2, %v2831_v41 }
 0x1c5   :  { %v3563_v6 = vpop.f32.mrb[40].mxu1 }
 0x1c6   :  { %v3564_v9 = vpop.f32.mrb[41].mxu1 }
 0x1c7   :  { %v3565_v10 = vadd.f32 %v3564_v9, %v3563_v6  ;;  %v3566_v12 = vpop.f32.mrb[42].mxu1  ;;  %v480_v6 = vrot.slane %v5377_v22, %v479_v62 }
 0x1c8   :  { %v3567_v13 = vpop.f32.mrb[43].mxu1 }
 0x1c9   :  { %v2918_v15 = vadd.f32 %v3565_v10, %v2869_v58  ;;  %v3568_v16 = vadd.f32 %v3567_v13, %v3566_v12  ;;  %v484_v10 = vrot.slane %v5377_v22, %v483_v0  ;;  %v2404_v20 = vadd.f32 %v5182_v51, %v480_v6 }
 0x1ca   :  { %v2410_v51 = vadd.f32 %v5210_v7, %v480_v6 }
 0x1cb   :  { %v2921_v17 = vadd.f32 %v3568_v16, %v2872_v59  ;;  %v2400_v16 = vadd.f32 %v5178_v60, %v480_v6 }
 0x1cd   :  { %v3569_v5 = vpop.f32.mrb[44].mxu1 }
 0x1ce   :  { %v3570_v23 = vpop.f32.mrb[45].mxu1 }
 0x1cf   :  { %v3571_v34 = vadd.f32 %v3570_v23, %v3569_v5  ;;  %v3572_v24 = vpop.f32.mrb[46].mxu1 }
 0x1d0   :  { %v3573_v49 = vpop.f32.mrb[47].mxu1 }
 0x1d1   :  { %v2926_v25 = vadd.f32 %v3571_v34, %v2877_v1  ;;  %v3574_v38 = vadd.f32 %v3573_v49, %v3572_v24  ;;  %v2406_v24 = vadd.f32 %v5190_v63, %v484_v10 }
 0x1d3   :  { %v2929_v26 = vadd.f32 %v3574_v38, %v2880_v3 }
 0x1e5   :  { %v3591_v27 = vpop.f32.mrb[48].mxu1 }
 0x1e6   :  { %v3592_v28 = vpop.f32.mrb[49].mxu1 }
 0x1e7   :  { %v3593_v29 = vadd.f32 %v3592_v28, %v3591_v27  ;;  %v3594_v30 = vpop.f32.mrb[50].mxu1 }
 0x1e8   :  { %v3595_v45 = vpop.f32.mrb[51].mxu1 }
 0x1e9   :  { %v2967_v31 = vadd.f32 %v3593_v29, %v2918_v15  ;;  %v3596_v32 = vadd.f32 %v3595_v45, %v3594_v30 }
 0x1eb   :  { %v2970_v33 = vadd.f32 %v3596_v32, %v2921_v17  ;;  %v2402_v17 = vadd.f32 %v5180_v61, %v484_v10 }
 0x1ed   :  { %v3597_v35 = vpop.f32.mrb[52].mxu1 }
 0x1ee   :  { %v3598_v36 = vpop.f32.mrb[53].mxu1 }
 0x1ef   :  { %v3599_v37 = vadd.f32 %v3598_v36, %v3597_v35  ;;  %v3600_v39 = vpop.f32.mrb[54].mxu1 }
 0x1f0   :  { %v3601_v40 = vpop.f32.mrb[55].mxu1 }
 0x1f1   :  { %v2975_v41 = vadd.f32 %v3599_v37, %v2926_v25  ;;  %v3602_v43 = vadd.f32 %v3601_v40, %v3600_v39 }
 0x1f3   :  { %v2978_v44 = vadd.f32 %v3602_v43, %v2929_v26 }
 0x205   :  { %v3619_v50 = vpop.f32.mrb[56].mxu1 }
 0x206   :  { %v3620_v53 = vpop.f32.mrb[57].mxu1 }
 0x207   :  { %v3621_v56 = vadd.f32 %v3620_v53, %v3619_v50  ;;  %v3622_v58 = vpop.f32.mrb[58].mxu1 }
 0x208   :  { %v3623_v19 = vpop.f32.mrb[59].mxu1 }
 0x209   :  { %v3624_v59 = vadd.f32 %v3623_v19, %v3622_v58  ;;  %v5380_v42 = vadd.f32 %v3621_v56, %v2967_v31  ;;  %v2416_v31 = vadd.f32 %v5228_v14, %v484_v10 }
 0x20b   :  { %v5382_v46 = vadd.f32 %v3624_v59, %v2970_v33 }
 0x20d   :  { %v3625_v55 = vpop.f32.mrb[60].mxu1 }
 0x20e   :  { %v3626_v1 = vpop.f32.mrb[61].mxu1 }
 0x20f   :  { %v3627_v2 = vadd.f32 %v3626_v1, %v3625_v55  ;;  %v3628_v3 = vpop.f32.mrb[62].mxu1 }
 0x210   :  { %v3629_v9 = vpop.f32.mrb[63].mxu1 }
 0x211   :  { %v3630_v12 = vadd.f32 %v3629_v9, %v3628_v3  ;;  %v3024_v13 = vadd.f32 %v3627_v2, %v2975_v41 }
 0x213   :  { %v5388_v15 = vadd.f32 %v3630_v12, %v2978_v44 }
 0x216   :  { %v2664_v5 = vpop.f32.mrb[0].mxu0 }
 0x217   :  { %v3632_v23 = vadd.f32 %v2664_v5, %v2400_v16  ;;  %v2666_v34 = vpop.f32.mrb[1].mxu0 }
 0x218   :  { %v3635_v49 = vadd.f32 %v2666_v34, %v2402_v17  ;;  %v2668_v25 = vpop.f32.mrb[2].mxu0 }
 0x219   :  { %v3633_v38 = vadd.f32 %v3632_v23, %v5321_v47  ;;  %v3638_v22 = vadd.f32 %v2668_v25, %v2404_v20  ;;  %v2670_v26 = vpop.f32.mrb[3].mxu0  ;;  %v2412_v47 = vadd.f32 %v5212_v8, %v484_v10 }
 0x21a   :  { %v3636_v27 = vadd.f32 %v3635_v49, %v5323_v4  ;;  %v3641_v28 = vadd.f32 %v2670_v26, %v2406_v24 }
 0x21b   :  { %v3079_v29 = vmax.f32 %v3633_v38, 0.0  ;;  %v3639_v60 = vadd.f32 %v3638_v22, %v5325_v48  ;;  %v2414_v48 = vadd.f32 %v5220_v11, %v480_v6 }
 0x21c   :  { %v3080_v61 = vmax.f32 %v3636_v27, 0.0  ;;  %v3642_v30 = vadd.f32 %v3641_v28, %v5330_v52 }
 0x21d   :  { %3091 = vst [vmem:[%s5452_s3] sm:$0xff] %v3079_v29  ;;  %v3082_v63 = vmax.f32 %v3639_v60, 0.0 }
 0x21e   :  { %3092 = vst [vmem:[%s5452_s3 + $0x8] sm:$0xff] %v3080_v61  ;;  %v3083_v4 = vmax.f32 %v3642_v30, 0.0  ;;  %v2674_v45 = vpop.f32.mrb[4].mxu0 }
 0x21f   :  { %3094 = vst [vmem:[%s5452_s3 + $0x18] sm:$0xff] %v3082_v63  ;;  %v3644_v7 = vadd.f32 %v2674_v45, %v2410_v51  ;;  %v2676_v52 = vpop.f32.mrb[5].mxu0 }
 0x220   :  { %3095 = vst [vmem:[%s5452_s3 + $0x20] sm:$0xff] %v3083_v4  ;;  %v3647_v8 = vadd.f32 %v2676_v52, %v2412_v47  ;;  %v2678_v32 = vpop.f32.mrb[6].mxu0 }
 0x221   :  { %v3645_v33 = vadd.f32 %v3644_v7, %v5337_v54  ;;  %v3650_v35 = vadd.f32 %v2678_v32, %v2414_v48  ;;  %v2680_v36 = vpop.f32.mrb[7].mxu0 }
 0x222   :  { %v3648_v11 = vadd.f32 %v3647_v8, %v5339_v18  ;;  %v3653_v37 = vadd.f32 %v2680_v36, %v2416_v31 }
 0x223   :  { %v3085_v39 = vmax.f32 %v3645_v33, 0.0  ;;  %v3651_v40 = vadd.f32 %v3650_v35, %v5344_v57 }
 0x224   :  { %v3086_v41 = vmax.f32 %v3648_v11, 0.0  ;;  %v3654_v43 = vadd.f32 %v3653_v37, %v5347_v21 }
 0x225   :  { %3097 = vst [vmem:[%s5452_s3 + $0x30] sm:$0xff] %v3085_v39  ;;  %v3088_v14 = vmax.f32 %v3651_v40, 0.0 }
 0x226   :  { %3098 = vst [vmem:[%s5452_s3 + $0x38] sm:$0xff] %v3086_v41  ;;  %v3089_v54 = vmax.f32 %v3654_v43, 0.0 }
 0x227   :  { %3100 = vst [vmem:[%s5452_s3 + $0x48] sm:$0xff] %v3088_v14 }
 0x228   :  { %3101 = vst [vmem:[%s5452_s3 + $0x50] sm:$0xff] %v3089_v54 }
 0x235   :  { %v3064_v18 = vpop.f32.mrb[64].mxu1 }
 0x236   :  { %v3065_v57 = vadd.f32 %v3064_v18, %v5380_v42  ;;  %v3066_v21 = vpop.f32.mrb[65].mxu1 }
 0x237   :  { %v3067_v44 = vpop.f32.mrb[66].mxu1 }
 0x238   :  { %v3081_v50 = vmax.f32 %v3065_v57, 0.0  ;;  %v3068_v53 = vadd.f32 %v3067_v44, %v5382_v46  ;;  %v3069_v56 = vpop.f32.mrb[67].mxu1 }
 0x23a   :  { %3093 = vst.msk [vmem:[%s5452_s3 + $0x10] sm:$0xff] %vm2358_vm0, %v3081_v50  ;;  %v3084_v58 = vmax.f32 %v3068_v53, 0.0 }
 0x23c   :  { %3096 = vst.msk [vmem:[%s5452_s3 + $0x28] sm:$0xff] %vm2358_vm0, %v3084_v58 }
 0x23d   :  { %v3072_v19 = vpop.f32.mrb[68].mxu1 }
 0x23e   :  { %v3073_v59 = vadd.f32 %v3072_v19, %v3024_v13  ;;  %v3074_v42 = vpop.f32.mrb[69].mxu1 }
 0x23f   :  { %v3075_v62 = vpop.f32.mrb[70].mxu1 }
 0x240   :  { %v3087_v0 = vmax.f32 %v3073_v59, 0.0  ;;  %v3076_v55 = vadd.f32 %v3075_v62, %v5388_v15  ;;  %v3077_v46 = vpop.f32.mrb[71].mxu1 }
 0x242   :  { %3099 = vst.msk [vmem:[%s5452_s3 + $0x40] sm:$0xff] %vm2358_vm0, %v3087_v0  ;;  %v3090_v1 = vmax.f32 %v3076_v55, 0.0 }
 0x244   :  { %3102 = vst.msk [vmem:[%s5452_s3 + $0x58] sm:$0xff] %vm2358_vm0, %v3090_v1 }

</bundles_post_ra>
